<compile_context>
chip_gen: v6e
topology: v6e:2x2x1
jax: 0.10.0
libtpu: 0.0.40
codegen_flags: <defaults>
</compile_context>

<pallas_src>
import math
import functools

import numpy as np
import jax
import jax.numpy as jnp
from jax import lax
from jax.experimental import pallas as pl
from jax.experimental.pallas import tpu as pltpu

LN_EPS = 1e-5


# ----------------------------- shared helpers ------------------------------
def _layernorm(x, g, b):
    mu = jnp.mean(x, axis=-1, keepdims=True)
    xc = x - mu
    var = jnp.mean(xc * xc, axis=-1, keepdims=True)
    return xc * lax.rsqrt(var + LN_EPS) * g + b


def _erf(x):
    # Abramowitz & Stegun 7.1.26 rational approximation (f32-accurate);
    # avoids relying on an erf lowering in Mosaic.
    a1, a2, a3, a4, a5 = (0.254829592, -0.284496736, 1.421413741,
                          -1.453152027, 1.061405429)
    p = 0.3275911
    s = jnp.where(x >= 0.0, 1.0, -1.0)
    ax = jnp.abs(x)
    t = 1.0 / (1.0 + p * ax)
    y = 1.0 - (((((a5 * t + a4) * t + a3) * t + a2) * t + a1) * t) * jnp.exp(-ax * ax)
    return s * y


def _gelu_exact(x):
    # nn.GELU default (approximate='none')
    return 0.5 * x * (1.0 + _erf(x * (1.0 / math.sqrt(2.0))))


def _bilinear_matrix(ix, iy, w_row, cols, H, W):
    """(rows, H*W) sampling matrix reproducing F.grid_sample (bilinear,
    padding_mode='zeros', align_corners=True).  ix indexes W (grid x), iy
    indexes H (grid y).  Each row is pre-scaled by `w_row` (rows, 1).

    Only the (ix0, iy0) corner needs a full-width compare/select; the other
    three corners are the same one-hot rolled by +1 / +W / +W+1 along the
    lane axis (XLU).  Wrap-around rows are harmless: their per-corner
    validity weight is zero, and whenever a row has non-zero weight its base
    corner index is a valid flat column (normalized coords >= 0 ==> ix0,
    iy0 >= 0; all-corners-invalid rows are zero-weighted anyway).
    """
    ix0 = jnp.floor(ix)
    iy0 = jnp.floor(iy)
    ix1 = ix0 + 1.0
    iy1 = iy0 + 1.0
    wx1 = ix - ix0
    wx0 = 1.0 - wx1
    wy1 = iy - iy0
    wy0 = 1.0 - wy1
    vx0 = (ix0 >= 0.0) & (ix0 <= W - 1.0)
    vx1 = (ix1 >= 0.0) & (ix1 <= W - 1.0)
    vy0 = (iy0 >= 0.0) & (iy0 <= H - 1.0)
    vy1 = (iy1 >= 0.0) & (iy1 <= H - 1.0)
    wrx0 = w_row * wx0                                  # (rows, 1) — cheap
    wrx1 = w_row * wx1
    w00 = jnp.where(vx0 & vy0, wrx0 * wy0, 0.0)
    w10 = jnp.where(vx1 & vy0, wrx1 * wy0, 0.0)
    w01 = jnp.where(vx0 & vy1, wrx0 * wy1, 0.0)
    w11 = jnp.where(vx1 & vy1, wrx1 * wy1, 0.0)

    flat0 = (iy0 * float(W) + ix0).astype(jnp.int32)    # (rows, 1)
    base = jnp.where(cols == flat0, 1.0, 0.0)           # (rows, HW): 1 cmp + 1 sel
    S = w00 * base
    S = S + w10 * pltpu.roll(base, shift=1, axis=1)
    S = S + w01 * pltpu.roll(base, shift=W, axis=1)
    S = S + w11 * pltpu.roll(base, shift=W + 1, axis=1)
    return S


def _make_masks(K, E, n_heads, n_points):
    """Constant selection/aggregation masks, built host-side (no in-kernel
    integer div/mod needed).  Row index convention: r = k*HPN + j, j = h*P+p."""
    HPN = n_heads * n_points
    hd = E // n_heads
    R = K * HPN
    j = np.arange(HPN)
    r = np.arange(R)
    m_head = (j[:, None] // n_points == j[None, :] // n_points).astype(np.float32)
    A = ((r // HPN)[:, None] == np.arange(K)[None, :]).astype(np.float32)      # (R, K)
    Jsel = ((r % HPN)[:, None] == j[None, :]).astype(np.float32)               # (R, HPN)
    G = (np.arange(K)[:, None] == (r // HPN)[None, :]).astype(np.float32)      # (K, R)
    head_sel = (((r % HPN) // n_points)[:, None]
                == (np.arange(E) // hd)[None, :]).astype(np.float32)           # (R, E)
    return (jnp.asarray(m_head), jnp.asarray(A), jnp.asarray(Jsel),
            jnp.asarray(G), jnp.asarray(head_sel))


# --------------------------- fused Block kernel ----------------------------
def _block_kernel(*refs, cam_hw, n_heads, n_points):
    n_cam = len(cam_hw)
    o_ref = refs[-1]
    query_ref, points_ref = refs[0], refs[1]
    feat_refs = refs[2:2 + n_cam]
    cam_refs = refs[2 + n_cam:2 + 3 * n_cam]
    (png_ref, pnb_ref,
     wsa_ref, bsa_ref, wcomb_ref, bcomb_ref,
     mlg_ref, mlb_ref, w1_ref, b1_ref, w2_ref, b2_ref,
     mh_ref, a_ref, jsel_ref, g_ref, hsel_ref) = refs[2 + 3 * n_cam:-1]

    q = query_ref[0]                    # (K, E)
    pts = points_ref[0]                 # (K, 3)
    K, E = q.shape
    HPN = n_heads * n_points
    R = K * HPN

    # proj_attn_norm(query) — shared by all cameras.
    qn = _layernorm(q, png_ref[...], pnb_ref[...])

    # Camera-invariant iotas, hoisted: JAX does not CSE broadcast_in_dim, and
    # the camera loop below is a static Python unroll.
    cols_by_hw = {}
    for (H, W) in cam_hw:
        HW = H * W
        if HW not in cols_by_hw:
            cols_by_hw[HW] = (lax.broadcasted_iota(jnp.int32, (K, HW), 1),
                              lax.broadcasted_iota(jnp.int32, (R, HW), 1))

    # proj(concat_c out_c) with output_proj folded in (host-side precompute):
    #   x = sum_c weighted_c @ wcomb[c] + bcomb
    proj_acc = jnp.zeros((K, E), jnp.float32) + bcomb_ref[...]

    # TODO(synk): for production feature-map sizes, make cameras a second grid
    # axis ("arbitrary") with proj_acc as a VMEM scratch accumulator so only
    # one camera's (E, HW) slab is resident/double-buffered at a time (v7x has
    # 64 MiB VMEM), and set vmem_limit_bytes explicitly.
    for c in range(n_cam):
        H, W = cam_hw[c]
        HW = H * W
        cols_c, cols_p = cols_by_hw[HW]
        feat = feat_refs[c][0]          # (E, HW) channels-major (lane-dense HW)
        M = cam_refs[2 * c][...]        # (3, 2)
        t = cam_refs[2 * c + 1][...]    # (1, 2)

        # TODO(synk): utils.Camera is undefined in the reference; deterministic
        # affine pinhole stand-in  pixel = points @ M + t (element-wise form).
        pc = (pts[:, 0:1] * M[0:1, :] + pts[:, 1:2] * M[1:2, :]
              + pts[:, 2:3] * M[2:3, :] + t)                 # (K, 2)
        p0 = pc[:, 0:1]
        p1 = pc[:, 1:2]

        # ---- DeformaleMHA._project: full-channel sample at the projected
        # point (normalization / bounding mirror the reference exactly,
        # including its H/W mix-up quirks).
        n0 = 2.0 * p0 / (H - 1.0) - 1.0
        n1 = 2.0 * p1 / (W - 1.0) - 1.0
        bnd_c = jnp.where((n0 >= 0.0) & (n0 <= float(H)) &
                          (n1 >= 0.0) & (n1 <= float(W)), 1.0, 0.0)
        ix_c = (n0 + 1.0) * 0.5 * (W - 1.0)      # grid x -> width
        iy_c = (n1 + 1.0) * 0.5 * (H - 1.0)      # grid y -> height
        Sc = _bilinear_matrix(ix_c, iy_c, bnd_c, cols_c, H, W)          # (K, HW)
        center = lax.dot_general(Sc.astype(feat.dtype), feat,
                                 (((1,), (1,)), ((), ())),
                                 preferred_element_type=jnp.float32)    # (K, E)
        _query = center + qn

        # Fused sampling_offsets || attention_weights matmul (one MXU push);
        # offset columns are pre-permuted host-side to [x-block | y-block].
        so_aw = (jnp.dot(_query, wsa_ref[...], preferred_element_type=jnp.float32)
                 + bsa_ref[...])                                        # (K, 3*HPN)
        offs = so_aw[:, :2 * HPN]
        logits = so_aw[:, 2 * HPN:]
        lmax = jnp.max(logits, axis=-1, keepdims=True)
        ee = jnp.exp(logits - lmax)
        denom = jnp.dot(ee, mh_ref[...], preferred_element_type=jnp.float32)
        attn = ee / denom               # exact per-head softmax over points

        ox = offs[:, :HPN]
        oy = offs[:, HPN:]
        c0 = p0 + ox / H                                                # (K, HPN)
        c1 = p1 + oy / W
        m0 = 2.0 * (c0 / (H - 1.0)) - 1.0
        m1 = 2.0 * (c1 / (W - 1.0)) - 1.0
        bnd = jnp.where((m0 >= 0.0) & (m0 <= float(H)) &
                        (m1 >= 0.0) & (m1 <= float(W)), 1.0, 0.0)
        ixp = (m0 + 1.0) * 0.5 * (W - 1.0)
        iyp = (m1 + 1.0) * 0.5 * (H - 1.0)
        w_row = attn * bnd

        # Fused (K, HPN) -> (R, 1) row-major flatten of ixp/iyp/w_row:
        # one A-matmul + three masked lane reductions.
        stacked = jnp.concatenate([ixp, iyp, w_row], axis=1)            # (K, 3*HPN)
        rowsv = jnp.dot(a_ref[...], stacked,
                        preferred_element_type=jnp.float32)             # (R, 3*HPN)
        jsel = jsel_ref[...]
        ix_f = jnp.sum(rowsv[:, :HPN] * jsel, axis=1, keepdims=True)
        iy_f = jnp.sum(rowsv[:, HPN:2 * HPN] * jsel, axis=1, keepdims=True)
        w_f = jnp.sum(rowsv[:, 2 * HPN:] * jsel, axis=1, keepdims=True)

        # One batched sampling matrix for ALL heads x points (row = k*HPN + j),
        # attention weight * bounding folded into the rows, one MXU contraction
        # against the full-channel feature slab.
        Sp = _bilinear_matrix(ix_f, iy_f, w_f, cols_p, H, W)            # (R, HW)
        sampled = lax.dot_general(Sp.astype(feat.dtype), feat,
                                  (((1,), (1,)), ((), ())),
                                  preferred_element_type=jnp.float32)   # (R, E)
        weighted = jnp.dot(g_ref[...], sampled * hsel_ref[...],
                           preferred_element_type=jnp.float32)          # (K, E)
        # output_proj + per-camera proj block pre-folded into wcomb[c].
        proj_acc = proj_acc + jnp.dot(weighted, wcomb_ref[c],
                                      preferred_element_type=jnp.float32)

    # x = query + proj_attn(proj_attn_norm(query), points, value)
    x = q + proj_acc
    # x = x + mlp(mlp_norm(x))
    xn = _layernorm(x, mlg_ref[...], mlb_ref[...])
    h = jnp.dot(xn, w1_ref[...], preferred_element_type=jnp.float32) + b1_ref[...]
    h = _gelu_exact(h)
    y = jnp.dot(h, w2_ref[...], preferred_element_type=jnp.float32) + b2_ref[...]
    o_ref[0] = x + y


# ------------------------------ Block forward ------------------------------
def block_forward(query, point_emb, points, feature_dict, p,
                  *, feature_dtype=jnp.bfloat16):
    # NOTE: the reference forward computes an nn.MultiheadAttention branch
    # from (query + point_emb) and immediately discards it, so `point_emb`
    # never influences the output — the dead branch is omitted entirely.
    del point_emb
    B, K, E = query.shape
    cam_keys = p["camera_keys"]
    n_cam = len(cam_keys)

    cam_hw = []
    feats = []
    for cam in cam_keys:
        feat = feature_dict[cam]                       # (B, E, H, W) NCHW
        Hc, Wc = feat.shape[-2], feat.shape[-1]
        cam_hw.append((Hc, Wc))
        # channels-major, free reshape; bf16 halves HBM/VMEM traffic and is
        # MXU-native (accumulation stays f32).  Pass feature_dtype=jnp.float32
        # for exact-f32 sampling.
        feats.append(feat.reshape(B, E, Hc * Wc).astype(feature_dtype))

    cam_params = []
    for cam in cam_keys:
        M, t = p["cameras"][cam]
        cam_params += [M, t]

    # ---- host-side weight fusions (parameter plumbing only) ----
    # sampling_offsets || attention_weights -> one (E, 3*HPN) matmul.
    wsa = jnp.concatenate([p["wso_t"], p["waw_t"]], axis=1)
    bsa = jnp.concatenate([p["bso"], p["baw"]], axis=1)
    # output_proj folded into the per-camera block of proj:
    #   (x @ wop_t + bop) @ wproj_c == x @ (wop_t @ wproj_c) + bop @ wproj_c
    wcomb_blocks = []
    bcomb = p["bproj"]
    for c in range(n_cam):
        wproj_c = p["wproj_t"][c * E:(c + 1) * E, :]
        wcomb_blocks.append(p["wop_t"] @ wproj_c)
        bcomb = bcomb + p["bop"] @ wproj_c
    wcomb = jnp.stack(wcomb_blocks, axis=0)            # (n_cam, E, E)

    weights = [p["proj_attn_norm_g"], p["proj_attn_norm_b"],
               wsa, bsa, wcomb, bcomb,
               p["mlp_norm_g"], p["mlp_norm_b"],
               p["w1_t"], p["b1"], p["w2_t"], p["b2"]]
    masks = list(_make_masks(K, E, p["n_heads"], p["n_points"]))

    args = [query, points] + feats + cam_params + weights + masks

    def _const_spec(arr):
        nd = arr.ndim
        return pl.BlockSpec(arr.shape, lambda i: (0,) * nd)

    in_specs = [pl.BlockSpec((1, K, E), lambda i: (i, 0, 0)),
                pl.BlockSpec((1, K, 3), lambda i: (i, 0, 0))]
    for (Hc, Wc) in cam_hw:
        in_specs.append(pl.BlockSpec((1, E, Hc * Wc), lambda i: (i, 0, 0)))
    for a in cam_params + weights + masks:
        in_specs.append(_const_spec(a))

    kern = functools.partial(_block_kernel, cam_hw=tuple(cam_hw),
                             n_heads=p["n_heads"], n_points=p["n_points"])

    # TODO(synk): with B==1 on v7x, make cameras (or query tiles) the parallel
    # grid axis instead so the second TensorCore gets work.
    return pl.pallas_call(
        kern,
        out_shape=jax.ShapeDtypeStruct((B, K, E), jnp.float32),
        grid=(B,),
        in_specs=in_specs,
        out_specs=pl.BlockSpec((1, K, E), lambda i: (i, 0, 0)),
        compiler_params=pltpu.CompilerParams(
            # batch steps are independent: "parallel" lets v7x split them
            # across its two TensorCores; no-op on v5e/v6e.
            dimension_semantics=("parallel",)),
    )(*args)


# ------------------------------ parameter init -----------------------------
def make_params(key, E, n_heads, n_points, camera_keys, H, W):
    n_cameras = len(camera_keys)
    ks = jax.random.split(key, 12)

    def nrm(k, shape, s=0.05):
        return s * jax.random.normal(k, shape, jnp.float32)

    ones = jnp.ones((1, E), jnp.float32)     # LayerNorm default weight
    zeros = jnp.zeros((1, E), jnp.float32)   # LayerNorm default bias
    HPN = n_heads * n_points

    # DeformaleMHA params
    wso = nrm(ks[0], (2 * HPN, E), 0.02)                   # sampling_offsets.weight
    thetas = jnp.arange(n_heads, dtype=jnp.float32) * (2.0 * math.pi / n_heads)
    grid_init = jnp.stack([jnp.cos(thetas), jnp.sin(thetas)], axis=-1)
    grid_init = grid_init / jnp.max(jnp.abs(grid_init), axis=-1, keepdims=True)
    grid_init = jnp.tile(grid_init[:, None, :], (1, n_points, 1))
    grid_init = grid_init * jnp.arange(1, n_points + 1, dtype=jnp.float32)[None, :, None]
    bso_torch = grid_init.reshape(-1)                      # sampling_offsets.bias (h,p,c)
    waw = nrm(ks[1], (HPN, E), 0.02)                       # attention_weights
    baw = nrm(ks[2], (HPN,), 0.02)
    wop = nrm(ks[3], (E, E), 0.1)                          # output_proj
    bop = nrm(ks[4], (E,), 0.02)
    wproj = nrm(ks[5], (E, n_cameras * E), 0.1)            # proj
    bproj = nrm(ks[6], (E,), 0.02)

    # torchvision-style MLP(E, [2E, E]) : Linear(E,2E), GELU, Linear(2E,E)
    w1 = nrm(ks[7], (2 * E, E), 0.1)
    b1 = nrm(ks[8], (2 * E,), 0.02)
    w2 = nrm(ks[9], (E, 2 * E), 0.1)
    b2 = nrm(ks[10], (E,), 0.02)

    # Re-layout sampling_offsets columns from PyTorch's (h, p, xy) interleave
    # to [x-block | y-block], each (h, p) row-major (parameter plumbing only).
    perm = jnp.array([h * n_points * 2 + q * 2 + c
                      for c in range(2)
                      for h in range(n_heads)
                      for q in range(n_points)], dtype=jnp.int32)
    wso_t = jnp.take(wso.T, perm, axis=1)
    bso = jnp.take(bso_torch, perm)[None, :]

    # TODO(synk): utils.Camera is not defined in the reference; use a
    # deterministic affine pinhole stand-in  pixel = points @ M + t.
    cameras = {}
    for i, cam in enumerate(camera_keys):
        M = jnp.array([[(H - 1) * 0.45, 0.4 * i],
                       [-0.4 * i, (W - 1) * 0.45],
                       [1.0 + 0.5 * i, -1.0 + 0.5 * i]], jnp.float32)
        t = jnp.array([[(H - 1) * 0.5, (W - 1) * 0.5]], jnp.float32)
        cameras[cam] = (M, t)

    return dict(
        n_heads=n_heads, n_points=n_points,
        camera_keys=camera_keys, cameras=cameras,
        proj_attn_norm_g=ones, proj_attn_norm_b=zeros,
        mlp_norm_g=ones, mlp_norm_b=zeros,
        wso_t=wso_t, bso=bso, waw_t=waw.T, baw=baw[None, :],
        wop_t=wop.T, bop=bop[None, :],
        wproj_t=wproj.T, bproj=bproj[None, :],
        w1_t=w1.T, b1=b1[None, :], w2_t=w2.T, b2=b2[None, :],
    )


# ----------------------------------- main -----------------------------------
if __name__ == "__main__":
    B, K, E = 2, 8, 32
    n_heads, n_points = 4, 4
    H = W = 16
    camera_keys = ("cam_front", "cam_left")

    key = jax.random.PRNGKey(0)
    k_q, k_pe, k_pts, k_f1, k_f2, k_par = jax.random.split(key, 6)

    query = jax.random.normal(k_q, (B, K, E), jnp.float32)
    point_emb = jax.random.normal(k_pe, (B, K, E), jnp.float32)
    points = jax.random.uniform(k_pts, (B, K, 3), jnp.float32, minval=-1.0, maxval=1.0)
    feature_dict = {
        camera_keys[0]: 0.5 * jax.random.normal(k_f1, (B, E, H, W), jnp.float32),
        camera_keys[1]: 0.5 * jax.random.normal(k_f2, (B, E, H, W), jnp.float32),
    }

    params = make_params(k_par, E, n_heads, n_points, camera_keys, H, W)

    out = block_forward(query, point_emb, points, feature_dict, params)
    out = jax.block_until_ready(out)
    assert out.shape == (B, K, E)
    print("KERNEL_OK")
</pallas_src>

<mosaic_0001>
module attributes {stable_mosaic.version = 11 : i64} {
  func.func @_block_kernel(%arg0: i32, %arg1: memref<1x8x32xf32, #tpu.memory_space<vmem>>, %arg2: memref<1x8x3xf32, #tpu.memory_space<vmem>>, %arg3: memref<1x32x256xbf16, #tpu.memory_space<vmem>>, %arg4: memref<1x32x256xbf16, #tpu.memory_space<vmem>>, %arg5: memref<3x2xf32, #tpu.memory_space<vmem>>, %arg6: memref<1x2xf32, #tpu.memory_space<vmem>>, %arg7: memref<3x2xf32, #tpu.memory_space<vmem>>, %arg8: memref<1x2xf32, #tpu.memory_space<vmem>>, %arg9: memref<1x32xf32, #tpu.memory_space<vmem>>, %arg10: memref<1x32xf32, #tpu.memory_space<vmem>>, %arg11: memref<32x48xf32, #tpu.memory_space<vmem>>, %arg12: memref<1x48xf32, #tpu.memory_space<vmem>>, %arg13: memref<2x32x32xf32, #tpu.memory_space<vmem>>, %arg14: memref<1x32xf32, #tpu.memory_space<vmem>>, %arg15: memref<1x32xf32, #tpu.memory_space<vmem>>, %arg16: memref<1x32xf32, #tpu.memory_space<vmem>>, %arg17: memref<32x64xf32, #tpu.memory_space<vmem>>, %arg18: memref<1x64xf32, #tpu.memory_space<vmem>>, %arg19: memref<64x32xf32, #tpu.memory_space<vmem>>, %arg20: memref<1x32xf32, #tpu.memory_space<vmem>>, %arg21: memref<16x16xf32, #tpu.memory_space<vmem>>, %arg22: memref<128x8xf32, #tpu.memory_space<vmem>>, %arg23: memref<128x16xf32, #tpu.memory_space<vmem>>, %arg24: memref<8x128xf32, #tpu.memory_space<vmem>>, %arg25: memref<128x32xf32, #tpu.memory_space<vmem>>, %arg26: memref<1x8x32xf32, #tpu.memory_space<vmem>>) attributes {dimension_semantics = [#tpu.dimension_semantics<parallel>], iteration_bounds = array<i64: 2>, scalar_prefetch = 0 : i64, scratch_operands = 0 : i64, tpu.core_type = #tpu.core_type<tc>, window_params = [{transform_indices = @transform_0, window_bounds = array<i64: 1, 8, 32>}, {transform_indices = @transform_1, window_bounds = array<i64: 1, 8, 3>}, {transform_indices = @transform_2, window_bounds = array<i64: 1, 32, 256>}, {transform_indices = @transform_3, window_bounds = array<i64: 1, 32, 256>}, {pipeline_mode = #tpu.pipeline_mode<synchronous>, transform_indices = @transform_4, window_bounds = array<i64: 3, 2>}, {pipeline_mode = #tpu.pipeline_mode<synchronous>, transform_indices = @transform_5, window_bounds = array<i64: 1, 2>}, {pipeline_mode = #tpu.pipeline_mode<synchronous>, transform_indices = @transform_6, window_bounds = array<i64: 3, 2>}, {pipeline_mode = #tpu.pipeline_mode<synchronous>, transform_indices = @transform_7, window_bounds = array<i64: 1, 2>}, {pipeline_mode = #tpu.pipeline_mode<synchronous>, transform_indices = @transform_8, window_bounds = array<i64: 1, 32>}, {pipeline_mode = #tpu.pipeline_mode<synchronous>, transform_indices = @transform_9, window_bounds = array<i64: 1, 32>}, {pipeline_mode = #tpu.pipeline_mode<synchronous>, transform_indices = @transform_10, window_bounds = array<i64: 32, 48>}, {pipeline_mode = #tpu.pipeline_mode<synchronous>, transform_indices = @transform_11, window_bounds = array<i64: 1, 48>}, {pipeline_mode = #tpu.pipeline_mode<synchronous>, transform_indices = @transform_12, window_bounds = array<i64: 2, 32, 32>}, {pipeline_mode = #tpu.pipeline_mode<synchronous>, transform_indices = @transform_13, window_bounds = array<i64: 1, 32>}, {pipeline_mode = #tpu.pipeline_mode<synchronous>, transform_indices = @transform_14, window_bounds = array<i64: 1, 32>}, {pipeline_mode = #tpu.pipeline_mode<synchronous>, transform_indices = @transform_15, window_bounds = array<i64: 1, 32>}, {pipeline_mode = #tpu.pipeline_mode<synchronous>, transform_indices = @transform_16, window_bounds = array<i64: 32, 64>}, {pipeline_mode = #tpu.pipeline_mode<synchronous>, transform_indices = @transform_17, window_bounds = array<i64: 1, 64>}, {pipeline_mode = #tpu.pipeline_mode<synchronous>, transform_indices = @transform_18, window_bounds = array<i64: 64, 32>}, {pipeline_mode = #tpu.pipeline_mode<synchronous>, transform_indices = @transform_19, window_bounds = array<i64: 1, 32>}, {pipeline_mode = #tpu.pipeline_mode<synchronous>, transform_indices = @transform_20, window_bounds = array<i64: 16, 16>}, {pipeline_mode = #tpu.pipeline_mode<synchronous>, transform_indices = @transform_21, window_bounds = array<i64: 128, 8>}, {pipeline_mode = #tpu.pipeline_mode<synchronous>, transform_indices = @transform_22, window_bounds = array<i64: 128, 16>}, {pipeline_mode = #tpu.pipeline_mode<synchronous>, transform_indices = @transform_23, window_bounds = array<i64: 8, 128>}, {pipeline_mode = #tpu.pipeline_mode<synchronous>, transform_indices = @transform_24, window_bounds = array<i64: 128, 32>}, {transform_indices = @transform_25, window_bounds = array<i64: 1, 8, 32>}]} {
    %c0 = arith.constant 0 : index
    %c0_0 = arith.constant 0 : index
    %c0_1 = arith.constant 0 : index
    %0 = vector.load %arg1[%c0, %c0_0, %c0_1] : memref<1x8x32xf32, #tpu.memory_space<vmem>>, vector<1x8x32xf32>
    %1 = vector.shape_cast %0 : vector<1x8x32xf32> to vector<8x32xf32>
    %c0_2 = arith.constant 0 : index
    %c0_3 = arith.constant 0 : index
    %c0_4 = arith.constant 0 : index
    %2 = vector.load %arg2[%c0_2, %c0_3, %c0_4] : memref<1x8x3xf32, #tpu.memory_space<vmem>>, vector<1x8x3xf32>
    %3 = vector.shape_cast %2 : vector<1x8x3xf32> to vector<8x3xf32>
    %c0_5 = arith.constant 0 : index
    %c0_6 = arith.constant 0 : index
    %4 = vector.load %arg9[%c0_5, %c0_6] : memref<1x32xf32, #tpu.memory_space<vmem>>, vector<1x32xf32>
    %c0_7 = arith.constant 0 : index
    %c0_8 = arith.constant 0 : index
    %5 = vector.load %arg10[%c0_7, %c0_8] : memref<1x32xf32, #tpu.memory_space<vmem>>, vector<1x32xf32>
    %cst = arith.constant dense<0.000000e+00> : vector<8xf32>
    %6 = vector.multi_reduction <add>, %1, %cst [1] : vector<8x32xf32> to vector<8xf32>
    %7 = vector.shape_cast %6 : vector<8xf32> to vector<8x1xf32>
    %cst_9 = arith.constant 3.200000e+01 : f32
    %8 = vector.broadcast %cst_9 : f32 to vector<8x1xf32>
    %9 = arith.divf %7, %8 : vector<8x1xf32>
    %10 = vector.broadcast %9 : vector<8x1xf32> to vector<8x32xf32>
    %11 = arith.subf %1, %10 : vector<8x32xf32>
    %12 = arith.mulf %11, %11 : vector<8x32xf32>
    %cst_10 = arith.constant dense<0.000000e+00> : vector<8xf32>
    %13 = vector.multi_reduction <add>, %12, %cst_10 [1] : vector<8x32xf32> to vector<8xf32>
    %14 = vector.shape_cast %13 : vector<8xf32> to vector<8x1xf32>
    %cst_11 = arith.constant 3.200000e+01 : f32
    %15 = vector.broadcast %cst_11 : f32 to vector<8x1xf32>
    %16 = arith.divf %14, %15 : vector<8x1xf32>
    %cst_12 = arith.constant 9.99999974E-6 : f32
    %17 = vector.broadcast %cst_12 : f32 to vector<8x1xf32>
    %18 = arith.addf %16, %17 : vector<8x1xf32>
    %19 = math.rsqrt %18 : vector<8x1xf32>
    %20 = vector.broadcast %19 : vector<8x1xf32> to vector<8x32xf32>
    %21 = arith.mulf %11, %20 : vector<8x32xf32>
    %22 = vector.broadcast %4 : vector<1x32xf32> to vector<8x32xf32>
    %23 = arith.mulf %21, %22 : vector<8x32xf32>
    %24 = vector.broadcast %5 : vector<1x32xf32> to vector<8x32xf32>
    %25 = arith.addf %23, %24 : vector<8x32xf32>
    %26 = tpu.iota {dimensions = array<i32: 1>} : vector<8x256xi32>
    %27 = tpu.iota {dimensions = array<i32: 1>} : vector<128x256xi32>
    %cst_13 = arith.constant 0.000000e+00 : f32
    %28 = vector.broadcast %cst_13 : f32 to vector<8x32xf32>
    %c0_14 = arith.constant 0 : index
    %c0_15 = arith.constant 0 : index
    %29 = vector.load %arg14[%c0_14, %c0_15] : memref<1x32xf32, #tpu.memory_space<vmem>>, vector<1x32xf32>
    %30 = vector.broadcast %29 : vector<1x32xf32> to vector<8x32xf32>
    %31 = arith.addf %28, %30 : vector<8x32xf32>
    %c0_16 = arith.constant 0 : index
    %c0_17 = arith.constant 0 : index
    %c0_18 = arith.constant 0 : index
    %32 = vector.load %arg3[%c0_16, %c0_17, %c0_18] : memref<1x32x256xbf16, #tpu.memory_space<vmem>>, vector<1x32x256xbf16>
    %33 = vector.shape_cast %32 : vector<1x32x256xbf16> to vector<32x256xbf16>
    %c0_19 = arith.constant 0 : index
    %c0_20 = arith.constant 0 : index
    %34 = vector.load %arg5[%c0_19, %c0_20] : memref<3x2xf32, #tpu.memory_space<vmem>>, vector<3x2xf32>
    %c0_21 = arith.constant 0 : index
    %c0_22 = arith.constant 0 : index
    %35 = vector.load %arg6[%c0_21, %c0_22] : memref<1x2xf32, #tpu.memory_space<vmem>>, vector<1x2xf32>
    %36 = vector.extract_strided_slice %3 {offsets = [0, 0], sizes = [8, 1], strides = [1, 1]} : vector<8x3xf32> to vector<8x1xf32>
    %37 = vector.extract_strided_slice %34 {offsets = [0, 0], sizes = [1, 2], strides = [1, 1]} : vector<3x2xf32> to vector<1x2xf32>
    %38 = vector.broadcast %36 : vector<8x1xf32> to vector<8x2xf32>
    %39 = vector.broadcast %37 : vector<1x2xf32> to vector<8x2xf32>
    %40 = arith.mulf %38, %39 : vector<8x2xf32>
    %41 = vector.extract_strided_slice %3 {offsets = [0, 1], sizes = [8, 1], strides = [1, 1]} : vector<8x3xf32> to vector<8x1xf32>
    %42 = vector.extract_strided_slice %34 {offsets = [1, 0], sizes = [1, 2], strides = [1, 1]} : vector<3x2xf32> to vector<1x2xf32>
    %43 = vector.broadcast %41 : vector<8x1xf32> to vector<8x2xf32>
    %44 = vector.broadcast %42 : vector<1x2xf32> to vector<8x2xf32>
    %45 = arith.mulf %43, %44 : vector<8x2xf32>
    %46 = arith.addf %40, %45 : vector<8x2xf32>
    %47 = vector.extract_strided_slice %3 {offsets = [0, 2], sizes = [8, 1], strides = [1, 1]} : vector<8x3xf32> to vector<8x1xf32>
    %48 = vector.extract_strided_slice %34 {offsets = [2, 0], sizes = [1, 2], strides = [1, 1]} : vector<3x2xf32> to vector<1x2xf32>
    %49 = vector.broadcast %47 : vector<8x1xf32> to vector<8x2xf32>
    %50 = vector.broadcast %48 : vector<1x2xf32> to vector<8x2xf32>
    %51 = arith.mulf %49, %50 : vector<8x2xf32>
    %52 = arith.addf %46, %51 : vector<8x2xf32>
    %53 = vector.broadcast %35 : vector<1x2xf32> to vector<8x2xf32>
    %54 = arith.addf %52, %53 : vector<8x2xf32>
    %55 = vector.extract_strided_slice %54 {offsets = [0, 0], sizes = [8, 1], strides = [1, 1]} : vector<8x2xf32> to vector<8x1xf32>
    %56 = vector.extract_strided_slice %54 {offsets = [0, 1], sizes = [8, 1], strides = [1, 1]} : vector<8x2xf32> to vector<8x1xf32>
    %cst_23 = arith.constant 2.000000e+00 : f32
    %57 = vector.broadcast %cst_23 : f32 to vector<8x1xf32>
    %58 = arith.mulf %57, %55 : vector<8x1xf32>
    %cst_24 = arith.constant 1.500000e+01 : f32
    %59 = vector.broadcast %cst_24 : f32 to vector<8x1xf32>
    %60 = arith.divf %58, %59 : vector<8x1xf32>
    %cst_25 = arith.constant 1.000000e+00 : f32
    %61 = vector.broadcast %cst_25 : f32 to vector<8x1xf32>
    %62 = arith.subf %60, %61 : vector<8x1xf32>
    %cst_26 = arith.constant 2.000000e+00 : f32
    %63 = vector.broadcast %cst_26 : f32 to vector<8x1xf32>
    %64 = arith.mulf %63, %56 : vector<8x1xf32>
    %cst_27 = arith.constant 1.500000e+01 : f32
    %65 = vector.broadcast %cst_27 : f32 to vector<8x1xf32>
    %66 = arith.divf %64, %65 : vector<8x1xf32>
    %cst_28 = arith.constant 1.000000e+00 : f32
    %67 = vector.broadcast %cst_28 : f32 to vector<8x1xf32>
    %68 = arith.subf %66, %67 : vector<8x1xf32>
    %cst_29 = arith.constant 0.000000e+00 : f32
    %69 = vector.broadcast %cst_29 : f32 to vector<8x1xf32>
    %70 = arith.cmpf oge, %62, %69 : vector<8x1xf32>
    %cst_30 = arith.constant 1.600000e+01 : f32
    %71 = vector.broadcast %cst_30 : f32 to vector<8x1xf32>
    %72 = arith.cmpf ole, %62, %71 : vector<8x1xf32>
    %73 = arith.andi %70, %72 : vector<8x1xi1>
    %cst_31 = arith.constant 0.000000e+00 : f32
    %74 = vector.broadcast %cst_31 : f32 to vector<8x1xf32>
    %75 = arith.cmpf oge, %68, %74 : vector<8x1xf32>
    %76 = arith.andi %73, %75 : vector<8x1xi1>
    %cst_32 = arith.constant 1.600000e+01 : f32
    %77 = vector.broadcast %cst_32 : f32 to vector<8x1xf32>
    %78 = arith.cmpf ole, %68, %77 : vector<8x1xf32>
    %79 = arith.andi %76, %78 : vector<8x1xi1>
    %cst_33 = arith.constant 1.000000e+00 : f32
    %cst_34 = arith.constant 0.000000e+00 : f32
    %80 = vector.broadcast %cst_33 : f32 to vector<8x1xf32>
    %81 = vector.broadcast %cst_34 : f32 to vector<8x1xf32>
    %82 = arith.select %79, %80, %81 : vector<8x1xi1>, vector<8x1xf32>
    %cst_35 = arith.constant 1.000000e+00 : f32
    %83 = vector.broadcast %cst_35 : f32 to vector<8x1xf32>
    %84 = arith.addf %62, %83 : vector<8x1xf32>
    %cst_36 = arith.constant 5.000000e-01 : f32
    %85 = vector.broadcast %cst_36 : f32 to vector<8x1xf32>
    %86 = arith.mulf %84, %85 : vector<8x1xf32>
    %cst_37 = arith.constant 1.500000e+01 : f32
    %87 = vector.broadcast %cst_37 : f32 to vector<8x1xf32>
    %88 = arith.mulf %86, %87 : vector<8x1xf32>
    %cst_38 = arith.constant 1.000000e+00 : f32
    %89 = vector.broadcast %cst_38 : f32 to vector<8x1xf32>
    %90 = arith.addf %68, %89 : vector<8x1xf32>
    %cst_39 = arith.constant 5.000000e-01 : f32
    %91 = vector.broadcast %cst_39 : f32 to vector<8x1xf32>
    %92 = arith.mulf %90, %91 : vector<8x1xf32>
    %cst_40 = arith.constant 1.500000e+01 : f32
    %93 = vector.broadcast %cst_40 : f32 to vector<8x1xf32>
    %94 = arith.mulf %92, %93 : vector<8x1xf32>
    %95 = math.floor %88 : vector<8x1xf32>
    %96 = math.floor %94 : vector<8x1xf32>
    %cst_41 = arith.constant 1.000000e+00 : f32
    %97 = vector.broadcast %cst_41 : f32 to vector<8x1xf32>
    %98 = arith.addf %95, %97 : vector<8x1xf32>
    %cst_42 = arith.constant 1.000000e+00 : f32
    %99 = vector.broadcast %cst_42 : f32 to vector<8x1xf32>
    %100 = arith.addf %96, %99 : vector<8x1xf32>
    %101 = arith.subf %88, %95 : vector<8x1xf32>
    %cst_43 = arith.constant 1.000000e+00 : f32
    %102 = vector.broadcast %cst_43 : f32 to vector<8x1xf32>
    %103 = arith.subf %102, %101 : vector<8x1xf32>
    %104 = arith.subf %94, %96 : vector<8x1xf32>
    %cst_44 = arith.constant 1.000000e+00 : f32
    %105 = vector.broadcast %cst_44 : f32 to vector<8x1xf32>
    %106 = arith.subf %105, %104 : vector<8x1xf32>
    %cst_45 = arith.constant 0.000000e+00 : f32
    %107 = vector.broadcast %cst_45 : f32 to vector<8x1xf32>
    %108 = arith.cmpf oge, %95, %107 : vector<8x1xf32>
    %cst_46 = arith.constant 1.500000e+01 : f32
    %109 = vector.broadcast %cst_46 : f32 to vector<8x1xf32>
    %110 = arith.cmpf ole, %95, %109 : vector<8x1xf32>
    %111 = arith.andi %108, %110 : vector<8x1xi1>
    %cst_47 = arith.constant 0.000000e+00 : f32
    %112 = vector.broadcast %cst_47 : f32 to vector<8x1xf32>
    %113 = arith.cmpf oge, %98, %112 : vector<8x1xf32>
    %cst_48 = arith.constant 1.500000e+01 : f32
    %114 = vector.broadcast %cst_48 : f32 to vector<8x1xf32>
    %115 = arith.cmpf ole, %98, %114 : vector<8x1xf32>
    %116 = arith.andi %113, %115 : vector<8x1xi1>
    %cst_49 = arith.constant 0.000000e+00 : f32
    %117 = vector.broadcast %cst_49 : f32 to vector<8x1xf32>
    %118 = arith.cmpf oge, %96, %117 : vector<8x1xf32>
    %cst_50 = arith.constant 1.500000e+01 : f32
    %119 = vector.broadcast %cst_50 : f32 to vector<8x1xf32>
    %120 = arith.cmpf ole, %96, %119 : vector<8x1xf32>
    %121 = arith.andi %118, %120 : vector<8x1xi1>
    %cst_51 = arith.constant 0.000000e+00 : f32
    %122 = vector.broadcast %cst_51 : f32 to vector<8x1xf32>
    %123 = arith.cmpf oge, %100, %122 : vector<8x1xf32>
    %cst_52 = arith.constant 1.500000e+01 : f32
    %124 = vector.broadcast %cst_52 : f32 to vector<8x1xf32>
    %125 = arith.cmpf ole, %100, %124 : vector<8x1xf32>
    %126 = arith.andi %123, %125 : vector<8x1xi1>
    %127 = arith.mulf %82, %103 : vector<8x1xf32>
    %128 = arith.mulf %82, %101 : vector<8x1xf32>
    %129 = arith.andi %111, %121 : vector<8x1xi1>
    %130 = arith.mulf %127, %106 : vector<8x1xf32>
    %cst_53 = arith.constant 0.000000e+00 : f32
    %131 = vector.broadcast %cst_53 : f32 to vector<8x1xf32>
    %132 = arith.select %129, %130, %131 : vector<8x1xi1>, vector<8x1xf32>
    %133 = arith.andi %116, %121 : vector<8x1xi1>
    %134 = arith.mulf %128, %106 : vector<8x1xf32>
    %cst_54 = arith.constant 0.000000e+00 : f32
    %135 = vector.broadcast %cst_54 : f32 to vector<8x1xf32>
    %136 = arith.select %133, %134, %135 : vector<8x1xi1>, vector<8x1xf32>
    %137 = arith.andi %111, %126 : vector<8x1xi1>
    %138 = arith.mulf %127, %104 : vector<8x1xf32>
    %cst_55 = arith.constant 0.000000e+00 : f32
    %139 = vector.broadcast %cst_55 : f32 to vector<8x1xf32>
    %140 = arith.select %137, %138, %139 : vector<8x1xi1>, vector<8x1xf32>
    %141 = arith.andi %116, %126 : vector<8x1xi1>
    %142 = arith.mulf %128, %104 : vector<8x1xf32>
    %cst_56 = arith.constant 0.000000e+00 : f32
    %143 = vector.broadcast %cst_56 : f32 to vector<8x1xf32>
    %144 = arith.select %141, %142, %143 : vector<8x1xi1>, vector<8x1xf32>
    %cst_57 = arith.constant 1.600000e+01 : f32
    %145 = vector.broadcast %cst_57 : f32 to vector<8x1xf32>
    %146 = arith.mulf %96, %145 : vector<8x1xf32>
    %147 = arith.addf %146, %95 : vector<8x1xf32>
    %148 = arith.fptosi %147 : vector<8x1xf32> to vector<8x1xi32>
    %149 = vector.broadcast %148 : vector<8x1xi32> to vector<8x256xi32>
    %150 = arith.cmpi eq, %26, %149 : vector<8x256xi32>
    %cst_58 = arith.constant 1.000000e+00 : f32
    %cst_59 = arith.constant 0.000000e+00 : f32
    %151 = vector.broadcast %cst_58 : f32 to vector<8x256xf32>
    %152 = vector.broadcast %cst_59 : f32 to vector<8x256xf32>
    %153 = arith.select %150, %151, %152 : vector<8x256xi1>, vector<8x256xf32>
    %154 = vector.broadcast %132 : vector<8x1xf32> to vector<8x256xf32>
    %155 = arith.mulf %154, %153 : vector<8x256xf32>
    %c1_i32 = arith.constant 1 : i32
    %156 = tpu.dynamic_rotate %153 by %c1_i32 dim 1 : vector<8x256xf32>, i32 -> vector<8x256xf32>
    %157 = vector.broadcast %136 : vector<8x1xf32> to vector<8x256xf32>
    %158 = arith.mulf %157, %156 : vector<8x256xf32>
    %159 = arith.addf %155, %158 : vector<8x256xf32>
    %c16_i32 = arith.constant 16 : i32
    %160 = tpu.dynamic_rotate %153 by %c16_i32 dim 1 : vector<8x256xf32>, i32 -> vector<8x256xf32>
    %161 = vector.broadcast %140 : vector<8x1xf32> to vector<8x256xf32>
    %162 = arith.mulf %161, %160 : vector<8x256xf32>
    %163 = arith.addf %159, %162 : vector<8x256xf32>
    %c17_i32 = arith.constant 17 : i32
    %164 = tpu.dynamic_rotate %153 by %c17_i32 dim 1 : vector<8x256xf32>, i32 -> vector<8x256xf32>
    %165 = vector.broadcast %144 : vector<8x1xf32> to vector<8x256xf32>
    %166 = arith.mulf %165, %164 : vector<8x256xf32>
    %167 = arith.addf %163, %166 : vector<8x256xf32>
    %168 = arith.truncf %167 : vector<8x256xf32> to vector<8x256xbf16>
    %cst_60 = arith.constant dense<0.000000e+00> : vector<8x32xf32>
    %169 = tpu.matmul %168, %33, %cst_60 {dimension_numbers = #tpu.dot_dimension_numbers<[1], [1], [0], [0], [0, 0, 1, 0], [], []>} : vector<8x256xbf16>, vector<32x256xbf16>, vector<8x32xf32> -> vector<8x32xf32>
    %170 = arith.addf %169, %25 : vector<8x32xf32>
    %c0_61 = arith.constant 0 : index
    %c0_62 = arith.constant 0 : index
    %171 = vector.load %arg11[%c0_61, %c0_62] : memref<32x48xf32, #tpu.memory_space<vmem>>, vector<32x48xf32>
    %cst_63 = arith.constant dense<0.000000e+00> : vector<8x48xf32>
    %172 = tpu.matmul %170, %171, %cst_63 {dimension_numbers = #tpu.dot_dimension_numbers<[1], [0], [0], [1], [0, 0, 1, 1], [], []>} : vector<8x32xf32>, vector<32x48xf32>, vector<8x48xf32> -> vector<8x48xf32>
    %c0_64 = arith.constant 0 : index
    %c0_65 = arith.constant 0 : index
    %173 = vector.load %arg12[%c0_64, %c0_65] : memref<1x48xf32, #tpu.memory_space<vmem>>, vector<1x48xf32>
    %174 = vector.broadcast %173 : vector<1x48xf32> to vector<8x48xf32>
    %175 = arith.addf %172, %174 : vector<8x48xf32>
    %176 = vector.extract_strided_slice %175 {offsets = [0, 0], sizes = [8, 32], strides = [1, 1]} : vector<8x48xf32> to vector<8x32xf32>
    %177 = vector.extract_strided_slice %175 {offsets = [0, 32], sizes = [8, 16], strides = [1, 1]} : vector<8x48xf32> to vector<8x16xf32>
    %cst_66 = arith.constant dense<0xFF800000> : vector<8xf32>
    %178 = vector.multi_reduction <maximumf>, %177, %cst_66 [1] : vector<8x16xf32> to vector<8xf32>
    %179 = vector.shape_cast %178 : vector<8xf32> to vector<8x1xf32>
    %180 = vector.broadcast %179 : vector<8x1xf32> to vector<8x16xf32>
    %181 = arith.subf %177, %180 : vector<8x16xf32>
    %182 = math.exp %181 : vector<8x16xf32>
    %c0_67 = arith.constant 0 : index
    %c0_68 = arith.constant 0 : index
    %183 = vector.load %arg21[%c0_67, %c0_68] : memref<16x16xf32, #tpu.memory_space<vmem>>, vector<16x16xf32>
    %cst_69 = arith.constant dense<0.000000e+00> : vector<8x16xf32>
    %184 = tpu.matmul %182, %183, %cst_69 {dimension_numbers = #tpu.dot_dimension_numbers<[1], [0], [0], [1], [0, 0, 1, 1], [], []>} : vector<8x16xf32>, vector<16x16xf32>, vector<8x16xf32> -> vector<8x16xf32>
    %185 = arith.divf %182, %184 : vector<8x16xf32>
    %186 = vector.extract_strided_slice %176 {offsets = [0, 0], sizes = [8, 16], strides = [1, 1]} : vector<8x32xf32> to vector<8x16xf32>
    %187 = vector.extract_strided_slice %176 {offsets = [0, 16], sizes = [8, 16], strides = [1, 1]} : vector<8x32xf32> to vector<8x16xf32>
    %cst_70 = arith.constant 1.600000e+01 : f32
    %188 = vector.broadcast %cst_70 : f32 to vector<8x16xf32>
    %189 = arith.divf %186, %188 : vector<8x16xf32>
    %190 = vector.broadcast %55 : vector<8x1xf32> to vector<8x16xf32>
    %191 = arith.addf %190, %189 : vector<8x16xf32>
    %cst_71 = arith.constant 1.600000e+01 : f32
    %192 = vector.broadcast %cst_71 : f32 to vector<8x16xf32>
    %193 = arith.divf %187, %192 : vector<8x16xf32>
    %194 = vector.broadcast %56 : vector<8x1xf32> to vector<8x16xf32>
    %195 = arith.addf %194, %193 : vector<8x16xf32>
    %cst_72 = arith.constant 1.500000e+01 : f32
    %196 = vector.broadcast %cst_72 : f32 to vector<8x16xf32>
    %197 = arith.divf %191, %196 : vector<8x16xf32>
    %cst_73 = arith.constant 2.000000e+00 : f32
    %198 = vector.broadcast %cst_73 : f32 to vector<8x16xf32>
    %199 = arith.mulf %198, %197 : vector<8x16xf32>
    %cst_74 = arith.constant 1.000000e+00 : f32
    %200 = vector.broadcast %cst_74 : f32 to vector<8x16xf32>
    %201 = arith.subf %199, %200 : vector<8x16xf32>
    %cst_75 = arith.constant 1.500000e+01 : f32
    %202 = vector.broadcast %cst_75 : f32 to vector<8x16xf32>
    %203 = arith.divf %195, %202 : vector<8x16xf32>
    %cst_76 = arith.constant 2.000000e+00 : f32
    %204 = vector.broadcast %cst_76 : f32 to vector<8x16xf32>
    %205 = arith.mulf %204, %203 : vector<8x16xf32>
    %cst_77 = arith.constant 1.000000e+00 : f32
    %206 = vector.broadcast %cst_77 : f32 to vector<8x16xf32>
    %207 = arith.subf %205, %206 : vector<8x16xf32>
    %cst_78 = arith.constant 0.000000e+00 : f32
    %208 = vector.broadcast %cst_78 : f32 to vector<8x16xf32>
    %209 = arith.cmpf oge, %201, %208 : vector<8x16xf32>
    %cst_79 = arith.constant 1.600000e+01 : f32
    %210 = vector.broadcast %cst_79 : f32 to vector<8x16xf32>
    %211 = arith.cmpf ole, %201, %210 : vector<8x16xf32>
    %212 = arith.andi %209, %211 : vector<8x16xi1>
    %cst_80 = arith.constant 0.000000e+00 : f32
    %213 = vector.broadcast %cst_80 : f32 to vector<8x16xf32>
    %214 = arith.cmpf oge, %207, %213 : vector<8x16xf32>
    %215 = arith.andi %212, %214 : vector<8x16xi1>
    %cst_81 = arith.constant 1.600000e+01 : f32
    %216 = vector.broadcast %cst_81 : f32 to vector<8x16xf32>
    %217 = arith.cmpf ole, %207, %216 : vector<8x16xf32>
    %218 = arith.andi %215, %217 : vector<8x16xi1>
    %cst_82 = arith.constant 1.000000e+00 : f32
    %cst_83 = arith.constant 0.000000e+00 : f32
    %219 = vector.broadcast %cst_82 : f32 to vector<8x16xf32>
    %220 = vector.broadcast %cst_83 : f32 to vector<8x16xf32>
    %221 = arith.select %218, %219, %220 : vector<8x16xi1>, vector<8x16xf32>
    %cst_84 = arith.constant 1.000000e+00 : f32
    %222 = vector.broadcast %cst_84 : f32 to vector<8x16xf32>
    %223 = arith.addf %201, %222 : vector<8x16xf32>
    %cst_85 = arith.constant 5.000000e-01 : f32
    %224 = vector.broadcast %cst_85 : f32 to vector<8x16xf32>
    %225 = arith.mulf %223, %224 : vector<8x16xf32>
    %cst_86 = arith.constant 1.500000e+01 : f32
    %226 = vector.broadcast %cst_86 : f32 to vector<8x16xf32>
    %227 = arith.mulf %225, %226 : vector<8x16xf32>
    %cst_87 = arith.constant 1.000000e+00 : f32
    %228 = vector.broadcast %cst_87 : f32 to vector<8x16xf32>
    %229 = arith.addf %207, %228 : vector<8x16xf32>
    %cst_88 = arith.constant 5.000000e-01 : f32
    %230 = vector.broadcast %cst_88 : f32 to vector<8x16xf32>
    %231 = arith.mulf %229, %230 : vector<8x16xf32>
    %cst_89 = arith.constant 1.500000e+01 : f32
    %232 = vector.broadcast %cst_89 : f32 to vector<8x16xf32>
    %233 = arith.mulf %231, %232 : vector<8x16xf32>
    %234 = arith.mulf %185, %221 : vector<8x16xf32>
    %235 = tpu.concatenate %227, %233, %234 in 1 : vector<8x16xf32>, vector<8x16xf32>, vector<8x16xf32> -> vector<8x48xf32>
    %c0_90 = arith.constant 0 : index
    %c0_91 = arith.constant 0 : index
    %236 = vector.load %arg22[%c0_90, %c0_91] : memref<128x8xf32, #tpu.memory_space<vmem>>, vector<128x8xf32>
    %cst_92 = arith.constant dense<0.000000e+00> : vector<128x48xf32>
    %237 = tpu.matmul %236, %235, %cst_92 {dimension_numbers = #tpu.dot_dimension_numbers<[1], [0], [0], [1], [0, 0, 1, 1], [], []>} : vector<128x8xf32>, vector<8x48xf32>, vector<128x48xf32> -> vector<128x48xf32>
    %c0_93 = arith.constant 0 : index
    %c0_94 = arith.constant 0 : index
    %238 = vector.load %arg23[%c0_93, %c0_94] : memref<128x16xf32, #tpu.memory_space<vmem>>, vector<128x16xf32>
    %239 = vector.extract_strided_slice %237 {offsets = [0, 0], sizes = [128, 16], strides = [1, 1]} : vector<128x48xf32> to vector<128x16xf32>
    %240 = arith.mulf %239, %238 : vector<128x16xf32>
    %cst_95 = arith.constant dense<0.000000e+00> : vector<128xf32>
    %241 = vector.multi_reduction <add>, %240, %cst_95 [1] : vector<128x16xf32> to vector<128xf32>
    %242 = vector.shape_cast %241 : vector<128xf32> to vector<128x1xf32>
    %243 = vector.extract_strided_slice %237 {offsets = [0, 16], sizes = [128, 16], strides = [1, 1]} : vector<128x48xf32> to vector<128x16xf32>
    %244 = arith.mulf %243, %238 : vector<128x16xf32>
    %cst_96 = arith.constant dense<0.000000e+00> : vector<128xf32>
    %245 = vector.multi_reduction <add>, %244, %cst_96 [1] : vector<128x16xf32> to vector<128xf32>
    %246 = vector.shape_cast %245 : vector<128xf32> to vector<128x1xf32>
    %247 = vector.extract_strided_slice %237 {offsets = [0, 32], sizes = [128, 16], strides = [1, 1]} : vector<128x48xf32> to vector<128x16xf32>
    %248 = arith.mulf %247, %238 : vector<128x16xf32>
    %cst_97 = arith.constant dense<0.000000e+00> : vector<128xf32>
    %249 = vector.multi_reduction <add>, %248, %cst_97 [1] : vector<128x16xf32> to vector<128xf32>
    %250 = vector.shape_cast %249 : vector<128xf32> to vector<128x1xf32>
    %251 = math.floor %242 : vector<128x1xf32>
    %252 = math.floor %246 : vector<128x1xf32>
    %cst_98 = arith.constant 1.000000e+00 : f32
    %253 = vector.broadcast %cst_98 : f32 to vector<128x1xf32>
    %254 = arith.addf %251, %253 : vector<128x1xf32>
    %cst_99 = arith.constant 1.000000e+00 : f32
    %255 = vector.broadcast %cst_99 : f32 to vector<128x1xf32>
    %256 = arith.addf %252, %255 : vector<128x1xf32>
    %257 = arith.subf %242, %251 : vector<128x1xf32>
    %cst_100 = arith.constant 1.000000e+00 : f32
    %258 = vector.broadcast %cst_100 : f32 to vector<128x1xf32>
    %259 = arith.subf %258, %257 : vector<128x1xf32>
    %260 = arith.subf %246, %252 : vector<128x1xf32>
    %cst_101 = arith.constant 1.000000e+00 : f32
    %261 = vector.broadcast %cst_101 : f32 to vector<128x1xf32>
    %262 = arith.subf %261, %260 : vector<128x1xf32>
    %cst_102 = arith.constant 0.000000e+00 : f32
    %263 = vector.broadcast %cst_102 : f32 to vector<128x1xf32>
    %264 = arith.cmpf oge, %251, %263 : vector<128x1xf32>
    %cst_103 = arith.constant 1.500000e+01 : f32
    %265 = vector.broadcast %cst_103 : f32 to vector<128x1xf32>
    %266 = arith.cmpf ole, %251, %265 : vector<128x1xf32>
    %267 = arith.andi %264, %266 : vector<128x1xi1>
    %cst_104 = arith.constant 0.000000e+00 : f32
    %268 = vector.broadcast %cst_104 : f32 to vector<128x1xf32>
    %269 = arith.cmpf oge, %254, %268 : vector<128x1xf32>
    %cst_105 = arith.constant 1.500000e+01 : f32
    %270 = vector.broadcast %cst_105 : f32 to vector<128x1xf32>
    %271 = arith.cmpf ole, %254, %270 : vector<128x1xf32>
    %272 = arith.andi %269, %271 : vector<128x1xi1>
    %cst_106 = arith.constant 0.000000e+00 : f32
    %273 = vector.broadcast %cst_106 : f32 to vector<128x1xf32>
    %274 = arith.cmpf oge, %252, %273 : vector<128x1xf32>
    %cst_107 = arith.constant 1.500000e+01 : f32
    %275 = vector.broadcast %cst_107 : f32 to vector<128x1xf32>
    %276 = arith.cmpf ole, %252, %275 : vector<128x1xf32>
    %277 = arith.andi %274, %276 : vector<128x1xi1>
    %cst_108 = arith.constant 0.000000e+00 : f32
    %278 = vector.broadcast %cst_108 : f32 to vector<128x1xf32>
    %279 = arith.cmpf oge, %256, %278 : vector<128x1xf32>
    %cst_109 = arith.constant 1.500000e+01 : f32
    %280 = vector.broadcast %cst_109 : f32 to vector<128x1xf32>
    %281 = arith.cmpf ole, %256, %280 : vector<128x1xf32>
    %282 = arith.andi %279, %281 : vector<128x1xi1>
    %283 = arith.mulf %250, %259 : vector<128x1xf32>
    %284 = arith.mulf %250, %257 : vector<128x1xf32>
    %285 = arith.andi %267, %277 : vector<128x1xi1>
    %286 = arith.mulf %283, %262 : vector<128x1xf32>
    %cst_110 = arith.constant 0.000000e+00 : f32
    %287 = vector.broadcast %cst_110 : f32 to vector<128x1xf32>
    %288 = arith.select %285, %286, %287 : vector<128x1xi1>, vector<128x1xf32>
    %289 = arith.andi %272, %277 : vector<128x1xi1>
    %290 = arith.mulf %284, %262 : vector<128x1xf32>
    %cst_111 = arith.constant 0.000000e+00 : f32
    %291 = vector.broadcast %cst_111 : f32 to vector<128x1xf32>
    %292 = arith.select %289, %290, %291 : vector<128x1xi1>, vector<128x1xf32>
    %293 = arith.andi %267, %282 : vector<128x1xi1>
    %294 = arith.mulf %283, %260 : vector<128x1xf32>
    %cst_112 = arith.constant 0.000000e+00 : f32
    %295 = vector.broadcast %cst_112 : f32 to vector<128x1xf32>
    %296 = arith.select %293, %294, %295 : vector<128x1xi1>, vector<128x1xf32>
    %297 = arith.andi %272, %282 : vector<128x1xi1>
    %298 = arith.mulf %284, %260 : vector<128x1xf32>
    %cst_113 = arith.constant 0.000000e+00 : f32
    %299 = vector.broadcast %cst_113 : f32 to vector<128x1xf32>
    %300 = arith.select %297, %298, %299 : vector<128x1xi1>, vector<128x1xf32>
    %cst_114 = arith.constant 1.600000e+01 : f32
    %301 = vector.broadcast %cst_114 : f32 to vector<128x1xf32>
    %302 = arith.mulf %252, %301 : vector<128x1xf32>
    %303 = arith.addf %302, %251 : vector<128x1xf32>
    %304 = arith.fptosi %303 : vector<128x1xf32> to vector<128x1xi32>
    %305 = vector.broadcast %304 : vector<128x1xi32> to vector<128x256xi32>
    %306 = arith.cmpi eq, %27, %305 : vector<128x256xi32>
    %cst_115 = arith.constant 1.000000e+00 : f32
    %cst_116 = arith.constant 0.000000e+00 : f32
    %307 = vector.broadcast %cst_115 : f32 to vector<128x256xf32>
    %308 = vector.broadcast %cst_116 : f32 to vector<128x256xf32>
    %309 = arith.select %306, %307, %308 : vector<128x256xi1>, vector<128x256xf32>
    %310 = vector.broadcast %288 : vector<128x1xf32> to vector<128x256xf32>
    %311 = arith.mulf %310, %309 : vector<128x256xf32>
    %c1_i32_117 = arith.constant 1 : i32
    %312 = tpu.dynamic_rotate %309 by %c1_i32_117 dim 1 : vector<128x256xf32>, i32 -> vector<128x256xf32>
    %313 = vector.broadcast %292 : vector<128x1xf32> to vector<128x256xf32>
    %314 = arith.mulf %313, %312 : vector<128x256xf32>
    %315 = arith.addf %311, %314 : vector<128x256xf32>
    %c16_i32_118 = arith.constant 16 : i32
    %316 = tpu.dynamic_rotate %309 by %c16_i32_118 dim 1 : vector<128x256xf32>, i32 -> vector<128x256xf32>
    %317 = vector.broadcast %296 : vector<128x1xf32> to vector<128x256xf32>
    %318 = arith.mulf %317, %316 : vector<128x256xf32>
    %319 = arith.addf %315, %318 : vector<128x256xf32>
    %c17_i32_119 = arith.constant 17 : i32
    %320 = tpu.dynamic_rotate %309 by %c17_i32_119 dim 1 : vector<128x256xf32>, i32 -> vector<128x256xf32>
    %321 = vector.broadcast %300 : vector<128x1xf32> to vector<128x256xf32>
    %322 = arith.mulf %321, %320 : vector<128x256xf32>
    %323 = arith.addf %319, %322 : vector<128x256xf32>
    %324 = arith.truncf %323 : vector<128x256xf32> to vector<128x256xbf16>
    %cst_120 = arith.constant dense<0.000000e+00> : vector<128x32xf32>
    %325 = tpu.matmul %324, %33, %cst_120 {dimension_numbers = #tpu.dot_dimension_numbers<[1], [1], [0], [0], [0, 0, 1, 0], [], []>} : vector<128x256xbf16>, vector<32x256xbf16>, vector<128x32xf32> -> vector<128x32xf32>
    %c0_121 = arith.constant 0 : index
    %c0_122 = arith.constant 0 : index
    %326 = vector.load %arg24[%c0_121, %c0_122] : memref<8x128xf32, #tpu.memory_space<vmem>>, vector<8x128xf32>
    %c0_123 = arith.constant 0 : index
    %c0_124 = arith.constant 0 : index
    %327 = vector.load %arg25[%c0_123, %c0_124] : memref<128x32xf32, #tpu.memory_space<vmem>>, vector<128x32xf32>
    %328 = arith.mulf %325, %327 : vector<128x32xf32>
    %cst_125 = arith.constant dense<0.000000e+00> : vector<8x32xf32>
    %329 = tpu.matmul %326, %328, %cst_125 {dimension_numbers = #tpu.dot_dimension_numbers<[1], [0], [0], [1], [0, 0, 1, 1], [], []>} : vector<8x128xf32>, vector<128x32xf32>, vector<8x32xf32> -> vector<8x32xf32>
    %c0_126 = arith.constant 0 : index
    %c0_127 = arith.constant 0 : index
    %c0_128 = arith.constant 0 : index
    %330 = vector.load %arg13[%c0_126, %c0_127, %c0_128] : memref<2x32x32xf32, #tpu.memory_space<vmem>>, vector<1x32x32xf32>
    %331 = vector.shape_cast %330 : vector<1x32x32xf32> to vector<32x32xf32>
    %cst_129 = arith.constant dense<0.000000e+00> : vector<8x32xf32>
    %332 = tpu.matmul %329, %331, %cst_129 {dimension_numbers = #tpu.dot_dimension_numbers<[1], [0], [0], [1], [0, 0, 1, 1], [], []>} : vector<8x32xf32>, vector<32x32xf32>, vector<8x32xf32> -> vector<8x32xf32>
    %333 = arith.addf %31, %332 : vector<8x32xf32>
    %c0_130 = arith.constant 0 : index
    %c0_131 = arith.constant 0 : index
    %c0_132 = arith.constant 0 : index
    %334 = vector.load %arg4[%c0_130, %c0_131, %c0_132] : memref<1x32x256xbf16, #tpu.memory_space<vmem>>, vector<1x32x256xbf16>
    %335 = vector.shape_cast %334 : vector<1x32x256xbf16> to vector<32x256xbf16>
    %c0_133 = arith.constant 0 : index
    %c0_134 = arith.constant 0 : index
    %336 = vector.load %arg7[%c0_133, %c0_134] : memref<3x2xf32, #tpu.memory_space<vmem>>, vector<3x2xf32>
    %c0_135 = arith.constant 0 : index
    %c0_136 = arith.constant 0 : index
    %337 = vector.load %arg8[%c0_135, %c0_136] : memref<1x2xf32, #tpu.memory_space<vmem>>, vector<1x2xf32>
    %338 = vector.extract_strided_slice %3 {offsets = [0, 0], sizes = [8, 1], strides = [1, 1]} : vector<8x3xf32> to vector<8x1xf32>
    %339 = vector.extract_strided_slice %336 {offsets = [0, 0], sizes = [1, 2], strides = [1, 1]} : vector<3x2xf32> to vector<1x2xf32>
    %340 = vector.broadcast %338 : vector<8x1xf32> to vector<8x2xf32>
    %341 = vector.broadcast %339 : vector<1x2xf32> to vector<8x2xf32>
    %342 = arith.mulf %340, %341 : vector<8x2xf32>
    %343 = vector.extract_strided_slice %3 {offsets = [0, 1], sizes = [8, 1], strides = [1, 1]} : vector<8x3xf32> to vector<8x1xf32>
    %344 = vector.extract_strided_slice %336 {offsets = [1, 0], sizes = [1, 2], strides = [1, 1]} : vector<3x2xf32> to vector<1x2xf32>
    %345 = vector.broadcast %343 : vector<8x1xf32> to vector<8x2xf32>
    %346 = vector.broadcast %344 : vector<1x2xf32> to vector<8x2xf32>
    %347 = arith.mulf %345, %346 : vector<8x2xf32>
    %348 = arith.addf %342, %347 : vector<8x2xf32>
    %349 = vector.extract_strided_slice %3 {offsets = [0, 2], sizes = [8, 1], strides = [1, 1]} : vector<8x3xf32> to vector<8x1xf32>
    %350 = vector.extract_strided_slice %336 {offsets = [2, 0], sizes = [1, 2], strides = [1, 1]} : vector<3x2xf32> to vector<1x2xf32>
    %351 = vector.broadcast %349 : vector<8x1xf32> to vector<8x2xf32>
    %352 = vector.broadcast %350 : vector<1x2xf32> to vector<8x2xf32>
    %353 = arith.mulf %351, %352 : vector<8x2xf32>
    %354 = arith.addf %348, %353 : vector<8x2xf32>
    %355 = vector.broadcast %337 : vector<1x2xf32> to vector<8x2xf32>
    %356 = arith.addf %354, %355 : vector<8x2xf32>
    %357 = vector.extract_strided_slice %356 {offsets = [0, 0], sizes = [8, 1], strides = [1, 1]} : vector<8x2xf32> to vector<8x1xf32>
    %358 = vector.extract_strided_slice %356 {offsets = [0, 1], sizes = [8, 1], strides = [1, 1]} : vector<8x2xf32> to vector<8x1xf32>
    %cst_137 = arith.constant 2.000000e+00 : f32
    %359 = vector.broadcast %cst_137 : f32 to vector<8x1xf32>
    %360 = arith.mulf %359, %357 : vector<8x1xf32>
    %cst_138 = arith.constant 1.500000e+01 : f32
    %361 = vector.broadcast %cst_138 : f32 to vector<8x1xf32>
    %362 = arith.divf %360, %361 : vector<8x1xf32>
    %cst_139 = arith.constant 1.000000e+00 : f32
    %363 = vector.broadcast %cst_139 : f32 to vector<8x1xf32>
    %364 = arith.subf %362, %363 : vector<8x1xf32>
    %cst_140 = arith.constant 2.000000e+00 : f32
    %365 = vector.broadcast %cst_140 : f32 to vector<8x1xf32>
    %366 = arith.mulf %365, %358 : vector<8x1xf32>
    %cst_141 = arith.constant 1.500000e+01 : f32
    %367 = vector.broadcast %cst_141 : f32 to vector<8x1xf32>
    %368 = arith.divf %366, %367 : vector<8x1xf32>
    %cst_142 = arith.constant 1.000000e+00 : f32
    %369 = vector.broadcast %cst_142 : f32 to vector<8x1xf32>
    %370 = arith.subf %368, %369 : vector<8x1xf32>
    %cst_143 = arith.constant 0.000000e+00 : f32
    %371 = vector.broadcast %cst_143 : f32 to vector<8x1xf32>
    %372 = arith.cmpf oge, %364, %371 : vector<8x1xf32>
    %cst_144 = arith.constant 1.600000e+01 : f32
    %373 = vector.broadcast %cst_144 : f32 to vector<8x1xf32>
    %374 = arith.cmpf ole, %364, %373 : vector<8x1xf32>
    %375 = arith.andi %372, %374 : vector<8x1xi1>
    %cst_145 = arith.constant 0.000000e+00 : f32
    %376 = vector.broadcast %cst_145 : f32 to vector<8x1xf32>
    %377 = arith.cmpf oge, %370, %376 : vector<8x1xf32>
    %378 = arith.andi %375, %377 : vector<8x1xi1>
    %cst_146 = arith.constant 1.600000e+01 : f32
    %379 = vector.broadcast %cst_146 : f32 to vector<8x1xf32>
    %380 = arith.cmpf ole, %370, %379 : vector<8x1xf32>
    %381 = arith.andi %378, %380 : vector<8x1xi1>
    %cst_147 = arith.constant 1.000000e+00 : f32
    %cst_148 = arith.constant 0.000000e+00 : f32
    %382 = vector.broadcast %cst_147 : f32 to vector<8x1xf32>
    %383 = vector.broadcast %cst_148 : f32 to vector<8x1xf32>
    %384 = arith.select %381, %382, %383 : vector<8x1xi1>, vector<8x1xf32>
    %cst_149 = arith.constant 1.000000e+00 : f32
    %385 = vector.broadcast %cst_149 : f32 to vector<8x1xf32>
    %386 = arith.addf %364, %385 : vector<8x1xf32>
    %cst_150 = arith.constant 5.000000e-01 : f32
    %387 = vector.broadcast %cst_150 : f32 to vector<8x1xf32>
    %388 = arith.mulf %386, %387 : vector<8x1xf32>
    %cst_151 = arith.constant 1.500000e+01 : f32
    %389 = vector.broadcast %cst_151 : f32 to vector<8x1xf32>
    %390 = arith.mulf %388, %389 : vector<8x1xf32>
    %cst_152 = arith.constant 1.000000e+00 : f32
    %391 = vector.broadcast %cst_152 : f32 to vector<8x1xf32>
    %392 = arith.addf %370, %391 : vector<8x1xf32>
    %cst_153 = arith.constant 5.000000e-01 : f32
    %393 = vector.broadcast %cst_153 : f32 to vector<8x1xf32>
    %394 = arith.mulf %392, %393 : vector<8x1xf32>
    %cst_154 = arith.constant 1.500000e+01 : f32
    %395 = vector.broadcast %cst_154 : f32 to vector<8x1xf32>
    %396 = arith.mulf %394, %395 : vector<8x1xf32>
    %397 = math.floor %390 : vector<8x1xf32>
    %398 = math.floor %396 : vector<8x1xf32>
    %cst_155 = arith.constant 1.000000e+00 : f32
    %399 = vector.broadcast %cst_155 : f32 to vector<8x1xf32>
    %400 = arith.addf %397, %399 : vector<8x1xf32>
    %cst_156 = arith.constant 1.000000e+00 : f32
    %401 = vector.broadcast %cst_156 : f32 to vector<8x1xf32>
    %402 = arith.addf %398, %401 : vector<8x1xf32>
    %403 = arith.subf %390, %397 : vector<8x1xf32>
    %cst_157 = arith.constant 1.000000e+00 : f32
    %404 = vector.broadcast %cst_157 : f32 to vector<8x1xf32>
    %405 = arith.subf %404, %403 : vector<8x1xf32>
    %406 = arith.subf %396, %398 : vector<8x1xf32>
    %cst_158 = arith.constant 1.000000e+00 : f32
    %407 = vector.broadcast %cst_158 : f32 to vector<8x1xf32>
    %408 = arith.subf %407, %406 : vector<8x1xf32>
    %cst_159 = arith.constant 0.000000e+00 : f32
    %409 = vector.broadcast %cst_159 : f32 to vector<8x1xf32>
    %410 = arith.cmpf oge, %397, %409 : vector<8x1xf32>
    %cst_160 = arith.constant 1.500000e+01 : f32
    %411 = vector.broadcast %cst_160 : f32 to vector<8x1xf32>
    %412 = arith.cmpf ole, %397, %411 : vector<8x1xf32>
    %413 = arith.andi %410, %412 : vector<8x1xi1>
    %cst_161 = arith.constant 0.000000e+00 : f32
    %414 = vector.broadcast %cst_161 : f32 to vector<8x1xf32>
    %415 = arith.cmpf oge, %400, %414 : vector<8x1xf32>
    %cst_162 = arith.constant 1.500000e+01 : f32
    %416 = vector.broadcast %cst_162 : f32 to vector<8x1xf32>
    %417 = arith.cmpf ole, %400, %416 : vector<8x1xf32>
    %418 = arith.andi %415, %417 : vector<8x1xi1>
    %cst_163 = arith.constant 0.000000e+00 : f32
    %419 = vector.broadcast %cst_163 : f32 to vector<8x1xf32>
    %420 = arith.cmpf oge, %398, %419 : vector<8x1xf32>
    %cst_164 = arith.constant 1.500000e+01 : f32
    %421 = vector.broadcast %cst_164 : f32 to vector<8x1xf32>
    %422 = arith.cmpf ole, %398, %421 : vector<8x1xf32>
    %423 = arith.andi %420, %422 : vector<8x1xi1>
    %cst_165 = arith.constant 0.000000e+00 : f32
    %424 = vector.broadcast %cst_165 : f32 to vector<8x1xf32>
    %425 = arith.cmpf oge, %402, %424 : vector<8x1xf32>
    %cst_166 = arith.constant 1.500000e+01 : f32
    %426 = vector.broadcast %cst_166 : f32 to vector<8x1xf32>
    %427 = arith.cmpf ole, %402, %426 : vector<8x1xf32>
    %428 = arith.andi %425, %427 : vector<8x1xi1>
    %429 = arith.mulf %384, %405 : vector<8x1xf32>
    %430 = arith.mulf %384, %403 : vector<8x1xf32>
    %431 = arith.andi %413, %423 : vector<8x1xi1>
    %432 = arith.mulf %429, %408 : vector<8x1xf32>
    %cst_167 = arith.constant 0.000000e+00 : f32
    %433 = vector.broadcast %cst_167 : f32 to vector<8x1xf32>
    %434 = arith.select %431, %432, %433 : vector<8x1xi1>, vector<8x1xf32>
    %435 = arith.andi %418, %423 : vector<8x1xi1>
    %436 = arith.mulf %430, %408 : vector<8x1xf32>
    %cst_168 = arith.constant 0.000000e+00 : f32
    %437 = vector.broadcast %cst_168 : f32 to vector<8x1xf32>
    %438 = arith.select %435, %436, %437 : vector<8x1xi1>, vector<8x1xf32>
    %439 = arith.andi %413, %428 : vector<8x1xi1>
    %440 = arith.mulf %429, %406 : vector<8x1xf32>
    %cst_169 = arith.constant 0.000000e+00 : f32
    %441 = vector.broadcast %cst_169 : f32 to vector<8x1xf32>
    %442 = arith.select %439, %440, %441 : vector<8x1xi1>, vector<8x1xf32>
    %443 = arith.andi %418, %428 : vector<8x1xi1>
    %444 = arith.mulf %430, %406 : vector<8x1xf32>
    %cst_170 = arith.constant 0.000000e+00 : f32
    %445 = vector.broadcast %cst_170 : f32 to vector<8x1xf32>
    %446 = arith.select %443, %444, %445 : vector<8x1xi1>, vector<8x1xf32>
    %cst_171 = arith.constant 1.600000e+01 : f32
    %447 = vector.broadcast %cst_171 : f32 to vector<8x1xf32>
    %448 = arith.mulf %398, %447 : vector<8x1xf32>
    %449 = arith.addf %448, %397 : vector<8x1xf32>
    %450 = arith.fptosi %449 : vector<8x1xf32> to vector<8x1xi32>
    %451 = vector.broadcast %450 : vector<8x1xi32> to vector<8x256xi32>
    %452 = arith.cmpi eq, %26, %451 : vector<8x256xi32>
    %cst_172 = arith.constant 1.000000e+00 : f32
    %cst_173 = arith.constant 0.000000e+00 : f32
    %453 = vector.broadcast %cst_172 : f32 to vector<8x256xf32>
    %454 = vector.broadcast %cst_173 : f32 to vector<8x256xf32>
    %455 = arith.select %452, %453, %454 : vector<8x256xi1>, vector<8x256xf32>
    %456 = vector.broadcast %434 : vector<8x1xf32> to vector<8x256xf32>
    %457 = arith.mulf %456, %455 : vector<8x256xf32>
    %c1_i32_174 = arith.constant 1 : i32
    %458 = tpu.dynamic_rotate %455 by %c1_i32_174 dim 1 : vector<8x256xf32>, i32 -> vector<8x256xf32>
    %459 = vector.broadcast %438 : vector<8x1xf32> to vector<8x256xf32>
    %460 = arith.mulf %459, %458 : vector<8x256xf32>
    %461 = arith.addf %457, %460 : vector<8x256xf32>
    %c16_i32_175 = arith.constant 16 : i32
    %462 = tpu.dynamic_rotate %455 by %c16_i32_175 dim 1 : vector<8x256xf32>, i32 -> vector<8x256xf32>
    %463 = vector.broadcast %442 : vector<8x1xf32> to vector<8x256xf32>
    %464 = arith.mulf %463, %462 : vector<8x256xf32>
    %465 = arith.addf %461, %464 : vector<8x256xf32>
    %c17_i32_176 = arith.constant 17 : i32
    %466 = tpu.dynamic_rotate %455 by %c17_i32_176 dim 1 : vector<8x256xf32>, i32 -> vector<8x256xf32>
    %467 = vector.broadcast %446 : vector<8x1xf32> to vector<8x256xf32>
    %468 = arith.mulf %467, %466 : vector<8x256xf32>
    %469 = arith.addf %465, %468 : vector<8x256xf32>
    %470 = arith.truncf %469 : vector<8x256xf32> to vector<8x256xbf16>
    %cst_177 = arith.constant dense<0.000000e+00> : vector<8x32xf32>
    %471 = tpu.matmul %470, %335, %cst_177 {dimension_numbers = #tpu.dot_dimension_numbers<[1], [1], [0], [0], [0, 0, 1, 0], [], []>} : vector<8x256xbf16>, vector<32x256xbf16>, vector<8x32xf32> -> vector<8x32xf32>
    %472 = arith.addf %471, %25 : vector<8x32xf32>
    %c0_178 = arith.constant 0 : index
    %c0_179 = arith.constant 0 : index
    %473 = vector.load %arg11[%c0_178, %c0_179] : memref<32x48xf32, #tpu.memory_space<vmem>>, vector<32x48xf32>
    %cst_180 = arith.constant dense<0.000000e+00> : vector<8x48xf32>
    %474 = tpu.matmul %472, %473, %cst_180 {dimension_numbers = #tpu.dot_dimension_numbers<[1], [0], [0], [1], [0, 0, 1, 1], [], []>} : vector<8x32xf32>, vector<32x48xf32>, vector<8x48xf32> -> vector<8x48xf32>
    %c0_181 = arith.constant 0 : index
    %c0_182 = arith.constant 0 : index
    %475 = vector.load %arg12[%c0_181, %c0_182] : memref<1x48xf32, #tpu.memory_space<vmem>>, vector<1x48xf32>
    %476 = vector.broadcast %475 : vector<1x48xf32> to vector<8x48xf32>
    %477 = arith.addf %474, %476 : vector<8x48xf32>
    %478 = vector.extract_strided_slice %477 {offsets = [0, 0], sizes = [8, 32], strides = [1, 1]} : vector<8x48xf32> to vector<8x32xf32>
    %479 = vector.extract_strided_slice %477 {offsets = [0, 32], sizes = [8, 16], strides = [1, 1]} : vector<8x48xf32> to vector<8x16xf32>
    %cst_183 = arith.constant dense<0xFF800000> : vector<8xf32>
    %480 = vector.multi_reduction <maximumf>, %479, %cst_183 [1] : vector<8x16xf32> to vector<8xf32>
    %481 = vector.shape_cast %480 : vector<8xf32> to vector<8x1xf32>
    %482 = vector.broadcast %481 : vector<8x1xf32> to vector<8x16xf32>
    %483 = arith.subf %479, %482 : vector<8x16xf32>
    %484 = math.exp %483 : vector<8x16xf32>
    %c0_184 = arith.constant 0 : index
    %c0_185 = arith.constant 0 : index
    %485 = vector.load %arg21[%c0_184, %c0_185] : memref<16x16xf32, #tpu.memory_space<vmem>>, vector<16x16xf32>
    %cst_186 = arith.constant dense<0.000000e+00> : vector<8x16xf32>
    %486 = tpu.matmul %484, %485, %cst_186 {dimension_numbers = #tpu.dot_dimension_numbers<[1], [0], [0], [1], [0, 0, 1, 1], [], []>} : vector<8x16xf32>, vector<16x16xf32>, vector<8x16xf32> -> vector<8x16xf32>
    %487 = arith.divf %484, %486 : vector<8x16xf32>
    %488 = vector.extract_strided_slice %478 {offsets = [0, 0], sizes = [8, 16], strides = [1, 1]} : vector<8x32xf32> to vector<8x16xf32>
    %489 = vector.extract_strided_slice %478 {offsets = [0, 16], sizes = [8, 16], strides = [1, 1]} : vector<8x32xf32> to vector<8x16xf32>
    %cst_187 = arith.constant 1.600000e+01 : f32
    %490 = vector.broadcast %cst_187 : f32 to vector<8x16xf32>
    %491 = arith.divf %488, %490 : vector<8x16xf32>
    %492 = vector.broadcast %357 : vector<8x1xf32> to vector<8x16xf32>
    %493 = arith.addf %492, %491 : vector<8x16xf32>
    %cst_188 = arith.constant 1.600000e+01 : f32
    %494 = vector.broadcast %cst_188 : f32 to vector<8x16xf32>
    %495 = arith.divf %489, %494 : vector<8x16xf32>
    %496 = vector.broadcast %358 : vector<8x1xf32> to vector<8x16xf32>
    %497 = arith.addf %496, %495 : vector<8x16xf32>
    %cst_189 = arith.constant 1.500000e+01 : f32
    %498 = vector.broadcast %cst_189 : f32 to vector<8x16xf32>
    %499 = arith.divf %493, %498 : vector<8x16xf32>
    %cst_190 = arith.constant 2.000000e+00 : f32
    %500 = vector.broadcast %cst_190 : f32 to vector<8x16xf32>
    %501 = arith.mulf %500, %499 : vector<8x16xf32>
    %cst_191 = arith.constant 1.000000e+00 : f32
    %502 = vector.broadcast %cst_191 : f32 to vector<8x16xf32>
    %503 = arith.subf %501, %502 : vector<8x16xf32>
    %cst_192 = arith.constant 1.500000e+01 : f32
    %504 = vector.broadcast %cst_192 : f32 to vector<8x16xf32>
    %505 = arith.divf %497, %504 : vector<8x16xf32>
    %cst_193 = arith.constant 2.000000e+00 : f32
    %506 = vector.broadcast %cst_193 : f32 to vector<8x16xf32>
    %507 = arith.mulf %506, %505 : vector<8x16xf32>
    %cst_194 = arith.constant 1.000000e+00 : f32
    %508 = vector.broadcast %cst_194 : f32 to vector<8x16xf32>
    %509 = arith.subf %507, %508 : vector<8x16xf32>
    %cst_195 = arith.constant 0.000000e+00 : f32
    %510 = vector.broadcast %cst_195 : f32 to vector<8x16xf32>
    %511 = arith.cmpf oge, %503, %510 : vector<8x16xf32>
    %cst_196 = arith.constant 1.600000e+01 : f32
    %512 = vector.broadcast %cst_196 : f32 to vector<8x16xf32>
    %513 = arith.cmpf ole, %503, %512 : vector<8x16xf32>
    %514 = arith.andi %511, %513 : vector<8x16xi1>
    %cst_197 = arith.constant 0.000000e+00 : f32
    %515 = vector.broadcast %cst_197 : f32 to vector<8x16xf32>
    %516 = arith.cmpf oge, %509, %515 : vector<8x16xf32>
    %517 = arith.andi %514, %516 : vector<8x16xi1>
    %cst_198 = arith.constant 1.600000e+01 : f32
    %518 = vector.broadcast %cst_198 : f32 to vector<8x16xf32>
    %519 = arith.cmpf ole, %509, %518 : vector<8x16xf32>
    %520 = arith.andi %517, %519 : vector<8x16xi1>
    %cst_199 = arith.constant 1.000000e+00 : f32
    %cst_200 = arith.constant 0.000000e+00 : f32
    %521 = vector.broadcast %cst_199 : f32 to vector<8x16xf32>
    %522 = vector.broadcast %cst_200 : f32 to vector<8x16xf32>
    %523 = arith.select %520, %521, %522 : vector<8x16xi1>, vector<8x16xf32>
    %cst_201 = arith.constant 1.000000e+00 : f32
    %524 = vector.broadcast %cst_201 : f32 to vector<8x16xf32>
    %525 = arith.addf %503, %524 : vector<8x16xf32>
    %cst_202 = arith.constant 5.000000e-01 : f32
    %526 = vector.broadcast %cst_202 : f32 to vector<8x16xf32>
    %527 = arith.mulf %525, %526 : vector<8x16xf32>
    %cst_203 = arith.constant 1.500000e+01 : f32
    %528 = vector.broadcast %cst_203 : f32 to vector<8x16xf32>
    %529 = arith.mulf %527, %528 : vector<8x16xf32>
    %cst_204 = arith.constant 1.000000e+00 : f32
    %530 = vector.broadcast %cst_204 : f32 to vector<8x16xf32>
    %531 = arith.addf %509, %530 : vector<8x16xf32>
    %cst_205 = arith.constant 5.000000e-01 : f32
    %532 = vector.broadcast %cst_205 : f32 to vector<8x16xf32>
    %533 = arith.mulf %531, %532 : vector<8x16xf32>
    %cst_206 = arith.constant 1.500000e+01 : f32
    %534 = vector.broadcast %cst_206 : f32 to vector<8x16xf32>
    %535 = arith.mulf %533, %534 : vector<8x16xf32>
    %536 = arith.mulf %487, %523 : vector<8x16xf32>
    %537 = tpu.concatenate %529, %535, %536 in 1 : vector<8x16xf32>, vector<8x16xf32>, vector<8x16xf32> -> vector<8x48xf32>
    %c0_207 = arith.constant 0 : index
    %c0_208 = arith.constant 0 : index
    %538 = vector.load %arg22[%c0_207, %c0_208] : memref<128x8xf32, #tpu.memory_space<vmem>>, vector<128x8xf32>
    %cst_209 = arith.constant dense<0.000000e+00> : vector<128x48xf32>
    %539 = tpu.matmul %538, %537, %cst_209 {dimension_numbers = #tpu.dot_dimension_numbers<[1], [0], [0], [1], [0, 0, 1, 1], [], []>} : vector<128x8xf32>, vector<8x48xf32>, vector<128x48xf32> -> vector<128x48xf32>
    %c0_210 = arith.constant 0 : index
    %c0_211 = arith.constant 0 : index
    %540 = vector.load %arg23[%c0_210, %c0_211] : memref<128x16xf32, #tpu.memory_space<vmem>>, vector<128x16xf32>
    %541 = vector.extract_strided_slice %539 {offsets = [0, 0], sizes = [128, 16], strides = [1, 1]} : vector<128x48xf32> to vector<128x16xf32>
    %542 = arith.mulf %541, %540 : vector<128x16xf32>
    %cst_212 = arith.constant dense<0.000000e+00> : vector<128xf32>
    %543 = vector.multi_reduction <add>, %542, %cst_212 [1] : vector<128x16xf32> to vector<128xf32>
    %544 = vector.shape_cast %543 : vector<128xf32> to vector<128x1xf32>
    %545 = vector.extract_strided_slice %539 {offsets = [0, 16], sizes = [128, 16], strides = [1, 1]} : vector<128x48xf32> to vector<128x16xf32>
    %546 = arith.mulf %545, %540 : vector<128x16xf32>
    %cst_213 = arith.constant dense<0.000000e+00> : vector<128xf32>
    %547 = vector.multi_reduction <add>, %546, %cst_213 [1] : vector<128x16xf32> to vector<128xf32>
    %548 = vector.shape_cast %547 : vector<128xf32> to vector<128x1xf32>
    %549 = vector.extract_strided_slice %539 {offsets = [0, 32], sizes = [128, 16], strides = [1, 1]} : vector<128x48xf32> to vector<128x16xf32>
    %550 = arith.mulf %549, %540 : vector<128x16xf32>
    %cst_214 = arith.constant dense<0.000000e+00> : vector<128xf32>
    %551 = vector.multi_reduction <add>, %550, %cst_214 [1] : vector<128x16xf32> to vector<128xf32>
    %552 = vector.shape_cast %551 : vector<128xf32> to vector<128x1xf32>
    %553 = math.floor %544 : vector<128x1xf32>
    %554 = math.floor %548 : vector<128x1xf32>
    %cst_215 = arith.constant 1.000000e+00 : f32
    %555 = vector.broadcast %cst_215 : f32 to vector<128x1xf32>
    %556 = arith.addf %553, %555 : vector<128x1xf32>
    %cst_216 = arith.constant 1.000000e+00 : f32
    %557 = vector.broadcast %cst_216 : f32 to vector<128x1xf32>
    %558 = arith.addf %554, %557 : vector<128x1xf32>
    %559 = arith.subf %544, %553 : vector<128x1xf32>
    %cst_217 = arith.constant 1.000000e+00 : f32
    %560 = vector.broadcast %cst_217 : f32 to vector<128x1xf32>
    %561 = arith.subf %560, %559 : vector<128x1xf32>
    %562 = arith.subf %548, %554 : vector<128x1xf32>
    %cst_218 = arith.constant 1.000000e+00 : f32
    %563 = vector.broadcast %cst_218 : f32 to vector<128x1xf32>
    %564 = arith.subf %563, %562 : vector<128x1xf32>
    %cst_219 = arith.constant 0.000000e+00 : f32
    %565 = vector.broadcast %cst_219 : f32 to vector<128x1xf32>
    %566 = arith.cmpf oge, %553, %565 : vector<128x1xf32>
    %cst_220 = arith.constant 1.500000e+01 : f32
    %567 = vector.broadcast %cst_220 : f32 to vector<128x1xf32>
    %568 = arith.cmpf ole, %553, %567 : vector<128x1xf32>
    %569 = arith.andi %566, %568 : vector<128x1xi1>
    %cst_221 = arith.constant 0.000000e+00 : f32
    %570 = vector.broadcast %cst_221 : f32 to vector<128x1xf32>
    %571 = arith.cmpf oge, %556, %570 : vector<128x1xf32>
    %cst_222 = arith.constant 1.500000e+01 : f32
    %572 = vector.broadcast %cst_222 : f32 to vector<128x1xf32>
    %573 = arith.cmpf ole, %556, %572 : vector<128x1xf32>
    %574 = arith.andi %571, %573 : vector<128x1xi1>
    %cst_223 = arith.constant 0.000000e+00 : f32
    %575 = vector.broadcast %cst_223 : f32 to vector<128x1xf32>
    %576 = arith.cmpf oge, %554, %575 : vector<128x1xf32>
    %cst_224 = arith.constant 1.500000e+01 : f32
    %577 = vector.broadcast %cst_224 : f32 to vector<128x1xf32>
    %578 = arith.cmpf ole, %554, %577 : vector<128x1xf32>
    %579 = arith.andi %576, %578 : vector<128x1xi1>
    %cst_225 = arith.constant 0.000000e+00 : f32
    %580 = vector.broadcast %cst_225 : f32 to vector<128x1xf32>
    %581 = arith.cmpf oge, %558, %580 : vector<128x1xf32>
    %cst_226 = arith.constant 1.500000e+01 : f32
    %582 = vector.broadcast %cst_226 : f32 to vector<128x1xf32>
    %583 = arith.cmpf ole, %558, %582 : vector<128x1xf32>
    %584 = arith.andi %581, %583 : vector<128x1xi1>
    %585 = arith.mulf %552, %561 : vector<128x1xf32>
    %586 = arith.mulf %552, %559 : vector<128x1xf32>
    %587 = arith.andi %569, %579 : vector<128x1xi1>
    %588 = arith.mulf %585, %564 : vector<128x1xf32>
    %cst_227 = arith.constant 0.000000e+00 : f32
    %589 = vector.broadcast %cst_227 : f32 to vector<128x1xf32>
    %590 = arith.select %587, %588, %589 : vector<128x1xi1>, vector<128x1xf32>
    %591 = arith.andi %574, %579 : vector<128x1xi1>
    %592 = arith.mulf %586, %564 : vector<128x1xf32>
    %cst_228 = arith.constant 0.000000e+00 : f32
    %593 = vector.broadcast %cst_228 : f32 to vector<128x1xf32>
    %594 = arith.select %591, %592, %593 : vector<128x1xi1>, vector<128x1xf32>
    %595 = arith.andi %569, %584 : vector<128x1xi1>
    %596 = arith.mulf %585, %562 : vector<128x1xf32>
    %cst_229 = arith.constant 0.000000e+00 : f32
    %597 = vector.broadcast %cst_229 : f32 to vector<128x1xf32>
    %598 = arith.select %595, %596, %597 : vector<128x1xi1>, vector<128x1xf32>
    %599 = arith.andi %574, %584 : vector<128x1xi1>
    %600 = arith.mulf %586, %562 : vector<128x1xf32>
    %cst_230 = arith.constant 0.000000e+00 : f32
    %601 = vector.broadcast %cst_230 : f32 to vector<128x1xf32>
    %602 = arith.select %599, %600, %601 : vector<128x1xi1>, vector<128x1xf32>
    %cst_231 = arith.constant 1.600000e+01 : f32
    %603 = vector.broadcast %cst_231 : f32 to vector<128x1xf32>
    %604 = arith.mulf %554, %603 : vector<128x1xf32>
    %605 = arith.addf %604, %553 : vector<128x1xf32>
    %606 = arith.fptosi %605 : vector<128x1xf32> to vector<128x1xi32>
    %607 = vector.broadcast %606 : vector<128x1xi32> to vector<128x256xi32>
    %608 = arith.cmpi eq, %27, %607 : vector<128x256xi32>
    %cst_232 = arith.constant 1.000000e+00 : f32
    %cst_233 = arith.constant 0.000000e+00 : f32
    %609 = vector.broadcast %cst_232 : f32 to vector<128x256xf32>
    %610 = vector.broadcast %cst_233 : f32 to vector<128x256xf32>
    %611 = arith.select %608, %609, %610 : vector<128x256xi1>, vector<128x256xf32>
    %612 = vector.broadcast %590 : vector<128x1xf32> to vector<128x256xf32>
    %613 = arith.mulf %612, %611 : vector<128x256xf32>
    %c1_i32_234 = arith.constant 1 : i32
    %614 = tpu.dynamic_rotate %611 by %c1_i32_234 dim 1 : vector<128x256xf32>, i32 -> vector<128x256xf32>
    %615 = vector.broadcast %594 : vector<128x1xf32> to vector<128x256xf32>
    %616 = arith.mulf %615, %614 : vector<128x256xf32>
    %617 = arith.addf %613, %616 : vector<128x256xf32>
    %c16_i32_235 = arith.constant 16 : i32
    %618 = tpu.dynamic_rotate %611 by %c16_i32_235 dim 1 : vector<128x256xf32>, i32 -> vector<128x256xf32>
    %619 = vector.broadcast %598 : vector<128x1xf32> to vector<128x256xf32>
    %620 = arith.mulf %619, %618 : vector<128x256xf32>
    %621 = arith.addf %617, %620 : vector<128x256xf32>
    %c17_i32_236 = arith.constant 17 : i32
    %622 = tpu.dynamic_rotate %611 by %c17_i32_236 dim 1 : vector<128x256xf32>, i32 -> vector<128x256xf32>
    %623 = vector.broadcast %602 : vector<128x1xf32> to vector<128x256xf32>
    %624 = arith.mulf %623, %622 : vector<128x256xf32>
    %625 = arith.addf %621, %624 : vector<128x256xf32>
    %626 = arith.truncf %625 : vector<128x256xf32> to vector<128x256xbf16>
    %cst_237 = arith.constant dense<0.000000e+00> : vector<128x32xf32>
    %627 = tpu.matmul %626, %335, %cst_237 {dimension_numbers = #tpu.dot_dimension_numbers<[1], [1], [0], [0], [0, 0, 1, 0], [], []>} : vector<128x256xbf16>, vector<32x256xbf16>, vector<128x32xf32> -> vector<128x32xf32>
    %c0_238 = arith.constant 0 : index
    %c0_239 = arith.constant 0 : index
    %628 = vector.load %arg24[%c0_238, %c0_239] : memref<8x128xf32, #tpu.memory_space<vmem>>, vector<8x128xf32>
    %c0_240 = arith.constant 0 : index
    %c0_241 = arith.constant 0 : index
    %629 = vector.load %arg25[%c0_240, %c0_241] : memref<128x32xf32, #tpu.memory_space<vmem>>, vector<128x32xf32>
    %630 = arith.mulf %627, %629 : vector<128x32xf32>
    %cst_242 = arith.constant dense<0.000000e+00> : vector<8x32xf32>
    %631 = tpu.matmul %628, %630, %cst_242 {dimension_numbers = #tpu.dot_dimension_numbers<[1], [0], [0], [1], [0, 0, 1, 1], [], []>} : vector<8x128xf32>, vector<128x32xf32>, vector<8x32xf32> -> vector<8x32xf32>
    %c1 = arith.constant 1 : index
    %c0_243 = arith.constant 0 : index
    %c0_244 = arith.constant 0 : index
    %632 = vector.load %arg13[%c1, %c0_243, %c0_244] : memref<2x32x32xf32, #tpu.memory_space<vmem>>, vector<1x32x32xf32>
    %633 = vector.shape_cast %632 : vector<1x32x32xf32> to vector<32x32xf32>
    %cst_245 = arith.constant dense<0.000000e+00> : vector<8x32xf32>
    %634 = tpu.matmul %631, %633, %cst_245 {dimension_numbers = #tpu.dot_dimension_numbers<[1], [0], [0], [1], [0, 0, 1, 1], [], []>} : vector<8x32xf32>, vector<32x32xf32>, vector<8x32xf32> -> vector<8x32xf32>
    %635 = arith.addf %333, %634 : vector<8x32xf32>
    %636 = arith.addf %1, %635 : vector<8x32xf32>
    %c0_246 = arith.constant 0 : index
    %c0_247 = arith.constant 0 : index
    %637 = vector.load %arg15[%c0_246, %c0_247] : memref<1x32xf32, #tpu.memory_space<vmem>>, vector<1x32xf32>
    %c0_248 = arith.constant 0 : index
    %c0_249 = arith.constant 0 : index
    %638 = vector.load %arg16[%c0_248, %c0_249] : memref<1x32xf32, #tpu.memory_space<vmem>>, vector<1x32xf32>
    %cst_250 = arith.constant dense<0.000000e+00> : vector<8xf32>
    %639 = vector.multi_reduction <add>, %636, %cst_250 [1] : vector<8x32xf32> to vector<8xf32>
    %640 = vector.shape_cast %639 : vector<8xf32> to vector<8x1xf32>
    %cst_251 = arith.constant 3.200000e+01 : f32
    %641 = vector.broadcast %cst_251 : f32 to vector<8x1xf32>
    %642 = arith.divf %640, %641 : vector<8x1xf32>
    %643 = vector.broadcast %642 : vector<8x1xf32> to vector<8x32xf32>
    %644 = arith.subf %636, %643 : vector<8x32xf32>
    %645 = arith.mulf %644, %644 : vector<8x32xf32>
    %cst_252 = arith.constant dense<0.000000e+00> : vector<8xf32>
    %646 = vector.multi_reduction <add>, %645, %cst_252 [1] : vector<8x32xf32> to vector<8xf32>
    %647 = vector.shape_cast %646 : vector<8xf32> to vector<8x1xf32>
    %cst_253 = arith.constant 3.200000e+01 : f32
    %648 = vector.broadcast %cst_253 : f32 to vector<8x1xf32>
    %649 = arith.divf %647, %648 : vector<8x1xf32>
    %cst_254 = arith.constant 9.99999974E-6 : f32
    %650 = vector.broadcast %cst_254 : f32 to vector<8x1xf32>
    %651 = arith.addf %649, %650 : vector<8x1xf32>
    %652 = math.rsqrt %651 : vector<8x1xf32>
    %653 = vector.broadcast %652 : vector<8x1xf32> to vector<8x32xf32>
    %654 = arith.mulf %644, %653 : vector<8x32xf32>
    %655 = vector.broadcast %637 : vector<1x32xf32> to vector<8x32xf32>
    %656 = arith.mulf %654, %655 : vector<8x32xf32>
    %657 = vector.broadcast %638 : vector<1x32xf32> to vector<8x32xf32>
    %658 = arith.addf %656, %657 : vector<8x32xf32>
    %c0_255 = arith.constant 0 : index
    %c0_256 = arith.constant 0 : index
    %659 = vector.load %arg17[%c0_255, %c0_256] : memref<32x64xf32, #tpu.memory_space<vmem>>, vector<32x64xf32>
    %cst_257 = arith.constant dense<0.000000e+00> : vector<8x64xf32>
    %660 = tpu.matmul %658, %659, %cst_257 {dimension_numbers = #tpu.dot_dimension_numbers<[1], [0], [0], [1], [0, 0, 1, 1], [], []>} : vector<8x32xf32>, vector<32x64xf32>, vector<8x64xf32> -> vector<8x64xf32>
    %c0_258 = arith.constant 0 : index
    %c0_259 = arith.constant 0 : index
    %661 = vector.load %arg18[%c0_258, %c0_259] : memref<1x64xf32, #tpu.memory_space<vmem>>, vector<1x64xf32>
    %662 = vector.broadcast %661 : vector<1x64xf32> to vector<8x64xf32>
    %663 = arith.addf %660, %662 : vector<8x64xf32>
    %cst_260 = arith.constant 5.000000e-01 : f32
    %664 = vector.broadcast %cst_260 : f32 to vector<8x64xf32>
    %665 = arith.mulf %664, %663 : vector<8x64xf32>
    %cst_261 = arith.constant 0.707106769 : f32
    %666 = vector.broadcast %cst_261 : f32 to vector<8x64xf32>
    %667 = arith.mulf %663, %666 : vector<8x64xf32>
    %cst_262 = arith.constant 0.000000e+00 : f32
    %668 = vector.broadcast %cst_262 : f32 to vector<8x64xf32>
    %669 = arith.cmpf oge, %667, %668 : vector<8x64xf32>
    %cst_263 = arith.constant 1.000000e+00 : f32
    %cst_264 = arith.constant -1.000000e+00 : f32
    %670 = vector.broadcast %cst_263 : f32 to vector<8x64xf32>
    %671 = vector.broadcast %cst_264 : f32 to vector<8x64xf32>
    %672 = arith.select %669, %670, %671 : vector<8x64xi1>, vector<8x64xf32>
    %673 = math.absf %667 : vector<8x64xf32>
    %cst_265 = arith.constant 0.327591091 : f32
    %674 = vector.broadcast %cst_265 : f32 to vector<8x64xf32>
    %675 = arith.mulf %674, %673 : vector<8x64xf32>
    %cst_266 = arith.constant 1.000000e+00 : f32
    %676 = vector.broadcast %cst_266 : f32 to vector<8x64xf32>
    %677 = arith.addf %676, %675 : vector<8x64xf32>
    %cst_267 = arith.constant 1.000000e+00 : f32
    %678 = vector.broadcast %cst_267 : f32 to vector<8x64xf32>
    %679 = arith.divf %678, %677 : vector<8x64xf32>
    %cst_268 = arith.constant 1.06140542 : f32
    %680 = vector.broadcast %cst_268 : f32 to vector<8x64xf32>
    %681 = arith.mulf %680, %679 : vector<8x64xf32>
    %cst_269 = arith.constant -1.45315206 : f32
    %682 = vector.broadcast %cst_269 : f32 to vector<8x64xf32>
    %683 = arith.addf %681, %682 : vector<8x64xf32>
    %684 = arith.mulf %683, %679 : vector<8x64xf32>
    %cst_270 = arith.constant 1.42141378 : f32
    %685 = vector.broadcast %cst_270 : f32 to vector<8x64xf32>
    %686 = arith.addf %684, %685 : vector<8x64xf32>
    %687 = arith.mulf %686, %679 : vector<8x64xf32>
    %cst_271 = arith.constant -0.284496725 : f32
    %688 = vector.broadcast %cst_271 : f32 to vector<8x64xf32>
    %689 = arith.addf %687, %688 : vector<8x64xf32>
    %690 = arith.mulf %689, %679 : vector<8x64xf32>
    %cst_272 = arith.constant 0.254829586 : f32
    %691 = vector.broadcast %cst_272 : f32 to vector<8x64xf32>
    %692 = arith.addf %690, %691 : vector<8x64xf32>
    %693 = arith.mulf %692, %679 : vector<8x64xf32>
    %cst_273 = arith.constant 0.000000e+00 : f32
    %694 = vector.broadcast %cst_273 : f32 to vector<8x64xf32>
    %695 = arith.subf %694, %673 : vector<8x64xf32>
    %696 = arith.mulf %695, %673 : vector<8x64xf32>
    %697 = math.exp %696 : vector<8x64xf32>
    %698 = arith.mulf %693, %697 : vector<8x64xf32>
    %cst_274 = arith.constant 1.000000e+00 : f32
    %699 = vector.broadcast %cst_274 : f32 to vector<8x64xf32>
    %700 = arith.subf %699, %698 : vector<8x64xf32>
    %701 = arith.mulf %672, %700 : vector<8x64xf32>
    %cst_275 = arith.constant 1.000000e+00 : f32
    %702 = vector.broadcast %cst_275 : f32 to vector<8x64xf32>
    %703 = arith.addf %702, %701 : vector<8x64xf32>
    %704 = arith.mulf %665, %703 : vector<8x64xf32>
    %c0_276 = arith.constant 0 : index
    %c0_277 = arith.constant 0 : index
    %705 = vector.load %arg19[%c0_276, %c0_277] : memref<64x32xf32, #tpu.memory_space<vmem>>, vector<64x32xf32>
    %cst_278 = arith.constant dense<0.000000e+00> : vector<8x32xf32>
    %706 = tpu.matmul %704, %705, %cst_278 {dimension_numbers = #tpu.dot_dimension_numbers<[1], [0], [0], [1], [0, 0, 1, 1], [], []>} : vector<8x64xf32>, vector<64x32xf32>, vector<8x32xf32> -> vector<8x32xf32>
    %c0_279 = arith.constant 0 : index
    %c0_280 = arith.constant 0 : index
    %707 = vector.load %arg20[%c0_279, %c0_280] : memref<1x32xf32, #tpu.memory_space<vmem>>, vector<1x32xf32>
    %708 = vector.broadcast %707 : vector<1x32xf32> to vector<8x32xf32>
    %709 = arith.addf %706, %708 : vector<8x32xf32>
    %710 = arith.addf %636, %709 : vector<8x32xf32>
    %c0_281 = arith.constant 0 : index
    %c0_282 = arith.constant 0 : index
    %c0_283 = arith.constant 0 : index
    %711 = vector.load %arg26[%c0_281, %c0_282, %c0_283] : memref<1x8x32xf32, #tpu.memory_space<vmem>>, vector<1x8x32xf32>
    %712 = vector.shape_cast %711 : vector<1x8x32xf32> to vector<8x32xf32>
    %713 = vector.shape_cast %710 : vector<8x32xf32> to vector<1x8x32xf32>
    tpu.vector_store %arg26[%c0_281, %c0_282, %c0_283], %713 {strides = array<i32>} : memref<1x8x32xf32, #tpu.memory_space<vmem>>, vector<1x8x32xf32>,
    return
  }
  func.func @transform_0(%arg0: i32) -> (i32, i32, i32) {
    %c0_i32 = arith.constant 0 : i32
    %c0_i32_0 = arith.constant 0 : i32
    %c0_i32_1 = arith.constant 0 : i32
    return %arg0, %c0_i32, %c0_i32_0 : i32, i32, i32
  }
  func.func @transform_1(%arg0: i32) -> (i32, i32, i32) {
    %c0_i32 = arith.constant 0 : i32
    %c0_i32_0 = arith.constant 0 : i32
    %c0_i32_1 = arith.constant 0 : i32
    return %arg0, %c0_i32, %c0_i32_0 : i32, i32, i32
  }
  func.func @transform_2(%arg0: i32) -> (i32, i32, i32) {
    %c0_i32 = arith.constant 0 : i32
    %c0_i32_0 = arith.constant 0 : i32
    %c0_i32_1 = arith.constant 0 : i32
    return %arg0, %c0_i32, %c0_i32_0 : i32, i32, i32
  }
  func.func @transform_3(%arg0: i32) -> (i32, i32, i32) {
    %c0_i32 = arith.constant 0 : i32
    %c0_i32_0 = arith.constant 0 : i32
    %c0_i32_1 = arith.constant 0 : i32
    return %arg0, %c0_i32, %c0_i32_0 : i32, i32, i32
  }
  func.func @transform_4(%arg0: i32) -> (i32, i32) {
    %c0_i32 = arith.constant 0 : i32
    %c0_i32_0 = arith.constant 0 : i32
    %c0_i32_1 = arith.constant 0 : i32
    return %c0_i32, %c0_i32_0 : i32, i32
  }
  func.func @transform_5(%arg0: i32) -> (i32, i32) {
    %c0_i32 = arith.constant 0 : i32
    %c0_i32_0 = arith.constant 0 : i32
    %c0_i32_1 = arith.constant 0 : i32
    return %c0_i32, %c0_i32_0 : i32, i32
  }
  func.func @transform_6(%arg0: i32) -> (i32, i32) {
    %c0_i32 = arith.constant 0 : i32
    %c0_i32_0 = arith.constant 0 : i32
    %c0_i32_1 = arith.constant 0 : i32
    return %c0_i32, %c0_i32_0 : i32, i32
  }
  func.func @transform_7(%arg0: i32) -> (i32, i32) {
    %c0_i32 = arith.constant 0 : i32
    %c0_i32_0 = arith.constant 0 : i32
    %c0_i32_1 = arith.constant 0 : i32
    return %c0_i32, %c0_i32_0 : i32, i32
  }
  func.func @transform_8(%arg0: i32) -> (i32, i32) {
    %c0_i32 = arith.constant 0 : i32
    %c0_i32_0 = arith.constant 0 : i32
    %c0_i32_1 = arith.constant 0 : i32
    return %c0_i32, %c0_i32_0 : i32, i32
  }
  func.func @transform_9(%arg0: i32) -> (i32, i32) {
    %c0_i32 = arith.constant 0 : i32
    %c0_i32_0 = arith.constant 0 : i32
    %c0_i32_1 = arith.constant 0 : i32
    return %c0_i32, %c0_i32_0 : i32, i32
  }
  func.func @transform_10(%arg0: i32) -> (i32, i32) {
    %c0_i32 = arith.constant 0 : i32
    %c0_i32_0 = arith.constant 0 : i32
    %c0_i32_1 = arith.constant 0 : i32
    return %c0_i32, %c0_i32_0 : i32, i32
  }
  func.func @transform_11(%arg0: i32) -> (i32, i32) {
    %c0_i32 = arith.constant 0 : i32
    %c0_i32_0 = arith.constant 0 : i32
    %c0_i32_1 = arith.constant 0 : i32
    return %c0_i32, %c0_i32_0 : i32, i32
  }
  func.func @transform_12(%arg0: i32) -> (i32, i32, i32) {
    %c0_i32 = arith.constant 0 : i32
    %c0_i32_0 = arith.constant 0 : i32
    %c0_i32_1 = arith.constant 0 : i32
    %c0_i32_2 = arith.constant 0 : i32
    return %c0_i32, %c0_i32_0, %c0_i32_1 : i32, i32, i32
  }
  func.func @transform_13(%arg0: i32) -> (i32, i32) {
    %c0_i32 = arith.constant 0 : i32
    %c0_i32_0 = arith.constant 0 : i32
    %c0_i32_1 = arith.constant 0 : i32
    return %c0_i32, %c0_i32_0 : i32, i32
  }
  func.func @transform_14(%arg0: i32) -> (i32, i32) {
    %c0_i32 = arith.constant 0 : i32
    %c0_i32_0 = arith.constant 0 : i32
    %c0_i32_1 = arith.constant 0 : i32
    return %c0_i32, %c0_i32_0 : i32, i32
  }
  func.func @transform_15(%arg0: i32) -> (i32, i32) {
    %c0_i32 = arith.constant 0 : i32
    %c0_i32_0 = arith.constant 0 : i32
    %c0_i32_1 = arith.constant 0 : i32
    return %c0_i32, %c0_i32_0 : i32, i32
  }
  func.func @transform_16(%arg0: i32) -> (i32, i32) {
    %c0_i32 = arith.constant 0 : i32
    %c0_i32_0 = arith.constant 0 : i32
    %c0_i32_1 = arith.constant 0 : i32
    return %c0_i32, %c0_i32_0 : i32, i32
  }
  func.func @transform_17(%arg0: i32) -> (i32, i32) {
    %c0_i32 = arith.constant 0 : i32
    %c0_i32_0 = arith.constant 0 : i32
    %c0_i32_1 = arith.constant 0 : i32
    return %c0_i32, %c0_i32_0 : i32, i32
  }
  func.func @transform_18(%arg0: i32) -> (i32, i32) {
    %c0_i32 = arith.constant 0 : i32
    %c0_i32_0 = arith.constant 0 : i32
    %c0_i32_1 = arith.constant 0 : i32
    return %c0_i32, %c0_i32_0 : i32, i32
  }
  func.func @transform_19(%arg0: i32) -> (i32, i32) {
    %c0_i32 = arith.constant 0 : i32
    %c0_i32_0 = arith.constant 0 : i32
    %c0_i32_1 = arith.constant 0 : i32
    return %c0_i32, %c0_i32_0 : i32, i32
  }
  func.func @transform_20(%arg0: i32) -> (i32, i32) {
    %c0_i32 = arith.constant 0 : i32
    %c0_i32_0 = arith.constant 0 : i32
    %c0_i32_1 = arith.constant 0 : i32
    return %c0_i32, %c0_i32_0 : i32, i32
  }
  func.func @transform_21(%arg0: i32) -> (i32, i32) {
    %c0_i32 = arith.constant 0 : i32
    %c0_i32_0 = arith.constant 0 : i32
    %c0_i32_1 = arith.constant 0 : i32
    return %c0_i32, %c0_i32_0 : i32, i32
  }
  func.func @transform_22(%arg0: i32) -> (i32, i32) {
    %c0_i32 = arith.constant 0 : i32
    %c0_i32_0 = arith.constant 0 : i32
    %c0_i32_1 = arith.constant 0 : i32
    return %c0_i32, %c0_i32_0 : i32, i32
  }
  func.func @transform_23(%arg0: i32) -> (i32, i32) {
    %c0_i32 = arith.constant 0 : i32
    %c0_i32_0 = arith.constant 0 : i32
    %c0_i32_1 = arith.constant 0 : i32
    return %c0_i32, %c0_i32_0 : i32, i32
  }
  func.func @transform_24(%arg0: i32) -> (i32, i32) {
    %c0_i32 = arith.constant 0 : i32
    %c0_i32_0 = arith.constant 0 : i32
    %c0_i32_1 = arith.constant 0 : i32
    return %c0_i32, %c0_i32_0 : i32, i32
  }
  func.func @transform_25(%arg0: i32) -> (i32, i32, i32) {
    %c0_i32 = arith.constant 0 : i32
    %c0_i32_0 = arith.constant 0 : i32
    %c0_i32_1 = arith.constant 0 : i32
    return %arg0, %c0_i32, %c0_i32_0 : i32, i32, i32
  }
}

</mosaic_0001>

<bundles_post_ra>
// kernel: tpu_custom_call.1
= control target key start
LH: loop header
LB: loop body
LE: loop exit
PB: predicated region body
PF: predicated region fallthrough
CT: control target
= control target key end

     0   :  { %s13447_s0 = inlined_call_operand.vmem [shape: f32[2,8,32], index: 0, kind: input, shape index: {}]   ;;  %s13448_s1 = inlined_call_operand.vmem [shape: f32[2,8,3], index: 1, kind: input, shape index: {}]   ;;  %s13449_s2 = inlined_call_operand.vmem [shape: bf16[2,32,256], index: 2, kind: input, shape index: {}]   ;;  %s13450_s3 = inlined_call_operand.vmem [shape: bf16[2,32,256], index: 3, kind: input, shape index: {}]   ;;  %s13451_s4 = inlined_call_operand.vmem [shape: f32[3,2], index: 4, kind: input, shape index: {}]   ;;  %s13452_s5 = inlined_call_operand.vmem [shape: f32[1,2], index: 5, kind: input, shape index: {}]   ;;  %s13453_s6 = inlined_call_operand.vmem [shape: f32[3,2], index: 6, kind: input, shape index: {}]   ;;  %s13454_s7 = inlined_call_operand.vmem [shape: f32[1,2], index: 7, kind: input, shape index: {}]   ;;  %s13455_s8 = inlined_call_operand.vmem [shape: f32[1,32], index: 8, kind: input, shape index: {}]   ;;  %s13456_s9 = inlined_call_operand.vmem [shape: f32[1,32], index: 9, kind: input, shape index: {}]   ;;  %s13457_s10 = inlined_call_operand.vmem [shape: f32[32,48], index: 10, kind: input, shape index: {}]   ;;  %s13458_s11 = inlined_call_operand.vmem [shape: f32[1,48], index: 11, kind: input, shape index: {}]   ;;  %s13459_s12 = inlined_call_operand.vmem [shape: f32[2,32,32], index: 12, kind: input, shape index: {}]   ;;  %s13460_s13 = inlined_call_operand.vmem [shape: f32[1,32], index: 13, kind: input, shape index: {}]   ;;  %s13461_s14 = inlined_call_operand.vmem [shape: f32[1,32], index: 14, kind: input, shape index: {}]   ;;  %s13462_s15 = inlined_call_operand.vmem [shape: f32[1,32], index: 15, kind: input, shape index: {}]   ;;  %s13463_s16 = inlined_call_operand.vmem [shape: f32[32,64], index: 16, kind: input, shape index: {}]   ;;  %s13464_s17 = inlined_call_operand.vmem [shape: f32[1,64], index: 17, kind: input, shape index: {}]   ;;  %s13465_s18 = inlined_call_operand.vmem [shape: f32[64,32], index: 18, kind: input, shape index: {}]   ;;  %s13466_s19 = inlined_call_operand.vmem [shape: f32[1,32], index: 19, kind: input, shape index: {}]   ;;  %s13467_s20 = inlined_call_operand.vmem [shape: f32[16,16], index: 20, kind: input, shape index: {}]   ;;  %s13468_s21 = inlined_call_operand.vmem [shape: f32[128,8], index: 21, kind: input, shape index: {}]   ;;  %s13469_s22 = inlined_call_operand.vmem [shape: f32[128,16], index: 22, kind: input, shape index: {}]   ;;  %s13470_s23 = inlined_call_operand.vmem [shape: f32[8,128], index: 23, kind: input, shape index: {}]   ;;  %s13471_s24 = inlined_call_operand.vmem [shape: f32[128,32], index: 24, kind: input, shape index: {}]   ;;  %s13472_s25 = inlined_call_operand.hbm [shape: f32[2,8,32], index: 25, kind: output, shape index: {}]  }
   0x1   :  { %13861 = sst [smem:[#allocation175_spill]] %s13447_s0 }
   0x2   :  { %13862 = sst [smem:[#allocation176_spill]] %s13448_s1 }
   0x3   :  { %13863 = sst [smem:[#allocation177_spill]] %s13449_s2 }
   0x4   :  { %13864 = sst [smem:[#allocation178_spill]] %s13450_s3 }
   0x5   :  { %13865 = sst [smem:[#allocation179_spill]] %s13451_s4 }
   0x6   :  { %13866 = sst [smem:[#allocation180_spill]] %s13452_s5 }
   0x7   :  { %13867 = sst [smem:[#allocation181_spill]] %s13453_s6 }
   0x8   :  { %13868 = sst [smem:[#allocation182_spill]] %s13454_s7 }
   0x9   :  { %13869 = sst [smem:[#allocation183_spill]] %s13455_s8 }
   0xa   :  { %13870 = sst [smem:[#allocation184_spill]] %s13456_s9 }
   0xb   :  { %13871 = sst [smem:[#allocation185_spill]] %s13466_s19 }
   0xc   :  { %13872 = sst [smem:[#allocation186_spill]] %s13472_s25 }
   0xd   :  { %30 = vsyncpa [#allocation3], 0 }
   0xe   :  { %32 = vsyncpa [#allocation3 + $0x1], 0  ;;  %s7454_s29 = smov 0   ;;  %s7456_s2 = smov 0  }
   0xf   :  { %s7458_s6 = smov 0   ;;  %s7460_s30 = smov 0  }
  0x10 LB: > { %13873 = sst [smem:[#allocation5_spill]] %s7296_s29  ;;  %s7475_s7 = sadd.s32 4294967295, %s7308_s30   ;;  %s7308_s30 = sphi %s7460_s30, %s15293_s30   ;;  %s7304_s6 = sphi %s7458_s6, %s15295_s6   ;;  %s7300_s2 = sphi %s7456_s2, %s15297_s2   ;;  %s7296_s29 = sphi %s7454_s29, %s15296_s29  }
  0x11   : > { %13874 = sst [smem:[#allocation6_spill]] %s7304_s6  ;;  %s6117_s3 = sadd.s32 4294967294, %s7308_s30  }
  0x12   : > { %13875 = sst [smem:[#allocation7_spill]] %s7308_s30  ;;  %s7479_s26 = sadd.s32 1, %s7308_s30  }
  0x13   : > { %13876 = sst [smem:[#allocation8_spill]] %s7479_s26  ;;  %s590_s1 = sadd.s32 1, %s7304_s6 }
  0x14   : > { %s587_s8 = ssub.s32 %s7308_s30, %s7479_s26  ;;  %p600_p0 = scmp.ne.s32.totalorder %s7304_s6, %s7300_s2 }
  0x15   : > { %p588_p1 = scmp.eq.s32.totalorder %s587_s8, 0  ;;  %p601_p2 = scmp.eq.s32.totalorder %s7475_s7, 1 }
  0x16   : > { %p606_p3 = scmp.ne.s32.totalorder %s7300_s2, %s7296_s29  ;;  %p607_p4 = scmp.eq.s32.totalorder %s6117_s3, 1 }
  0x17   : > { %s7490_s27 = scalar_select %p588_p1, %s7304_s6, %s590_s1  }
  0x18   : > { %p7492_p5 = por %p601_p2, %p600_p0  ;;  %p7496_p6 = por %p607_p4, %p606_p3 }
  0x19   : > { %13877 = sst [smem:[#allocation9_spill]] %s7490_s27  ;;  %p6120_p7 = scmp.ge.s32.totalorder %s7308_s30, 1 }
  0x1a   : > { %s13879_s28 = scalar_select %p7496_p6, 1, 0 }
  0x1b   : > { %p718_p8 = scmp.lt.s32.totalorder %s7308_s30, 3 }
  0x1c   : > { %13880 = sst [smem:[#allocation10_spill]] %s13879_s28 }
  0x1d   : > { %p719_p9 = pnand %p6120_p7, %p718_p8 }
  0x1f   : > { %722 = sbr.rel (%p719_p9) target bundleno = 6669 (0x1a0d), region = 120 }
  0x24   : > { %p799_p10 = scmp.lt.s32.totalorder %s7475_s7, 1  ;;  %v13487_v0 = vmov 0   ;;  %v7311_v1 = vmov 2   ;;  %s13881_s8 = sld [smem:[#allocation176_spill]]  ;;  %v13485_v3 = vmov 1   ;;  %v851_v4 = vlaneseq }
  0x25   : > { %6640 = vset.pattern.permute.xlu0 %v13487_v0  ;;  %6642 = vset.pattern.permute.xlu1 %v7311_v1  ;;  %s13882_s28 = sld [smem:[#allocation178_spill]]  ;;  %v13489_v41 = vmov 0.0   ;;  %v13890_v45 = vmov 0 }
  0x26   : > { %s7505_s9 = scalar_select %p799_p10, %s7475_s7, 1  ;;  %v874_v5 = vshrl.u32 %v851_v4, 7  ;;  %6310 = vmatprep.subr.mxu1 %v13489_v41 }
  0x27   : > { %s13883_s6 = sld [smem:[#allocation179_spill]] }
  0x28   : > { %s6122_s5 = sshll.u32 %s7505_s9, 3  ;;  %s6200_s0 = sshll.u32 %s7505_s9, 5  ;;  %v875_v6 = vsub.s32 0, %v874_v5  ;;  %v884_v9 = vsub.s32 1, %v874_v5  ;;  %v894_v10 = vsub.s32 2, %v874_v5 }
  0x29   : > { %s13885_s1 = sld [smem:[#allocation180_spill]]  ;;  %s13493_s9 = smov 32  }
  0x2a   : > { %s806_s27 = scalar_lea.vmem %s13881_s8, %s6122_s5  ;;  %s13482_s8 = smov 1  }
  0x2b   : > { %s7519_s29 = scalar_lea.vmem %s13882_s28, %s6200_s0  ;;  %v819_v2 = vld [vmem:[%s806_s27] sm:$0xff]  ;;  %s13884_s28 = sld [smem:[#allocation181_spill]] }
  0x2c   : > { %870 = vperm.xlu0 %6640, %v819_v2   ;;  %889 = vperm.xlu1 %6642, %v819_v2   ;;  %s13886_s27 = sld [smem:[#allocation182_spill]] }
  0x2d   : > { %v866_v7 = vld [vmem:[%s13883_s6] sm:$0x7]  ;;  %s13899_s6 = sld [smem:[#allocation177_spill]] }
  0x2e   : > { %v876_v12 = vrot.slane %v866_v7, %v875_v6  ;;  %v885_v14 = vrot.slane %v866_v7, %v884_v9  ;;  %v895_v16 = vrot.slane %v866_v7, %v894_v10  ;;  %s13901_s3 = sld [smem:[#allocation183_spill]] }
  0x2f   : > { %v6131_v28 = vld [vmem:[%s13885_s1] ss:$0 sm:$0xff]  ;;  %s13902_s1 = sld [smem:[#allocation184_spill]] }
  0x30   : > { %6641 = vset.pattern.permute.xlu0 %v13485_v3  ;;  %6643 = vset.pattern.permute.xlu1 %v13485_v3  ;;  %s15287_s19 = sld [smem:[#allocation185_spill]] }
  0x31   : > { %879 = vperm.xlu0 %6641, %v819_v2   ;;  %v3444_v8 = vld [vmem:[%s13884_s28] sm:$0x7]  ;;  %s13478_s28 = smov 127  }
  0x32   : > { %v3449_v13 = vrot.slane %v3444_v8, %v875_v6  ;;  %v3454_v15 = vrot.slane %v3444_v8, %v884_v9  ;;  %v3460_v17 = vrot.slane %v3444_v8, %v894_v10  ;;  %v6159_v29 = vld [vmem:[%s13886_s27] ss:$0 sm:$0xff]  ;;  %s13495_s27 = smov 16  }
  0x33   : > { %s811_s26 = scalar_lea.vmem %s13899_s6, %s6200_s0  ;;  %s13480_s0 = smov 17  }
  0x34   : > { %s13900_s6 = sld [smem:[#allocation175_spill]] }
  0x35   : > { %6644 = vset.pattern.permute.xlu0 %v13487_v0 }
  0xa7   : > { %v871_v11 = vpop.permute.xlu0 %870  ;;  %v890_v18 = vpop.permute.xlu1 %889 }
  0xa8   : > { %v877_v19 = vmul.f32 %v876_v12, %v871_v11  ;;  %v3450_v20 = vmul.f32 %v3449_v13, %v871_v11  ;;  %v896_v24 = vmul.f32 %v895_v16, %v890_v18  ;;  %v3461_v25 = vmul.f32 %v3460_v17, %v890_v18 }
  0xa9   : > { %v7594_v11 = vand.u32 127, %v851_v4 }
  0xab   : > { %13897 = vst [vmem:[#allocation13_spill] sm:$0xff] %v7594_v11  ;;  %v7597_v12 = vadd.s32 128, %v7594_v11 }
  0xac   : > { %v880_v21 = vpop.permute.xlu0 %879 }
  0xad   : > { %v886_v22 = vmul.f32 %v885_v14, %v880_v21  ;;  %v3455_v23 = vmul.f32 %v3454_v15, %v880_v21  ;;  %13898 = vst [vmem:[#allocation14_spill] sm:$0xff] %v7597_v12  ;;  %v7163_v21 = vld [vmem:[%s811_s26 + $0x14] ss:$8 sps:$4 sm:$0xff]  }
  0xae   : > { %1069 = vmatprep.subr.bf16.mxu0 %v7163_v21 }
  0xaf   : > { %v887_v26 = vadd.f32 %v886_v22, %v877_v19  ;;  %v3456_v27 = vadd.f32 %v3455_v23, %v3450_v20  ;;  %v7165_v22 = vld [vmem:[%s811_s26 + $0x10] ss:$8 sps:$4 sm:$0xff]  }
  0xb0   : > { %1070 = vmatpush1.bf16.xpose.msra.mxu0 %v7165_v22 }
  0xb1   : > { %v897_v30 = vadd.f32 %v896_v24, %v887_v26  ;;  %v3462_v31 = vadd.f32 %v3461_v25, %v3456_v27  ;;  %v7166_v24 = vld [vmem:[%s811_s26 + $0x4] ss:$8 sps:$4 sm:$0xff]   ;;  %v7168_v25 = vld [vmem:[%s811_s26] ss:$8 sps:$4 sm:$0xff]   ;;  %s13783_s26 = smov 112  }
  0xb2   : > { %1071 = vmatprep.subr.bf16.mxu0 %v7166_v24 }
  0xb3   : > { %v7537_v32 = vadd.f32 %v6131_v28, %v897_v30  ;;  %v7539_v33 = vadd.f32 %v6159_v29, %v3462_v31 }
  0xb5   : > { %13887 = vst [vmem:[#allocation11_spill] sm:$0xff] %v7539_v33  ;;  %v3470_v34 = vmul.f32 2.0, %v7539_v33  ;;  %v905_v35 = vmul.f32 2.0, %v7537_v32 }
  0xb7   : > { %v3471_v36 = vmul.f32 0.06666667, %v3470_v34  ;;  %v907_v37 = vmul.f32 0.06666667, %v905_v35 }
  0xb8   : > { %1072 = vmatpush1.bf16.xpose.msra.mxu0 %v7168_v25 }
  0xb9   : > { %v7543_v38 = vadd.f32 -1.0, %v3471_v36  ;;  %v6132_v39 = vadd.f32 -1.0, %v907_v37  ;;  %3174 = vmatprep.subr.bf16.mxu0 %v7163_v21  ;;  %v7705_v21 = vld [vmem:[%s13469_s22 + $0x28] sm:$0xff] }
  0xbb   : > { %vm910_vm0 = vcmp.le.f32.partialorder %v6132_v39, 16.0  ;;  %v923_v40 = vadd.f32 1.0, %v6132_v39  ;;  %vm909_vm1 = vcmp.ge.f32.partialorder %v6132_v39, 0.0  ;;  %vm3473_vm3 = vcmp.ge.f32.partialorder %v7543_v38, 0.0 }
  0xbc   : > { %v917_v42 = vsel %vm910_vm0, 1, %v13487_v0  ;;  %vm7548_vm2 = vmand %vm909_vm1, %vm910_vm0  ;;  %vm3474_vm4 = vcmp.le.f32.partialorder %v7543_v38, 16.0  ;;  %v912_v51 = vsel %vm909_vm1, 1, %v13487_v0 }
  0xbd   : > { %v924_v44 = vmul.f32 0.5, %v923_v40  ;;  %918 = vrot.lane.b32.xlu0 %v917_v42, %s13478_s28  ;;  %vm7559_vm5 = vmand %vm3473_vm3, %vm3474_vm4 }
  0xbe   : > { %v13891_v45 = vsel %vm7559_vm5, 4294967295, %v13890_v45 }
  0xbf   : > { %13892 = vst [vmem:[#allocation12_spill] sm:$0xff] %v13891_v45  ;;  %v925_v46 = vmul.f32 15.0, %v924_v44 }
  0xc1   : > { %v926_v47 = vfloor.f32 %v925_v46 }
  0xc3   : > { %968 = vrot.lane.b32.xlu1 %v926_v47, %s13482_s8  ;;  %v928_v48 = vsub.f32 %v925_v46, %v926_v47  ;;  %v927_v49 = vadd.f32 1.0, %v926_v47  ;;  %vm930_vm6 = vcmp.ge.f32.partialorder %v926_v47, 0.0  ;;  %vm931_vm7 = vcmp.le.f32.partialorder %v926_v47, 15.0 }
  0xc4   : > { %vm7566_vm10 = vmand %vm930_vm6, %vm931_vm7  ;;  %v966_v56 = vmul.f32 16.0, %v926_v47 }
  0xc5   : > { %v929_v50 = vsub.f32 1.0, %v928_v48  ;;  %vm933_vm8 = vcmp.ge.f32.partialorder %v927_v49, 0.0  ;;  %vm934_vm9 = vcmp.le.f32.partialorder %v927_v49, 15.0  ;;  %v938_v55 = vsel %vm7566_vm10, 1, %v13487_v0 }
  0xc6   : > { %vm7572_vm11 = vmand %vm933_vm8, %vm934_vm9 }
  0xc7   : > { %944 = vrot.lane.b32.xlu0 %v929_v50, %s13478_s28  ;;  %913 = vrot.lane.b32.xlu1 %v912_v51, %s13478_s28  ;;  %v952_v54 = vsel %vm7572_vm11, 1, %v13487_v0 }
  0xcb   : > { %953 = vrot.lane.b32.xlu0 %v952_v54, %s13478_s28  ;;  %939 = vrot.lane.b32.xlu1 %v938_v55, %s13478_s28 }
 0x12f   : > { %v919_v59 = vpop.permute.xlu0 %918 }
 0x130   : > { %vm920_vm13 = vcmp.ne.s32.totalorder %v919_v59, 0 }
 0x135   : > { %v969_v57 = vpop.permute.xlu1 %968 }
 0x136   : > { %v971_v58 = vadd.f32 %v969_v57, %v966_v56 }
 0x138   : > { %v6520_v60 = vtrunc.f32 %v971_v58 }
 0x139   : > { %v914_v61 = vpop.permute.xlu1 %913  ;;  %v945_v6 = vpop.permute.xlu0 %944 }
 0x13a   : > { %v6521_v62 = vcvt.f32.s32 %v6520_v60  ;;  %vm915_vm12 = vcmp.ne.s32.totalorder %v914_v61, 0 }
 0x13b   : > { %vm916_vm14 = vmand %vm7548_vm2, %vm915_vm12 }
 0x13c   : > { %vm921_vm15 = vmand %vm916_vm14, %vm920_vm13  ;;  %974 = vperm.xlu1 %6643, %v6521_v62   ;;  %vm13564_vm13 = vcmp.lt.s32.totalorder %v7594_v11, 16  ;;  %vm13563_vm14 = vcmp.lt.s32.totalorder %v7594_v11, 17 }
 0x13d   : > { %v922_v63 = vsel %vm921_vm15, 1.0, %v13489_v41  ;;  %v940_v1 = vpop.permute.xlu1 %939  ;;  %v954_v13 = vpop.permute.xlu0 %953  ;;  %vm13513_vm15 = vmmov 0  }
 0x13e   : > { %vm941_vm0 = vcmp.ne.s32.totalorder %v940_v1, 0  ;;  %v936_v2 = vmul.f32 %v929_v50, %v922_v63  ;;  %v937_v5 = vmul.f32 %v928_v48, %v922_v63  ;;  %vm955_vm8 = vcmp.ne.s32.totalorder %v954_v13, 0  ;;  %6318 = vmatprep.mubr.msk.f32.mxu1 %vm13513_vm15, %v13489_v41 }
 0x13f   : > { %vm942_vm1 = vmand %vm7566_vm10, %vm941_vm0 }
 0x140   : > { %958 = vrot.lane.b32.xlu1 %v928_v48, %s13478_s28  ;;  %v947_v7 = vmul.f32 %v945_v6, %v936_v2  ;;  %v950_v8 = vmul.f32 %v945_v6, %v937_v5  ;;  %vm949_vm2 = vmand %vm7572_vm11, %vm941_vm0  ;;  %s7623_s28 = scalar_lea.vmem %s13900_s6, %s6122_s5  ;;  %vm13484_vm0 = vcmask 392448   ;;  %s13497_s6 = smov 96  }
 0x141   : > { %6645 = vset.pattern.permute.xlu1 %v13487_v0  ;;  %vm956_vm9 = vmand %vm7566_vm10, %vm955_vm8  ;;  %v818_v26 = vld [vmem:[%s7623_s28] sm:$0xff]  ;;  %vm13512_vm10 = vcmask 261120   ;;  %s14723_s5 = smov 112  }
 0x142   : > { %v948_v9 = vsel %vm942_vm1, %v947_v7, 0.0  ;;  %v951_v10 = vsel %vm949_vm2, %v950_v8, 0.0  ;;  %vm963_vm12 = vmand %vm7572_vm11, %vm955_vm8  ;;  %v823_v27 = vsel %vm13512_vm10, %v818_v26, 0.0  ;;  %vm13582_vm11 = vcmp.lt.s32.totalorder %v7594_v11, 1 }
 0x143   : > { %982 = vperm.xlu0 %6644, %v948_v9   ;;  %vm13511_vm2 = vcmask 130048  }
 0x144   : > { %996 = vperm.xlu1 %6645, %v951_v10  }
 0x1b7   : > { %v975_v14 = vpop.permute.xlu1 %974 }
 0x1b8   : > { %vm976_vm6 = vcmp.eq.s32.totalorder %v7594_v11, %v975_v14  ;;  %vm977_vm7 = vcmp.eq.s32.totalorder %v7597_v12, %v975_v14  ;;  %v1100_v14 = vld [vmem:[%s13457_s10 + $0x18] sm:$0xff] }
 0x1b9   : > { %v978_v15 = vsel %vm976_vm6, 1.0, %v13489_v41  ;;  %v979_v16 = vsel %vm977_vm7, 1.0, %v13489_v41  ;;  %6311 = vmatpush3.msra.mxu1 %v1100_v14 }
 0x1ba   : > { %v6646_v17 = vpack.i.bf16 %v979_v16, %v978_v15  ;;  %6312 = vmatprep.subr.mxu1 %v13489_v41 }
 0x1bb   : > { %v959_v18 = vpop.permute.xlu1 %958 }
 0x1bc   : > { %v961_v19 = vmul.f32 %v959_v18, %v936_v2  ;;  %6647 = vrot.lane.b32.xlu0 %v6646_v17, %s13482_s8  ;;  %v964_v4 = vmul.f32 %v959_v18, %v937_v5  ;;  %v7678_v18 = vld [vmem:[%s13469_s22 + $0x8] sm:$0xff]  ;;  %s14009_s8 = smov 17  }
 0x1be   : > { %v962_v20 = vsel %vm956_vm9, %v961_v19, 0.0  ;;  %v965_v23 = vsel %vm963_vm12, %v964_v4, 0.0  ;;  %v983_v28 = vpop.permute.xlu0 %982  ;;  %v7683_v19 = vld [vmem:[%s13469_s22 + $0x10] sm:$0xff]  ;;  %v7690_v4 = vld [vmem:[%s13469_s22 + $0x18] sm:$0xff] }
 0x1bf   : > { %1012 = vperm.xlu1 %6645, %v962_v20   ;;  %v997_v30 = vpop.permute.xlu1 %996  ;;  %v985_v47 = vmul.f32 %v983_v28, %v978_v15  ;;  %v986_v50 = vmul.f32 %v983_v28, %v979_v16  ;;  %v1099_v15 = vld [vmem:[%s13457_s10 + $0x10] sm:$0xff]  ;;  %v1098_v16 = vld [vmem:[%s13457_s10 + $0x8] sm:$0xff]  ;;  %v7698_v20 = vld [vmem:[%s13469_s22 + $0x20] sm:$0xff] }
 0x1c0   : > { %6652 = vrot.lane.b32.xlu0 %v6646_v17, %s13495_s27  ;;  %6313 = vmatpush3.msra.mxu1 %v1099_v15  ;;  %v7754_v28 = vld [vmem:[%s13469_s22 + $0x60] sm:$0xff] }
 0x1c1   : > { %6314 = vmatprep.subr.mxu1 %v13489_v41 }
 0x1c2   : > { %6315 = vmatpush3.msra.mxu1 %v1098_v16  ;;  %v1189_v16 = vld [vmem:[%s13467_s20 + $0x8] sm:$0xff] }
 0x1c3   : > { %1028 = vperm.xlu1 %6645, %v965_v23   ;;  %6316 = vmatprep.subr.mxu1 %v13489_v41  ;;  %v7719_v23 = vld [vmem:[%s13469_s22 + $0x38] sm:$0xff] }
 0x1c7   : > { %6657 = vrot.lane.b32.xlu1 %v6646_v17, %s13480_s0  ;;  %v7670_v17 = vld [vmem:[%s13469_s22] sm:$0xff]  ;;  %s14013_s0 = smov 16  }
 0x1c8   : > { %6661 = vset.pattern.permute.xlu1 %v13485_v3 }
 0x1df   : > { %824 = vadd.xlane.f32.xlu0 %v823_v27  ;;  %v7747_v27 = vld [vmem:[%s13469_s22 + $0x58] sm:$0xff] }
 0x1f5   : > { %1626 = vrot.lane.b32.xlu0 %v7670_v17, %s13495_s27 }
 0x1f9   : > { %1630 = vrot.lane.b32.xlu0 %v7683_v19, %s13495_s27 }
 0x1fd   : > { %1634 = vrot.lane.b32.xlu0 %v7698_v20, %s13495_s27 }
 0x22e   : > { %v6648_v29 = vpop.permute.xlu0 %6647 }
 0x22f   : > { %v6650_v31 = vunpack.i.h.bf16 %v6648_v29  ;;  %v6649_v34 = vunpack.i.l.bf16 %v6648_v29  ;;  %v7761_v29 = vld [vmem:[%s13469_s22 + $0x68] sm:$0xff] }
 0x231   : > { %v993_v37 = vsel %vm13582_vm11, %v6650_v31, %v6649_v34  ;;  %v992_v42 = vsel %vm13582_vm11, %v6649_v34, %v6650_v31  ;;  %v7775_v31 = vld [vmem:[%s13469_s22 + $0x78] sm:$0xff] }
 0x232   : > { %v6653_v35 = vpop.permute.xlu0 %6652  ;;  %v999_v44 = vmul.f32 %v997_v30, %v993_v37  ;;  %v1000_v46 = vmul.f32 %v997_v30, %v992_v42  ;;  %v7768_v30 = vld [vmem:[%s13469_s22 + $0x70] sm:$0xff]  ;;  %v6129_v42 = vld [vmem:[%s13902_s1] ss:$0 sm:$0xff]  ;;  %s14380_s1 = smov 127  }
 0x233   : > { %v6655_v39 = vunpack.i.h.bf16 %v6653_v35  ;;  %v6654_v40 = vunpack.i.l.bf16 %v6653_v35 }
 0x234   : > { %v1001_v56 = vadd.f32 %v999_v44, %v985_v47  ;;  %v1002_v57 = vadd.f32 %v1000_v46, %v986_v50 }
 0x235   : > { %v1008_v48 = vsel %vm13564_vm13, %v6654_v40, %v6655_v39  ;;  %v1009_v49 = vsel %vm13564_vm13, %v6655_v39, %v6654_v40  ;;  %v6128_v39 = vld [vmem:[%s13901_s3] ss:$0 sm:$0xff] }
 0x23a   : > { %v1013_v36 = vpop.permute.xlu1 %1012 }
 0x23b   : > { %v1015_v51 = vmul.f32 %v1013_v36, %v1009_v49  ;;  %v1016_v52 = vmul.f32 %v1013_v36, %v1008_v48 }
 0x23d   : > { %v1017_v60 = vadd.f32 %v1015_v51, %v1001_v56  ;;  %v1018_v61 = vadd.f32 %v1016_v52, %v1002_v57  ;;  %v6137_v52 = vld [vmem:[%s13458_s11] ss:$0 sm:$0xff] }
 0x23e   : > { %v1029_v43 = vpop.permute.xlu1 %1028 }
 0x242   : > { %v6658_v53 = vpop.permute.xlu1 %6657 }
 0x243   : > { %v6660_v54 = vunpack.i.h.bf16 %v6658_v53  ;;  %v6659_v55 = vunpack.i.l.bf16 %v6658_v53 }
 0x245   : > { %v1024_v58 = vsel %vm13563_vm14, %v6659_v55, %v6660_v54  ;;  %v1025_v59 = vsel %vm13563_vm14, %v6660_v54, %v6659_v55 }
 0x246   : > { %v1032_v62 = vmul.f32 %v1029_v43, %v1024_v58  ;;  %v1031_v63 = vmul.f32 %v1029_v43, %v1025_v59 }
 0x248   : > { %v1034_v1 = vadd.f32 %v1032_v62, %v1018_v61  ;;  %v1033_v2 = vadd.f32 %v1031_v63, %v1017_v60 }
 0x24a   : > { %v1036_v5 = vpack.c.bf16 %v1034_v1, %v1034_v1  ;;  %v1035_v6 = vpack.c.bf16 %v1033_v2, %v1033_v2 }
 0x24c   : > { %1089 = vmatprep.mubr.bf16.mxu0 %v1036_v5 }
 0x24d   : > { %1090 = vmatmul.mubr.bf16.vlgmr.msra.gmra.mxu0 %v1035_v6 }
 0x24e   : > { %3175 = vmatpush1.bf16.xpose.msra.mxu0 %v7165_v22  ;;  %v7712_v22 = vld [vmem:[%s13469_s22 + $0x30] sm:$0xff] }
 0x24f   : > { %3176 = vmatprep.subr.bf16.mxu0 %v7166_v24  ;;  %1638 = vrot.lane.b32.xlu0 %v7712_v22, %s13495_s27  ;;  %v7726_v24 = vld [vmem:[%s13469_s22 + $0x40] sm:$0xff] }
 0x253   : > { %1642 = vrot.lane.b32.xlu0 %v7726_v24, %s13495_s27 }
 0x256   : > { %3177 = vmatpush1.bf16.xpose.msra.mxu0 %v7168_v25  ;;  %v7733_v25 = vld [vmem:[%s13469_s22 + $0x48] sm:$0xff] }
 0x268   : > { %v825_v7 = vpop.xlane.xlu0 %824 }
 0x269   : > { %v827_v8 = vmul.f32 0.03125, %v825_v7 }
 0x26b   : > { %v7642_v9 = vsub.f32 %v818_v26, %v827_v8  ;;  %v7740_v26 = vld [vmem:[%s13469_s22 + $0x50] sm:$0xff] }
 0x26c   : > { %1646 = vrot.lane.b32.xlu0 %v7740_v26, %s13495_s27 }
 0x26d   : > { %v829_v10 = vmul.f32 %v7642_v9, %v7642_v9 }
 0x26f   : > { %v830_v13 = vsel %vm13512_vm10, %v829_v10, 0.0 }
 0x270   : > { %831 = vadd.xlane.f32.xlu1 %v830_v13  ;;  %1650 = vrot.lane.b32.xlu0 %v7754_v28, %s13495_s27 }
 0x274   : > { %1654 = vrot.lane.b32.xlu0 %v7768_v30, %s13495_s27 }
 0x278   : > { %1802 = vrot.lane.b32.xlu0 %v7670_v17, %s13493_s9 }
 0x281   : > { %1281 = vperm.xlu1 %6661, %v7537_v32  }
 0x285   : > { %6662 = vset.pattern.permute.xlu1 %v13487_v0 }
 0x286   : > { %1276 = vperm.xlu1 %6662, %v7537_v32   ;;  %v1097_v32 = vld [vmem:[%s13457_s10] sm:$0xff] }
 0x287   : > { %6317 = vmatpush3.msra.mxu1 %v1097_v32  ;;  %v1188_v32 = vld [vmem:[%s13467_s20] sm:$0xff] }
 0x288   : > { %6321 = vmatprep.subr.mxu1 %v13489_v41 }
 0x28a   : > { %6903 = vset.pattern.permute.xlu1 %v13485_v3 }
 0x28b   : > { %1628 = vrot.lane.b32.xlu1 %v7678_v18, %s13495_s27 }
 0x28f   : > { %1632 = vrot.lane.b32.xlu1 %v7690_v4, %s13495_s27 }
 0x293   : > { %1636 = vrot.lane.b32.xlu1 %v7705_v21, %s13495_s27 }
 0x297   : > { %1640 = vrot.lane.b32.xlu1 %v7719_v23, %s13495_s27 }
 0x29b   : > { %1644 = vrot.lane.b32.xlu1 %v7733_v25, %s13495_s27 }
 0x29f   : > { %1648 = vrot.lane.b32.xlu1 %v7747_v27, %s13495_s27 }
 0x2a3   : > { %1652 = vrot.lane.b32.xlu1 %v7761_v29, %s13495_s27 }
 0x2a7   : > { %1656 = vrot.lane.b32.xlu1 %v7775_v31, %s13495_s27  ;;  %s13937_s27 = smov 96  }
 0x2ab   : > { %1804 = vrot.lane.b32.xlu1 %v7678_v18, %s13493_s9 }
 0x2af   : > { %1808 = vrot.lane.b32.xlu1 %v7690_v4, %s13493_s9 }
 0x2b3   : > { %1812 = vrot.lane.b32.xlu1 %v7705_v21, %s13493_s9 }
 0x2b7   : > { %1816 = vrot.lane.b32.xlu1 %v7719_v23, %s13493_s9 }
 0x2bb   : > { %1820 = vrot.lane.b32.xlu1 %v7733_v25, %s13493_s9 }
 0x2bf   : > { %1824 = vrot.lane.b32.xlu1 %v7747_v27, %s13493_s9 }
 0x2c3   : > { %1828 = vrot.lane.b32.xlu1 %v7761_v29, %s13493_s9 }
 0x2c7   : > { %1830 = vrot.lane.b32.xlu1 %v7768_v30, %s13493_s9 }
 0x2f9   : > { %v832_v34 = vpop.xlane.xlu1 %831 }
 0x2fa   : > { %v833_v35 = vmul.f32 0.03125, %v832_v34 }
 0x2fc   : > { %v834_v36 = vadd.f32 1e-05, %v833_v35 }
 0x2fd   : > { %v1282_v51 = vpop.permute.xlu1 %1281 }
 0x2fe   : > { %7175 = vrsqrt.f32 %v834_v36 }
 0x301   : > { %v1277_v58 = vpop.permute.xlu1 %1276 }
 0x305   : > { %v7851_v35 = vpop.permute.xlu1 %1628 }
 0x306   : > { %13904 = vst [vmem:[#allocation16_spill] sm:$0xff] %v7851_v35 }
 0x309   : > { %v7853_v36 = vpop.permute.xlu1 %1632 }
 0x30a   : > { %13905 = vst [vmem:[#allocation17_spill] sm:$0xff] %v7853_v36 }
 0x30b   : > { %v7176_v37 = vpop.eup %7175 }
 0x30c   : > { %v836_v40 = vmul.f32 %v7176_v37, %v7642_v9 }
 0x30d   : > { %v1091_v43 = vpop.f32.mrf.mxu0  ;;  %v7855_v37 = vpop.permute.xlu1 %1636 }
 0x30e   : > { %v843_v44 = vmul.f32 %v6128_v39, %v836_v40  ;;  %13906 = vst [vmem:[#allocation18_spill] sm:$0xff] %v7855_v37  ;;  %v7857_v39 = vpop.permute.xlu0 %1626 }
 0x30f   : > { %v1093_v46 = vpop.f32.mrf.mxu0  ;;  %13907 = vst [vmem:[#allocation19_spill] sm:$0xff] %v7857_v39 }
 0x310   : > { %v7806_v47 = vadd.f32 %v6129_v42, %v843_v44 }
 0x311   : > { %v1094_v48 = vpop.f32.mrf.mxu0  ;;  %v7859_v40 = vpop.permute.xlu1 %1640 }
 0x312   : > { %13903 = vst [vmem:[#allocation15_spill] sm:$0xff] %v7806_v47  ;;  %v1092_v49 = vadd.f32 %v1091_v43, %v7806_v47  ;;  %13908 = vst [vmem:[#allocation20_spill] sm:$0xff] %v7859_v40  ;;  %v7861_v42 = vpop.permute.xlu0 %1630 }
 0x313   : > { %v1095_v50 = vpop.f32.mrf.mxu0  ;;  %13909 = vst [vmem:[#allocation21_spill] sm:$0xff] %v7861_v42 }
 0x314   : > { %6319 = vmatmul.mubr.msk.f32.vlgmr.msra.gmra.mxu1 %vm13512_vm10, %v1092_v49 }
 0x315   : > { %6325 = vmatprep.mubr.msk.f32.mxu1 %vm13513_vm15, %v13489_v41  ;;  %6322 = vmatpush3.msra.mxu1 %v1189_v16  ;;  %v7863_v43 = vpop.permute.xlu1 %1644 }
 0x316   : > { %6323 = vmatprep.subr.mxu1 %v13489_v41  ;;  %13910 = vst [vmem:[#allocation22_spill] sm:$0xff] %v7863_v43  ;;  %v7865_v44 = vpop.permute.xlu0 %1634 }
 0x317   : > { %6324 = vmatpush3.msra.mxu1 %v1188_v32  ;;  %13911 = vst [vmem:[#allocation23_spill] sm:$0xff] %v7865_v44 }
 0x319   : > { %v7867_v46 = vpop.permute.xlu1 %1648 }
 0x31a   : > { %13912 = vst [vmem:[#allocation24_spill] sm:$0xff] %v7867_v46  ;;  %v7869_v48 = vpop.permute.xlu0 %1638 }
 0x31b   : > { %13913 = vst [vmem:[#allocation25_spill] sm:$0xff] %v7869_v48 }
 0x31d   : > { %v7871_v49 = vpop.permute.xlu1 %1652 }
 0x31e   : > { %13914 = vst [vmem:[#allocation26_spill] sm:$0xff] %v7871_v49  ;;  %v7873_v50 = vpop.permute.xlu0 %1642 }
 0x31f   : > { %13915 = vst [vmem:[#allocation27_spill] sm:$0xff] %v7873_v50 }
 0x3d4   : > { %v1177_v53 = vpop.f32.mrf.mxu1 }
 0x3d5   : > { %v7815_v54 = vadd.f32 %v6137_v52, %v1177_v53  ;;  %v7877_v52 = vpop.permute.xlu0 %1646 }
 0x3d6   : > { %v6320_v55 = vpop.f32.mrf.mxu1  ;;  %13917 = vst [vmem:[#allocation29_spill] sm:$0xff] %v7877_v52 }
 0x3d7   : > { %v1273_v56 = vmul.f32 0.0625, %v7815_v54  ;;  %v1182_v57 = vsel %vm13484_vm0, %v7815_v54, -inf }
 0x3d8   : > { %1183 = vmax.xlane.f32.xlu0 %v1182_v57 }
 0x3d9   : > { %v1279_v59 = vadd.f32 %v1277_v58, %v1273_v56  ;;  %v1284_v60 = vadd.f32 %v1282_v51, %v1273_v56  ;;  %v7875_v51 = vpop.permute.xlu1 %1656  ;;  %v7881_v55 = vpop.permute.xlu0 %1650 }
 0x3da   : > { %13916 = vst [vmem:[#allocation28_spill] sm:$0xff] %v7875_v51  ;;  %13919 = vst [vmem:[#allocation31_spill] sm:$0xff] %v7881_v55 }
 0x3db   : > { %v1285_v61 = vmul.f32 0.06666667, %v1279_v59  ;;  %v1288_v62 = vmul.f32 0.06666667, %v1284_v60 }
 0x3dd   : > { %v1286_v63 = vmul.f32 2.0, %v1285_v61  ;;  %v1289_v1 = vmul.f32 2.0, %v1288_v62  ;;  %v7879_v53 = vpop.permute.xlu1 %1804  ;;  %v7885_v57 = vpop.permute.xlu0 %1654 }
 0x3de   : > { %13918 = vst [vmem:[#allocation30_spill] sm:$0xff] %v7879_v53  ;;  %13921 = vst [vmem:[#allocation33_spill] sm:$0xff] %v7885_v57 }
 0x3df   : > { %v7820_v2 = vadd.f32 -1.0, %v1286_v63  ;;  %v6141_v5 = vadd.f32 -1.0, %v1289_v1 }
 0x3e1   : > { %vm1300_vm1 = vcmp.le.f32.partialorder %v6141_v5, 16.0  ;;  %v1307_v7 = vadd.f32 1.0, %v7820_v2  ;;  %v1310_v8 = vadd.f32 1.0, %v6141_v5  ;;  %vm1294_vm6 = vcmp.ge.f32.partialorder %v6141_v5, 0.0  ;;  %v7883_v56 = vpop.permute.xlu1 %1808  ;;  %v7889_v59 = vpop.permute.xlu0 %1802 }
 0x3e2   : > { %v1301_v6 = vsel %vm1300_vm1, 1, %v13487_v0  ;;  %v1295_v34 = vsel %vm1294_vm6, 1, %v13487_v0  ;;  %13920 = vst [vmem:[#allocation32_spill] sm:$0xff] %v7883_v56  ;;  %13923 = vst [vmem:[#allocation35_spill] sm:$0xff] %v7889_v59  ;;  %vm1291_vm7 = vcmp.ge.f32.partialorder %v7820_v2, 0.0  ;;  %vm1292_vm8 = vcmp.le.f32.partialorder %v7820_v2, 16.0 }
 0x3e3   : > { %1302 = vrot.lane.b32.xlu1 %v1301_v6, %s13783_s26  ;;  %v1308_v9 = vmul.f32 0.5, %v1307_v7  ;;  %v1311_v10 = vmul.f32 0.5, %v1310_v8  ;;  %vm1293_vm9 = vmand %vm1291_vm7, %vm1292_vm8  ;;  %v1320_v2 = vld [vmem:[%s13468_s21] sm:$0xff]  ;;  %vm13508_vm7 = vcmask 64512  }
 0x3e5   : > { %v1309_v13 = vmul.f32 15.0, %v1308_v9  ;;  %v1312_v14 = vmul.f32 15.0, %v1311_v10  ;;  %v7887_v58 = vpop.permute.xlu1 %1812 }
 0x3e6   : > { %13922 = vst [vmem:[#allocation34_spill] sm:$0xff] %v7887_v58 }
 0x3e7   : > { %v7826_v15 = vsel %vm13511_vm2, %v1309_v13, %v1312_v14 }
 0x3e9   : > { %v7891_v61 = vpop.permute.xlu1 %1816 }
 0x3ea   : > { %13924 = vst [vmem:[#allocation36_spill] sm:$0xff] %v7891_v61 }
 0x3ed   : > { %v7896_v5 = vpop.permute.xlu1 %1820 }
 0x3ee   : > { %1806 = vrot.lane.b32.xlu0 %v7683_v19, %s13493_s9  ;;  %13926 = vst [vmem:[#allocation38_spill] sm:$0xff] %v7896_v5 }
 0x3f1   : > { %v7902_v8 = vpop.permute.xlu1 %1824 }
 0x3f2   : > { %1810 = vrot.lane.b32.xlu0 %v7698_v20, %s13493_s9  ;;  %13929 = vst [vmem:[#allocation41_spill] sm:$0xff] %v7902_v8 }
 0x3f5   : > { %v7906_v13 = vpop.permute.xlu1 %1828 }
 0x3f6   : > { %1814 = vrot.lane.b32.xlu0 %v7712_v22, %s13493_s9  ;;  %13931 = vst [vmem:[#allocation43_spill] sm:$0xff] %v7906_v13 }
 0x3f9   : > { %v7913_v16 = vpop.permute.xlu1 %1830 }
 0x3fa   : > { %1818 = vrot.lane.b32.xlu0 %v7726_v24, %s13493_s9  ;;  %13934 = vst [vmem:[#allocation46_spill] sm:$0xff] %v7913_v16 }
 0x3fe   : > { %1822 = vrot.lane.b32.xlu0 %v7740_v26, %s13493_s9 }
 0x402   : > { %1826 = vrot.lane.b32.xlu0 %v7754_v28, %s13493_s9 }
 0x406   : > { %1832 = vrot.lane.b32.xlu0 %v7775_v31, %s13493_s9 }
 0x40a   : > { %1296 = vrot.lane.b32.xlu0 %v1295_v34, %s13783_s26 }
 0x455   : > { %v1303_v34 = vpop.permute.xlu1 %1302 }
 0x456   : > { %vm1304_vm1 = vcmp.ne.s32.totalorder %v1303_v34, 0 }
 0x461   : > { %v1184_v60 = vpop.xlane.xlu0 %1183 }
 0x462   : > { %v1185_v62 = vsub.f32 %v7815_v54, %v1184_v60 }
 0x464   : > { %v1186_v63 = vmul.f32 1.442695, %v1185_v62 }
 0x465   : > { %v7894_v1 = vpop.permute.xlu0 %1806 }
 0x466   : > { %13925 = vst [vmem:[#allocation37_spill] sm:$0xff] %v7894_v1  ;;  %7177 = vpow2.f32 %v1186_v63 }
 0x469   : > { %v7898_v6 = vpop.permute.xlu0 %1810 }
 0x46a   : > { %13927 = vst [vmem:[#allocation39_spill] sm:$0xff] %v7898_v6 }
 0x46d   : > { %v7900_v7 = vpop.permute.xlu0 %1814 }
 0x46e   : > { %13928 = vst [vmem:[#allocation40_spill] sm:$0xff] %v7900_v7 }
 0x471   : > { %v7904_v9 = vpop.permute.xlu0 %1818 }
 0x472   : > { %13930 = vst [vmem:[#allocation42_spill] sm:$0xff] %v7904_v9 }
 0x473   : > { %v7178_v10 = vpop.eup %7177 }
 0x474   : > { %1191 = vrot.lane.b32.xlu0 %v7178_v10, %s13497_s6  ;;  %s13998_s6 = smov 1  }
 0x475   : > { %v7909_v54 = vpop.permute.xlu0 %1822 }
 0x476   : > { %13932 = vst [vmem:[#allocation44_spill] sm:$0xff] %v7909_v54 }
 0x479   : > { %v7911_v14 = vpop.permute.xlu0 %1826 }
 0x47a   : > { %13933 = vst [vmem:[#allocation45_spill] sm:$0xff] %v7911_v14 }
 0x47d   : > { %v7915_v32 = vpop.permute.xlu0 %1832 }
 0x47e   : > { %13935 = vst [vmem:[#allocation47_spill] sm:$0xff] %v7915_v32 }
 0x481   : > { %v1297_v60 = vpop.permute.xlu0 %1296 }
 0x482   : > { %vm1298_vm12 = vcmp.ne.s32.totalorder %v1297_v60, 0 }
 0x483   : > { %vm1299_vm6 = vmand %vm1293_vm9, %vm1298_vm12 }
 0x484   : > { %vm1305_vm0 = vmand %vm1299_vm6, %vm1304_vm1 }
 0x485   : > { %v1306_v62 = vsel %vm1305_vm0, 1.0, %v13489_v41 }
 0x486   : > { %1314 = vrot.lane.b32.xlu1 %v1306_v62, %s13493_s9 }
 0x4e6   : > { %v1192_v63 = vpop.permute.xlu0 %1191 }
 0x4e7   : > { %6326 = vmatmul.mubr.msk.f32.vlgmr.msra.gmra.mxu1 %vm13511_vm2, %v1192_v63 }
 0x4e8   : > { %6330 = vmatprep.mubr.msk.f32.mxu1 %vm13508_vm7, %v1320_v2  ;;  %v13936_v2 = vmov 0.0  }
 0x4f8   : > { %v1315_v33 = vpop.permute.xlu1 %1314 }
 0x5a7   : > { %v1262_v3 = vpop.f32.mrf.mxu1 }
 0x5a8   : > { %1267 = vrot.lane.b32.xlu0 %v1262_v3, %s13493_s9  ;;  %v1322_v3 = vld [vmem:[%s13468_s21 + $0x10] sm:$0xff]  ;;  %s14725_s9 = smov 32  }
 0x5a9   : > { %v6327_v0 = vpop.f32.mrf.mxu1 }
 0x5aa   : > { %v1321_v0 = vld [vmem:[%s13468_s21 + $0x8] sm:$0xff] }
 0x61a   : > { %v1268_v34 = vpop.permute.xlu0 %1267 }
 0x61b   : > { %7179 = vrcp.f32 %v1268_v34  ;;  %v1327_v34 = vld [vmem:[%s13468_s21 + $0x38] sm:$0xff] }
 0x628   : > { %v7180_v60 = vpop.eup %7179 }
 0x629   : > { %v1271_v41 = vmul.f32 %v7180_v60, %v7178_v10  ;;  %v1326_v10 = vld [vmem:[%s13468_s21 + $0x30] sm:$0xff]  ;;  %v1328_v60 = vld [vmem:[%s13468_s21 + $0x40] sm:$0xff] }
 0x62b   : > { %v1317_v62 = vmul.f32 %v1315_v33, %v1271_v41  ;;  %v1323_v33 = vld [vmem:[%s13468_s21 + $0x18] sm:$0xff]  ;;  %v1324_v41 = vld [vmem:[%s13468_s21 + $0x20] sm:$0xff] }
 0x62d   : > { %v1319_v63 = vsel %vm13512_vm10, %v7826_v15, %v1317_v62  ;;  %v1325_v15 = vld [vmem:[%s13468_s21 + $0x28] sm:$0xff] }
 0x62e   : > { %6328 = vmatprep.subr.mxu1 %v1319_v63  ;;  %v1329_v62 = vld [vmem:[%s13468_s21 + $0x48] sm:$0xff] }
 0x62f   : > { %6329 = vmatpush3.msra.mxu1 %v1319_v63  ;;  %v1330_v63 = vld [vmem:[%s13468_s21 + $0x50] sm:$0xff] }
 0x630   : > { %6331 = vmatmul.mubr.msk.f32.vlgmr.msra.gmra.mxu1 %vm13508_vm7, %v1321_v0  ;;  %6354 = vmatprep.subr.mxu1 %v13936_v2  ;;  %v1331_v0 = vld [vmem:[%s13468_s21 + $0x58] sm:$0xff] }
 0x631   : > { %6333 = vmatprep.mubr.msk.f32.mxu1 %vm13508_vm7, %v1322_v3  ;;  %v1332_v3 = vld [vmem:[%s13468_s21 + $0x60] sm:$0xff] }
 0x634   : > { %6334 = vmatmul.mubr.msk.f32.gmra.mxu1 %vm13508_vm7, %v1323_v33  ;;  %v1333_v33 = vld [vmem:[%s13468_s21 + $0x68] sm:$0xff] }
 0x635   : > { %6336 = vmatprep.mubr.msk.f32.mxu1 %vm13508_vm7, %v1324_v41  ;;  %v1334_v41 = vld [vmem:[%s13468_s21 + $0x70] sm:$0xff] }
 0x638   : > { %6337 = vmatmul.mubr.msk.f32.gmra.mxu1 %vm13508_vm7, %v1325_v15  ;;  %v1335_v15 = vld [vmem:[%s13468_s21 + $0x78] sm:$0xff] }
 0x639   : > { %6339 = vmatprep.mubr.msk.f32.mxu1 %vm13508_vm7, %v1326_v10 }
 0x63c   : > { %6340 = vmatmul.mubr.msk.f32.gmra.mxu1 %vm13508_vm7, %v1327_v34 }
 0x63d   : > { %6342 = vmatprep.mubr.msk.f32.mxu1 %vm13508_vm7, %v1328_v60 }
 0x640   : > { %6343 = vmatmul.mubr.msk.f32.gmra.mxu1 %vm13508_vm7, %v1329_v62 }
 0x641   : > { %6345 = vmatprep.mubr.msk.f32.mxu1 %vm13508_vm7, %v1330_v63 }
 0x644   : > { %6346 = vmatmul.mubr.msk.f32.gmra.mxu1 %vm13508_vm7, %v1331_v0 }
 0x645   : > { %6348 = vmatprep.mubr.msk.f32.mxu1 %vm13508_vm7, %v1332_v3 }
 0x648   : > { %6349 = vmatmul.mubr.msk.f32.gmra.mxu1 %vm13508_vm7, %v1333_v33 }
 0x649   : > { %6351 = vmatprep.mubr.msk.f32.mxu1 %vm13508_vm7, %v1334_v41 }
 0x64c   : > { %6352 = vmatmul.mubr.msk.f32.gmra.mxu1 %vm13508_vm7, %v1335_v15 }
 0x64d   : > { %6386 = vmatprep.mubr.msk.f32.mxu1 %vm13513_vm15, %v13936_v2 }
 0x6f0   : > { %v6332_v10 = vpop.f32.mrf.mxu1 }
 0x6f1   : > { %v1675_v34 = vmul.f32 %v6332_v10, %v7851_v35  ;;  %v1547_v60 = vmul.f32 %v6332_v10, %v7678_v18  ;;  %v1851_v63 = vmul.f32 %v6332_v10, %v7879_v53 }
 0x6f2   : > { %v1451_v0 = vpop.f32.mrf.mxu1 }
 0x6f3   : > { %1708 = vrot.lane.b32.xlu1 %v1675_v34, %s13783_s26  ;;  %v1565_v62 = vsel %vm13511_vm2, %v1547_v60, 0.0  ;;  %v1850_v3 = vmul.f32 %v7889_v59, %v1451_v0  ;;  %v13970_v59 = vmov 0 }
 0x6f4   : > { %1566 = vadd.xlane.f32.xlu0 %v1565_v62  ;;  %v6335_v33 = vpop.f32.mrf.mxu1  ;;  %v1674_v62 = vmul.f32 %v7857_v39, %v1451_v0 }
 0x6f5   : > { %v1677_v41 = vmul.f32 %v6335_v33, %v7853_v36 }
 0x6f6   : > { %v1461_v15 = vpop.f32.mrf.mxu1 }
 0x6f7   : > { %1884 = vrot.lane.b32.xlu1 %v1851_v63, %s13937_s27  ;;  %v1852_v18 = vmul.f32 %v7894_v1, %v1461_v15 }
 0x6f8   : > { %v6338_v34 = vpop.f32.mrf.mxu1 }
 0x6f9   : > { %v1679_v10 = vmul.f32 %v6338_v34, %v7855_v37 }
 0x6fa   : > { %v1471_v60 = vpop.f32.mrf.mxu1 }
 0x6fb   : > { %1882 = vrot.lane.b32.xlu1 %v1850_v3, %s13937_s27  ;;  %v1854_v63 = vmul.f32 %v7898_v6, %v1471_v60  ;;  %v1546_v3 = vmul.f32 %v7670_v17, %v1451_v0  ;;  %v1550_v36 = vmul.f32 %v7698_v20, %v1471_v60  ;;  %v1549_v20 = vmul.f32 %v6335_v33, %v7690_v4 }
 0x6fc   : > { %v6341_v37 = vpop.f32.mrf.mxu1 }
 0x6fd   : > { %v1681_v1 = vmul.f32 %v6341_v37, %v7859_v40  ;;  %v1571_v0 = vsel %vm13511_vm2, %v1549_v20, 0.0 }
 0x6fe   : > { %v1481_v6 = vpop.f32.mrf.mxu1 }
 0x6ff   : > { %1712 = vrot.lane.b32.xlu1 %v1677_v41, %s13783_s26  ;;  %v1562_v41 = vsel %vm13511_vm2, %v1546_v3, 0.0  ;;  %v1856_v17 = vmul.f32 %v7900_v7, %v1481_v6 }
 0x700   : > { %v6344_v3 = vpop.f32.mrf.mxu1 }
 0x703   : > { %1886 = vrot.lane.b32.xlu1 %v1852_v18, %s13937_s27  ;;  %v1574_v18 = vsel %vm13511_vm2, %v1550_v36, 0.0  ;;  %v1552_v36 = vmul.f32 %v7712_v22, %v1481_v6  ;;  %v1548_v22 = vmul.f32 %v7683_v19, %v1461_v15 }
 0x707   : > { %1716 = vrot.lane.b32.xlu1 %v1679_v10, %s13783_s26  ;;  %v1853_v10 = vmul.f32 %v6335_v33, %v7883_v56  ;;  %v1568_v33 = vsel %vm13511_vm2, %v1548_v22, 0.0 }
 0x70a   : > { %1706 = vrot.lane.b32.xlu0 %v1674_v62, %s13783_s26  ;;  %v1580_v62 = vsel %vm13511_vm2, %v1552_v36, 0.0 }
 0x70b   : > { %1890 = vrot.lane.b32.xlu1 %v1854_v63, %s13937_s27  ;;  %v1676_v63 = vmul.f32 %v7861_v42, %v1461_v15 }
 0x729   : > { %1563 = vadd.xlane.f32.xlu0 %v1562_v41  ;;  %v8027_v41 = vpop.f32.mrf.mxu1 }
 0x72a   : > { %v1858_v4 = vmul.f32 %v7904_v9, %v8027_v41 }
 0x72b   : > { %v8040_v20 = vpop.f32.mrf.mxu1 }
 0x72d   : > { %v8044_v36 = vpop.f32.mrf.mxu1 }
 0x72e   : > { %v1860_v19 = vmul.f32 %v7909_v54, %v8044_v36  ;;  %v13959_v54 = vmov 0  }
 0x72f   : > { %1575 = vadd.xlane.f32.xlu1 %v1574_v18  ;;  %v1554_v18 = vmul.f32 %v7726_v24, %v8027_v41  ;;  %v1551_v24 = vmul.f32 %v6338_v34, %v7705_v21  ;;  %v8059_v22 = vpop.f32.mrf.mxu1 }
 0x730   : > { %v1687_v21 = vmul.f32 %v8059_v22, %v7871_v49  ;;  %v13956_v49 = vmov 0 }
 0x731   : > { %v1577_v15 = vsel %vm13511_vm2, %v1551_v24, 0.0 }
 0x73f   : > { %1888 = vrot.lane.b32.xlu0 %v1853_v10, %s13937_s27  ;;  %v1586_v10 = vsel %vm13511_vm2, %v1554_v18, 0.0 }
 0x740   : > { %1720 = vrot.lane.b32.xlu1 %v1681_v1, %s13783_s26  ;;  %v1683_v1 = vmul.f32 %v6344_v3, %v7863_v43 }
 0x744   : > { %1894 = vrot.lane.b32.xlu1 %v1856_v17, %s13937_s27  ;;  %v1855_v17 = vmul.f32 %v6338_v34, %v7887_v58  ;;  %v8063_v34 = vpop.f32.mrf.mxu1 }
 0x745   : > { %v1558_v18 = vmul.f32 %v7754_v28, %v8063_v34 }
 0x75e   : > { %1572 = vadd.xlane.f32.xlu0 %v1571_v0  ;;  %v1685_v0 = vmul.f32 %v8040_v20, %v7867_v46 }
 0x768   : > { %1581 = vadd.xlane.f32.xlu1 %v1580_v62  ;;  %v1556_v62 = vmul.f32 %v7740_v26, %v8044_v36  ;;  %v1862_v26 = vmul.f32 %v7911_v14, %v8063_v34 }
 0x774   : > { %1710 = vrot.lane.b32.xlu0 %v1676_v63, %s13783_s26  ;;  %v1592_v63 = vsel %vm13511_vm2, %v1556_v62, 0.0 }
 0x779   : > { %1724 = vrot.lane.b32.xlu1 %v1683_v1, %s13783_s26  ;;  %v1678_v1 = vmul.f32 %v7865_v44, %v1471_v60  ;;  %v1553_v60 = vmul.f32 %v6341_v37, %v7719_v23 }
 0x77d   : > { %1898 = vrot.lane.b32.xlu1 %v1858_v4, %s13937_s27  ;;  %v1857_v4 = vmul.f32 %v6341_v37, %v7891_v61 }
 0x793   : > { %1569 = vadd.xlane.f32.xlu0 %v1568_v33  ;;  %v1583_v33 = vsel %vm13511_vm2, %v1553_v60, 0.0 }
 0x7a1   : > { %1587 = vadd.xlane.f32.xlu1 %v1586_v10  ;;  %v1598_v10 = vsel %vm13511_vm2, %v1558_v18, 0.0 }
 0x7a9   : > { %1892 = vrot.lane.b32.xlu0 %v1855_v17, %s13937_s27  ;;  %v1680_v17 = vmul.f32 %v7869_v48, %v1481_v6  ;;  %v8088_v6 = vpop.xlane.xlu0 %1566 }
 0x7ad   : > { %v8090_v24 = vpop.permute.xlu0 %1706 }
 0x7b2   : > { %1728 = vrot.lane.b32.xlu1 %v1685_v0, %s13783_s26  ;;  %v1859_v0 = vmul.f32 %v6344_v3, %v7896_v5  ;;  %v8093_v62 = vpop.xlane.xlu0 %1563 }
 0x7b6   : > { %1902 = vrot.lane.b32.xlu1 %v1860_v19, %s13937_s27  ;;  %v8078_v19 = vpop.f32.mrf.mxu1 }
 0x7b7   : > { %v1689_v23 = vmul.f32 %v8078_v19, %v7875_v51  ;;  %v13948_v51 = vmov 0 }
 0x7b8   : > { %v8082_v37 = vpop.f32.mrf.mxu1 }
 0x7b9   : > { %v1864_v28 = vmul.f32 %v7913_v16, %v8082_v37  ;;  %v1560_v60 = vmul.f32 %v7768_v30, %v8082_v37  ;;  %v1861_v30 = vmul.f32 %v8040_v20, %v7902_v8 }
 0x7c8   : > { %1578 = vadd.xlane.f32.xlu0 %v1577_v15  ;;  %v1555_v15 = vmul.f32 %v6344_v3, %v7733_v25  ;;  %v1604_v25 = vsel %vm13511_vm2, %v1560_v60, 0.0 }
 0x7da   : > { %1593 = vadd.xlane.f32.xlu1 %v1592_v63  ;;  %v1589_v63 = vsel %vm13511_vm2, %v1555_v15, 0.0 }
 0x7de   : > { %1714 = vrot.lane.b32.xlu0 %v1678_v1, %s13783_s26  ;;  %v1709_v1 = vpop.permute.xlu1 %1708 }
 0x7e2   : > { %1896 = vrot.lane.b32.xlu0 %v1857_v4, %s13937_s27  ;;  %v8096_v4 = vpop.permute.xlu0 %1888 }
 0x7eb   : > { %1732 = vrot.lane.b32.xlu1 %v1687_v21, %s13783_s26  ;;  %v8098_v21 = vpop.permute.xlu1 %1884 }
 0x7ef   : > { %1906 = vrot.lane.b32.xlu1 %v1862_v26, %s13937_s27  ;;  %v8100_v26 = vpop.xlane.xlu0 %1572 }
 0x7f3   : > { %v8104_v18 = vpop.permute.xlu0 %1710 }
 0x801   : > { %1584 = vadd.xlane.f32.xlu0 %v1583_v33  ;;  %v1883_v33 = vpop.permute.xlu1 %1882 }
 0x813   : > { %1599 = vadd.xlane.f32.xlu1 %v1598_v10  ;;  %v1682_v10 = vmul.f32 %v7873_v50, %v8027_v41 }
 0x817   : > { %1718 = vrot.lane.b32.xlu0 %v1680_v17, %s13783_s26  ;;  %v1713_v17 = vpop.permute.xlu1 %1712 }
 0x818   : > { %v1763_v41 = vsel %vm13511_vm2, %v1713_v17, 0.0  ;;  %v1557_v17 = vmul.f32 %v8040_v20, %v7747_v27 }
 0x81b   : > { %1900 = vrot.lane.b32.xlu0 %v1859_v0, %s13937_s27  ;;  %v1757_v0 = vsel %vm13511_vm2, %v1709_v1, 0.0  ;;  %v1887_v15 = vpop.permute.xlu1 %1886 }
 0x81c   : > { %v8107_v3 = vpop.xlane.xlu0 %1569  ;;  %v1936_v60 = vsel %vm13511_vm2, %v1887_v15, 0.0  ;;  %v1684_v15 = vmul.f32 %v7877_v52, %v8044_v36  ;;  %v1559_v36 = vmul.f32 %v8059_v22, %v7761_v29 }
 0x81f   : > { %v8122_v1 = vpop.permute.xlu1 %1716 }
 0x824   : > { %1736 = vrot.lane.b32.xlu1 %v1689_v23, %s13783_s26  ;;  %v8115_v23 = vpop.permute.xlu0 %1892 }
 0x828   : > { %1910 = vrot.lane.b32.xlu1 %v1864_v28, %s13937_s27  ;;  %v1930_v28 = vsel %vm13511_vm2, %v1883_v33, 0.0 }
 0x83a   : > { %1590 = vadd.xlane.f32.xlu0 %v1589_v63 }
 0x84c   : > { %1605 = vadd.xlane.f32.xlu1 %v1604_v25 }
 0x850   : > { %1722 = vrot.lane.b32.xlu0 %v1682_v10, %s13783_s26  ;;  %1758 = vadd.xlane.f32.xlu1 %v1757_v0  ;;  %v1891_v0 = vpop.permute.xlu1 %1890 }
 0x851   : > { %v8119_v63 = vpop.xlane.xlu0 %1578  ;;  %v1942_v33 = vsel %vm13511_vm2, %v1891_v0, 0.0  ;;  %v1686_v0 = vmul.f32 %v7881_v55, %v8063_v34  ;;  %v1561_v34 = vmul.f32 %v8078_v19, %v7775_v31  ;;  %v8231_v55 = vfloor.f32 %v8100_v26 }
 0x852   : > { %v8331_v42 = vfloor.f32 %v8119_v63 }
 0x853   : > { %v8264_v8 = vsub.f32 %v8100_v26, %v8231_v55  ;;  %v8284_v26 = vfloor.f32 %v8093_v62 }
 0x854   : > { %1904 = vrot.lane.b32.xlu0 %v1861_v30, %s13937_s27  ;;  %1931 = vadd.xlane.f32.xlu1 %v1930_v28  ;;  %v1595_v28 = vsel %vm13511_vm2, %v1557_v17, 0.0  ;;  %vm2111_vm14 = vcmp.ge.f32.partialorder %v8331_v42, 0.0  ;;  %vm2127_vm13 = vcmp.le.f32.partialorder %v8331_v42, 15.0 }
 0x855   : > { %v1715_v25 = vpop.permute.xlu0 %1714  ;;  %13955 = vst [vmem:[#allocation61_spill] sm:$0xff] %v8264_v8  ;;  %v2061_v58 = vsub.f32 1.0, %v8264_v8  ;;  %v8340_v56 = vsub.f32 %v8093_v62, %v8284_v26 }
 0x856   : > { %v1766_v10 = vsel %vm13511_vm2, %v1715_v25, 0.0 }
 0x857   : > { %13969 = vst [vmem:[#allocation72_spill] sm:$0xff] %v8340_v56 }
 0x858   : > { %1764 = vadd.xlane.f32.xlu1 %v1763_v41 }
 0x859   : > { %v1897_v16 = vpop.permute.xlu0 %1896 }
 0x85a   : > { %v1951_v30 = vsel %vm13511_vm2, %v1897_v16, 0.0 }
 0x85c   : > { %1937 = vadd.xlane.f32.xlu1 %v1936_v60  ;;  %v1863_v60 = vmul.f32 %v8059_v22, %v7906_v13 }
 0x860   : > { %1767 = vadd.xlane.f32.xlu1 %v1766_v10  ;;  %v1601_v10 = vsel %vm13511_vm2, %v1559_v36, 0.0 }
 0x864   : > { %1943 = vadd.xlane.f32.xlu1 %v1942_v33 }
 0x868   : > { %1952 = vadd.xlane.f32.xlu1 %v1951_v30  ;;  %v1865_v30 = vmul.f32 %v8078_v19, %v7915_v32 }
 0x873   : > { %1596 = vadd.xlane.f32.xlu0 %v1595_v28 }
 0x889   : > { %1726 = vrot.lane.b32.xlu0 %v1684_v15, %s13783_s26  ;;  %v1607_v15 = vsel %vm13511_vm2, %v1561_v34, 0.0 }
 0x88a   : > { %v8134_v41 = vpop.xlane.xlu0 %1584 }
 0x88d   : > { %1908 = vrot.lane.b32.xlu0 %v1863_v60, %s13937_s27  ;;  %v1688_v60 = vmul.f32 %v7885_v57, %v8082_v37  ;;  %v1933_v37 = vsel %vm13511_vm2, %v8098_v21, 0.0  ;;  %v1769_v21 = vsel %vm13511_vm2, %v8122_v1, 0.0 }
 0x88e   : > { %v1719_v16 = vpop.permute.xlu0 %1718 }
 0x88f   : > { %v1772_v25 = vsel %vm13511_vm2, %v1719_v16, 0.0 }
 0x890   : > { %1773 = vadd.xlane.f32.xlu1 %v1772_v25 }
 0x892   : > { %v1901_v27 = vpop.permute.xlu0 %1900 }
 0x893   : > { %v1957_v20 = vsel %vm13511_vm2, %v1901_v27, 0.0 }
 0x894   : > { %1958 = vadd.xlane.f32.xlu1 %v1957_v20 }
 0x8ac   : > { %1602 = vadd.xlane.f32.xlu0 %v1601_v10  ;;  %v8164_v10 = vpop.xlane.xlu1 %1575 }
 0x8b0   : > { %v1721_v31 = vpop.permute.xlu1 %1720 }
 0x8b4   : > { %v1895_v19 = vpop.permute.xlu1 %1894 }
 0x8c2   : > { %1730 = vrot.lane.b32.xlu0 %v1686_v0, %s13783_s26  ;;  %v8166_v0 = vpop.xlane.xlu1 %1581 }
 0x8c3   : > { %v8147_v33 = vpop.xlane.xlu0 %1590  ;;  %v8321_v7 = vfloor.f32 %v8166_v0 }
 0x8c5   : > { %v8367_v47 = vsub.f32 %v8166_v0, %v8321_v7 }
 0x8c6   : > { %1912 = vrot.lane.b32.xlu0 %v1865_v30, %s13937_s27  ;;  %v1725_v30 = vpop.permute.xlu1 %1724 }
 0x8c7   : > { %v1723_v17 = vpop.permute.xlu0 %1722  ;;  %v1781_v1 = vsel %vm13511_vm2, %v1725_v30, 0.0  ;;  %13977 = vst [vmem:[#allocation78_spill] sm:$0xff] %v8367_v47 }
 0x8c8   : > { %v1778_v28 = vsel %vm13511_vm2, %v1723_v17, 0.0  ;;  %v1754_v17 = vsel %vm13511_vm2, %v8090_v24, 0.0  ;;  %v1945_v24 = vsel %vm13511_vm2, %v8115_v23, 0.0 }
 0x8c9   : > { %1779 = vadd.xlane.f32.xlu1 %v1778_v28  ;;  %v1939_v28 = vsel %vm13511_vm2, %v8096_v4, 0.0 }
 0x8cb   : > { %v1905_v29 = vpop.permute.xlu0 %1904 }
 0x8cc   : > { %v1963_v22 = vsel %vm13511_vm2, %v1905_v29, 0.0  ;;  %v1899_v29 = vpop.permute.xlu1 %1898 }
 0x8cd   : > { %1964 = vadd.xlane.f32.xlu1 %v1963_v22  ;;  %v1760_v22 = vsel %vm13511_vm2, %v8104_v18, 0.0  ;;  %v1948_v18 = vsel %vm13511_vm2, %v1895_v19, 0.0 }
 0x8d0   : > { %v8176_v34 = vpop.xlane.xlu1 %1587 }
 0x8e5   : > { %1608 = vadd.xlane.f32.xlu0 %v1607_v15  ;;  %v1729_v15 = vpop.permute.xlu1 %1728 }
 0x8e6   : > { %v1787_v19 = vsel %vm13511_vm2, %v1729_v15, 0.0 }
 0x8e9   : > { %v1903_v4 = vpop.permute.xlu1 %1902 }
 0x8fb   : > { %1734 = vrot.lane.b32.xlu0 %v1688_v60, %s13783_s26  ;;  %v1775_v60 = vsel %vm13511_vm2, %v1721_v31, 0.0  ;;  %v1954_v31 = vsel %vm13511_vm2, %v1899_v29, 0.0 }
 0x8fc   : > { %v8160_v16 = vpop.xlane.xlu0 %1596 }
 0x900   : > { %v1727_v25 = vpop.permute.xlu0 %1726 }
 0x901   : > { %v1784_v27 = vsel %vm13511_vm2, %v1727_v25, 0.0 }
 0x902   : > { %1785 = vadd.xlane.f32.xlu1 %v1784_v27  ;;  %v8186_v27 = vpop.xlane.xlu1 %1593 }
 0x904   : > { %v1909_v20 = vpop.permute.xlu0 %1908 }
 0x905   : > { %v1969_v36 = vsel %vm13511_vm2, %v1909_v20, 0.0 }
 0x906   : > { %1970 = vadd.xlane.f32.xlu1 %v1969_v36  ;;  %v1733_v23 = vpop.permute.xlu1 %1732 }
 0x907   : > { %v1793_v30 = vsel %vm13511_vm2, %v1733_v23, 0.0 }
 0x91a   : > { %1934 = vadd.xlane.f32.xlu0 %v1933_v37 }
 0x91e   : > { %1755 = vadd.xlane.f32.xlu0 %v1754_v17 }
 0x922   : > { %1940 = vadd.xlane.f32.xlu0 %v1939_v28  ;;  %v1907_v28 = vpop.permute.xlu1 %1906 }
 0x926   : > { %1761 = vadd.xlane.f32.xlu0 %v1760_v22  ;;  %v1960_v22 = vsel %vm13511_vm2, %v1903_v4, 0.0 }
 0x92a   : > { %1770 = vadd.xlane.f32.xlu0 %v1769_v21  ;;  %v8194_v21 = vpop.xlane.xlu1 %1599 }
 0x92e   : > { %1946 = vadd.xlane.f32.xlu0 %v1945_v24  ;;  %v1737_v24 = vpop.permute.xlu1 %1736 }
 0x92f   : > { %v1799_v29 = vsel %vm13511_vm2, %v1737_v24, 0.0  ;;  %v8214_v24 = vfloor.f32 %v8088_v6 }
 0x931   : > { %vm2107_vm1 = vcmp.ge.f32.partialorder %v8214_v24, 0.0  ;;  %vm2123_vm6 = vcmp.le.f32.partialorder %v8214_v24, 15.0 }
 0x932   : > { %1776 = vadd.xlane.f32.xlu0 %v1775_v60  ;;  %v1966_v60 = vsel %vm13511_vm2, %v1907_v28, 0.0 }
 0x935   : > { %v8183_v25 = vpop.xlane.xlu0 %1602 }
 0x936   : > { %1949 = vadd.xlane.f32.xlu0 %v1948_v18  ;;  %v1911_v18 = vpop.permute.xlu1 %1910 }
 0x937   : > { %v1972_v15 = vsel %vm13511_vm2, %v1911_v18, 0.0 }
 0x939   : > { %v1731_v20 = vpop.permute.xlu0 %1730 }
 0x93a   : > { %1782 = vadd.xlane.f32.xlu0 %v1781_v1  ;;  %v1790_v36 = vsel %vm13511_vm2, %v1731_v20, 0.0 }
 0x93b   : > { %1791 = vadd.xlane.f32.xlu1 %v1790_v36  ;;  %v8203_v36 = vpop.xlane.xlu1 %1605 }
 0x93d   : > { %v1913_v37 = vpop.permute.xlu0 %1912 }
 0x93e   : > { %1955 = vadd.xlane.f32.xlu0 %v1954_v31  ;;  %v1975_v17 = vsel %vm13511_vm2, %v1913_v37, 0.0 }
 0x93f   : > { %1976 = vadd.xlane.f32.xlu1 %v1975_v17  ;;  %v1759_v23 = vpop.xlane.xlu1 %1758  ;;  %v3487_v17 = vadd.f32 1.0, %v7543_v38 }
 0x942   : > { %1788 = vadd.xlane.f32.xlu0 %v1787_v19  ;;  %v8208_v19 = vfloor.f32 %v1759_v23 }
 0x943   : > { %v8205_v37 = vpop.xlane.xlu1 %1931 }
 0x944   : > { %13938 = vst [vmem:[#allocation48_spill] sm:$0xff] %v8205_v37  ;;  %vm2203_vm9 = vcmp.ge.f32.partialorder %v8208_v19, 0.0  ;;  %vm2219_vm12 = vcmp.le.f32.partialorder %v8208_v19, 15.0 }
 0x946   : > { %1961 = vadd.xlane.f32.xlu0 %v1960_v22  ;;  %v3488_v22 = vmul.f32 0.5, %v3487_v17  ;;  %v8228_v17 = vsub.f32 %v8088_v6, %v8214_v24 }
 0x947   : > { %v1765_v31 = vpop.xlane.xlu1 %1764 }
 0x948   : > { %v8218_v18 = vfloor.f32 %v1765_v31  ;;  %13944 = vst [vmem:[#allocation54_spill] sm:$0xff] %v8228_v17  ;;  %v2059_v6 = vsub.f32 1.0, %v8228_v17 }
 0x94a   : > { %1794 = vadd.xlane.f32.xlu0 %v1793_v30  ;;  %v2523_v30 = vmul.f32 16.0, %v8208_v19  ;;  %13941 = vst [vmem:[#allocation51_spill] sm:$0xff] %v8218_v18  ;;  %v8287_v5 = vsub.f32 %v1765_v31, %v8218_v18 }
 0x94b   : > { %v8210_v28 = vpop.xlane.xlu1 %1937 }
 0x94c   : > { %13939 = vst [vmem:[#allocation49_spill] sm:$0xff] %v8210_v28  ;;  %13962 = vst [vmem:[#allocation65_spill] sm:$0xff] %v8287_v5 }
 0x94e   : > { %1967 = vadd.xlane.f32.xlu0 %v1966_v60 }
 0x94f   : > { %v8216_v60 = vpop.xlane.xlu1 %1767 }
 0x950   : > { %13940 = vst [vmem:[#allocation50_spill] sm:$0xff] %v8216_v60 }
 0x952   : > { %1800 = vadd.xlane.f32.xlu0 %v1799_v29  ;;  %v3489_v29 = vmul.f32 15.0, %v3488_v22  ;;  %v8234_v22 = vsub.f32 %v1759_v23, %v8208_v19 }
 0x953   : > { %v8224_v57 = vpop.xlane.xlu1 %1943 }
 0x954   : > { %13943 = vst [vmem:[#allocation53_spill] sm:$0xff] %v8224_v57  ;;  %13945 = vst [vmem:[#allocation55_spill] sm:$0xff] %v8234_v22  ;;  %v13522_v52 = vsub.f32 1.0, %v8234_v22 }
 0x956   : > { %1973 = vadd.xlane.f32.xlu0 %v1972_v15  ;;  %v2539_v15 = vadd.f32 %v2523_v30, %v8214_v24 }
 0x957   : > { %v8242_v13 = vpop.xlane.xlu1 %1952 }
 0x958   : > { %v6524_v32 = vtrunc.f32 %v2539_v15  ;;  %13946 = vst [vmem:[#allocation56_spill] sm:$0xff] %v8242_v13 }
 0x95a   : > { %v6525_v30 = vcvt.f32.s32 %v6524_v32  ;;  %v13951_v32 = vmov 0 }
 0x95b   : > { %v8289_v46 = vpop.xlane.xlu1 %1773 }
 0x95c   : > { %vm2572_vm10 = vcmp.eq.s32.totalorder %v7594_v11, %v6525_v30  ;;  %vm2573_vm15 = vcmp.eq.s32.totalorder %v7597_v12, %v6525_v30  ;;  %v8358_v35 = vfloor.f32 %v8289_v46 }
 0x95d   : > { %v8304_v31 = vsel %vm2572_vm10, 1.0, %v13936_v2  ;;  %v8309_v9 = vsel %vm2573_vm15, 1.0, %v13936_v2  ;;  %vm2109_vm10 = vcmp.ge.f32.partialorder %v8231_v55, 0.0  ;;  %vm2125_vm15 = vcmp.le.f32.partialorder %v8231_v55, 15.0 }
 0x95e   : > { %13975 = vst [vmem:[#allocation76_spill] sm:$0xff] %v8358_v35 }
 0x95f   : > { %v8360_v62 = vpop.xlane.xlu1 %1958 }
 0x960   : > { %13976 = vst [vmem:[#allocation77_spill] sm:$0xff] %v8360_v62 }
 0x96e   : > { %v8200_v20 = vpop.xlane.xlu0 %1608 }
 0x972   : > { %v1735_v4 = vpop.permute.xlu0 %1734 }
 0x973   : > { %v1796_v1 = vsel %vm13511_vm2, %v1735_v4, 0.0  ;;  %v8221_v4 = vfloor.f32 %v3489_v29  ;;  %vm8253_vm2 = vmand %vm2203_vm9, %vm2219_vm12 }
 0x974   : > { %1797 = vadd.xlane.f32.xlu1 %v1796_v1  ;;  %v2525_v1 = vmul.f32 16.0, %v8218_v18  ;;  %v13952_v32 = vsel %vm8253_vm2, 4294967295, %v13951_v32 }
 0x975   : > { %13942 = vst [vmem:[#allocation52_spill] sm:$0xff] %v8221_v4  ;;  %vm3494_vm0 = vcmp.ge.f32.partialorder %v8221_v4, 0.0  ;;  %vm3495_vm8 = vcmp.le.f32.partialorder %v8221_v4, 15.0  ;;  %13953 = vst [vmem:[#allocation59_spill] sm:$0xff] %v13952_v32  ;;  %v8325_v30 = vsub.f32 %v3489_v29, %v8221_v4  ;;  %v8328_v40 = vadd.f32 1.0, %v8221_v4 }
 0x976   : > { %v2541_v15 = vadd.f32 %v2525_v1, %v8231_v55  ;;  %vm8248_vm7 = vmand %vm3494_vm0, %vm3495_vm8  ;;  %v8355_v39 = vmul.f32 16.0, %v8221_v4 }
 0x977   : > { %v13949_v51 = vsel %vm8248_vm7, 4294967295, %v13948_v51  ;;  %vm8266_vm0 = vmand %vm2107_vm1, %vm2123_vm6  ;;  %v8299_v38 = vsel %vm8248_vm7, 1, %v13959_v54  ;;  %13967 = vst [vmem:[#allocation70_spill] sm:$0xff] %v8325_v30  ;;  %vm2106_vm6 = vcmp.ge.f32.partialorder %v8284_v26, 0.0  ;;  %v8406_v30 = vfloor.f32 %v8164_v10 }
 0x978   : > { %13950 = vst [vmem:[#allocation58_spill] sm:$0xff] %v13949_v51  ;;  %v6528_v14 = vtrunc.f32 %v2541_v15  ;;  %v13957_v49 = vsel %vm8266_vm0, 4294967295, %v13956_v49  ;;  %v8281_v15 = vsel %vm3474_vm4, 1, %v13959_v54  ;;  %vm2331_vm8 = vmand %vm8266_vm0, %vm8253_vm2  ;;  %vm2221_vm4 = vcmp.le.f32.partialorder %v8218_v18, 15.0 }
 0x979   : > { %13958 = vst [vmem:[#allocation62_spill] sm:$0xff] %v13957_v49  ;;  %13961 = vst [vmem:[#allocation64_spill] sm:$0xff] %v8281_v15  ;;  %v13981_v51 = vsub.f32 1.0, %v8287_v5  ;;  %v8409_v15 = vpop.xlane.xlu1 %1779 }
 0x97a   : > { %13963 = vst [vmem:[#allocation66_spill] sm:$0xff] %v8299_v38  ;;  %13974 = vst [vmem:[#allocation75_spill] sm:$0xff] %v8355_v39  ;;  %v2528_v38 = vmul.f32 16.0, %v8358_v35 }
 0x97d   : > { %v8457_v8 = vpop.xlane.xlu1 %1964 }
 0x97e   : > { %13992 = vst [vmem:[#allocation90_spill] sm:$0xff] %v8457_v8 }
 0x98b   : > { %v8502_v32 = vpop.xlane.xlu1 %1785 }
 0x9a3   : > { %v8246_v23 = vpop.xlane.xlu0 %1934 }
 0x9a4   : > { %13947 = vst [vmem:[#allocation57_spill] sm:$0xff] %v8246_v23  ;;  %v8258_v1 = vmul.f32 %v2059_v6, %v8246_v23  ;;  %v8276_v6 = vsel %vm3473_vm3, 1, %v13959_v54  ;;  %vm2205_vm3 = vcmp.ge.f32.partialorder %v8218_v18, 0.0 }
 0x9a5   : > { %13960 = vst [vmem:[#allocation63_spill] sm:$0xff] %v8276_v6  ;;  %vm8347_vm9 = vmand %vm2205_vm3, %vm2221_vm4  ;;  %vm2122_vm3 = vcmp.le.f32.partialorder %v8284_v26, 15.0  ;;  %v8418_v6 = vfloor.f32 %v8107_v3 }
 0x9a6   : > { %13954 = vst [vmem:[#allocation60_spill] sm:$0xff] %v8258_v1  ;;  %v2347_v50 = vmul.f32 %v8258_v1, %v13522_v52  ;;  %v13971_v59 = vsel %vm8347_vm9, 4294967295, %v13970_v59  ;;  %v2544_v1 = vadd.f32 %v2528_v38, %v8321_v7  ;;  %v13993_v38 = vmov 0 }
 0x9a7   : > { %v1756_v52 = vpop.xlane.xlu0 %1755  ;;  %13972 = vst [vmem:[#allocation73_spill] sm:$0xff] %v13971_v59 }
 0x9a8   : > { %v2363_v48 = vsel %vm2331_vm8, %v2347_v50, 0.0  ;;  %v8318_v44 = vfloor.f32 %v1756_v52  ;;  %v6529_v50 = vcvt.f32.s32 %v6528_v14  ;;  %vm8372_vm8 = vmand %vm2109_vm10, %vm2125_vm15 }
 0x9a9   : > { %v8313_v61 = vmul.f32 %v8304_v31, %v2363_v48  ;;  %v8316_v43 = vmul.f32 %v8309_v9, %v2363_v48  ;;  %vm2333_vm4 = vmand %vm8372_vm8, %vm8347_vm9 }
 0x9aa   : > { %13966 = vst [vmem:[#allocation69_spill] sm:$0xff] %v8318_v44  ;;  %v2522_v48 = vmul.f32 16.0, %v8318_v44  ;;  %vm2576_vm12 = vcmp.eq.s32.totalorder %v7594_v11, %v6529_v50  ;;  %vm2577_vm1 = vcmp.eq.s32.totalorder %v7597_v12, %v6529_v50  ;;  %v8386_v0 = vsub.f32 %v1756_v52, %v8318_v44 }
 0x9ab   : > { %13964 = vst [vmem:[#allocation67_spill] sm:$0xff] %v8313_v61  ;;  %13965 = vst [vmem:[#allocation68_spill] sm:$0xff] %v8316_v43  ;;  %v8336_v14 = vpop.xlane.xlu0 %1940  ;;  %v8403_v52 = vsel %vm2577_vm1, 1.0, %v13936_v2  ;;  %v8421_v50 = vfloor.f32 %v8176_v34  ;;  %vm2202_vm10 = vcmp.ge.f32.partialorder %v8318_v44, 0.0  ;;  %vm2218_vm15 = vcmp.le.f32.partialorder %v8318_v44, 15.0 }
 0x9ac   : > { %13968 = vst [vmem:[#allocation71_spill] sm:$0xff] %v8336_v14  ;;  %v8352_v53 = vmul.f32 %v2061_v58, %v8336_v14  ;;  %v2538_v29 = vadd.f32 %v2522_v48, %v8284_v26  ;;  %v13978_v58 = vmov 0  ;;  %v8382_v48 = vsub.f32 %v8119_v63, %v8331_v42  ;;  %13983 = vst [vmem:[#allocation81_spill] sm:$0xff] %v8386_v0 }
 0x9ad   : > { %v13979_v58 = vsel %vm8372_vm8, 4294967295, %v13978_v58  ;;  %v8398_v63 = vsel %vm2576_vm12, 1.0, %v13936_v2  ;;  %13986 = vst [vmem:[#allocation84_spill] sm:$0xff] %v8421_v50 }
 0x9ae   : > { %13973 = vst [vmem:[#allocation74_spill] sm:$0xff] %v8352_v53  ;;  %13980 = vst [vmem:[#allocation79_spill] sm:$0xff] %v13979_v58  ;;  %v2349_v45 = vmul.f32 %v8352_v53, %v13981_v51  ;;  %v6522_v61 = vtrunc.f32 %v2538_v29  ;;  %v2058_v51 = vsub.f32 1.0, %v8340_v56  ;;  %v8439_v53 = vfloor.f32 %v8409_v15 }
 0x9af   : > { %13982 = vst [vmem:[#allocation80_spill] sm:$0xff] %v8382_v48  ;;  %v8392_v43 = vpop.xlane.xlu0 %1761 }
 0x9b0   : > { %v2365_v39 = vsel %vm2333_vm4, %v2349_v45, 0.0  ;;  %v6523_v4 = vcvt.f32.s32 %v6522_v61  ;;  %v8427_v58 = vfloor.f32 %v8392_v43  ;;  %v8436_v61 = vmul.f32 %v2058_v51, %v8205_v37  ;;  %13990 = vst [vmem:[#allocation88_spill] sm:$0xff] %v8439_v53  ;;  %vm8461_vm4 = vmand %vm2202_vm10, %vm2218_vm15 }
 0x9b1   : > { %v8412_v29 = vmul.f32 %v8398_v63, %v2365_v39  ;;  %v8415_v45 = vmul.f32 %v8403_v52, %v2365_v39  ;;  %v2063_v39 = vsub.f32 1.0, %v8382_v48  ;;  %v8455_v51 = vfloor.f32 %v8216_v60 }
 0x9b2   : > { %13987 = vst [vmem:[#allocation85_spill] sm:$0xff] %v8427_v58  ;;  %vm2571_vm12 = vcmp.eq.s32.totalorder %v7597_v12, %v6523_v4  ;;  %vm2570_vm1 = vcmp.eq.s32.totalorder %v7594_v11, %v6523_v4  ;;  %13989 = vst [vmem:[#allocation87_spill] sm:$0xff] %v8436_v61  ;;  %v13994_v38 = vsel %vm8461_vm4, 4294967295, %v13993_v38 }
 0x9b3   : > { %13984 = vst [vmem:[#allocation82_spill] sm:$0xff] %v8412_v29  ;;  %13985 = vst [vmem:[#allocation83_spill] sm:$0xff] %v8415_v45  ;;  %v1771_v29 = vpop.xlane.xlu0 %1770  ;;  %v8442_v5 = vsel %vm2571_vm12, 1.0, %v13936_v2  ;;  %v2602_v4 = vsel %vm2570_vm1, 1.0, %v13936_v2 }
 0x9b4   : > { %v8431_v45 = vfloor.f32 %v1771_v29  ;;  %v8451_v59 = vpack.i.bf16 %v8309_v9, %v8442_v5  ;;  %13995 = vst [vmem:[#allocation91_spill] sm:$0xff] %v13994_v38  ;;  %v2524_v9 = vmul.f32 16.0, %v8427_v58  ;;  %v6663_v49 = vpack.i.bf16 %v8304_v31, %v2602_v4  ;;  %vm8487_vm12 = vmand %vm2106_vm6, %vm2122_vm3 }
 0x9b5   : > { %v14000_v31 = vmov 0  ;;  %vm2330_vm1 = vmand %vm8487_vm12, %vm8461_vm4  ;;  %vm2208_vm3 = vcmp.ge.f32.partialorder %v8358_v35, 0.0 }
 0x9b6   : > { %13988 = vst [vmem:[#allocation86_spill] sm:$0xff] %v8431_v45  ;;  %v8446_v48 = vsub.f32 %v1771_v29, %v8431_v45  ;;  %v2527_v22 = vmul.f32 16.0, %v8431_v45  ;;  %v13996_v29 = vsub.f32 1.0, %v8386_v0  ;;  %6669 = vrot.lane.b32.xlu0 %v8451_v59, %s13998_s6  ;;  %vm2207_vm10 = vcmp.ge.f32.partialorder %v8431_v45, 0.0  ;;  %6664 = vrot.lane.b32.xlu1 %v6663_v49, %s13998_s6 }
 0x9b7   : > { %v8470_v17 = vpop.xlane.xlu0 %1946  ;;  %vm2223_vm15 = vcmp.le.f32.partialorder %v8431_v45, 15.0  ;;  %v14001_v31 = vsel %vm8487_vm12, 4294967295, %v14000_v31  ;;  %v2526_v0 = vmul.f32 16.0, %v8455_v51  ;;  %v14010_v45 = vmov 0 }
 0x9b8   : > { %13991 = vst [vmem:[#allocation89_spill] sm:$0xff] %v8446_v48  ;;  %v2346_v14 = vmul.f32 %v8436_v61, %v13996_v29  ;;  %13997 = vst [vmem:[#allocation92_spill] sm:$0xff] %v8470_v17  ;;  %v2543_v44 = vadd.f32 %v2527_v22, %v8331_v42  ;;  %v8480_v29 = vsub.f32 %v8176_v34, %v8421_v50  ;;  %v2530_v61 = vmul.f32 16.0, %v8439_v53 }
 0x9b9   : > { %14002 = vst [vmem:[#allocation94_spill] sm:$0xff] %v14001_v31  ;;  %v8493_v23 = vmul.f32 %v2063_v39, %v8470_v17  ;;  %v6534_v22 = vtrunc.f32 %v2544_v1  ;;  %vm8506_vm6 = vmand %vm2207_vm10, %vm2223_vm15  ;;  %v14004_v39 = vmov 0  ;;  %v14007_v1 = vsub.f32 1.0, %v8446_v48 }
 0x9ba   : > { %13999 = vst [vmem:[#allocation93_spill] sm:$0xff] %v8480_v29  ;;  %v6532_v34 = vtrunc.f32 %v2543_v44  ;;  %v14005_v39 = vsel %vm8506_vm6, 4294967295, %v14004_v39  ;;  %v2540_v17 = vadd.f32 %v2524_v9, %v8418_v6  ;;  %v8518_v44 = vsub.f32 %v8289_v46, %v8358_v35  ;;  %6684 = vrot.lane.b32.xlu0 %v6663_v49, %s14009_s8  ;;  %vm8524_vm10 = vmand %vm2111_vm14, %vm2127_vm13  ;;  %6674 = vrot.lane.b32.xlu1 %v6663_v49, %s14013_s0 }
 0x9bb   : > { %14003 = vst [vmem:[#allocation95_spill] sm:$0xff] %v8493_v23  ;;  %14006 = vst [vmem:[#allocation96_spill] sm:$0xff] %v14005_v39  ;;  %v2351_v31 = vmul.f32 %v8493_v23, %v14007_v1  ;;  %v8513_v38 = vpop.xlane.xlu0 %1776  ;;  %v8520_v56 = vsel %vm2330_vm1, %v2346_v14, 0.0  ;;  %v14011_v45 = vsel %vm8524_vm10, 4294967295, %v14010_v45  ;;  %vm2224_vm15 = vcmp.le.f32.partialorder %v8358_v35, 15.0 }
 0x9bc   : > { %14008 = vst [vmem:[#allocation97_spill] sm:$0xff] %v8518_v44  ;;  %v6533_v37 = vcvt.f32.s32 %v6532_v34  ;;  %14012 = vst [vmem:[#allocation98_spill] sm:$0xff] %v14011_v45  ;;  %v6535_v9 = vcvt.f32.s32 %v6534_v22  ;;  %v2546_v1 = vadd.f32 %v2530_v61, %v8421_v50  ;;  %v8532_v46 = vmul.f32 %v2602_v4, %v8520_v56 }
 0x9bd   : > { %v8535_v14 = vfloor.f32 %v8502_v32  ;;  %vm2335_vm13 = vmand %vm8524_vm10, %vm8506_vm6  ;;  %v6526_v49 = vtrunc.f32 %v2540_v17  ;;  %v2542_v39 = vadd.f32 %v2526_v0, %v8406_v30  ;;  %v14020_v0 = vmov 0 }
 0x9be   : > { %14014 = vst [vmem:[#allocation99_spill] sm:$0xff] %v8532_v46  ;;  %vm2580_vm14 = vcmp.eq.s32.totalorder %v7594_v11, %v6533_v37  ;;  %vm2581_vm1 = vcmp.eq.s32.totalorder %v7597_v12, %v6533_v37  ;;  %v2367_v4 = vsel %vm2335_vm13, %v2351_v31, 0.0  ;;  %v8552_v46 = vfloor.f32 %v8186_v27  ;;  %6679 = vrot.lane.b32.xlu1 %v8451_v59, %s14013_s0 }
 0x9bf   : > { %14015 = vst [vmem:[#allocation100_spill] sm:$0xff] %v8535_v14  ;;  %v8544_v22 = vsel %vm2580_vm14, 1.0, %v13936_v2  ;;  %v8547_v61 = vsel %vm2581_vm1, 1.0, %v13936_v2  ;;  %v8549_v34 = vpop.xlane.xlu0 %1949  ;;  %vm2128_vm13 = vcmp.le.f32.partialorder %v8321_v7, 15.0  ;;  %v6538_v31 = vtrunc.f32 %v2546_v1  ;;  %vm8571_vm1 = vmand %vm2208_vm3, %vm2224_vm15 }
 0x9c0   : > { %14016 = vst [vmem:[#allocation101_spill] sm:$0xff] %v8549_v34  ;;  %14017 = vst [vmem:[#allocation102_spill] sm:$0xff] %v8552_v46  ;;  %v8556_v23 = vmul.f32 %v8544_v22, %v2367_v4  ;;  %v8559_v37 = vmul.f32 %v8547_v61, %v2367_v4  ;;  %v2532_v45 = vmul.f32 16.0, %v8535_v14  ;;  %v6527_v48 = vcvt.f32.s32 %v6526_v49 }
 0x9c1   : > { %v14021_v0 = vsel %vm8571_vm1, 4294967295, %v14020_v0  ;;  %v14023_v4 = vsub.f32 1.0, %v8367_v47  ;;  %vm2582_vm11 = vcmp.eq.s32.totalorder %v7594_v11, %v6535_v9  ;;  %v8583_v1 = vsub.f32 %v8107_v3, %v8418_v6 }
 0x9c2   : > { %14018 = vst [vmem:[#allocation103_spill] sm:$0xff] %v8556_v23  ;;  %14019 = vst [vmem:[#allocation104_spill] sm:$0xff] %v8559_v37  ;;  %v2066_v17 = vsub.f32 1.0, %v8480_v29  ;;  %v8591_v37 = vsub.f32 %v8186_v27, %v8552_v46  ;;  %v6530_v35 = vtrunc.f32 %v2542_v39  ;;  %vm2574_vm3 = vcmp.eq.s32.totalorder %v7594_v11, %v6527_v48  ;;  %6689 = vrot.lane.b32.xlu1 %v8451_v59, %s14009_s8 }
 0x9c3   : > { %14022 = vst [vmem:[#allocation105_spill] sm:$0xff] %v14021_v0  ;;  %v8578_v23 = vmul.f32 %v14023_v4, %v8549_v34  ;;  %14025 = vst [vmem:[#allocation107_spill] sm:$0xff] %v8583_v1  ;;  %v8586_v49 = vpop.xlane.xlu0 %1782  ;;  %vm14027_vm15 = vcmp.ge.f32.partialorder %v8321_v7, 0.0  ;;  %v14028_v3 = vmov 0  ;;  %v14031_v4 = vsub.f32 1.0, %v8518_v44 }
 0x9c4   : > { %14026 = vst [vmem:[#allocation108_spill] sm:$0xff] %v8591_v37  ;;  %vm8598_vm7 = vmand %vm14027_vm15, %vm2128_vm13  ;;  %v8607_v29 = vsub.f32 %v8409_v15, %v8439_v53  ;;  %v8610_v27 = vsel %vm2574_vm3, 1.0, %v13936_v2  ;;  %v8617_v39 = vsel %vm2582_vm11, 1.0, %v13936_v2  ;;  %v6539_v44 = vcvt.f32.s32 %v6538_v31 }
 0x9c5   : > { %14024 = vst [vmem:[#allocation106_spill] sm:$0xff] %v8578_v23  ;;  %v14029_v3 = vsel %vm8598_vm7, 4294967295, %v14028_v3  ;;  %v2352_v47 = vmul.f32 %v8578_v23, %v14031_v4  ;;  %vm2336_vm14 = vmand %vm8598_vm7, %vm8571_vm1  ;;  %v6693_v4 = vpack.i.bf16 %v8398_v63, %v8610_v27  ;;  %vm14033_vm13 = vcmp.eq.s32.totalorder %v7597_v12, %v6535_v9 }
 0x9c6   : > { %14030 = vst [vmem:[#allocation109_spill] sm:$0xff] %v14029_v3  ;;  %14032 = vst [vmem:[#allocation110_spill] sm:$0xff] %v8607_v29  ;;  %v8626_v23 = vsel %vm14033_vm13, 1.0, %v13936_v2  ;;  %v2548_v34 = vadd.f32 %v2532_v45, %v8552_v46  ;;  %vm2210_vm11 = vcmp.ge.f32.partialorder %v8439_v53, 0.0  ;;  %vm2226_vm3 = vcmp.le.f32.partialorder %v8439_v53, 15.0 }
 0x9c7   : > { %v2368_v15 = vsel %vm2336_vm14, %v2352_v47, 0.0  ;;  %v8635_v18 = vpop.xlane.xlu0 %1955  ;;  %v8639_v47 = vcvt.f32.s32 %v6530_v35  ;;  %6694 = vrot.lane.b32.xlu0 %v6693_v4, %s13998_s6  ;;  %vm2130_vm15 = vcmp.le.f32.partialorder %v8421_v50, 15.0  ;;  %v2068_v59 = vsub.f32 1.0, %v8591_v37  ;;  %vm8654_vm12 = vmand %vm2210_vm11, %vm2226_vm3 }
 0x9c8   : > { %v8630_v3 = vmul.f32 %v8617_v39, %v2368_v15  ;;  %v8633_v0 = vmul.f32 %v8626_v23, %v2368_v15  ;;  %14036 = vst [vmem:[#allocation113_spill] sm:$0xff] %v8635_v18  ;;  %vm2575_vm13 = vcmp.eq.s32.totalorder %v7597_v12, %v6527_v48  ;;  %v8648_v45 = vmul.f32 %v2066_v17, %v8635_v18 }
 0x9c9   : > { %v8652_v35 = vsel %vm2575_vm13, 1.0, %v13936_v2  ;;  %v14038_v9 = vmov 0  ;;  %vm2587_vm14 = vcmp.eq.s32.totalorder %v7597_v12, %v6539_v44  ;;  %v6542_v31 = vtrunc.f32 %v2548_v34 }
 0x9ca   : > { %14034 = vst [vmem:[#allocation111_spill] sm:$0xff] %v8630_v3  ;;  %14035 = vst [vmem:[#allocation112_spill] sm:$0xff] %v8633_v0  ;;  %v14039_v9 = vsel %vm8654_vm12, 4294967295, %v14038_v9  ;;  %v8660_v15 = vfloor.f32 %v8134_v41  ;;  %v6698_v48 = vpack.i.bf16 %v8403_v52, %v8652_v35  ;;  %v8669_v63 = vfloor.f32 %v8194_v21  ;;  %v8673_v3 = vpop.xlane.xlu1 %1970 }
 0x9cb   : > { %14037 = vst [vmem:[#allocation114_spill] sm:$0xff] %v8648_v45  ;;  %14040 = vst [vmem:[#allocation115_spill] sm:$0xff] %v14039_v9  ;;  %v8664_v17 = vpop.xlane.xlu0 %1788  ;;  %v8676_v34 = vfloor.f32 %v8513_v38  ;;  %6704 = vrot.lane.b32.xlu0 %v6693_v4, %s14013_s0  ;;  %vm14042_vm3 = vcmp.ge.f32.partialorder %v8421_v50, 0.0  ;;  %v14043_v52 = vmov 0  ;;  %v14046_v0 = vsub.f32 1.0, %v8607_v29 }
 0x9cc   : > { %vm8683_vm5 = vmand %vm14042_vm3, %vm2130_vm15  ;;  %v8692_v18 = vsub.f32 %v8502_v32, %v8535_v14  ;;  %6699 = vrot.lane.b32.xlu1 %v6698_v48, %s13998_s6  ;;  %vm14048_vm15 = vcmp.eq.s32.totalorder %v7594_v11, %v6539_v44  ;;  %vm2212_vm3 = vcmp.ge.f32.partialorder %v8535_v14, 0.0  ;;  %vm2228_vm11 = vcmp.le.f32.partialorder %v8535_v14, 15.0 }
 0x9cd   : > { %14041 = vst [vmem:[#allocation116_spill] sm:$0xff] %v8676_v34  ;;  %v14044_v52 = vsel %vm8683_vm5, 4294967295, %v14043_v52  ;;  %v2354_v37 = vmul.f32 %v8648_v45, %v14046_v0  ;;  %vm2338_vm13 = vmand %vm8683_vm5, %vm8654_vm12  ;;  %v8702_v53 = vsel %vm14048_vm15, 1.0, %v13936_v2  ;;  %v8707_v0 = vsel %vm2587_vm14, 1.0, %v13936_v2 }
 0x9ce   : > { %14045 = vst [vmem:[#allocation117_spill] sm:$0xff] %v14044_v52  ;;  %14047 = vst [vmem:[#allocation118_spill] sm:$0xff] %v8692_v18  ;;  %v6543_v45 = vcvt.f32.s32 %v6542_v31  ;;  %v8713_v29 = vsub.f32 %v8134_v41, %v8660_v15  ;;  %v8725_v44 = vsub.f32 %v8194_v21, %v8669_v63  ;;  %v2529_v31 = vmul.f32 16.0, %v8676_v34  ;;  %v1792_v60 = vpop.xlane.xlu1 %1791 }
 0x9cf   : > { %v2370_v32 = vsel %vm2338_vm13, %v2354_v37, 0.0  ;;  %v8721_v57 = vpop.xlane.xlu0 %1961  ;;  %v8728_v37 = vfloor.f32 %v8147_v33  ;;  %6714 = vrot.lane.b32.xlu0 %v6693_v4, %s14009_s8  ;;  %vm14055_vm14 = vcmp.eq.s32.totalorder %v7594_v11, %v8639_v47  ;;  %v8743_v21 = vadd.f32 1.0, %v8214_v24  ;;  %vm8751_vm13 = vmand %vm2212_vm3, %vm2228_vm11 }
 0x9d0   : > { %14049 = vst [vmem:[#allocation119_spill] sm:$0xff] %v8713_v29  ;;  %v8716_v52 = vmul.f32 %v8702_v53, %v2370_v32  ;;  %v8719_v9 = vmul.f32 %v8707_v0, %v2370_v32  ;;  %14052 = vst [vmem:[#allocation122_spill] sm:$0xff] %v8721_v57  ;;  %v8733_v41 = vmul.f32 %v2068_v59, %v8721_v57  ;;  %v2060_v32 = vsub.f32 1.0, %v8583_v1 }
 0x9d1   : > { %14053 = vst [vmem:[#allocation123_spill] sm:$0xff] %v8725_v44  ;;  %6709 = vrot.lane.b32.xlu1 %v6698_v48, %s14013_s0  ;;  %v14057_v4 = vmov 0  ;;  %vm2579_vm15 = vcmp.eq.s32.totalorder %v7597_v12, %v8639_v47  ;;  %vm2591_vm6 = vcmp.eq.s32.totalorder %v7597_v12, %v6543_v45  ;;  %v8762_v24 = vfloor.f32 %v8160_v16 }
 0x9d2   : > { %14050 = vst [vmem:[#allocation120_spill] sm:$0xff] %v8716_v52  ;;  %14051 = vst [vmem:[#allocation121_spill] sm:$0xff] %v8719_v9  ;;  %v8740_v52 = vsel %vm14055_vm14, 1.0, %v13936_v2  ;;  %v14058_v4 = vsel %vm8751_vm13, 4294967295, %v14057_v4  ;;  %vm2590_vm14 = vcmp.eq.s32.totalorder %v7594_v11, %v6543_v45  ;;  %v8764_v9 = vfloor.f32 %v1792_v60 }
 0x9d3   : > { %14054 = vst [vmem:[#allocation124_spill] sm:$0xff] %v8733_v41  ;;  %14056 = vst [vmem:[#allocation125_spill] sm:$0xff] %v8740_v52  ;;  %v6723_v59 = vpack.i.bf16 %v8544_v22, %v8740_v52  ;;  %vm14061_vm11 = vcmp.le.f32.partialorder %v8552_v46, 15.0  ;;  %vm14062_vm3 = vcmp.ge.f32.partialorder %v8552_v46, 0.0  ;;  %v14063_v57 = vmov 0  ;;  %v8777_v52 = vpop.xlane.xlu0 %1794 }
 0x9d4   : > { %14059 = vst [vmem:[#allocation126_spill] sm:$0xff] %v14058_v4  ;;  %14060 = vst [vmem:[#allocation127_spill] sm:$0xff] %v8764_v9  ;;  %v14066_v14 = vsub.f32 1.0, %v8692_v18  ;;  %v8781_v45 = vsub.f32 %v8147_v33, %v8728_v37  ;;  %v2065_v1 = vsub.f32 1.0, %v8713_v29  ;;  %v2545_v46 = vadd.f32 %v2529_v31, %v8660_v15 }
 0x9d5   : > { %vm8770_vm5 = vmand %vm14062_vm3, %vm14061_vm11  ;;  %6724 = vrot.lane.b32.xlu0 %v6723_v59, %s13998_s6  ;;  %v2070_v18 = vsub.f32 1.0, %v8725_v44  ;;  %6719 = vrot.lane.b32.xlu1 %v6698_v48, %s14009_s8  ;;  %v8796_v33 = vsel %vm2591_vm6, 1.0, %v13936_v2  ;;  %v8816_v44 = vsub.f32 %v1792_v60, %v8764_v9  ;;  %v2534_v4 = vmul.f32 16.0, %v8764_v9 }
 0x9d6   : > { %v14064_v57 = vsel %vm8770_vm5, 4294967295, %v14063_v57  ;;  %v2356_v22 = vmul.f32 %v8733_v41, %v14066_v14  ;;  %14067 = vst [vmem:[#allocation129_spill] sm:$0xff] %v8781_v45  ;;  %vm2340_vm11 = vmand %vm8770_vm5, %vm8751_vm13  ;;  %v8793_v41 = vsel %vm2590_vm14, 1.0, %v13936_v2  ;;  %v2067_v50 = vsub.f32 1.0, %v8781_v45 }
 0x9d7   : > { %14065 = vst [vmem:[#allocation128_spill] sm:$0xff] %v14064_v57  ;;  %v8803_v57 = vsel %vm2579_vm15, 1.0, %v13936_v2  ;;  %14072 = vst [vmem:[#allocation134_spill] sm:$0xff] %v8816_v44  ;;  %v8821_v29 = vpop.xlane.xlu0 %1967  ;;  %v8832_v60 = vmul.f32 %v2060_v32, %v8210_v28  ;;  %vm2230_vm6 = vcmp.le.f32.partialorder %v8764_v9, 15.0  ;;  %v13638_v45 = vsub.f32 1.0, %v8816_v44 }
 0x9d8   : > { %v2372_v14 = vsel %vm2340_vm11, %v2356_v22, 0.0  ;;  %14068 = vst [vmem:[#allocation130_spill] sm:$0xff] %v8803_v57  ;;  %v8813_v22 = vsub.f32 %v8160_v16, %v8762_v24  ;;  %v6728_v47 = vpack.i.bf16 %v8547_v61, %v8803_v57  ;;  %14073 = vst [vmem:[#allocation135_spill] sm:$0xff] %v8821_v29  ;;  %v6536_v16 = vtrunc.f32 %v2545_v46 }
 0x9d9   : > { %v8806_v31 = vmul.f32 %v8793_v41, %v2372_v14  ;;  %v8809_v48 = vmul.f32 %v8796_v33, %v2372_v14  ;;  %6734 = vrot.lane.b32.xlu0 %v6723_v59, %s14013_s0  ;;  %14074 = vst [vmem:[#allocation136_spill] sm:$0xff] %v8832_v60  ;;  %v8835_v61 = vmul.f32 %v2065_v1, %v8242_v13  ;;  %vm2214_vm11 = vcmp.ge.f32.partialorder %v8764_v9, 0.0 }
 0x9da   : > { %14071 = vst [vmem:[#allocation133_spill] sm:$0xff] %v8813_v22  ;;  %v8839_v14 = vsub.f32 %v8392_v43, %v8427_v58  ;;  %6729 = vrot.lane.b32.xlu1 %v6728_v47, %s13998_s6  ;;  %v8845_v46 = vmul.f32 %v2070_v18, %v8821_v29  ;;  %v2069_v32 = vsub.f32 1.0, %v8813_v22  ;;  %v2550_v1 = vadd.f32 %v2534_v4, %v8669_v63  ;;  %vm8870_vm14 = vmand %vm2214_vm11, %vm2230_vm6 }
 0x9db   : > { %14069 = vst [vmem:[#allocation131_spill] sm:$0xff] %v8806_v31  ;;  %14070 = vst [vmem:[#allocation132_spill] sm:$0xff] %v8809_v48  ;;  %v8825_v31 = vfloor.f32 %v8183_v25  ;;  %v6537_v48 = vcvt.f32.s32 %v6536_v16  ;;  %v8851_v57 = vmul.f32 %v2067_v50, %v8360_v62  ;;  %v8862_v16 = vfloor.f32 %v8586_v49  ;;  %v8885_v9 = vpop.xlane.xlu0 %1800 }
 0x9dc   : > { %14075 = vst [vmem:[#allocation137_spill] sm:$0xff] %v8839_v14  ;;  %14076 = vst [vmem:[#allocation138_spill] sm:$0xff] %v8845_v46  ;;  %v2358_v4 = vmul.f32 %v8845_v46, %v13638_v45  ;;  %v6546_v29 = vtrunc.f32 %v2550_v1  ;;  %v8888_v22 = vmul.f32 %v2069_v32, %v8457_v8  ;;  %v8892_v45 = vsub.f32 %v8513_v38, %v8676_v34 }
 0x9dd   : > { %v8855_v43 = vsub.f32 %v8183_v25, %v8825_v31  ;;  %6744 = vrot.lane.b32.xlu0 %v6723_v59, %s14009_s8  ;;  %vm2584_vm3 = vcmp.eq.s32.totalorder %v7594_v11, %v6537_v48  ;;  %14077 = vst [vmem:[#allocation139_spill] sm:$0xff] %v8862_v16  ;;  %v14078_v25 = vmov 0  ;;  %v8881_v59 = vfloor.f32 %v8664_v17 }
 0x9de   : > { %6739 = vrot.lane.b32.xlu1 %v6728_v47, %s14013_s0  ;;  %v8866_v50 = vsel %vm2584_vm3, 1.0, %v13936_v2  ;;  %v14079_v25 = vsel %vm8870_vm14, 4294967295, %v14078_v25  ;;  %vm14082_vm11 = vcmp.le.f32.partialorder %v8669_v63, 15.0  ;;  %vm14083_vm5 = vcmp.ge.f32.partialorder %v8669_v63, 0.0 }
 0x9df   : > { %14080 = vst [vmem:[#allocation140_spill] sm:$0xff] %v14079_v25  ;;  %14081 = vst [vmem:[#allocation141_spill] sm:$0xff] %v8881_v59  ;;  %v6753_v18 = vpack.i.bf16 %v8866_v50, %v8617_v39  ;;  %v14084_v39 = vmov 0  ;;  %vm2585_vm15 = vcmp.eq.s32.totalorder %v7597_v12, %v6537_v48  ;;  %v8906_v32 = vfloor.f32 %v8200_v20 }
 0x9e0   : > { %vm8900_vm13 = vmand %vm14083_vm5, %vm14082_vm11  ;;  %v8911_v38 = vfloor.f32 %v8777_v52  ;;  %v6547_v1 = vcvt.f32.s32 %v6546_v29  ;;  %v8919_v48 = vsel %vm2585_vm15, 1.0, %v13936_v2  ;;  %vm14088_vm11 = vcmp.le.f32.partialorder %v8427_v58, 15.0 }
 0x9e1   : > { %v14085_v39 = vsel %vm8900_vm13, 4294967295, %v14084_v39  ;;  %6754 = vrot.lane.b32.xlu0 %v6753_v18, %s13998_s6  ;;  %vm2342_vm5 = vmand %vm8900_vm13, %vm8870_vm14  ;;  %vm14089_vm12 = vcmp.ge.f32.partialorder %v8427_v58, 0.0  ;;  %v14090_v46 = vmov 0  ;;  %v14093_v44 = vsub.f32 1.0, %v8839_v14 }
 0x9e2   : > { %14086 = vst [vmem:[#allocation142_spill] sm:$0xff] %v14085_v39  ;;  %14087 = vst [vmem:[#allocation143_spill] sm:$0xff] %v8911_v38  ;;  %v2531_v25 = vmul.f32 16.0, %v8862_v16  ;;  %v2374_v39 = vsel %vm2342_vm5, %v2358_v4, 0.0  ;;  %6749 = vrot.lane.b32.xlu1 %v6728_v47, %s14009_s8  ;;  %v8935_v29 = vfloor.f32 %v8885_v9  ;;  %v2533_v62 = vmul.f32 16.0, %v8881_v59 }
 0x9e3   : > { %vm8925_vm3 = vmand %vm14089_vm12, %vm14088_vm11  ;;  %v2348_v8 = vmul.f32 %v8832_v60, %v14093_v44  ;;  %vm2594_vm15 = vcmp.eq.s32.totalorder %v7594_v11, %v6547_v1  ;;  %vm2595_vm12 = vcmp.eq.s32.totalorder %v7597_v12, %v6547_v1  ;;  %vm14095_vm11 = vcmp.le.f32.partialorder %v8418_v6, 15.0 }
 0x9e4   : > { %v14091_v46 = vsel %vm8925_vm3, 4294967295, %v14090_v46  ;;  %14094 = vst [vmem:[#allocation145_spill] sm:$0xff] %v8935_v29  ;;  %vm14096_vm10 = vcmp.ge.f32.partialorder %v8418_v6, 0.0  ;;  %v14097_v44 = vmov 0  ;;  %v8950_v47 = vsel %vm2594_vm15, 1.0, %v13936_v2 }
 0x9e5   : > { %14092 = vst [vmem:[#allocation144_spill] sm:$0xff] %v14091_v46  ;;  %vm8944_vm6 = vmand %vm14096_vm10, %vm14095_vm11  ;;  %v8953_v58 = vsel %vm2595_vm12, 1.0, %v13936_v2  ;;  %v6758_v60 = vpack.i.bf16 %v8919_v48, %v8626_v23  ;;  %v8963_v1 = vsub.f32 %v8586_v49, %v8862_v16  ;;  %v2535_v4 = vmul.f32 16.0, %v8911_v38  ;;  %6764 = vrot.lane.b32.xlu0 %v6753_v18, %s14013_s0 }
 0x9e6   : > { %v14098_v44 = vsel %vm8944_vm6, 4294967295, %v14097_v44  ;;  %vm2332_vm5 = vmand %vm8944_vm6, %vm8925_vm3  ;;  %v8967_v14 = vmul.f32 %v8950_v47, %v2374_v39  ;;  %v8970_v13 = vmul.f32 %v8953_v58, %v2374_v39  ;;  %v8975_v23 = vsub.f32 %v8200_v20, %v8906_v32 }
 0x9e7   : > { %14099 = vst [vmem:[#allocation146_spill] sm:$0xff] %v14098_v44  ;;  %14100 = vst [vmem:[#allocation147_spill] sm:$0xff] %v8963_v1  ;;  %v2364_v44 = vsel %vm2332_vm5, %v2348_v8, 0.0  ;;  %v2537_v46 = vmul.f32 16.0, %v8935_v29  ;;  %6759 = vrot.lane.b32.xlu1 %v6758_v60, %s13998_s6  ;;  %v2547_v49 = vadd.f32 %v2531_v25, %v8728_v37  ;;  %v2549_v39 = vadd.f32 %v2533_v62, %v8762_v24 }
 0x9e8   : > { %14101 = vst [vmem:[#allocation148_spill] sm:$0xff] %v8967_v14  ;;  %14102 = vst [vmem:[#allocation149_spill] sm:$0xff] %v8970_v13  ;;  %v8983_v14 = vsub.f32 %v8664_v17, %v8881_v59  ;;  %v14103_v20 = vsub.f32 1.0, %v8892_v45  ;;  %v2551_v17 = vadd.f32 %v2535_v4, %v8825_v31  ;;  %vm14104_vm15 = vcmp.le.f32.partialorder %v8660_v15, 15.0 }
 0x9e9   : > { %v6540_v13 = vtrunc.f32 %v2547_v49  ;;  %6774 = vrot.lane.b32.xlu0 %v6753_v18, %s14009_s8  ;;  %vm14105_vm6 = vcmp.ge.f32.partialorder %v8660_v15, 0.0  ;;  %v14106_v62 = vmov 0  ;;  %v2553_v25 = vadd.f32 %v2537_v46, %v8906_v32 }
 0x9ea   : > { %v2353_v8 = vmul.f32 %v8835_v61, %v14103_v20  ;;  %vm9001_vm13 = vmand %vm14105_vm6, %vm14104_vm15  ;;  %v9012_v4 = vmul.f32 %v8442_v5, %v8520_v56  ;;  %vm14110_vm6 = vcmp.le.f32.partialorder %v8728_v37, 15.0  ;;  %vm14111_vm15 = vcmp.ge.f32.partialorder %v8728_v37, 0.0 }
 0x9eb   : > { %v14107_v62 = vsel %vm9001_vm13, 4294967295, %v14106_v62  ;;  %6769 = vrot.lane.b32.xlu1 %v6758_v60, %s14013_s0  ;;  %v6541_v18 = vcvt.f32.s32 %v6540_v13  ;;  %vm9018_vm5 = vmand %vm14111_vm15, %vm14110_vm6  ;;  %v14112_v49 = vmov 0  ;;  %v6544_v28 = vtrunc.f32 %v2549_v39 }
 0x9ec   : > { %14108 = vst [vmem:[#allocation150_spill] sm:$0xff] %v14107_v62  ;;  %14109 = vst [vmem:[#allocation151_spill] sm:$0xff] %v9012_v4  ;;  %v14113_v49 = vsel %vm9018_vm5, 4294967295, %v14112_v49  ;;  %v9025_v13 = vmul.f32 %v8652_v35, %v2364_v44  ;;  %vm14116_vm14 = vcmp.le.f32.partialorder %v8762_v24, 15.0  ;;  %vm14117_vm10 = vcmp.ge.f32.partialorder %v8762_v24, 0.0 }
 0x9ed   : > { %14114 = vst [vmem:[#allocation152_spill] sm:$0xff] %v14113_v49  ;;  %vm9031_vm12 = vmand %vm14117_vm10, %vm14116_vm14  ;;  %v14118_v56 = vmov 0  ;;  %vm2588_vm6 = vcmp.eq.s32.totalorder %v7594_v11, %v6541_v18  ;;  %vm2589_vm15 = vcmp.eq.s32.totalorder %v7597_v12, %v6541_v18  ;;  %v9038_v5 = vmul.f32 %v8610_v27, %v2364_v44 }
 0x9ee   : > { %14115 = vst [vmem:[#allocation153_spill] sm:$0xff] %v9025_v13  ;;  %v14119_v56 = vsel %vm9031_vm12, 4294967295, %v14118_v56  ;;  %vm14122_vm11 = vcmp.le.f32.partialorder %v8676_v34, 15.0  ;;  %vm14123_vm3 = vcmp.ge.f32.partialorder %v8676_v34, 0.0  ;;  %v14124_v35 = vmov 0  ;;  %v9066_v13 = vpop.xlane.xlu1 %1976 }
 0x9ef   : > { %14120 = vst [vmem:[#allocation154_spill] sm:$0xff] %v14119_v56  ;;  %14121 = vst [vmem:[#allocation155_spill] sm:$0xff] %v9038_v5  ;;  %v9050_v46 = vsub.f32 %v8777_v52, %v8911_v38  ;;  %v2620_v39 = vsel %vm2588_vm6, 1.0, %v13936_v2  ;;  %v2621_v20 = vsel %vm2589_vm15, 1.0, %v13936_v2  ;;  %v6548_v18 = vtrunc.f32 %v2551_v17  ;;  %6779 = vrot.lane.b32.xlu1 %v6758_v60, %s14009_s8 }
 0x9f0   : > { %vm9044_vm4 = vmand %vm14123_vm3, %vm14122_vm11  ;;  %v2071_v27 = vsub.f32 1.0, %v8855_v43  ;;  %vm14126_vm14 = vcmp.le.f32.partialorder %v8862_v16, 15.0  ;;  %vm14127_vm10 = vcmp.ge.f32.partialorder %v8862_v16, 0.0  ;;  %v14128_v44 = vmov 0 }
 0x9f1   : > { %v14125_v35 = vsel %vm9044_vm4, 4294967295, %v14124_v35  ;;  %vm9059_vm7 = vmand %vm14127_vm10, %vm14126_vm14  ;;  %v14131_v5 = vsub.f32 1.0, %v8963_v1  ;;  %v6783_v4 = vpack.i.bf16 %v2620_v39, %v8702_v53  ;;  %v6552_v17 = vtrunc.f32 %v2553_v25 }
 0x9f2   : > { %v14129_v44 = vsel %vm9059_vm7, 4294967295, %v14128_v44  ;;  %v2073_v34 = vsub.f32 1.0, %v8975_v23  ;;  %vm14132_vm3 = vcmp.le.f32.partialorder %v8881_v59, 15.0  ;;  %vm14133_vm11 = vcmp.ge.f32.partialorder %v8881_v59, 0.0  ;;  %vm2337_vm15 = vmand %vm9001_vm13, %vm9044_vm4 }
 0x9f3   : > { %14130 = vst [vmem:[#allocation156_spill] sm:$0xff] %v14129_v44  ;;  %v2355_v52 = vmul.f32 %v8851_v57, %v14131_v5  ;;  %vm9075_vm6 = vmand %vm14133_vm11, %vm14132_vm3  ;;  %v14134_v16 = vmov 0  ;;  %v14137_v1 = vsub.f32 1.0, %v8983_v14  ;;  %v9084_v53 = vsub.f32 %v8885_v9, %v8935_v29  ;;  %6784 = vrot.lane.b32.xlu0 %v6783_v4, %s13998_s6 }
 0x9f4   : > { %v14135_v16 = vsel %vm9075_vm6, 4294967295, %v14134_v16  ;;  %v6545_v60 = vcvt.f32.s32 %v6544_v28  ;;  %v9087_v25 = vmul.f32 %v2071_v27, %v8673_v3  ;;  %v2369_v59 = vsel %vm2337_vm15, %v2353_v8, 0.0  ;;  %vm2339_vm3 = vmand %vm9018_vm5, %vm9059_vm7 }
 0x9f5   : > { %14136 = vst [vmem:[#allocation157_spill] sm:$0xff] %v14135_v16  ;;  %v2357_v5 = vmul.f32 %v8888_v22, %v14137_v1  ;;  %v6788_v1 = vpack.i.bf16 %v2621_v20, %v8707_v0  ;;  %v9102_v28 = vmul.f32 %v2073_v34, %v9066_v13  ;;  %v13690_v9 = vsub.f32 1.0, %v9050_v46  ;;  %vm2341_vm11 = vmand %vm9031_vm12, %vm9075_vm6  ;;  %v14280_v16 = vld [vmem:[#allocation80_spill] sm:$0xff] }
 0x9f6   : > { %v6549_v27 = vcvt.f32.s32 %v6548_v18  ;;  %v2371_v62 = vsel %vm2339_vm3, %v2355_v52, 0.0  ;;  %v6553_v0 = vcvt.f32.s32 %v6552_v17  ;;  %vm2231_vm15 = vcmp.le.f32.partialorder %v8911_v38, 15.0 }
 0x9f7   : > { %6789 = vrot.lane.b32.xlu1 %v6788_v1, %s13998_s6  ;;  %v2373_v8 = vsel %vm2341_vm11, %v2357_v5, 0.0  ;;  %v13698_v34 = vsub.f32 1.0, %v9084_v53  ;;  %vm2593_vm10 = vcmp.eq.s32.totalorder %v7597_v12, %v6545_v60  ;;  %vm2233_vm3 = vcmp.le.f32.partialorder %v8935_v29, 15.0  ;;  %6794 = vrot.lane.b32.xlu0 %v6783_v4, %s14013_s0 }
 0x9f8   : > { %vm2592_vm12 = vcmp.eq.s32.totalorder %v7594_v11, %v6545_v60  ;;  %vm14138_vm14 = vcmp.le.f32.partialorder %v8328_v40, 15.0  ;;  %vm14139_vm13 = vcmp.ge.f32.partialorder %v8328_v40, 0.0  ;;  %v14140_v18 = vmov 0 }
 0x9f9   : > { %vm9122_vm6 = vmand %vm14139_vm13, %vm14138_vm14  ;;  %vm14143_vm11 = vcmp.le.f32.partialorder %v8825_v31, 15.0  ;;  %vm14144_vm7 = vcmp.ge.f32.partialorder %v8825_v31, 0.0  ;;  %v14145_v52 = vmov 0  ;;  %v2359_v17 = vmul.f32 %v9087_v25, %v13690_v9 }
 0x9fa   : > { %v14141_v18 = vsel %vm9122_vm6, 4294967295, %v14140_v18  ;;  %vm9130_vm4 = vmand %vm14144_vm7, %vm14143_vm11  ;;  %vm2596_vm5 = vcmp.eq.s32.totalorder %v7594_v11, %v6549_v27  ;;  %vm2597_vm1 = vcmp.eq.s32.totalorder %v7597_v12, %v6549_v27  ;;  %vm14148_vm13 = vcmp.ge.f32.partialorder %v8911_v38, 0.0 }
 0x9fb   : > { %14142 = vst [vmem:[#allocation158_spill] sm:$0xff] %v14141_v18  ;;  %v14146_v52 = vsel %vm9130_vm4, 4294967295, %v14145_v52  ;;  %vm9141_vm14 = vmand %vm14148_vm13, %vm2231_vm15  ;;  %v14149_v40 = vmov 0  ;;  %6799 = vrot.lane.b32.xlu1 %v6788_v1, %s14013_s0  ;;  %v2625_v5 = vsel %vm2593_vm10, 1.0, %v13936_v2  ;;  %v9149_v60 = vmul.f32 %v8919_v48, %v2369_v59  ;;  %6804 = vrot.lane.b32.xlu0 %v6783_v4, %s14009_s8 }
 0x9fc   : > { %14147 = vst [vmem:[#allocation159_spill] sm:$0xff] %v14146_v52  ;;  %v14150_v40 = vsel %vm9141_vm14, 4294967295, %v14149_v40  ;;  %v9152_v9 = vmul.f32 %v8866_v50, %v2369_v59  ;;  %vm14154_vm11 = vcmp.ge.f32.partialorder %v8935_v29, 0.0  ;;  %v14155_v27 = vmov 0 }
 0x9fd   : > { %14151 = vst [vmem:[#allocation160_spill] sm:$0xff] %v14150_v40  ;;  %14152 = vst [vmem:[#allocation161_spill] sm:$0xff] %v9149_v60  ;;  %v2361_v56 = vmul.f32 %v9102_v28, %v13698_v34  ;;  %v2624_v49 = vsel %vm2592_vm12, 1.0, %v13936_v2  ;;  %vm2600_vm10 = vcmp.eq.s32.totalorder %v7594_v11, %v6553_v0  ;;  %v9165_v38 = vmul.f32 %v2621_v20, %v2371_v62  ;;  %v14279_v40 = vld [vmem:[#allocation92_spill] sm:$0xff] }
 0x9fe   : > { %14153 = vst [vmem:[#allocation162_spill] sm:$0xff] %v9152_v9  ;;  %vm9156_vm8 = vmand %vm14154_vm11, %vm2233_vm3  ;;  %vm14159_vm15 = vcmp.le.f32.partialorder %v8906_v32, 15.0  ;;  %vm14160_vm13 = vcmp.ge.f32.partialorder %v8906_v32, 0.0  ;;  %v14161_v50 = vmov 0  ;;  %v9177_v59 = vsel %vm2596_vm5, 1.0, %v13936_v2 }
 0x9ff   : > { %v14156_v27 = vsel %vm9156_vm8, 4294967295, %v14155_v27  ;;  %14158 = vst [vmem:[#allocation164_spill] sm:$0xff] %v9165_v38  ;;  %vm9171_vm7 = vmand %vm14160_vm13, %vm14159_vm15  ;;  %v9180_v48 = vsel %vm2597_vm1, 1.0, %v13936_v2  ;;  %v9182_v34 = vmul.f32 %v2620_v39, %v2371_v62  ;;  %v9186_v20 = vsub.f32 %v8164_v10, %v8406_v30  ;;  %6809 = vrot.lane.b32.xlu1 %v6788_v1, %s14009_s8 }
 0xa00   : > { %14157 = vst [vmem:[#allocation163_spill] sm:$0xff] %v14156_v27  ;;  %v14162_v50 = vsel %vm9171_vm7, 4294967295, %v14161_v50  ;;  %v2014_v38 = vadd.f32 1.0, %v8406_v30  ;;  %vm2343_vm12 = vmand %vm9130_vm4, %vm9141_vm14  ;;  %vm14165_vm5 = vcmp.eq.s32.totalorder %v7597_v12, %v6553_v0  ;;  %v9198_v9 = vmul.f32 %v2625_v5, %v2373_v8 }
 0xa01   : > { %14163 = vst [vmem:[#allocation165_spill] sm:$0xff] %v14162_v50  ;;  %14164 = vst [vmem:[#allocation166_spill] sm:$0xff] %v9182_v34  ;;  %v9196_v4 = vsel %vm14165_vm5, 1.0, %v13936_v2  ;;  %v2375_v62 = vsel %vm2343_vm12, %v2359_v17, 0.0  ;;  %v6813_v10 = vpack.i.bf16 %v2624_v49, %v8793_v41  ;;  %v9209_v39 = vsel %vm2600_vm10, 1.0, %v13936_v2 }
 0xa02   : > { %14166 = vst [vmem:[#allocation167_spill] sm:$0xff] %v9198_v9  ;;  %vm2345_vm1 = vmand %vm9171_vm7, %vm9156_vm8  ;;  %v9211_v34 = vmul.f32 %v2624_v49, %v2373_v8  ;;  %v9216_v17 = vsel %vm9122_vm6, 1, %v13959_v54  ;;  %v9219_v9 = vmul.f32 %v9180_v48, %v2375_v62  ;;  %v9222_v41 = vmul.f32 %v9177_v59, %v2375_v62 }
 0xa03   : > { %v2377_v60 = vsel %vm2345_vm1, %v2361_v56, 0.0  ;;  %14168 = vst [vmem:[#allocation169_spill] sm:$0xff] %v9216_v17  ;;  %v9225_v1 = vfloor.f32 %v8203_v36  ;;  %6814 = vrot.lane.b32.xlu0 %v6813_v10, %s13998_s6  ;;  %v6818_v49 = vpack.i.bf16 %v2625_v5, %v8796_v33  ;;  %vm2110_vm10 = vcmp.ge.f32.partialorder %v8406_v30, 0.0  ;;  %v1798_v33 = vpop.xlane.xlu1 %1797 }
 0xa04   : > { %14167 = vst [vmem:[#allocation168_spill] sm:$0xff] %v9211_v34  ;;  %14169 = vst [vmem:[#allocation170_spill] sm:$0xff] %v9219_v9  ;;  %v9232_v56 = vmul.f32 %v9196_v4, %v2377_v60  ;;  %vm2126_vm15 = vcmp.le.f32.partialorder %v8406_v30, 15.0  ;;  %v9237_v0 = vadd.f32 1.0, %v8284_v26  ;;  %v9240_v8 = vmul.f32 %v9209_v39, %v2377_v60  ;;  %v14176_v34 = vld [vmem:[#allocation50_spill] sm:$0xff]  ;;  %v14233_v30 = vld [vmem:[#allocation88_spill] sm:$0xff] }
 0xa05   : > { %14170 = vst [vmem:[#allocation171_spill] sm:$0xff] %v9222_v41  ;;  %v2062_v62 = vsub.f32 1.0, %v9186_v20  ;;  %v2027_v18 = vadd.f32 1.0, %v8208_v19  ;;  %6819 = vrot.lane.b32.xlu1 %v6818_v49, %s13998_s6  ;;  %v2030_v5 = vadd.f32 1.0, %v8455_v51  ;;  %v9247_v54 = vadd.f32 1.0, %v8231_v55  ;;  %v14174_v41 = vld [vmem:[#allocation84_spill] sm:$0xff]  ;;  %vm9283_vm12 = vmand %vm2110_vm10, %vm2126_vm15 }
 0xa06   : > { %14171 = vst [vmem:[#allocation172_spill] sm:$0xff] %v9232_v56  ;;  %14172 = vst [vmem:[#allocation173_spill] sm:$0xff] %v9240_v8  ;;  %v9249_v56 = vfloor.f32 %v1798_v33  ;;  %v9253_v26 = vsub.f32 %v8203_v36, %v9225_v1  ;;  %v9256_v60 = vadd.f32 1.0, %v8321_v7  ;;  %v9260_v19 = vadd.f32 1.0, %v8418_v6 }
 0xa07   : > { %6824 = vrot.lane.b32.xlu0 %v6813_v10, %s14013_s0  ;;  %v9263_v8 = vadd.f32 1.0, %v8331_v42  ;;  %v9266_v55 = vadd.f32 1.0, %v14174_v41  ;;  %v2078_v7 = vsub.f32 %v14176_v34, %v8455_v51  ;;  %v9276_v42 = vpop.xlane.xlu0 %1973  ;;  %vm14179_vm11 = vcmp.le.f32.partialorder %v2014_v38, 15.0 }
 0xa08   : > { %14173 = vst [vmem:[#allocation174_spill] sm:$0xff] %v9249_v56  ;;  %v9269_v9 = vsub.f32 %v1798_v33, %v9249_v56  ;;  %v2536_v36 = vmul.f32 16.0, %v9249_v56  ;;  %v2072_v34 = vsub.f32 1.0, %v9253_v26  ;;  %vm14180_vm13 = vcmp.ge.f32.partialorder %v2014_v38, 0.0  ;;  %v14188_v33 = vld [vmem:[#allocation53_spill] sm:$0xff] }
 0xa09   : > { %6829 = vrot.lane.b32.xlu1 %v6818_v49, %s14013_s0  ;;  %vm9295_vm6 = vmand %vm14180_vm13, %vm14179_vm11  ;;  %v2094_v52 = vsub.f32 1.0, %v2078_v7  ;;  %vm14184_vm5 = vcmp.le.f32.partialorder %v2030_v5, 15.0  ;;  %vm14185_vm7 = vcmp.ge.f32.partialorder %v2030_v5, 0.0  ;;  %v2302_v27 = vmul.f32 %v2062_v62, %v14188_v33  ;;  %v14303_v5 = vld [vmem:[#allocation101_spill] sm:$0xff] }
 0xa0a   : > { %14175 = vst [vmem:[#allocation84_spill] sm:$0xff] %v9269_v9  ;;  %v2552_v6 = vadd.f32 %v2536_v36, %v9225_v1  ;;  %v14183_v36 = vld [vmem:[#allocation102_spill] sm:$0xff]  ;;  %vm9308_vm4 = vmand %vm14185_vm7, %vm14184_vm5  ;;  %vm14189_vm11 = vcmp.le.f32.partialorder %v2027_v18, 15.0  ;;  %vm14190_vm13 = vcmp.ge.f32.partialorder %v2027_v18, 0.0  ;;  %vm14194_vm7 = vcmp.le.f32.partialorder %v8455_v51, 15.0 }
 0xa0b   : > { %6834 = vrot.lane.b32.xlu0 %v6813_v10, %s14009_s8  ;;  %v9302_v50 = vadd.f32 1.0, %v14183_v36  ;;  %vm9315_vm10 = vmand %vm14190_vm13, %vm14189_vm11  ;;  %v9320_v36 = vmul.f32 %v2072_v34, %v9276_v42  ;;  %vm14195_vm5 = vcmp.ge.f32.partialorder %v8455_v51, 0.0  ;;  %v2318_v18 = vmul.f32 %v9186_v20, %v14188_v33 }
 0xa0c   : > { %v6550_v10 = vtrunc.f32 %v2552_v6  ;;  %v6843_v6 = vpack.i.bf16 %v9177_v59, %v8950_v47  ;;  %vm9329_vm15 = vmand %vm14195_vm5, %vm14194_vm7  ;;  %vm14198_vm11 = vcmp.le.f32.partialorder %v8743_v21, 15.0  ;;  %vm14199_vm13 = vcmp.ge.f32.partialorder %v8743_v21, 0.0 }
 0xa0d   : > { %14193 = vst [vmem:[#allocation50_spill] sm:$0xff] %v9320_v36  ;;  %6839 = vrot.lane.b32.xlu1 %v6818_v49, %s14009_s8  ;;  %vm9339_vm1 = vmand %vm14199_vm13, %vm14198_vm11  ;;  %vm2120_vm3 = vcmp.ge.f32.partialorder %v9225_v1, 0.0  ;;  %vm2136_vm8 = vcmp.le.f32.partialorder %v9225_v1, 15.0  ;;  %vm14202_vm11 = vcmp.le.f32.partialorder %v9249_v56, 15.0  ;;  %vm14203_vm13 = vcmp.ge.f32.partialorder %v9249_v56, 0.0  ;;  %v14208_v49 = vld [vmem:[#allocation51_spill] sm:$0xff] }
 0xa0e   : > { %v6551_v51 = vcvt.f32.s32 %v6550_v10  ;;  %vm9354_vm0 = vmand %vm14203_vm13, %vm14202_vm11  ;;  %v14204_v21 = vmov 0  ;;  %v14207_v47 = vsub.f32 1.0, %v9269_v9  ;;  %v6848_v20 = vpack.i.bf16 %v9180_v48, %v8953_v58 }
 0xa0f   : > { %6844 = vrot.lane.b32.xlu0 %v6843_v6, %s13998_s6  ;;  %v14205_v21 = vsel %vm9354_vm0, 4294967295, %v14204_v21  ;;  %vm2430_vm14 = vmand %vm9283_vm12, %vm9308_vm4  ;;  %v2029_v34 = vadd.f32 1.0, %v14208_v49  ;;  %v9373_v33 = vadd.f32 1.0, %v8660_v15  ;;  %v9376_v58 = vadd.f32 1.0, %v8669_v63  ;;  %v14212_v63 = vld [vmem:[#allocation48_spill] sm:$0xff] }
 0xa10   : > { %14206 = vst [vmem:[#allocation102_spill] sm:$0xff] %v14205_v21  ;;  %v2360_v59 = vmul.f32 %v9320_v36, %v14207_v47  ;;  %vm2598_vm13 = vcmp.eq.s32.totalorder %v7594_v11, %v6551_v51  ;;  %vm2599_vm7 = vcmp.eq.s32.totalorder %v7597_v12, %v6551_v51  ;;  %vm9382_vm5 = vmand %vm2120_vm3, %vm2136_vm8  ;;  %v14209_v48 = vmov 0  ;;  %v14213_v36 = vld [vmem:[#allocation72_spill] sm:$0xff] }
 0xa11   : > { %v14210_v48 = vsel %vm9382_vm5, 4294967295, %v14209_v48  ;;  %6849 = vrot.lane.b32.xlu1 %v6848_v20, %s13998_s6  ;;  %v2630_v10 = vsel %vm2598_vm13, 1.0, %v13936_v2  ;;  %v2631_v51 = vsel %vm2599_vm7, 1.0, %v13936_v2  ;;  %v2350_v47 = vmul.f32 %v2302_v27, %v2094_v52  ;;  %vm2344_vm8 = vmand %vm9382_vm5, %vm9354_vm0 }
 0xa12   : > { %14211 = vst [vmem:[#allocation53_spill] sm:$0xff] %v14210_v48  ;;  %v2398_v15 = vmul.f32 %v2318_v18, %v2094_v52  ;;  %v2446_v49 = vmul.f32 %v2302_v27, %v2078_v7  ;;  %v2494_v12 = vmul.f32 %v2318_v18, %v2078_v7  ;;  %v9397_v9 = vmul.f32 %v14213_v36, %v14212_v63  ;;  %vm2478_vm3 = vmand %vm9295_vm6, %vm9308_vm4  ;;  %v14214_v7 = vld [vmem:[#allocation49_spill] sm:$0xff]  ;;  %v14215_v18 = vld [vmem:[#allocation107_spill] sm:$0xff] }
 0xa13   : > { %v2376_v52 = vsel %vm2344_vm8, %v2360_v59, 0.0  ;;  %6854 = vrot.lane.b32.xlu0 %v6843_v6, %s14013_s0  ;;  %v9405_v27 = vadd.f32 1.0, %v8728_v37  ;;  %v9409_v2 = vmul.f32 %v14215_v18, %v14214_v7  ;;  %vm2334_vm7 = vmand %vm9283_vm12, %vm9329_vm15  ;;  %vm2253_vm13 = vcmp.ge.f32.partialorder %v2029_v34, 0.0  ;;  %v14218_v37 = vld [vmem:[#allocation56_spill] sm:$0xff]  ;;  %v14219_v59 = vld [vmem:[#allocation119_spill] sm:$0xff] }
 0xa14   : > { %v9415_v36 = vmul.f32 %v2631_v51, %v2376_v52  ;;  %v9417_v63 = vmul.f32 %v2630_v10, %v2376_v52  ;;  %vm2382_vm8 = vmand %vm9295_vm6, %vm9329_vm15  ;;  %v9425_v48 = vmul.f32 %v14219_v59, %v14218_v37  ;;  %vm2269_vm9 = vcmp.le.f32.partialorder %v2029_v34, 15.0  ;;  %v14220_v7 = vld [vmem:[#allocation76_spill] sm:$0xff]  ;;  %v14235_v37 = vld [vmem:[#allocation125_spill] sm:$0xff] }
 0xa15   : > { %v2032_v18 = vadd.f32 1.0, %v14220_v7  ;;  %6859 = vrot.lane.b32.xlu1 %v6848_v20, %s14013_s0  ;;  %v2366_v21 = vsel %vm2334_vm7, %v2350_v47, 0.0  ;;  %v9429_v56 = vsel %vm2382_vm8, %v2398_v15, 0.0  ;;  %v9436_v62 = vsel %vm2430_vm14, %v2446_v49, 0.0  ;;  %v14237_v7 = vld [vmem:[#allocation130_spill] sm:$0xff]  ;;  %v14325_v47 = vld [vmem:[#allocation95_spill] sm:$0xff] }
 0xa16   : > { %14216 = vst [vmem:[#allocation51_spill] sm:$0xff] %v9415_v36  ;;  %14217 = vst [vmem:[#allocation48_spill] sm:$0xff] %v9417_v63  ;;  %v9443_v52 = vsel %vm2478_vm3, %v2494_v12, 0.0  ;;  %vm14224_vm15 = vcmp.le.f32.partialorder %v9247_v54, 15.0  ;;  %vm14225_vm7 = vcmp.ge.f32.partialorder %v9247_v54, 0.0  ;;  %vm14229_vm12 = vcmp.le.f32.partialorder %v9256_v60, 15.0 }
 0xa17   : > { %14221 = vst [vmem:[#allocation72_spill] sm:$0xff] %v9429_v56  ;;  %14222 = vst [vmem:[#allocation49_spill] sm:$0xff] %v9436_v62  ;;  %vm14230_vm11 = vcmp.ge.f32.partialorder %v9256_v60, 0.0  ;;  %v2034_v38 = vadd.f32 1.0, %v14233_v30  ;;  %v14234_v54 = vld [vmem:[#allocation100_spill] sm:$0xff]  ;;  %6864 = vrot.lane.b32.xlu0 %v6843_v6, %s14009_s8  ;;  %v9471_v49 = vpack.i.bf16 %v9209_v39, %v2630_v10  ;;  %v9474_v59 = vmul.f32 %v14235_v37, %v2366_v21  ;;  %v14239_v60 = vld [vmem:[#allocation57_spill] sm:$0xff] }
 0xa18   : > { %14223 = vst [vmem:[#allocation107_spill] sm:$0xff] %v9443_v52  ;;  %vm9449_vm8 = vmand %vm14225_vm7, %vm14224_vm15  ;;  %v9467_v15 = vadd.f32 1.0, %v14234_v54  ;;  %v9477_v63 = vmul.f32 %v14237_v7, %v2366_v21  ;;  %v14240_v36 = vld [vmem:[#allocation54_spill] sm:$0xff]  ;;  %v9486_v54 = vadd.f32 1.0, %v8762_v24  ;;  %v14243_v6 = vld [vmem:[#allocation77_spill] sm:$0xff]  ;;  %vm14248_vm7 = vcmp.le.f32.partialorder %v9237_v0, 15.0 }
 0xa19   : > { %vm9461_vm4 = vmand %vm14230_vm11, %vm14229_vm12  ;;  %14236 = vst [vmem:[#allocation56_spill] sm:$0xff] %v9474_v59  ;;  %v2315_v52 = vmul.f32 %v14240_v36, %v14239_v60  ;;  %v14241_v30 = vld [vmem:[#allocation62_spill] sm:$0xff]  ;;  %v14244_v39 = vld [vmem:[#allocation129_spill] sm:$0xff]  ;;  %6869 = vrot.lane.b32.xlu1 %v6848_v20, %s14009_s8  ;;  %vm14249_vm12 = vcmp.ge.f32.partialorder %v9237_v0, 0.0  ;;  %v14250_v24 = vmov 0  ;;  %v9511_v34 = vadd.f32 1.0, %v9225_v1 }
 0xa1a   : > { %14238 = vst [vmem:[#allocation119_spill] sm:$0xff] %v9477_v63  ;;  %vm14242_vm6 = vnez %v14241_v30  ;;  %v9490_v10 = vmul.f32 %v14244_v39, %v14243_v6  ;;  %vm9494_vm3 = vmand %vm2253_vm13, %vm2269_vm9  ;;  %v14247_v37 = vld [vmem:[#allocation86_spill] sm:$0xff]  ;;  %v14253_v60 = vld [vmem:[#allocation133_spill] sm:$0xff]  ;;  %vm14257_vm14 = vcmp.ge.f32.partialorder %v9266_v55, 0.0  ;;  %v14258_v1 = vmov 0 }
 0xa1b   : > { %v2031_v36 = vadd.f32 1.0, %v14247_v37  ;;  %vm9504_vm11 = vmand %vm14249_vm12, %vm14248_vm7  ;;  %v14252_v7 = vld [vmem:[#allocation90_spill] sm:$0xff]  ;;  %v14254_v0 = vld [vmem:[#allocation71_spill] sm:$0xff]  ;;  %vm14256_vm12 = vcmp.le.f32.partialorder %v9266_v55, 15.0  ;;  %v9534_v37 = vadd.f32 1.0, %v8825_v31  ;;  %vm14262_vm0 = vcmp.le.f32.partialorder %v9263_v8, 15.0  ;;  %6874 = vrot.lane.b32.xlu0 %v9471_v49, %s13998_s6 }
 0xa1c   : > { %v14251_v24 = vsel %vm9504_vm11, 4294967295, %v14250_v24  ;;  %v9515_v6 = vmul.f32 %v14253_v60, %v14252_v7  ;;  %v14255_v20 = vld [vmem:[#allocation61_spill] sm:$0xff]  ;;  %vm9527_vm9 = vmand %vm14257_vm14, %vm14256_vm12  ;;  %vm14263_vm11 = vcmp.ge.f32.partialorder %v9263_v8, 0.0  ;;  %v14264_v55 = vmov 0  ;;  %v14266_v60 = vld [vmem:[#allocation55_spill] sm:$0xff] }
 0xa1d   : > { %v2317_v39 = vmul.f32 %v14255_v20, %v14254_v0  ;;  %v14259_v1 = vsel %vm9527_vm9, 4294967295, %v14258_v1  ;;  %v14260_v7 = vld [vmem:[#allocation73_spill] sm:$0xff]  ;;  %vm9544_vm14 = vmand %vm14263_vm11, %vm14262_vm0  ;;  %v9552_v31 = vpack.i.bf16 %v9196_v4, %v2631_v51  ;;  %v14267_v0 = vsub.f32 1.0, %v14266_v60  ;;  %v14268_v59 = vld [vmem:[#allocation60_spill] sm:$0xff] }
 0xa1e   : > { %v14265_v55 = vsel %vm9544_vm14, 4294967295, %v14264_v55  ;;  %v2443_v8 = vmul.f32 %v14268_v59, %v14266_v60  ;;  %v2491_v63 = vmul.f32 %v2315_v52, %v14266_v60  ;;  %v14269_v62 = vld [vmem:[#allocation79_spill] sm:$0xff]  ;;  %vm14271_vm14 = vcmp.le.f32.partialorder %v9302_v50, 15.0  ;;  %v14275_v51 = vld [vmem:[#allocation69_spill] sm:$0xff]  ;;  %v14278_v56 = vld [vmem:[#allocation74_spill] sm:$0xff] }
 0xa1f   : > { %v2395_v20 = vmul.f32 %v2315_v52, %v14267_v0  ;;  %vm14270_vm0 = vnez %v14269_v62  ;;  %vm14272_vm9 = vcmp.ge.f32.partialorder %v9302_v50, 0.0  ;;  %v14273_v4 = vmov 0  ;;  %6879 = vrot.lane.b32.xlu1 %v9552_v31, %s13998_s6  ;;  %v14276_v59 = vld [vmem:[#allocation65_spill] sm:$0xff]  ;;  %6884 = vrot.lane.b32.xlu0 %v9471_v49, %s14013_s0  ;;  %vm14291_vm11 = vmand %vm9339_vm1, %vm8253_vm2  ;;  %v14323_v62 = vld [vmem:[#allocation98_spill] sm:$0xff] }
 0xa20   : > { %vm9572_vm13 = vmand %vm14272_vm9, %vm14271_vm14  ;;  %v9579_v52 = vadd.f32 1.0, %v14275_v51  ;;  %v14277_v60 = vsub.f32 1.0, %v14276_v59  ;;  %v2445_v50 = vmul.f32 %v14278_v56, %v14276_v59  ;;  %v2493_v11 = vmul.f32 %v2317_v39, %v14276_v59  ;;  %v14285_v56 = vld [vmem:[#allocation81_spill] sm:$0xff]  ;;  %v14397_v51 = vld [vmem:[#allocation147_spill] sm:$0xff] }
 0xa21   : > { %v14274_v4 = vsel %vm9572_vm13, 4294967295, %v14273_v4  ;;  %v2319_v17 = vmul.f32 %v14280_v16, %v14279_v40  ;;  %vm14281_vm9 = vcmp.le.f32.partialorder %v2032_v18, 15.0  ;;  %vm14282_vm14 = vcmp.ge.f32.partialorder %v2032_v18, 0.0  ;;  %v14296_v40 = vld [vmem:[#allocation87_spill] sm:$0xff]  ;;  %v14318_v59 = vld [vmem:[#allocation89_spill] sm:$0xff] }
 0xa22   : > { %v2397_v0 = vmul.f32 %v2317_v39, %v14277_v60  ;;  %vm9592_vm7 = vmand %vm14282_vm14, %vm14281_vm9  ;;  %v9600_v60 = vmul.f32 %v8855_v43, %v8673_v3  ;;  %v14286_v44 = vsub.f32 1.0, %v14285_v56  ;;  %vm14287_vm12 = vcmp.le.f32.partialorder %v2034_v38, 15.0 }
 0xa23   : > { %vm14288_vm15 = vcmp.ge.f32.partialorder %v2034_v38, 0.0  ;;  %v14289_v16 = vmov 0  ;;  %v9616_v3 = vadd.f32 1.0, %v8906_v32  ;;  %v9623_v43 = vsel %vm14291_vm11, %v2395_v20, 0.0  ;;  %v14301_v38 = vld [vmem:[#allocation105_spill] sm:$0xff]  ;;  %6889 = vrot.lane.b32.xlu1 %v9552_v31, %s14013_s0  ;;  %6894 = vrot.lane.b32.xlu0 %v9471_v49, %s14009_s8 }
 0xa24   : > { %v2394_v39 = vmul.f32 %v9397_v9, %v14286_v44  ;;  %vm9607_vm13 = vmand %vm14288_vm15, %vm14287_vm12  ;;  %v9641_v18 = vmul.f32 %v14296_v40, %v14285_v56  ;;  %vm14297_vm2 = vcmp.le.f32.partialorder %v2031_v36, 15.0  ;;  %vm14298_vm11 = vcmp.ge.f32.partialorder %v2031_v36, 0.0  ;;  %v14305_v36 = vld [vmem:[#allocation109_spill] sm:$0xff]  ;;  %v14320_v40 = vld [vmem:[#allocation91_spill] sm:$0xff] }
 0xa25   : > { %v14290_v16 = vsel %vm9607_vm13, 4294967295, %v14289_v16  ;;  %vm14292_vm15 = vmand %vm14242_vm6, %vm9315_vm10  ;;  %vm14302_vm6 = vnez %v14301_v38  ;;  %v9657_v29 = vmul.f32 %v9397_v9, %v14285_v56  ;;  %vm14308_vm14 = vcmp.ge.f32.partialorder %v9467_v15, 0.0 }
 0xa26   : > { %v9630_v44 = vsel %vm14292_vm15, %v2443_v8, 0.0  ;;  %vm14294_vm12 = vmand %vm9339_vm1, %vm9315_vm10  ;;  %vm14306_vm10 = vnez %v14305_v36  ;;  %v14319_v56 = vsub.f32 1.0, %v14318_v59  ;;  %v2495_v21 = vmul.f32 %v2319_v17, %v14318_v59  ;;  %v14391_v36 = vld [vmem:[#allocation94_spill] sm:$0xff] }
 0xa27   : > { %14293 = vst [vmem:[#allocation76_spill] sm:$0xff] %v9630_v44  ;;  %v9637_v32 = vsel %vm14294_vm12, %v2491_v63, 0.0  ;;  %vm9645_vm9 = vmand %vm14298_vm11, %vm14297_vm2  ;;  %v14304_v63 = vld [vmem:[#allocation78_spill] sm:$0xff]  ;;  %vm14307_vm11 = vcmp.le.f32.partialorder %v9467_v15, 15.0  ;;  %vm14311_vm12 = vnez %v14260_v7  ;;  %vm14339_vm13 = vcmp.ge.f32.partialorder %v9260_v19, 0.0  ;;  %6899 = vrot.lane.b32.xlu1 %v9552_v31, %s14009_s8 }
 0xa28   : > { %14295 = vst [vmem:[#allocation59_spill] sm:$0xff] %v9637_v32  ;;  %v2320_v30 = vmul.f32 %v14304_v63, %v14303_v5  ;;  %vm9673_vm1 = vmand %vm14308_vm14, %vm14307_vm11  ;;  %v2399_v7 = vmul.f32 %v2319_v17, %v14319_v56  ;;  %v14332_v17 = vld [vmem:[#allocation137_spill] sm:$0xff]  ;;  %v14333_v63 = vld [vmem:[#allocation136_spill] sm:$0xff]  ;;  %v14340_v49 = vmov 0  ;;  %v14367_v41 = vsub.f32 1.0, %v8892_v45 }
 0xa29   : > { %vm14312_vm15 = vmand %vm9449_vm8, %vm14311_vm12  ;;  %vm14322_vm12 = vnez %v14251_v24  ;;  %v14336_v56 = vld [vmem:[#allocation113_spill] sm:$0xff]  ;;  %v14395_v12 = vmov 0  ;;  %v10025_v9 = vmul.f32 %v9600_v60, %v9050_v46 }
 0xa2a   : > { %v9685_v20 = vsel %vm14312_vm15, %v2397_v0, 0.0  ;;  %vm14314_vm14 = vmand %vm14270_vm0, %vm9494_vm3  ;;  %vm14321_vm15 = vnez %v14320_v40  ;;  %vm14324_vm0 = vnez %v14323_v62  ;;  %v2447_v0 = vmul.f32 %v14325_v47, %v14318_v59  ;;  %v14337_v40 = vld [vmem:[#allocation93_spill] sm:$0xff]  ;;  %v14362_v62 = vld [vmem:[#allocation52_spill] sm:$0xff] }
 0xa2b   : > { %14313 = vst [vmem:[#allocation88_spill] sm:$0xff] %v9685_v20  ;;  %v9692_v15 = vsel %vm14314_vm14, %v2445_v50, 0.0  ;;  %vm14316_vm11 = vmand %vm9449_vm8, %vm9494_vm3  ;;  %v14329_v50 = vld [vmem:[#allocation117_spill] sm:$0xff]  ;;  %v9732_v59 = vmul.f32 %v14333_v63, %v14332_v17  ;;  %v2322_v47 = vmul.f32 %v14337_v40, %v14336_v56  ;;  %vm14338_vm14 = vcmp.le.f32.partialorder %v9260_v19, 15.0  ;;  %v14345_v40 = vld [vmem:[#allocation96_spill] sm:$0xff]  ;;  %3532 = vrot.lane.b32.xlu0 %v14362_v62, %s13998_s6 }
 0xa2c   : > { %14315 = vst [vmem:[#allocation100_spill] sm:$0xff] %v9692_v15  ;;  %v9699_v8 = vsel %vm14316_vm11, %v2493_v11, 0.0  ;;  %vm2378_vm2 = vmand %vm14322_vm12, %vm14321_vm15  ;;  %v14326_v11 = vld [vmem:[#allocation115_spill] sm:$0xff]  ;;  %vm14335_vm11 = vnez %v14265_v55  ;;  %v9759_v56 = vmul.f32 %v9409_v2, %v14332_v17  ;;  %vm14346_vm15 = vnez %v14345_v40  ;;  %v14347_v19 = vld [vmem:[#allocation97_spill] sm:$0xff] }
 0xa2d   : > { %14317 = vst [vmem:[#allocation125_spill] sm:$0xff] %v9699_v8  ;;  %v9728_v5 = vsel %vm2378_vm2, %v2394_v39, 0.0  ;;  %14334 = vst [vmem:[#allocation57_spill] sm:$0xff] %v9732_v59  ;;  %v14342_v39 = vld [vmem:[#allocation85_spill] sm:$0xff]  ;;  %v14343_v8 = vsub.f32 1.0, %v14332_v17  ;;  %v14348_v20 = vsub.f32 1.0, %v14347_v19 }
 0xa2e   : > { %14331 = vst [vmem:[#allocation130_spill] sm:$0xff] %v9728_v5  ;;  %vm9745_vm2 = vmand %vm14339_vm13, %vm14338_vm14  ;;  %v9750_v63 = vadd.f32 1.0, %v14342_v39  ;;  %vm14349_vm14 = vcmp.le.f32.partialorder %v9376_v58, 15.0  ;;  %vm14350_vm8 = vcmp.ge.f32.partialorder %v9376_v58, 0.0  ;;  %v14351_v39 = vmov 0  ;;  %v14354_v17 = vld [vmem:[#allocation106_spill] sm:$0xff] }
 0xa2f   : > { %v14341_v49 = vsel %vm9745_vm2, 4294967295, %v14340_v49  ;;  %v9755_v15 = vmul.f32 %v9409_v2, %v14343_v8  ;;  %14344 = vst [vmem:[#allocation54_spill] sm:$0xff] %v9759_v56  ;;  %vm2383_vm13 = vmand %vm14335_vm11, %vm14346_vm15  ;;  %v2400_v32 = vmul.f32 %v2320_v30, %v14348_v20  ;;  %v14353_v8 = vld [vmem:[#allocation127_spill] sm:$0xff]  ;;  %v2448_v40 = vmul.f32 %v14354_v17, %v14347_v19  ;;  %v14355_v56 = vld [vmem:[#allocation122_spill] sm:$0xff] }
 0xa30   : > { %vm9771_vm2 = vmand %vm14350_vm8, %vm14349_vm14  ;;  %v2038_v44 = vadd.f32 1.0, %v14353_v8  ;;  %v9778_v2 = vsel %vm2383_vm13, %v2399_v7, 0.0  ;;  %v2496_v20 = vmul.f32 %v2320_v30, %v14347_v19  ;;  %v14356_v59 = vld [vmem:[#allocation108_spill] sm:$0xff]  ;;  %v14357_v58 = vld [vmem:[#allocation126_spill] sm:$0xff]  ;;  %vm14359_vm15 = vnez %v14274_v4 }
 0xa31   : > { %v14352_v39 = vsel %vm9771_vm2, 4294967295, %v14351_v39  ;;  %v2324_v5 = vmul.f32 %v14356_v59, %v14355_v56  ;;  %vm14358_vm8 = vnez %v14357_v58  ;;  %vm14360_vm13 = vmand %vm14324_vm0, %vm9645_vm9  ;;  %v9807_v7 = vmul.f32 %v8835_v61, %v8892_v45  ;;  %v14370_v19 = vld [vmem:[#allocation114_spill] sm:$0xff] }
 0xa32   : > { %v9796_v31 = vsel %vm14360_vm13, %v2447_v0, 0.0  ;;  %vm14361_vm3 = vmand %vm14335_vm11, %vm9645_vm9  ;;  %v9811_v59 = vmul.f32 %v9425_v48, %v8892_v45  ;;  %vm14363_vm0 = vcmp.le.f32.partialorder %v9579_v52, 15.0  ;;  %vm14364_vm13 = vcmp.ge.f32.partialorder %v9579_v52, 0.0  ;;  %v14368_v0 = vld [vmem:[#allocation110_spill] sm:$0xff]  ;;  %v14371_v52 = vld [vmem:[#allocation128_spill] sm:$0xff] }
 0xa33   : > { %v9803_v30 = vsel %vm14361_vm3, %v2495_v21, 0.0  ;;  %vm9819_vm2 = vmand %vm14364_vm13, %vm14363_vm0  ;;  %v9826_v61 = vmul.f32 %v9425_v48, %v14367_v41  ;;  %v14369_v21 = vsub.f32 1.0, %v14368_v0  ;;  %v2450_v8 = vmul.f32 %v14370_v19, %v14368_v0  ;;  %v14381_v41 = vld [vmem:[#allocation63_spill] sm:$0xff]  ;;  %v14556_v45 = vld [vmem:[#allocation53_spill] sm:$0xff] }
 0xa34   : > { %v2498_v17 = vmul.f32 %v2322_v47, %v14368_v0  ;;  %vm14373_vm11 = vcmp.le.f32.partialorder %v9373_v33, 15.0  ;;  %vm14374_vm0 = vcmp.ge.f32.partialorder %v9373_v33, 0.0  ;;  %vm14377_vm5 = vmand %vm9461_vm4, %vm14302_vm6  ;;  %v14379_v33 = vld [vmem:[#allocation123_spill] sm:$0xff]  ;;  %3477 = vrot.lane.b32.xlu1 %v14381_v41, %s14380_s1  ;;  %v9905_v41 = vmul.f32 %v8851_v57, %v14397_v51 }
 0xa35   : > { %v2402_v56 = vmul.f32 %v2322_v47, %v14369_v21  ;;  %vm9841_vm13 = vmand %vm14374_vm0, %vm14373_vm11  ;;  %v9850_v48 = vsel %vm14377_vm5, %v2400_v32, 0.0  ;;  %v14378_v47 = vld [vmem:[#allocation135_spill] sm:$0xff]  ;;  %vm14382_vm11 = vcmp.le.f32.partialorder %v9405_v27, 15.0  ;;  %vm14383_vm0 = vcmp.ge.f32.partialorder %v9405_v27, 0.0  ;;  %v14388_v21 = vld [vmem:[#allocation118_spill] sm:$0xff] }
 0xa36   : > { %v2326_v62 = vmul.f32 %v14379_v33, %v14378_v47  ;;  %vm9864_vm6 = vmand %vm14383_vm0, %vm14382_vm11  ;;  %v14384_v32 = vmov 0  ;;  %v14389_v27 = vsub.f32 1.0, %v14388_v21  ;;  %v14390_v47 = vld [vmem:[#allocation124_spill] sm:$0xff]  ;;  %vm14393_vm0 = vcmp.le.f32.partialorder %v9486_v54, 15.0 }
 0xa37   : > { %v14385_v32 = vsel %vm9864_vm6, 4294967295, %v14384_v32  ;;  %vm14386_vm5 = vmand %vm14306_vm10, %vm9592_vm7  ;;  %v2452_v33 = vmul.f32 %v14390_v47, %v14388_v21  ;;  %v2500_v47 = vmul.f32 %v2324_v5, %v14388_v21  ;;  %v14402_v57 = vmov 0 }
 0xa38   : > { %v9873_v38 = vsel %vm14386_vm5, %v2448_v40, 0.0  ;;  %vm14387_vm3 = vmand %vm9461_vm4, %vm9592_vm7  ;;  %v2404_v19 = vmul.f32 %v2324_v5, %v14389_v27  ;;  %vm14394_vm5 = vcmp.ge.f32.partialorder %v9486_v54, 0.0  ;;  %v14398_v40 = vsub.f32 1.0, %v14397_v51  ;;  %v14399_v54 = vld [vmem:[#allocation64_spill] sm:$0xff] }
 0xa39   : > { %v9880_v0 = vsel %vm14387_vm3, %v2496_v20, 0.0  ;;  %vm9894_vm14 = vmand %vm14394_vm5, %vm14393_vm0  ;;  %v9909_v27 = vmul.f32 %v9490_v10, %v14397_v51  ;;  %3482 = vrot.lane.b32.xlu0 %v14399_v54, %s14380_s1  ;;  %vm14400_vm7 = vcmp.le.f32.partialorder %v9534_v37, 15.0  ;;  %vm14401_vm3 = vcmp.ge.f32.partialorder %v9534_v37, 0.0  ;;  %v14431_v54 = vld [vmem:[#allocation116_spill] sm:$0xff] }
 0xa3a   : > { %v14396_v12 = vsel %vm9894_vm14, 4294967295, %v14395_v12  ;;  %v9901_v20 = vmul.f32 %v9490_v10, %v14398_v40  ;;  %vm9922_vm0 = vmand %vm14401_vm3, %vm14400_vm7  ;;  %vm14404_vm5 = vnez %v14259_v1  ;;  %vm14405_vm10 = vnez %v14326_v11  ;;  %v14428_v40 = vld [vmem:[#allocation140_spill] sm:$0xff] }
 0xa3b   : > { %v14403_v57 = vsel %vm9922_vm0, 4294967295, %v14402_v57  ;;  %vm14406_vm9 = vmand %vm14404_vm5, %vm14405_vm10  ;;  %vm14407_vm11 = vnez %v14329_v50  ;;  %vm14408_vm14 = vnez %v14290_v16  ;;  %v2329_v11 = vmul.f32 %v8975_v23, %v9066_v13  ;;  %v14418_v16 = vld [vmem:[#allocation138_spill] sm:$0xff]  ;;  %v14420_v13 = vld [vmem:[#allocation144_spill] sm:$0xff] }
 0xa3c   : > { %v9931_v10 = vsel %vm14406_vm9, %v2402_v56, 0.0  ;;  %vm14409_vm4 = vmand %vm14407_vm11, %vm14408_vm14  ;;  %vm14412_vm10 = vcmp.le.f32.partialorder %v2038_v44, 15.0  ;;  %vm14413_vm9 = vcmp.ge.f32.partialorder %v2038_v44, 0.0  ;;  %v9957_v50 = vmul.f32 %v8888_v22, %v8983_v14  ;;  %v14419_v23 = vld [vmem:[#allocation66_spill] sm:$0xff] }
 0xa3d   : > { %v9938_v5 = vsel %vm14409_vm4, %v2450_v8, 0.0  ;;  %vm14410_vm7 = vmand %vm14404_vm5, %vm14408_vm14  ;;  %v14416_v8 = vld [vmem:[#allocation134_spill] sm:$0xff]  ;;  %3503 = vrot.lane.b32.xlu1 %v14419_v23, %s14380_s1  ;;  %vm14422_vm11 = vnez %v14341_v49  ;;  %v9972_v22 = vmul.f32 %v9515_v6, %v8983_v14  ;;  %vm14430_vm4 = vnez %v14352_v39 }
 0xa3e   : > { %v9945_v37 = vsel %vm14410_vm7, %v2498_v17, 0.0  ;;  %vm9951_vm3 = vmand %vm14413_vm9, %vm14412_vm10  ;;  %v14417_v1 = vsub.f32 1.0, %v14416_v8  ;;  %v2454_v17 = vmul.f32 %v14418_v16, %v14416_v8  ;;  %v2502_v51 = vmul.f32 %v2326_v62, %v14416_v8 }
 0xa3f   : > { %14411 = vst [vmem:[#allocation62_spill] sm:$0xff] %v9945_v37  ;;  %vm14423_vm5 = vmand %vm14359_vm15, %vm14358_vm8  ;;  %vm14425_vm7 = vnez %v14371_v52  ;;  %vm14429_vm9 = vnez %v14428_v40  ;;  %v2033_v8 = vadd.f32 1.0, %v14431_v54  ;;  %v10021_v4 = vmul.f32 %v9087_v25, %v9050_v46  ;;  %v14491_v37 = vld [vmem:[#allocation57_spill] sm:$0xff] }
 0xa40   : > { %v2406_v21 = vmul.f32 %v2326_v62, %v14417_v1  ;;  %v9979_v44 = vsel %vm14423_vm5, %v2404_v19, 0.0  ;;  %vm14426_vm10 = vmand %vm14425_vm7, %vm9673_vm1  ;;  %v14432_v1 = vsub.f32 1.0, %v8983_v14  ;;  %v14435_v19 = vld [vmem:[#allocation142_spill] sm:$0xff]  ;;  %v14439_v14 = vsub.f32 1.0, %v9050_v46 }
 0xa41   : > { %14424 = vst [vmem:[#allocation77_spill] sm:$0xff] %v9979_v44  ;;  %v9986_v62 = vsel %vm14426_vm10, %v2452_v33, 0.0  ;;  %vm2390_vm14 = vmand %vm14430_vm4, %vm14429_vm9  ;;  %vm14436_vm5 = vnez %v14435_v19  ;;  %v14437_v33 = vld [vmem:[#allocation70_spill] sm:$0xff]  ;;  %vm2252_vm10 = vcmp.ge.f32.partialorder %v9750_v63, 0.0  ;;  %vm2268_vm9 = vcmp.le.f32.partialorder %v9750_v63, 15.0  ;;  %v14458_v63 = vld [vmem:[#allocation141_spill] sm:$0xff] }
 0xa42   : > { %14427 = vst [vmem:[#allocation129_spill] sm:$0xff] %v9986_v62  ;;  %v9996_v58 = vmul.f32 %v9515_v6, %v14432_v1  ;;  %vm14433_vm8 = vmand %vm14359_vm15, %vm9673_vm1  ;;  %v14438_v16 = vsub.f32 1.0, %v14437_v33  ;;  %v10017_v6 = vmul.f32 %v9600_v60, %v14439_v14  ;;  %v10034_v40 = vsel %vm2390_vm14, %v2406_v21, 0.0  ;;  %v14455_v1 = vld [vmem:[#allocation157_spill] sm:$0xff]  ;;  %v14489_v44 = vld [vmem:[#allocation150_spill] sm:$0xff] }
 0xa43   : > { %v10003_v52 = vsel %vm14433_vm8, %v2500_v47, 0.0  ;;  %vm2438_vm7 = vmand %vm14436_vm5, %vm9951_vm3  ;;  %v14440_v47 = vld [vmem:[#allocation139_spill] sm:$0xff]  ;;  %14441 = vst [vmem:[#allocation90_spill] sm:$0xff] %v10034_v40  ;;  %v10042_v46 = vmul.f32 %v9102_v28, %v9084_v53  ;;  %vm14444_vm5 = vnez %v14125_v35  ;;  %vm14446_vm15 = vcmp.ge.f32.partialorder %v9616_v3, 0.0 }
 0xa44   : > { %14434 = vst [vmem:[#allocation86_spill] sm:$0xff] %v10003_v52  ;;  %3508 = vrot.lane.b32.xlu0 %v14438_v16, %s14380_s1  ;;  %vm2486_vm1 = vmand %vm14430_vm4, %vm9951_vm3  ;;  %v2035_v23 = vadd.f32 1.0, %v14440_v47  ;;  %v10036_v54 = vsel %vm2438_vm7, %v2454_v17, 0.0  ;;  %vm14445_vm4 = vcmp.le.f32.partialorder %v9616_v3, 15.0  ;;  %v14447_v60 = vmov 0  ;;  %v6670_v17 = vpop.permute.xlu0 %6669  ;;  %v14459_v47 = vld [vmem:[#allocation160_spill] sm:$0xff] }
 0xa45   : > { %14442 = vst [vmem:[#allocation133_spill] sm:$0xff] %v10036_v54  ;;  %v10038_v25 = vsel %vm2486_vm1, %v2502_v51, 0.0  ;;  %vm10052_vm8 = vmand %vm14446_vm15, %vm14445_vm4  ;;  %v14449_v39 = vsub.f32 1.0, %v9084_v53  ;;  %v10061_v28 = vmul.f32 %v2329_v11, %v9084_v53  ;;  %v10065_v21 = vmul.f32 %v9253_v26, %v9276_v42  ;;  %v14452_v51 = vld [vmem:[#allocation156_spill] sm:$0xff]  ;;  %v14454_v53 = vld [vmem:[#allocation169_spill] sm:$0xff] }
 0xa46   : > { %14443 = vst [vmem:[#allocation71_spill] sm:$0xff] %v10038_v25  ;;  %v14448_v60 = vsel %vm10052_vm8, 4294967295, %v14447_v60  ;;  %vm10071_vm14 = vmand %vm2252_vm10, %vm2268_vm9  ;;  %v6672_v26 = vunpack.i.h.bf16 %v6670_v17  ;;  %v6671_v42 = vunpack.i.l.bf16 %v6670_v17  ;;  %vm14456_vm3 = vnez %v14455_v1  ;;  %v14478_v25 = vld [vmem:[#allocation130_spill] sm:$0xff]  ;;  %v14488_v52 = vld [vmem:[#allocation68_spill] sm:$0xff] }
 0xa47   : > { %v10058_v56 = vmul.f32 %v2329_v11, %v14449_v39  ;;  %v6665_v11 = vpop.permute.xlu1 %6664  ;;  %vm14457_vm10 = vnez %v14396_v12  ;;  %v2037_v19 = vadd.f32 1.0, %v14458_v63  ;;  %vm14461_vm6 = vnez %v14391_v36  ;;  %vm14463_vm9 = vmand %vm14322_vm12, %vm9819_vm2  ;;  %v14466_v36 = vld [vmem:[#allocation146_spill] sm:$0xff] }
 0xa48   : > { %3517 = vrot.lane.b32.xlu0 %v14454_v53, %s14380_s1  ;;  %v6667_v16 = vunpack.i.h.bf16 %v6665_v11  ;;  %v6666_v14 = vunpack.i.l.bf16 %v6665_v11  ;;  %vm14462_vm4 = vmand %vm14461_vm6, %vm9819_vm2  ;;  %v10102_v17 = vsel %vm14463_vm9, %v9657_v29, 0.0  ;;  %vm14464_vm1 = vnez %v14420_v13  ;;  %v14469_v11 = vld [vmem:[#allocation13_spill] sm:$0xff] }
 0xa49   : > { %v2458_v39 = vsel %vm14462_vm4, %v9641_v18, 0.0  ;;  %vm14465_vm7 = vmand %vm14422_vm11, %vm14464_vm1  ;;  %vm14467_vm6 = vnez %v14466_v36  ;;  %v14468_v18 = vld [vmem:[#allocation143_spill] sm:$0xff]  ;;  %vm14470_vm8 = vcmp.lt.s32.totalorder %v14469_v11, 1  ;;  %vm14475_vm9 = vcmp.ge.f32.partialorder %v2033_v8, 0.0  ;;  %v14498_v36 = vld [vmem:[#allocation54_spill] sm:$0xff] }
 0xa4a   : > { %v10110_v53 = vsel %vm14465_vm7, %v9755_v15, 0.0  ;;  %vm2428_vm4 = vmand %vm14467_vm6, %vm10071_vm14  ;;  %v2039_v24 = vadd.f32 1.0, %v14468_v18  ;;  %v2731_v55 = vsel %vm14470_vm8, %v6667_v16, %v6672_v26  ;;  %vm14474_vm7 = vcmp.le.f32.partialorder %v2033_v8, 15.0  ;;  %v14483_v8 = vld [vmem:[#allocation174_spill] sm:$0xff] }
 0xa4b   : > { %vm14471_vm12 = vmmov %vm14470_vm8  ;;  %v14476_v13 = vmov 0  ;;  %v2765_v33 = vmul.f32 %v2731_v55, %v9623_v43  ;;  %v14485_v55 = vld [vmem:[#allocation67_spill] sm:$0xff] }
 0xa4c   : > { %v2747_v29 = vsel %vm14471_vm12, %v6672_v26, %v6667_v16  ;;  %vm14472_vm2 = vmmov %vm14470_vm8  ;;  %v6675_v16 = vpop.permute.xlu1 %6674  ;;  %vm14479_vm8 = vcmp.le.f32.partialorder %v2035_v23, 15.0  ;;  %vm14480_vm12 = vcmp.ge.f32.partialorder %v2035_v23, 0.0  ;;  %v14487_v23 = vld [vmem:[#allocation151_spill] sm:$0xff] }
 0xa4d   : > { %v2730_v63 = vsel %vm14472_vm2, %v6666_v14, %v6671_v42  ;;  %vm14473_vm1 = vmmov %vm14472_vm2  ;;  %v2764_v18 = vmul.f32 %v2747_v29, %v9623_v43  ;;  %v2040_v43 = vadd.f32 1.0, %v14483_v8  ;;  %v14486_v29 = vld [vmem:[#allocation99_spill] sm:$0xff]  ;;  %v2797_v62 = vadd.f32 %v2765_v33, %v14488_v52  ;;  %v14493_v33 = vld [vmem:[#allocation152_spill] sm:$0xff] }
 0xa4e   : > { %v2746_v15 = vsel %vm14473_vm1, %v6671_v42, %v6666_v14  ;;  %vm10127_vm15 = vmand %vm14475_vm9, %vm14474_vm7  ;;  %v2763_v26 = vmul.f32 %v2730_v63, %v14478_v25  ;;  %v14484_v42 = vld [vmem:[#allocation145_spill] sm:$0xff]  ;;  %v10161_v8 = vsel %vm2428_vm4, %v14491_v37, 0.0  ;;  %vm14501_vm9 = vnez %v14452_v51  ;;  %v6685_v51 = vpop.permute.xlu0 %6684 }
 0xa4f   : > { %v14477_v13 = vsel %vm10127_vm15, 4294967295, %v14476_v13  ;;  %v2762_v54 = vmul.f32 %v2746_v15, %v14478_v25  ;;  %vm10137_vm2 = vmand %vm14480_vm12, %vm14479_vm8  ;;  %v2041_v14 = vadd.f32 1.0, %v14484_v42  ;;  %v2796_v25 = vadd.f32 %v2764_v18, %v14485_v55  ;;  %v14525_v42 = vld [vmem:[#allocation154_spill] sm:$0xff] }
 0xa50   : > { %v2795_v15 = vadd.f32 %v2763_v26, %v14487_v23  ;;  %vm14492_vm7 = vmand %vm9841_vm13, %vm14444_vm5  ;;  %v6680_v37 = vpop.permute.xlu1 %6679  ;;  %vm14505_vm8 = vcmp.le.f32.partialorder %v2037_v19, 15.0  ;;  %v6677_v1 = vunpack.i.h.bf16 %v6675_v16  ;;  %vm2280_vm12 = vcmp.le.f32.partialorder %v2040_v43, 15.0  ;;  %v14527_v23 = vld [vmem:[#allocation76_spill] sm:$0xff] }
 0xa51   : > { %v2794_v63 = vadd.f32 %v2762_v54, %v14486_v29  ;;  %v10169_v52 = vsel %vm14492_vm7, %v9826_v61, 0.0  ;;  %v14495_v54 = vld [vmem:[#allocation163_spill] sm:$0xff]  ;;  %vm14499_vm5 = vmand %vm14422_vm11, %vm10071_vm14  ;;  %vm14500_vm7 = vnez %v14385_v32  ;;  %vm14506_vm11 = vcmp.ge.f32.partialorder %v2037_v19, 0.0 }
 0xa52   : > { %v10185_v35 = vsel %vm14499_vm5, %v14498_v36, 0.0  ;;  %vm14502_vm1 = vmand %vm14500_vm7, %vm14501_vm9  ;;  %vm14512_vm5 = vcmp.le.f32.partialorder %v9511_v34, 15.0  ;;  %v6676_v19 = vunpack.i.l.bf16 %v6675_v16  ;;  %v6682_v18 = vunpack.i.h.bf16 %v6680_v37 }
 0xa53   : > { %v10193_v61 = vsel %vm14502_vm1, %v9901_v20, 0.0  ;;  %vm14503_vm4 = vmand %vm14457_vm10, %vm14456_vm3  ;;  %vm14509_vm1 = vnez %v14459_v47  ;;  %vm14513_vm3 = vcmp.ge.f32.partialorder %v9511_v34, 0.0  ;;  %v6681_v26 = vunpack.i.l.bf16 %v6680_v37 }
 0xa54   : > { %v10201_v49 = vsel %vm14503_vm4, %v9996_v58, 0.0  ;;  %vm10205_vm14 = vmand %vm14506_vm11, %vm14505_vm8  ;;  %v14514_v58 = vmov 0  ;;  %vm14516_vm8 = vnez %v14477_v13  ;;  %vm14521_vm15 = vcmp.lt.s32.totalorder %v14469_v11, 16 }
 0xa55   : > { %14504 = vst [vmem:[#allocation61_spill] sm:$0xff] %v10201_v49  ;;  %vm14510_vm9 = vmand %vm9922_vm0, %vm14509_vm1  ;;  %vm14517_vm1 = vcmp.le.f32.partialorder %v2039_v24, 15.0  ;;  %v2890_v34 = vsel %vm14521_vm15, %v6676_v19, %v6681_v26  ;;  %v14528_v49 = vld [vmem:[#allocation159_spill] sm:$0xff] }
 0xa56   : > { %v10215_v20 = vsel %vm14510_vm9, %v10017_v6, 0.0  ;;  %vm10221_vm4 = vmand %vm14513_vm3, %vm14512_vm5  ;;  %vm14518_vm9 = vcmp.ge.f32.partialorder %v2039_v24, 0.0  ;;  %v14519_v6 = vmov 0  ;;  %vm2264_vm5 = vcmp.ge.f32.partialorder %v2040_v43, 0.0 }
 0xa57   : > { %14511 = vst [vmem:[#allocation73_spill] sm:$0xff] %v10215_v20  ;;  %v14515_v58 = vsel %vm10221_vm4, 4294967295, %v14514_v58  ;;  %vm10231_vm0 = vmand %vm14518_vm9, %vm14517_vm1  ;;  %vm14526_vm1 = vnez %v14525_v42  ;;  %v2923_v29 = vmul.f32 %v2890_v34, %v2458_v39  ;;  %v6690_v20 = vpop.permute.xlu1 %6689  ;;  %vm14544_vm9 = vcmp.ge.f32.partialorder %v2041_v14, 0.0 }
 0xa58   : > { %v14520_v6 = vsel %vm10231_vm0, 4294967295, %v14519_v6  ;;  %vm14522_vm6 = vmmov %vm14521_vm15  ;;  %vm14531_vm15 = vcmp.lt.s32.totalorder %v14469_v11, 17 }
 0xa59   : > { %v2891_v47 = vsel %vm14522_vm6, %v6677_v1, %v6682_v18  ;;  %vm14523_vm10 = vmmov %vm14522_vm6 }
 0xa5a   : > { %v2906_v16 = vsel %vm14523_vm10, %v6681_v26, %v6676_v19  ;;  %vm14524_vm11 = vmmov %vm14522_vm6  ;;  %v2925_v36 = vmul.f32 %v2891_v47, %v14527_v23  ;;  %v6687_v19 = vunpack.i.h.bf16 %v6685_v51  ;;  %v6686_v26 = vunpack.i.l.bf16 %v6685_v51  ;;  %v6695_v47 = vpop.permute.xlu0 %6694 }
 0xa5b   : > { %v2907_v24 = vsel %vm14524_vm11, %v6682_v18, %v6677_v1  ;;  %v2922_v55 = vmul.f32 %v2906_v16, %v2458_v39  ;;  %v6692_v1 = vunpack.i.h.bf16 %v6690_v20  ;;  %v6691_v18 = vunpack.i.l.bf16 %v6690_v20  ;;  %vm14532_vm3 = vmmov %vm14531_vm15 }
 0xa5c   : > { %v2924_v37 = vmul.f32 %v2907_v24, %v14527_v23  ;;  %vm14529_vm10 = vnez %v14528_v49  ;;  %v2955_v16 = vadd.f32 %v2923_v29, %v2795_v15  ;;  %v2957_v24 = vadd.f32 %v2925_v36, %v2797_v62  ;;  %vm14533_vm4 = vmmov %vm14532_vm3 }
 0xa5d   : > { %v2954_v39 = vadd.f32 %v2922_v55, %v2794_v63  ;;  %v3051_v51 = vsel %vm14531_vm15, %v6687_v19, %v6692_v1  ;;  %v3067_v20 = vsel %vm14532_vm3, %v6692_v1, %v6687_v19  ;;  %v3050_v23 = vsel %vm14533_vm4, %v6686_v26, %v6691_v18  ;;  %vm14534_vm6 = vmmov %vm14532_vm3  ;;  %v14537_v63 = vld [vmem:[#allocation59_spill] sm:$0xff] }
 0xa5e   : > { %v2956_v34 = vadd.f32 %v2924_v37, %v2796_v25  ;;  %v3066_v25 = vsel %vm14534_vm6, %v6691_v18, %v6686_v26  ;;  %vm10271_vm0 = vmand %vm2264_vm5, %vm2280_vm12  ;;  %v3084_v15 = vmul.f32 %v3067_v20, %v14537_v63  ;;  %vm14538_vm15 = vnez %v14489_v44 }
 0xa5f   : > { %v3082_v55 = vmul.f32 %v3066_v25, %v10102_v17  ;;  %vm14539_vm3 = vmand %vm14538_vm15, %vm14516_vm8  ;;  %vm14540_vm4 = vnez %v14448_v60  ;;  %vm14541_vm12 = vnez %v14495_v54  ;;  %vm14543_vm6 = vcmp.le.f32.partialorder %v2041_v14, 15.0  ;;  %v14550_v14 = vld [vmem:[#allocation102_spill] sm:$0xff] }
 0xa60   : > { %v10283_v29 = vsel %vm14539_vm3, %v9807_v7, 0.0  ;;  %vm14542_vm5 = vmand %vm14540_vm4, %vm14541_vm12  ;;  %v3083_v44 = vmul.f32 %v3050_v23, %v10102_v17  ;;  %v3085_v36 = vmul.f32 %v3051_v51, %v14537_v63  ;;  %vm14547_vm15 = vnez %v14493_v33  ;;  %v14553_v17 = vld [vmem:[#allocation84_spill] sm:$0xff] }
 0xa61   : > { %v10291_v43 = vsel %vm14542_vm5, %v10058_v56, 0.0  ;;  %vm10295_vm11 = vmand %vm14544_vm9, %vm14543_vm6  ;;  %vm14551_vm12 = vnez %v14550_v14  ;;  %vm14552_vm5 = vnez %v14515_v58  ;;  %v14554_v33 = vsub.f32 1.0, %v14553_v17 }
 0xa62   : > { %vm14548_vm3 = vmand %vm14547_vm15, %vm10137_vm2  ;;  %v3114_v26 = vadd.f32 %v3082_v55, %v2954_v39  ;;  %v3116_v1 = vadd.f32 %v3084_v15, %v2956_v34  ;;  %v3115_v13 = vadd.f32 %v3083_v44, %v2955_v16  ;;  %v3117_v18 = vadd.f32 %v3085_v36, %v2957_v24  ;;  %v14560_v34 = vld [vmem:[#allocation165_spill] sm:$0xff]  ;;  %v6700_v24 = vpop.permute.xlu1 %6699  ;;  %v14572_v15 = vld [vmem:[#allocation88_spill] sm:$0xff] }
 0xa63   : > { %v10307_v7 = vsel %vm14548_vm3, %v9905_v41, 0.0  ;;  %vm14549_vm9 = vmand %vm9841_vm13, %vm14516_vm8  ;;  %v2408_v54 = vmul.f32 %v10065_v21, %v14554_v33  ;;  %v14555_v41 = vld [vmem:[#allocation50_spill] sm:$0xff]  ;;  %vm14557_vm13 = vnez %v14556_v45  ;;  %v2504_v42 = vmul.f32 %v10065_v21, %v14553_v17 }
 0xa64   : > { %v10315_v56 = vsel %vm14549_vm9, %v9811_v59, 0.0  ;;  %vm2392_vm6 = vmand %vm14552_vm5, %vm14551_vm12  ;;  %v2456_v19 = vmul.f32 %v14555_v41, %v14553_v17  ;;  %v6705_v59 = vpop.permute.xlu0 %6704  ;;  %vm14561_vm9 = vnez %v14560_v34  ;;  %v6697_v16 = vunpack.i.h.bf16 %v6695_v47 }
 0xa65   : > { %vm14558_vm15 = vmand %vm14526_vm1, %vm10205_vm14  ;;  %vm14562_vm1 = vnez %v14520_v6  ;;  %v6702_v40 = vunpack.i.h.bf16 %v6700_v24  ;;  %v6701_v20 = vunpack.i.l.bf16 %v6700_v24  ;;  %v3147_v21 = vpack.c.bf16 %v3117_v18, %v3115_v13 }
 0xa66   : > { %v10336_v51 = vsel %vm14558_vm15, %v9957_v50, 0.0  ;;  %vm14559_vm3 = vmand %vm14500_vm7, %vm10137_vm2  ;;  %v3146_v50 = vpack.c.bf16 %v3116_v1, %v3114_v26  ;;  %vm14564_vm2 = vnez %v14403_v57  ;;  %v10381_v49 = vsel %vm2392_vm6, %v2408_v54, 0.0  ;;  %v14573_v26 = vld [vmem:[#allocation83_spill] sm:$0xff]  ;;  %v14574_v1 = vld [vmem:[#allocation82_spill] sm:$0xff] }
 0xa67   : > { %v10344_v39 = vsel %vm14559_vm3, %v9909_v27, 0.0  ;;  %vm2441_vm8 = vmand %vm14561_vm9, %vm10295_vm11  ;;  %v6696_v27 = vunpack.i.l.bf16 %v6695_v47  ;;  %vm14565_vm9 = vnez %v14396_v12  ;;  %3194 = vmatprep.mubr.bf16.mxu0 %v3147_v21  ;;  %v6707_v17 = vunpack.i.h.bf16 %v6705_v59  ;;  %v14580_v21 = vld [vmem:[#allocation153_spill] sm:$0xff] }
 0xa68   : > { %vm14563_vm15 = vmand %vm14529_vm10, %vm14562_vm1  ;;  %v10391_v12 = vsel %vm2441_vm8, %v10042_v46, 0.0  ;;  %v6715_v3 = vpop.permute.xlu0 %6714  ;;  %v6710_v46 = vpop.permute.xlu1 %6709  ;;  %3195 = vmatmul.mubr.bf16.vlgmr.msra.gmra.mxu0 %v3146_v50  ;;  %v6706_v33 = vunpack.i.l.bf16 %v6705_v59 }
 0xa69   : > { %v10358_v32 = vsel %vm14563_vm15, %v10021_v4, 0.0  ;;  %vm2487_vm7 = vmand %vm14564_vm2, %vm14562_vm1  ;;  %v6712_v54 = vunpack.i.h.bf16 %v6710_v46  ;;  %v6711_v41 = vunpack.i.l.bf16 %v6710_v46  ;;  %v6717_v18 = vunpack.i.h.bf16 %v6715_v3 }
 0xa6a   : > { %vm2488_vm3 = vmand %vm14552_vm5, %vm10271_vm0  ;;  %v10409_v36 = vsel %vm2487_vm7, %v10025_v9, 0.0  ;;  %v6716_v34 = vunpack.i.l.bf16 %v6715_v3  ;;  %v14581_v3 = vld [vmem:[#allocation155_spill] sm:$0xff]  ;;  %vm14582_vm2 = vcmp.lt.s32.totalorder %v14469_v11, 17 }
 0xa6b   : > { %vm14566_vm10 = vmand %vm14565_vm9, %vm10205_vm14  ;;  %vm14568_vm14 = vcmp.lt.s32.totalorder %v14469_v11, 1  ;;  %v10416_v14 = vsel %vm2488_vm3, %v2504_v42, 0.0 }
 0xa6c   : > { %v10374_v4 = vsel %vm14566_vm10, %v9972_v22, 0.0  ;;  %vm14567_vm15 = vmand %vm14557_vm13, %vm10271_vm0  ;;  %v2733_v22 = vsel %vm14568_vm14, %v6697_v16, %v6702_v40  ;;  %v6725_v45 = vpop.permute.xlu0 %6724  ;;  %vm14575_vm13 = vcmp.lt.s32.totalorder %v14469_v11, 16  ;;  %v6720_v24 = vpop.permute.xlu1 %6719 }
 0xa6d   : > { %v10388_v47 = vsel %vm14567_vm15, %v2456_v19, 0.0  ;;  %vm14569_vm9 = vmmov %vm14568_vm14  ;;  %v2769_v44 = vmul.f32 %v2733_v22, %v14572_v15  ;;  %v2893_v58 = vsel %vm14575_vm13, %v6707_v17, %v6712_v54  ;;  %v6727_v37 = vunpack.i.h.bf16 %v6725_v45 }
 0xa6e   : > { %v2749_v23 = vsel %vm14569_vm9, %v6702_v40, %v6697_v16  ;;  %vm14570_vm12 = vmmov %vm14569_vm9  ;;  %v6722_v40 = vunpack.i.h.bf16 %v6720_v24 }
 0xa6f   : > { %v2732_v25 = vsel %vm14570_vm12, %v6696_v27, %v6701_v20  ;;  %vm14571_vm6 = vmmov %vm14569_vm9  ;;  %v2768_v55 = vmul.f32 %v2749_v23, %v14572_v15  ;;  %v2801_v6 = vadd.f32 %v2769_v44, %v14573_v26 }
 0xa70   : > { %v2748_v63 = vsel %vm14571_vm6, %v6701_v20, %v6696_v27  ;;  %v2767_v57 = vmul.f32 %v2732_v25, %v10110_v53  ;;  %vm14576_vm0 = vmmov %vm14575_vm13  ;;  %v6721_v20 = vunpack.i.l.bf16 %v6720_v24  ;;  %v6735_v15 = vpop.permute.xlu0 %6734  ;;  %v6730_v46 = vpop.permute.xlu1 %6729 }
 0xa71   : > { %v2766_v19 = vmul.f32 %v2748_v63, %v10110_v53  ;;  %v2800_v9 = vadd.f32 %v2768_v55, %v14574_v1  ;;  %v2909_v62 = vsel %vm14576_vm0, %v6712_v54, %v6707_v17  ;;  %vm14577_vm5 = vmmov %vm14576_vm0  ;;  %v14579_v53 = vld [vmem:[#allocation100_spill] sm:$0xff]  ;;  %v3053_v55 = vsel %vm14582_vm2, %v6717_v18, %v6722_v40 }
 0xa72   : > { %v2892_v59 = vsel %vm14577_vm5, %v6706_v33, %v6711_v41  ;;  %vm14578_vm8 = vmmov %vm14576_vm0  ;;  %v2928_v42 = vmul.f32 %v2909_v62, %v14579_v53  ;;  %v2929_v16 = vmul.f32 %v2893_v58, %v14579_v53  ;;  %v2799_v22 = vadd.f32 %v2767_v57, %v14580_v21 }
 0xa73   : > { %v2908_v13 = vsel %vm14578_vm8, %v6711_v41, %v6706_v33  ;;  %v2927_v27 = vmul.f32 %v2892_v59, %v10161_v8  ;;  %vm2489_vm1 = vmand %vm14540_vm4, %vm10295_vm11  ;;  %v2798_v25 = vadd.f32 %v2766_v19, %v14581_v3  ;;  %v6726_v41 = vunpack.i.l.bf16 %v6725_v45 }
 0xa74   : > { %v2926_v50 = vmul.f32 %v2908_v13, %v10161_v8  ;;  %v2961_v23 = vadd.f32 %v2929_v16, %v2801_v6  ;;  %v2960_v63 = vadd.f32 %v2928_v42, %v2800_v9  ;;  %vm14583_vm7 = vmmov %vm14582_vm2  ;;  %v10450_v54 = vsel %vm2489_vm1, %v10061_v28, 0.0  ;;  %v14586_v6 = vld [vmem:[#allocation125_spill] sm:$0xff]  ;;  %v6745_v13 = vpop.permute.xlu0 %6744  ;;  %v6740_v16 = vpop.permute.xlu1 %6739 }
 0xa75   : > { %v3069_v8 = vsel %vm14583_vm7, %v6722_v40, %v6717_v18  ;;  %vm14584_vm3 = vmmov %vm14582_vm2  ;;  %v2959_v17 = vadd.f32 %v2927_v27, %v2799_v22  ;;  %v6732_v19 = vunpack.i.h.bf16 %v6730_v46  ;;  %v6731_v57 = vunpack.i.l.bf16 %v6730_v46 }
 0xa76   : > { %v3052_v44 = vsel %vm14584_vm3, %v6716_v34, %v6721_v20  ;;  %vm14585_vm10 = vmmov %vm14582_vm2  ;;  %v2958_v26 = vadd.f32 %v2926_v50, %v2798_v25  ;;  %v3089_v1 = vmul.f32 %v3053_v55, %v14586_v6  ;;  %v3088_v62 = vmul.f32 %v3069_v8, %v14586_v6  ;;  %v14591_v50 = vld [vmem:[#allocation72_spill] sm:$0xff] }
 0xa77   : > { %v3068_v60 = vsel %vm14585_vm10, %v6721_v20, %v6716_v34  ;;  %v3087_v33 = vmul.f32 %v3052_v44, %v10185_v35  ;;  %v6737_v59 = vunpack.i.h.bf16 %v6735_v15  ;;  %vm14587_vm11 = vmmov %vm14571_vm6  ;;  %v6736_v34 = vunpack.i.l.bf16 %v6735_v15  ;;  %v14592_v25 = vld [vmem:[#allocation104_spill] sm:$0xff] }
 0xa78   : > { %v3086_v58 = vmul.f32 %v3068_v60, %v10185_v35  ;;  %v2735_v18 = vsel %vm14587_vm11, %v6727_v37, %v6732_v19  ;;  %vm14588_vm4 = vmmov %vm14571_vm6  ;;  %v6747_v53 = vunpack.i.h.bf16 %v6745_v13  ;;  %v6742_v40 = vunpack.i.h.bf16 %v6740_v16  ;;  %v6755_v8 = vpop.permute.xlu0 %6754 }
 0xa79   : > { %v3119_v9 = vadd.f32 %v3087_v33, %v2959_v17  ;;  %v2751_v28 = vsel %vm14588_vm4, %v6732_v19, %v6727_v37  ;;  %vm14589_vm15 = vmmov %vm14588_vm4  ;;  %v2773_v42 = vmul.f32 %v2735_v18, %v9778_v2  ;;  %v6741_v20 = vunpack.i.l.bf16 %v6740_v16  ;;  %v6750_v17 = vpop.permute.xlu1 %6749 }
 0xa7a   : > { %v2750_v45 = vsel %vm14589_vm15, %v6731_v57, %v6726_v41  ;;  %vm14590_vm14 = vmmov %vm14588_vm4  ;;  %v2772_v24 = vmul.f32 %v2751_v28, %v9778_v2  ;;  %v3121_v21 = vadd.f32 %v3089_v1, %v2961_v23  ;;  %v3118_v22 = vadd.f32 %v3086_v58, %v2958_v26  ;;  %v14598_v28 = vld [vmem:[#allocation119_spill] sm:$0xff] }
 0xa7b   : > { %v2734_v35 = vsel %vm14590_vm14, %v6726_v41, %v6731_v57  ;;  %v2770_v27 = vmul.f32 %v2750_v45, %v14591_v50  ;;  %v3120_v3 = vadd.f32 %v3088_v62, %v2960_v63  ;;  %v2805_v55 = vadd.f32 %v2773_v42, %v14592_v25  ;;  %vm14593_vm9 = vmmov %vm14576_vm0  ;;  %v14597_v41 = vld [vmem:[#allocation49_spill] sm:$0xff]  ;;  %v14600_v42 = vld [vmem:[#allocation103_spill] sm:$0xff] }
 0xa7c   : > { %v2771_v15 = vmul.f32 %v2734_v35, %v14591_v50  ;;  %v2895_v44 = vsel %vm14593_vm9, %v6737_v59, %v6742_v40  ;;  %vm14594_vm12 = vmmov %vm14576_vm0  ;;  %v6746_v37 = vunpack.i.l.bf16 %v6745_v13  ;;  %v6757_v46 = vunpack.i.h.bf16 %v6755_v8  ;;  %v6765_v13 = vpop.permute.xlu0 %6764 }
 0xa7d   : > { %v2894_v60 = vsel %vm14594_vm12, %v6736_v34, %v6741_v20  ;;  %vm14595_vm6 = vmmov %vm14576_vm0  ;;  %v2933_v63 = vmul.f32 %v2895_v44, %v9796_v31  ;;  %v6756_v33 = vunpack.i.l.bf16 %v6755_v8  ;;  %v3149_v57 = vpack.c.bf16 %v3121_v21, %v3119_v9 }
 0xa7e   : > { %v2910_v2 = vsel %vm14595_vm6, %v6741_v20, %v6736_v34  ;;  %vm14596_vm13 = vmmov %vm14576_vm0  ;;  %v3148_v26 = vpack.c.bf16 %v3120_v3, %v3118_v22  ;;  %v2931_v6 = vmul.f32 %v2894_v60, %v14597_v41  ;;  %v6752_v1 = vunpack.i.h.bf16 %v6750_v17  ;;  %v6760_v20 = vpop.permute.xlu1 %6759 }
 0xa7f   : > { %v2911_v23 = vsel %vm14596_vm13, %v6742_v40, %v6737_v59  ;;  %v2930_v19 = vmul.f32 %v2910_v2, %v14597_v41  ;;  %v6751_v58 = vunpack.i.l.bf16 %v6750_v17  ;;  %v2965_v62 = vadd.f32 %v2933_v63, %v2805_v55  ;;  %3202 = vmatprep.mubr.bf16.mxu0 %v3149_v57  ;;  %v14599_v59 = vld [vmem:[#allocation56_spill] sm:$0xff]  ;;  %vm14601_vm0 = vmmov %vm14582_vm2 }
 0xa80   : > { %v2932_v18 = vmul.f32 %v2911_v23, %v9796_v31  ;;  %v2803_v45 = vadd.f32 %v2771_v15, %v14598_v28  ;;  %v2802_v34 = vadd.f32 %v2770_v27, %v14599_v59  ;;  %v2804_v35 = vadd.f32 %v2772_v24, %v14600_v42  ;;  %3203 = vmatmul.mubr.bf16.gmra.mxu0 %v3148_v26  ;;  %vm14602_vm5 = vmmov %vm14601_vm0  ;;  %v14605_v24 = vld [vmem:[#allocation107_spill] sm:$0xff]  ;;  %v6775_v8 = vpop.permute.xlu0 %6774 }
 0xa81   : > { %v6767_v16 = vunpack.i.h.bf16 %v6765_v13  ;;  %v6766_v50 = vunpack.i.l.bf16 %v6765_v13  ;;  %v3055_v9 = vsel %vm14601_vm0, %v6747_v53, %v6752_v1  ;;  %v3071_v40 = vsel %vm14602_vm5, %v6752_v1, %v6747_v53  ;;  %vm14603_vm8 = vmmov %vm14601_vm0 }
 0xa82   : > { %v3054_v31 = vsel %vm14603_vm8, %v6746_v37, %v6751_v58  ;;  %vm14604_vm1 = vmmov %vm14601_vm0  ;;  %v6762_v22 = vunpack.i.h.bf16 %v6760_v20  ;;  %v6761_v27 = vunpack.i.l.bf16 %v6760_v20  ;;  %v2963_v3 = vadd.f32 %v2931_v6, %v2803_v45  ;;  %v6770_v41 = vpop.permute.xlu1 %6769 }
 0xa83   : > { %v3070_v21 = vsel %vm14604_vm1, %v6751_v58, %v6746_v37  ;;  %v3091_v25 = vmul.f32 %v3054_v31, %v14605_v24  ;;  %v3093_v55 = vmul.f32 %v3055_v9, %v9803_v30  ;;  %v2962_v15 = vadd.f32 %v2930_v19, %v2802_v34  ;;  %vm14606_vm2 = vmmov %vm14588_vm4 }
 0xa84   : > { %v2737_v44 = vsel %vm14606_vm2, %v6757_v46, %v6762_v22  ;;  %vm14607_vm7 = vmmov %vm14606_vm2  ;;  %v6777_v37 = vunpack.i.h.bf16 %v6775_v8  ;;  %v6776_v23 = vunpack.i.l.bf16 %v6775_v8  ;;  %v6772_v26 = vunpack.i.h.bf16 %v6770_v41  ;;  %v6785_v20 = vpop.permute.xlu0 %6784 }
 0xa85   : > { %v2753_v53 = vsel %vm14607_vm7, %v6762_v22, %v6757_v46  ;;  %vm14608_vm3 = vmmov %vm14606_vm2  ;;  %v2777_v17 = vmul.f32 %v2737_v44, %v10169_v52  ;;  %v6771_v6 = vunpack.i.l.bf16 %v6770_v41  ;;  %v3123_v46 = vadd.f32 %v3091_v25, %v2963_v3  ;;  %v14616_v3 = vld [vmem:[#allocation111_spill] sm:$0xff] }
 0xa86   : > { %v2736_v60 = vsel %vm14608_vm3, %v6756_v33, %v6761_v27  ;;  %vm14609_vm10 = vmmov %vm14606_vm2  ;;  %v2776_v63 = vmul.f32 %v2753_v53, %v10169_v52  ;;  %v3125_v1 = vadd.f32 %v3093_v55, %v2965_v62  ;;  %v2964_v58 = vadd.f32 %v2932_v18, %v2804_v35  ;;  %v6780_v34 = vpop.permute.xlu1 %6779 }
 0xa87   : > { %v2752_v2 = vsel %vm14609_vm10, %v6761_v27, %v6756_v33  ;;  %v2775_v57 = vmul.f32 %v2736_v60, %v9850_v48  ;;  %v3090_v13 = vmul.f32 %v3070_v21, %v14605_v24  ;;  %vm14610_vm11 = vmmov %vm14595_vm6  ;;  %v3092_v35 = vmul.f32 %v3071_v40, %v9803_v30  ;;  %v14614_v21 = vld [vmem:[#allocation112_spill] sm:$0xff]  ;;  %v14615_v27 = vld [vmem:[#allocation161_spill] sm:$0xff] }
 0xa88   : > { %v2774_v19 = vmul.f32 %v2752_v2, %v9850_v48  ;;  %v2897_v33 = vsel %vm14610_vm11, %v6767_v16, %v6772_v26  ;;  %vm14611_vm4 = vmmov %vm14595_vm6  ;;  %v3151_v42 = vpack.c.bf16 %v3125_v1, %v3123_v46  ;;  %v6781_v31 = vunpack.i.l.bf16 %v6780_v34  ;;  %v6795_v41 = vpop.permute.xlu0 %6794 }
 0xa89   : > { %v2913_v28 = vsel %vm14611_vm4, %v6772_v26, %v6767_v16  ;;  %vm14612_vm15 = vmmov %vm14611_vm4  ;;  %v2937_v59 = vmul.f32 %v2897_v33, %v10283_v29  ;;  %v3122_v9 = vadd.f32 %v3090_v13, %v2962_v15  ;;  %v6782_v16 = vunpack.i.h.bf16 %v6780_v34  ;;  %v14621_v26 = vld [vmem:[#allocation162_spill] sm:$0xff] }
 0xa8a   : > { %v2896_v52 = vsel %vm14612_vm15, %v6766_v50, %v6771_v6  ;;  %vm14613_vm14 = vmmov %vm14611_vm4  ;;  %v2936_v48 = vmul.f32 %v2913_v28, %v10283_v29  ;;  %v2807_v22 = vadd.f32 %v2775_v57, %v14614_v21  ;;  %v2806_v24 = vadd.f32 %v2774_v19, %v14616_v3  ;;  %3210 = vmatprep.mubr.bf16.mxu0 %v3151_v42  ;;  %v6790_v8 = vpop.permute.xlu1 %6789 }
 0xa8b   : > { %v2912_v45 = vsel %vm14613_vm14, %v6771_v6, %v6766_v50  ;;  %v2935_v18 = vmul.f32 %v2896_v52, %v9873_v38  ;;  %v2809_v50 = vadd.f32 %v2777_v17, %v14615_v27  ;;  %v6787_v25 = vunpack.i.h.bf16 %v6785_v20  ;;  %vm14617_vm9 = vmmov %vm14601_vm0 }
 0xa8c   : > { %v2934_v62 = vmul.f32 %v2912_v45, %v9873_v38  ;;  %v6786_v29 = vunpack.i.l.bf16 %v6785_v20  ;;  %v3124_v55 = vadd.f32 %v3092_v35, %v2964_v58  ;;  %v3057_v38 = vsel %vm14617_vm9, %v6777_v37, %v6782_v16  ;;  %vm14618_vm12 = vmmov %vm14601_vm0  ;;  %v6805_v34 = vpop.permute.xlu0 %6804 }
 0xa8d   : > { %v3073_v30 = vsel %vm14618_vm12, %v6782_v16, %v6777_v37  ;;  %vm14619_vm6 = vmmov %vm14601_vm0  ;;  %v2967_v44 = vadd.f32 %v2935_v18, %v2807_v22  ;;  %v6792_v60 = vunpack.i.h.bf16 %v6790_v8  ;;  %v6791_v2 = vunpack.i.l.bf16 %v6790_v8 }
 0xa8e   : > { %v3056_v40 = vsel %vm14619_vm6, %v6776_v23, %v6781_v31  ;;  %vm14620_vm13 = vmmov %vm14601_vm0  ;;  %v3150_v53 = vpack.c.bf16 %v3124_v55, %v3122_v9  ;;  %v2969_v17 = vadd.f32 %v2937_v59, %v2809_v50  ;;  %v3097_v57 = vmul.f32 %v3057_v38, %v10315_v56  ;;  %v6800_v52 = vpop.permute.xlu1 %6799 }
 0xa8f   : > { %v3072_v15 = vsel %vm14620_vm13, %v6781_v31, %v6776_v23  ;;  %v3095_v19 = vmul.f32 %v3056_v40, %v9880_v0  ;;  %v2808_v6 = vadd.f32 %v2776_v63, %v14621_v26  ;;  %v2966_v37 = vadd.f32 %v2934_v62, %v2806_v24  ;;  %vm14622_vm0 = vmmov %vm14606_vm2 }
 0xa90   : > { %3211 = vmatmul.mubr.bf16.gmra.mxu0 %v3150_v53  ;;  %v6797_v46 = vunpack.i.h.bf16 %v6795_v41  ;;  %v6796_v1 = vunpack.i.l.bf16 %v6795_v41  ;;  %v2739_v23 = vsel %vm14622_vm0, %v6787_v25, %v6792_v60  ;;  %vm14623_vm5 = vmmov %vm14622_vm0  ;;  %v6802_v62 = vunpack.i.h.bf16 %v6800_v52 }
 0xa91   : > { %v2755_v58 = vsel %vm14623_vm5, %v6792_v60, %v6787_v25  ;;  %v2781_v33 = vmul.f32 %v2739_v23, %v10193_v61  ;;  %vm14624_vm8 = vmmov %vm14622_vm0  ;;  %v6801_v18 = vunpack.i.l.bf16 %v6800_v52  ;;  %v3127_v42 = vadd.f32 %v3095_v19, %v2967_v44  ;;  %v14631_v60 = vld [vmem:[#allocation164_spill] sm:$0xff] }
 0xa92   : > { %v10538_v13 = vmul.f32 %v2755_v58, %v10193_v61  ;;  %v2738_v28 = vsel %vm14624_vm8, %v6786_v29, %v6791_v2  ;;  %vm14625_vm1 = vmmov %vm14622_vm0  ;;  %v3129_v35 = vadd.f32 %v3097_v57, %v2969_v17  ;;  %v2968_v9 = vadd.f32 %v2936_v48, %v2808_v6 }
 0xa93   : > { %v2754_v63 = vsel %vm14625_vm1, %v6791_v2, %v6786_v29  ;;  %v2779_v59 = vmul.f32 %v2738_v28, %v9931_v10  ;;  %v3094_v16 = vmul.f32 %v3072_v15, %v9880_v0  ;;  %v6807_v61 = vunpack.i.h.bf16 %v6805_v34  ;;  %vm14626_vm2 = vmmov %vm14611_vm4  ;;  %v6810_v0 = vpop.permute.xlu1 %6809  ;;  %v6815_v29 = vpop.permute.xlu0 %6814  ;;  %v14630_v15 = vld [vmem:[#allocation121_spill] sm:$0xff] }
 0xa94   : > { %v2778_v45 = vmul.f32 %v2754_v63, %v9931_v10  ;;  %v6806_v20 = vunpack.i.l.bf16 %v6805_v34  ;;  %v2899_v31 = vsel %vm14626_vm2, %v6797_v46, %v6802_v62  ;;  %vm14627_vm7 = vmmov %vm14626_vm2  ;;  %v3153_v24 = vpack.c.bf16 %v3129_v35, %v3127_v42 }
 0xa95   : > { %v2915_v21 = vsel %vm14627_vm7, %v6802_v62, %v6797_v46  ;;  %v2941_v10 = vmul.f32 %v2899_v31, %v10307_v7  ;;  %vm14628_vm3 = vmmov %vm14626_vm2  ;;  %v3096_v25 = vmul.f32 %v3073_v30, %v10315_v56  ;;  %v3126_v55 = vadd.f32 %v3094_v16, %v2966_v37  ;;  %v14643_v16 = vld [vmem:[#allocation77_spill] sm:$0xff] }
 0xa96   : > { %v10553_v22 = vmul.f32 %v2915_v21, %v10307_v7  ;;  %v2898_v27 = vsel %vm14628_vm3, %v6796_v1, %v6801_v18  ;;  %vm14629_vm10 = vmmov %vm14626_vm2  ;;  %v6812_v38 = vunpack.i.h.bf16 %v6810_v0  ;;  %v6811_v40 = vunpack.i.l.bf16 %v6810_v0  ;;  %3218 = vmatprep.mubr.bf16.mxu0 %v3153_v24  ;;  %v14644_v0 = vld [vmem:[#allocation166_spill] sm:$0xff] }
 0xa97   : > { %v2914_v48 = vsel %vm14629_vm10, %v6801_v18, %v6796_v1  ;;  %v2939_v3 = vmul.f32 %v2898_v27, %v9938_v5  ;;  %v2811_v7 = vadd.f32 %v2779_v59, %v14630_v15  ;;  %v6817_v8 = vunpack.i.h.bf16 %v6815_v29  ;;  %vm14632_vm11 = vmmov %vm14619_vm6  ;;  %v6820_v41 = vpop.permute.xlu1 %6819  ;;  %v6825_v37 = vpop.permute.xlu0 %6824  ;;  %v14636_v1 = vld [vmem:[#allocation62_spill] sm:$0xff]  ;;  %v14640_v18 = vld [vmem:[#allocation61_spill] sm:$0xff] }
 0xa98   : > { %v2938_v50 = vmul.f32 %v2914_v48, %v9938_v5  ;;  %v6816_v44 = vunpack.i.l.bf16 %v6815_v29  ;;  %v3128_v53 = vadd.f32 %v3096_v25, %v2968_v9  ;;  %v2813_v2 = vadd.f32 %v2781_v33, %v14631_v60  ;;  %vm14633_vm4 = vmmov %vm14619_vm6  ;;  %v14637_v33 = vld [vmem:[#allocation120_spill] sm:$0xff] }
 0xa99   : > { %v3059_v17 = vsel %vm14632_vm11, %v6807_v61, %v6812_v38  ;;  %v3075_v5 = vsel %vm14633_vm4, %v6812_v38, %v6807_v61  ;;  %vm14634_vm15 = vmmov %vm14633_vm4  ;;  %v6822_v57 = vunpack.i.h.bf16 %v6820_v41  ;;  %v6821_v26 = vunpack.i.l.bf16 %v6820_v41 }
 0xa9a   : > { %v3058_v56 = vsel %vm14634_vm15, %v6806_v20, %v6811_v40  ;;  %vm14635_vm14 = vmmov %vm14633_vm4  ;;  %v3152_v19 = vpack.c.bf16 %v3128_v53, %v3126_v55  ;;  %v2971_v6 = vadd.f32 %v2939_v3, %v2811_v7  ;;  %v2973_v46 = vadd.f32 %v2941_v10, %v2813_v2 }
 0xa9b   : > { %v3074_v30 = vsel %vm14635_vm14, %v6811_v40, %v6806_v20  ;;  %v3099_v23 = vmul.f32 %v3058_v56, %v14636_v1  ;;  %v3101_v58 = vmul.f32 %v3059_v17, %v10344_v39  ;;  %v2810_v28 = vadd.f32 %v2778_v45, %v14637_v33  ;;  %vm14638_vm9 = vmmov %vm14622_vm0  ;;  %v6830_v9 = vpop.permute.xlu1 %6829  ;;  %v6835_v10 = vpop.permute.xlu0 %6834 }
 0xa9c   : > { %3219 = vmatmul.mubr.bf16.gmra.mxu0 %v3152_v19  ;;  %v6827_v63 = vunpack.i.h.bf16 %v6825_v37  ;;  %v6826_v52 = vunpack.i.l.bf16 %v6825_v37  ;;  %v2741_v59 = vsel %vm14638_vm9, %v6817_v8, %v6822_v57  ;;  %vm14639_vm12 = vmmov %vm14622_vm0  ;;  %v6832_v31 = vunpack.i.h.bf16 %v6830_v9 }
 0xa9d   : > { %v2757_v62 = vsel %vm14639_vm12, %v6822_v57, %v6817_v8  ;;  %v2785_v42 = vmul.f32 %v2741_v59, %v14640_v18  ;;  %vm14641_vm6 = vmmov %vm14622_vm0  ;;  %v6831_v21 = vunpack.i.l.bf16 %v6830_v9  ;;  %v3131_v27 = vadd.f32 %v3099_v23, %v2971_v6  ;;  %v14649_v8 = vld [vmem:[#allocation129_spill] sm:$0xff]  ;;  %v14650_v6 = vld [vmem:[#allocation132_spill] sm:$0xff] }
 0xa9e   : > { %v10581_v34 = vmul.f32 %v2757_v62, %v14640_v18  ;;  %v2740_v35 = vsel %vm14641_vm6, %v6816_v44, %v6821_v26  ;;  %vm14642_vm13 = vmmov %vm14622_vm0  ;;  %v3133_v48 = vadd.f32 %v3101_v58, %v2973_v46  ;;  %v2812_v3 = vadd.f32 %v10538_v13, %v14644_v0  ;;  %v14651_v46 = vld [vmem:[#allocation167_spill] sm:$0xff] }
 0xa9f   : > { %v2756_v45 = vsel %vm14642_vm13, %v6821_v26, %v6816_v44  ;;  %v2783_v20 = vmul.f32 %v2740_v35, %v14643_v16  ;;  %v2970_v24 = vadd.f32 %v2938_v50, %v2810_v28  ;;  %v6837_v25 = vunpack.i.h.bf16 %v6835_v10  ;;  %vm14645_vm0 = vmmov %vm14626_vm2  ;;  %v6840_v50 = vpop.permute.xlu1 %6839  ;;  %v6845_v17 = vpop.permute.xlu0 %6844 }
 0xaa0   : > { %v10589_v61 = vmul.f32 %v2756_v45, %v14643_v16  ;;  %v6836_v29 = vunpack.i.l.bf16 %v6835_v10  ;;  %v2901_v55 = vsel %vm14645_vm0, %v6827_v63, %v6832_v31  ;;  %vm14646_vm5 = vmmov %vm14645_vm0  ;;  %v3155_v60 = vpack.c.bf16 %v3133_v48, %v3131_v27 }
 0xaa1   : > { %v2917_v38 = vsel %vm14646_vm5, %v6832_v31, %v6827_v63  ;;  %v2945_v15 = vmul.f32 %v2901_v55, %v10336_v51  ;;  %vm14647_vm8 = vmmov %vm14645_vm0  ;;  %v2972_v2 = vadd.f32 %v10553_v22, %v2812_v3  ;;  %v3098_v56 = vmul.f32 %v3074_v30, %v14636_v1  ;;  %v14659_v31 = vld [vmem:[#allocation73_spill] sm:$0xff]  ;;  %v14662_v3 = vld [vmem:[#allocation90_spill] sm:$0xff] }
 0xaa2   : > { %v10599_v40 = vmul.f32 %v2917_v38, %v10336_v51  ;;  %v2900_v7 = vsel %vm14647_vm8, %v6826_v52, %v6831_v21  ;;  %vm14648_vm1 = vmmov %vm14645_vm0  ;;  %v3100_v41 = vmul.f32 %v3075_v5, %v10344_v39  ;;  %v6842_v51 = vunpack.i.h.bf16 %v6840_v50  ;;  %3226 = vmatprep.mubr.bf16.mxu0 %v3155_v60 }
 0xaa3   : > { %v2916_v13 = vsel %vm14648_vm1, %v6831_v21, %v6826_v52  ;;  %v2943_v53 = vmul.f32 %v2900_v7, %v14649_v8  ;;  %v6841_v19 = vunpack.i.l.bf16 %v6840_v50  ;;  %v6847_v57 = vunpack.i.h.bf16 %v6845_v17  ;;  %vm14652_vm2 = vmmov %vm14633_vm4  ;;  %v6850_v30 = vpop.permute.xlu1 %6849  ;;  %v6855_v59 = vpop.permute.xlu0 %6854 }
 0xaa4   : > { %v2942_v44 = vmul.f32 %v2916_v13, %v14649_v8  ;;  %v6846_v26 = vunpack.i.l.bf16 %v6845_v17  ;;  %v2815_v37 = vadd.f32 %v2783_v20, %v14650_v6  ;;  %v2817_v23 = vadd.f32 %v2785_v42, %v14651_v46  ;;  %vm14653_vm7 = vmmov %vm14652_vm2  ;;  %v14656_v42 = vld [vmem:[#allocation86_spill] sm:$0xff]  ;;  %v14663_v13 = vld [vmem:[#allocation131_spill] sm:$0xff] }
 0xaa5   : > { %v3130_v58 = vadd.f32 %v3098_v56, %v2970_v24  ;;  %v3132_v33 = vadd.f32 %v3100_v41, %v2972_v2  ;;  %v3061_v28 = vsel %vm14652_vm2, %v6837_v25, %v6842_v51  ;;  %v3077_v22 = vsel %vm14653_vm7, %v6842_v51, %v6837_v25  ;;  %vm14654_vm3 = vmmov %vm14652_vm2  ;;  %v14664_v8 = vld [vmem:[#allocation168_spill] sm:$0xff] }
 0xaa6   : > { %v3060_v39 = vsel %vm14654_vm3, %v6836_v29, %v6841_v19  ;;  %vm14655_vm10 = vmmov %vm14652_vm2  ;;  %v6852_v1 = vunpack.i.h.bf16 %v6850_v30  ;;  %v6851_v63 = vunpack.i.l.bf16 %v6850_v30  ;;  %v2975_v62 = vadd.f32 %v2943_v53, %v2815_v37 }
 0xaa7   : > { %v3076_v5 = vsel %vm14655_vm10, %v6841_v19, %v6836_v29  ;;  %v3154_v52 = vpack.c.bf16 %v3132_v33, %v3130_v58  ;;  %v2977_v18 = vadd.f32 %v2945_v15, %v2817_v23  ;;  %v3103_v35 = vmul.f32 %v3060_v39, %v14656_v42  ;;  %vm14657_vm11 = vmmov %vm14641_vm6  ;;  %v6860_v0 = vpop.permute.xlu1 %6859  ;;  %v6865_v38 = vpop.permute.xlu0 %6864 }
 0xaa8   : > { %v6857_v45 = vunpack.i.h.bf16 %v6855_v59  ;;  %v6856_v9 = vunpack.i.l.bf16 %v6855_v59  ;;  %v2743_v16 = vsel %vm14657_vm11, %v6847_v57, %v6852_v1  ;;  %vm14658_vm4 = vmmov %vm14641_vm6  ;;  %v6862_v29 = vunpack.i.h.bf16 %v6860_v0 }
 0xaa9   : > { %v2759_v20 = vsel %vm14658_vm4, %v6852_v1, %v6847_v57  ;;  %3227 = vmatmul.mubr.bf16.gmra.mxu0 %v3154_v52  ;;  %v2789_v10 = vmul.f32 %v2743_v16, %v14659_v31  ;;  %vm14660_vm15 = vmmov %vm14658_vm4  ;;  %v6861_v55 = vunpack.i.l.bf16 %v6860_v0  ;;  %v3105_v15 = vmul.f32 %v3061_v28, %v10374_v4  ;;  %v14669_v57 = vld [vmem:[#allocation133_spill] sm:$0xff]  ;;  %v14675_v16 = vld [vmem:[#allocation170_spill] sm:$0xff] }
 0xaaa   : > { %v10627_v21 = vmul.f32 %v2759_v20, %v14659_v31  ;;  %v2742_v27 = vsel %vm14660_vm15, %v6846_v26, %v6851_v63  ;;  %vm14661_vm14 = vmmov %vm14658_vm4  ;;  %v3135_v7 = vadd.f32 %v3103_v35, %v2975_v62  ;;  %v2814_v50 = vadd.f32 %v10589_v61, %v14663_v13  ;;  %v14676_v31 = vld [vmem:[#allocation71_spill] sm:$0xff] }
 0xaab   : > { %v2758_v48 = vsel %vm14661_vm14, %v6851_v63, %v6846_v26  ;;  %v2787_v25 = vmul.f32 %v2742_v27, %v14662_v3  ;;  %v2816_v53 = vadd.f32 %v10581_v34, %v14664_v8  ;;  %v6867_v60 = vunpack.i.h.bf16 %v6865_v38  ;;  %vm14665_vm9 = vmmov %vm14645_vm0  ;;  %v6870_v34 = vpop.permute.xlu1 %6869  ;;  %v6875_v28 = vpop.permute.xlu0 %6874 }
 0xaac   : > { %v10635_v24 = vmul.f32 %v2758_v48, %v14662_v3  ;;  %v6866_v2 = vunpack.i.l.bf16 %v6865_v38  ;;  %v2903_v17 = vsel %vm14665_vm9, %v6857_v45, %v6862_v29  ;;  %vm14666_vm12 = vmmov %vm14645_vm0  ;;  %v3137_v37 = vadd.f32 %v3105_v15, %v2977_v18 }
 0xaad   : > { %v2919_v56 = vsel %vm14666_vm12, %v6862_v29, %v6857_v45  ;;  %v2949_v51 = vmul.f32 %v2903_v17, %v10358_v32  ;;  %vm14667_vm6 = vmmov %vm14645_vm0  ;;  %v2974_v46 = vadd.f32 %v2942_v44, %v2814_v50  ;;  %v2976_v23 = vadd.f32 %v10599_v40, %v2816_v53  ;;  %v14674_v45 = vld [vmem:[#allocation149_spill] sm:$0xff] }
 0xaae   : > { %v10648_v41 = vmul.f32 %v2919_v56, %v10358_v32  ;;  %v2902_v19 = vsel %vm14667_vm6, %v6856_v9, %v6861_v55  ;;  %vm14668_vm13 = vmmov %vm14645_vm0  ;;  %v3102_v58 = vmul.f32 %v3076_v5, %v14656_v42  ;;  %v3104_v33 = vmul.f32 %v3077_v22, %v10374_v4  ;;  %v14681_v56 = vld [vmem:[#allocation148_spill] sm:$0xff] }
 0xaaf   : > { %v2918_v61 = vsel %vm14668_vm13, %v6861_v55, %v6856_v9  ;;  %v2947_v6 = vmul.f32 %v2902_v19, %v14669_v57  ;;  %v6872_v32 = vunpack.i.h.bf16 %v6870_v34  ;;  %v3157_v30 = vpack.c.bf16 %v3137_v37, %v3135_v7  ;;  %vm14670_vm0 = vmmov %vm14652_vm2  ;;  %v6880_v18 = vpop.permute.xlu1 %6879  ;;  %v6885_v35 = vpop.permute.xlu0 %6884 }
 0xab0   : > { %v2946_v26 = vmul.f32 %v2918_v61, %v14669_v57  ;;  %v6871_v39 = vunpack.i.l.bf16 %v6870_v34  ;;  %v6877_v1 = vunpack.i.h.bf16 %v6875_v28  ;;  %v6876_v63 = vunpack.i.l.bf16 %v6875_v28  ;;  %vm14671_vm5 = vmmov %vm14670_vm0 }
 0xab1   : > { %v3134_v52 = vadd.f32 %v3102_v58, %v2974_v46  ;;  %v3136_v59 = vadd.f32 %v3104_v33, %v2976_v23  ;;  %v3063_v62 = vsel %vm14670_vm0, %v6867_v60, %v6872_v32  ;;  %v3079_v44 = vsel %vm14671_vm5, %v6872_v32, %v6867_v60  ;;  %3234 = vmatprep.mubr.bf16.mxu0 %v3157_v30  ;;  %vm14672_vm8 = vmmov %vm14670_vm0  ;;  %v14686_v32 = vld [vmem:[#allocation171_spill] sm:$0xff] }
 0xab2   : > { %v3062_v40 = vsel %vm14672_vm8, %v6866_v2, %v6871_v39  ;;  %vm14673_vm1 = vmmov %vm14670_vm0  ;;  %v6882_v22 = vunpack.i.h.bf16 %v6880_v18  ;;  %v6881_v5 = vunpack.i.l.bf16 %v6880_v18  ;;  %v2819_v9 = vadd.f32 %v2787_v25, %v14674_v45 }
 0xab3   : > { %v3078_v4 = vsel %vm14673_vm1, %v6871_v39, %v6866_v2  ;;  %v3156_v42 = vpack.c.bf16 %v3136_v59, %v3134_v52  ;;  %v2821_v20 = vadd.f32 %v2789_v10, %v14675_v16  ;;  %v3107_v27 = vmul.f32 %v3062_v40, %v14676_v31  ;;  %vm14677_vm2 = vmmov %vm14658_vm4  ;;  %v6890_v15 = vpop.permute.xlu1 %6889  ;;  %v6895_v53 = vpop.permute.xlu0 %6894 }
 0xab4   : > { %v2745_v48 = vsel %vm14677_vm2, %v6877_v1, %v6882_v22  ;;  %vm14678_vm7 = vmmov %vm14677_vm2  ;;  %v6887_v7 = vunpack.i.h.bf16 %v6885_v35  ;;  %v6886_v13 = vunpack.i.l.bf16 %v6885_v35  ;;  %v6892_v50 = vunpack.i.h.bf16 %v6890_v15  ;;  %v14689_v35 = vld [vmem:[#allocation172_spill] sm:$0xff] }
 0xab5   : > { %v2761_v0 = vsel %vm14678_vm7, %v6882_v22, %v6877_v1  ;;  %vm14679_vm3 = vmmov %vm14677_vm2  ;;  %3235 = vmatmul.mubr.bf16.gmra.mxu0 %v3156_v42  ;;  %v2793_v25 = vmul.f32 %v2745_v48, %v10291_v43  ;;  %v6891_v8 = vunpack.i.l.bf16 %v6890_v15  ;;  %v2979_v60 = vadd.f32 %v2947_v6, %v2819_v9  ;;  %v14697_v15 = vld [vmem:[#allocation173_spill] sm:$0xff] }
 0xab6   : > { %v2744_v3 = vsel %vm14679_vm3, %v6876_v63, %v6881_v5  ;;  %vm14680_vm10 = vmmov %vm14677_vm2  ;;  %v2792_v55 = vmul.f32 %v2761_v0, %v10291_v43  ;;  %v2981_v2 = vadd.f32 %v2949_v51, %v2821_v20  ;;  %v3109_v17 = vmul.f32 %v3063_v62, %v10409_v36  ;;  %v14687_v62 = vld [vmem:[#allocation75_spill] sm:$0xff]  ;;  %v14694_v20 = vld [vmem:[#allocation12_spill] sm:$0xff] }
 0xab7   : > { %v2760_v29 = vsel %vm14680_vm10, %v6881_v5, %v6876_v63  ;;  %v2791_v38 = vmul.f32 %v2744_v3, %v10381_v49  ;;  %v2818_v19 = vadd.f32 %v10635_v24, %v14681_v56  ;;  %vm14682_vm11 = vmmov %vm14667_vm6  ;;  %v6900_v37 = vpop.permute.xlu1 %6899  ;;  %v6897_v46 = vunpack.i.h.bf16 %v6895_v53  ;;  %v3533_v63 = vpop.permute.xlu0 %3532  ;;  %v14688_v5 = vld [vmem:[#allocation51_spill] sm:$0xff] }
 0xab8   : > { %v2790_v10 = vmul.f32 %v2760_v29, %v10381_v49  ;;  %v2905_v43 = vsel %vm14682_vm11, %v6887_v7, %v6892_v50  ;;  %vm14683_vm4 = vmmov %vm14667_vm6  ;;  %v6896_v23 = vunpack.i.l.bf16 %v6895_v53  ;;  %v3139_v58 = vadd.f32 %v3107_v27, %v2979_v60  ;;  %v14699_v60 = vld [vmem:[#allocation70_spill] sm:$0xff] }
 0xab9   : > { %v2921_v61 = vsel %vm14683_vm4, %v6892_v50, %v6887_v7  ;;  %vm14684_vm15 = vmmov %vm14683_vm4  ;;  %v2953_v51 = vmul.f32 %v2905_v43, %v10391_v12  ;;  %v3141_v33 = vadd.f32 %v3109_v17, %v2981_v2  ;;  %v2820_v28 = vadd.f32 %v10627_v21, %v14686_v32 }
 0xaba   : > { %v2904_v49 = vsel %vm14684_vm15, %v6886_v13, %v6891_v8  ;;  %vm14685_vm14 = vmmov %vm14683_vm4  ;;  %v2952_v57 = vmul.f32 %v2921_v61, %v10391_v12  ;;  %v2978_v30 = vadd.f32 %v2946_v26, %v2818_v19  ;;  %v3106_v39 = vmul.f32 %v3078_v4, %v14676_v31 }
 0xabb   : > { %v2920_v34 = vsel %vm14685_vm14, %v6891_v8, %v6886_v13  ;;  %v2951_v24 = vmul.f32 %v2904_v49, %v10388_v47  ;;  %v3108_v1 = vmul.f32 %v3079_v44, %v10409_v36  ;;  %v3159_v52 = vpack.c.bf16 %v3141_v33, %v3139_v58  ;;  %v3478_v22 = vpop.permute.xlu1 %3477  ;;  %vm14690_vm9 = vmmov %vm14670_vm0  ;;  %v3483_v9 = vpop.permute.xlu0 %3482 }
 0xabc   : > { %v2950_v6 = vmul.f32 %v2920_v34, %v10388_v47  ;;  %v6902_v12 = vunpack.i.h.bf16 %v6900_v37  ;;  %v6901_v59 = vunpack.i.l.bf16 %v6900_v37  ;;  %v3535_v18 = vadd.f32 %v3533_v63, %v14687_v62  ;;  %vm14691_vm12 = vmmov %vm14670_vm0 }
 0xabd   : > { %v2980_v47 = vadd.f32 %v10648_v41, %v2820_v28  ;;  %v3138_v40 = vadd.f32 %v3106_v39, %v2978_v30  ;;  %v2823_v42 = vadd.f32 %v2791_v38, %v14688_v5  ;;  %v2825_v45 = vadd.f32 %v2793_v25, %v14689_v35  ;;  %3242 = vmatprep.mubr.bf16.mxu0 %v3159_v52  ;;  %vm14692_vm6 = vmmov %vm14670_vm0  ;;  %v14696_v25 = vld [vmem:[#allocation48_spill] sm:$0xff] }
 0xabe   : > { %v3065_v21 = vsel %vm14690_vm9, %v6897_v46, %v6902_v12  ;;  %v3081_v36 = vsel %vm14691_vm12, %v6902_v12, %v6897_v46  ;;  %v3064_v26 = vsel %vm14692_vm6, %v6896_v23, %v6901_v59  ;;  %vm14693_vm13 = vmmov %vm14670_vm0  ;;  %v6554_v4 = vtrunc.f32 %v3535_v18 }
 0xabf   : > { %v3080_v44 = vsel %vm14693_vm13, %v6901_v59, %v6896_v23  ;;  %v3140_v41 = vadd.f32 %v3108_v1, %v2980_v47  ;;  %vm3479_vm0 = vcmp.ne.s32.totalorder %v3478_v22, 0  ;;  %v2983_v16 = vadd.f32 %v2951_v24, %v2823_v42  ;;  %v3504_v29 = vpop.permute.xlu1 %3503  ;;  %v3509_v19 = vpop.permute.xlu0 %3508  ;;  %v14706_v1 = vld [vmem:[#allocation14_spill] sm:$0xff] }
 0xac0   : > { %vm14695_vm5 = vnez %v14694_v20  ;;  %vm3484_vm1 = vcmp.ne.s32.totalorder %v3483_v9, 0  ;;  %v2985_v31 = vadd.f32 %v2953_v51, %v2825_v45  ;;  %v3111_v27 = vmul.f32 %v3064_v26, %v10416_v14  ;;  %v14701_v51 = vld [vmem:[#allocation58_spill] sm:$0xff] }
 0xac1   : > { %vm3480_vm8 = vmand %vm14695_vm5, %vm3479_vm0  ;;  %v3113_v48 = vmul.f32 %v3065_v21, %v10450_v54  ;;  %v3158_v0 = vpack.c.bf16 %v3140_v41, %v3138_v40  ;;  %v6555_v3 = vcvt.f32.s32 %v6554_v4  ;;  %v2822_v38 = vadd.f32 %v2790_v10, %v14696_v25 }
 0xac2   : > { %vm3485_vm2 = vmand %vm3480_vm8, %vm3484_vm1  ;;  %v2824_v7 = vadd.f32 %v2792_v55, %v14697_v15  ;;  %v14698_v13 = vmov 0.0   ;;  %v3143_v8 = vadd.f32 %v3111_v27, %v2983_v16  ;;  %v14700_v2 = vsub.f32 1.0, %v14699_v60 }
 0xac3   : > { %v3486_v50 = vsel %vm3485_vm2, 1.0, %v14698_v13  ;;  %v3145_v53 = vadd.f32 %v3113_v48, %v2985_v31  ;;  %3243 = vmatmul.mubr.bf16.gmra.mxu0 %v3158_v0  ;;  %vm3505_vm7 = vcmp.ne.s32.totalorder %v3504_v29, 0  ;;  %3538 = vperm.xlu1 %6903, %v6555_v3   ;;  %v2982_v43 = vadd.f32 %v2950_v6, %v2822_v38  ;;  %v3518_v30 = vpop.permute.xlu0 %3517 }
 0xac4   : > { %v3500_v17 = vmul.f32 %v14700_v2, %v3486_v50  ;;  %v3501_v56 = vmul.f32 %v14699_v60, %v3486_v50  ;;  %v2984_v49 = vadd.f32 %v2952_v57, %v2824_v7  ;;  %v3110_v10 = vmul.f32 %v3080_v44, %v10416_v14  ;;  %v14704_v14 = vld [vmem:[#allocation158_spill] sm:$0xff]  ;;  %v3274_v2 = vld [vmem:[%s13471_s24 + $0x70] sm:$0xff] }
 0xac5   : > { %v3161_v61 = vpack.c.bf16 %v3145_v53, %v3143_v8  ;;  %v3112_v55 = vmul.f32 %v3081_v36, %v10450_v54  ;;  %vm14702_vm3 = vnez %v14701_v51  ;;  %v14703_v57 = vmov 0   ;;  %v3270_v51 = vld [vmem:[%s13471_s24 + $0x50] sm:$0xff] }
 0xac6   : > { %v3511_v34 = vmul.f32 %v3509_v19, %v3500_v17  ;;  %vm3506_vm10 = vmand %vm14702_vm3, %vm3505_vm7  ;;  %v3514_v24 = vmul.f32 %v3509_v19, %v3501_v56  ;;  %v3142_v37 = vadd.f32 %v3110_v10, %v2982_v43  ;;  %vm14705_vm11 = vnez %v14704_v14  ;;  %v3273_v19 = vld [vmem:[%s13471_s24 + $0x68] sm:$0xff]  ;;  %v3267_v14 = vld [vmem:[%s13471_s24 + $0x38] sm:$0xff] }
 0xac7   : > { %3250 = vmatprep.mubr.bf16.mxu0 %v3161_v61  ;;  %v3144_v46 = vadd.f32 %v3112_v55, %v2984_v49  ;;  %3522 = vrot.lane.b32.xlu1 %v14699_v60, %s14380_s1  ;;  %vm3513_vm4 = vmand %vm14705_vm11, %vm3505_vm7  ;;  %vm3519_vm9 = vcmp.ne.s32.totalorder %v3518_v30, 0  ;;  %v14707_v45 = vmov 1   ;;  %v3275_v60 = vld [vmem:[%s13471_s24 + $0x78] sm:$0xff]  ;;  %v3272_v49 = vld [vmem:[%s13471_s24 + $0x60] sm:$0xff]  ;;  %vm14708_vm13 = vmmov 0  }
 0xac8   : > { %v3512_v23 = vsel %vm3506_vm10, %v3511_v34, 0.0  ;;  %6904 = vset.pattern.permute.xlu1 %v14703_v57  ;;  %v3515_v54 = vsel %vm3513_vm4, %v3514_v24, 0.0  ;;  %vm3520_vm12 = vmand %vm14702_vm3, %vm3519_vm9  ;;  %v3271_v55 = vld [vmem:[%s13471_s24 + $0x58] sm:$0xff]  ;;  %v3265_v30 = vld [vmem:[%s13471_s24 + $0x28] sm:$0xff]  ;;  %vm14709_vm0 = vcmp.lt.s32.totalorder %v14469_v11, 1  ;;  %vm14710_vm5 = vcmp.lt.s32.totalorder %v14469_v11, 16 }
 0xac9   : > { %v3160_v6 = vpack.c.bf16 %v3144_v46, %v3142_v37  ;;  %3546 = vperm.xlu0 %6644, %v3512_v23   ;;  %vm3527_vm6 = vmand %vm14705_vm11, %vm3519_vm9  ;;  %v3269_v37 = vld [vmem:[%s13471_s24 + $0x48] sm:$0xff]  ;;  %v3268_v23 = vld [vmem:[%s13471_s24 + $0x40] sm:$0xff]  ;;  %vm14711_vm8 = vcmp.lt.s32.totalorder %v14469_v11, 17  ;;  %vm14713_vm2 = vcmask 261120   ;;  %vm14719_vm11 = vcmask 392448  }
 0xaca   : > { %vm14712_vm1 = vmmov %vm14709_vm0  ;;  %vm14721_vm4 = vcmask 130048  }
 0xacb   : > { %3251 = vmatmul.mubr.bf16.gmra.mxu0 %v3160_v6  ;;  %3559 = vperm.xlu1 %6904, %v3515_v54   ;;  %vm14714_vm7 = vmmov %vm14710_vm5 }
 0xacc   : > { %vm14715_vm3 = vmmov %vm14711_vm8 }
 0xacd   : > { %vm14718_vm10 = vmmov %vm14713_vm2 }
 0xb28   : > { %v10735_v58 = vpop.f32.mrf.mxu0 }
 0xb2a   : > { %v3198_v33 = vpop.f32.mrf.mxu0 }
 0xb2b   : > { %v3266_v33 = vld [vmem:[%s13471_s24 + $0x30] sm:$0xff] }
 0xb2c   : > { %v10737_v32 = vpop.f32.mrf.mxu0 }
 0xb2e   : > { %v3201_v28 = vpop.f32.mrf.mxu0 }
 0xb3e   : > { %v3539_v39 = vpop.permute.xlu1 %3538 }
 0xb3f   : > { %vm3540_vm15 = vcmp.eq.s32.totalorder %v14469_v11, %v3539_v39  ;;  %vm3541_vm14 = vcmp.eq.s32.totalorder %v14706_v1, %v3539_v39 }
 0xb40   : > { %v10742_v63 = vsel %vm3540_vm15, 1.0, %v14698_v13  ;;  %v10745_v52 = vsel %vm3541_vm14, 1.0, %v14698_v13  ;;  %v10747_v12 = vpop.f32.mrf.mxu0  ;;  %vm14722_vm15 = vcmask 64512  }
 0xb41   : > { %v6905_v59 = vpack.i.bf16 %v10745_v52, %v10742_v63 }
 0xb42   : > { %v3523_v62 = vpop.permute.xlu1 %3522  ;;  %v3206_v18 = vpop.f32.mrf.mxu0 }
 0xb43   : > { %v3525_v47 = vmul.f32 %v3523_v62, %v3500_v17  ;;  %6906 = vrot.lane.b32.xlu1 %v6905_v59, %s13998_s6  ;;  %v3528_v22 = vmul.f32 %v3523_v62, %v3501_v56  ;;  %v3263_v18 = vld [vmem:[%s13471_s24 + $0x18] sm:$0xff] }
 0xb44   : > { %v10754_v40 = vpop.f32.mrf.mxu0 }
 0xb45   : > { %v3526_v5 = vsel %vm3520_vm12, %v3525_v47, 0.0  ;;  %v3529_v35 = vsel %vm3527_vm6, %v3528_v22, 0.0  ;;  %v3262_v22 = vld [vmem:[%s13471_s24 + $0x10] sm:$0xff]  ;;  %vm14724_vm12 = vmmov %vm14721_vm4 }
 0xb46   : > { %3574 = vperm.xlu0 %6644, %v3526_v5   ;;  %v3209_v42 = vpop.f32.mrf.mxu0  ;;  %v3279_v5 = vmul.f32 %v3263_v18, %v10754_v40 }
 0xb47   : > { %6911 = vrot.lane.b32.xlu1 %v6905_v59, %s14013_s0  ;;  %v3261_v42 = vld [vmem:[%s13471_s24 + $0x8] sm:$0xff] }
 0xb4a   : > { %3589 = vperm.xlu0 %6644, %v3529_v35   ;;  %v3278_v35 = vmul.f32 %v3262_v22, %v10747_v12  ;;  %v3365_v12 = vld [vmem:[%s13459_s12 + $0x18] sm:$0xff] }
 0xb4e   : > { %6916 = vrot.lane.b32.xlu0 %v6905_v59, %s14009_s8  ;;  %v3264_v59 = vld [vmem:[%s13471_s24 + $0x20] sm:$0xff] }
 0xb4f   : > { %6920 = vset.pattern.permute.xlu0 %v14707_v45 }
 0xb50   : > { %v10761_v21 = vpop.f32.mrf.mxu0 }
 0xb51   : > { %v3280_v47 = vmul.f32 %v3264_v59, %v10761_v21  ;;  %v3260_v21 = vld [vmem:[%s13471_s24] sm:$0xff]  ;;  %v7193_v59 = vld [vmem:[%s13457_s10 + $0x8] sm:$0xff] }
 0xb52   : > { %v3214_v36 = vpop.f32.mrf.mxu0  ;;  %v3276_v40 = vmul.f32 %v3260_v21, %v10735_v58  ;;  %v3364_v58 = vld [vmem:[%s13459_s12 + $0x10] sm:$0xff] }
 0xb53   : > { %v3277_v36 = vmul.f32 %v3261_v42, %v10737_v32  ;;  %v3363_v32 = vld [vmem:[%s13459_s12 + $0x8] sm:$0xff] }
 0xb54   : > { %v3215_v26 = vpop.f32.mrf.mxu0 }
 0xb55   : > { %v3281_v62 = vmul.f32 %v3265_v30, %v3215_v26  ;;  %v3259_v26 = vld [vmem:[%s13470_s23] sm:$0xff] }
 0xb56   : > { %v3217_v44 = vpop.f32.mrf.mxu0 }
 0xb57   : > { %v3362_v44 = vld [vmem:[%s13459_s12] sm:$0xff] }
 0xb5c   : > { %v3220_v41 = vpop.f32.mrf.mxu0 }
 0xb5d   : > { %v3282_v39 = vmul.f32 %v3266_v33, %v3220_v41  ;;  %v7171_v41 = vld [vmem:[%s7519_s29 + $0x14] ss:$8 sps:$4 sm:$0xff]  }
 0xb5e   : > { %v3222_v4 = vpop.f32.mrf.mxu0  ;;  %5526 = vmatprep.subr.bf16.mxu0 %v7171_v41 }
 0xb5f   : > { %v7169_v4 = vld [vmem:[%s7519_s29 + $0x10] ss:$8 sps:$4 sm:$0xff]  }
 0xb60   : > { %v3223_v9 = vpop.f32.mrf.mxu0  ;;  %5527 = vmatpush1.bf16.xpose.msra.mxu0 %v7169_v4 }
 0xb61   : > { %v3283_v28 = vmul.f32 %v3267_v14, %v3223_v9  ;;  %v7174_v9 = vld [vmem:[%s7519_s29 + $0x4] ss:$8 sps:$4 sm:$0xff]  }
 0xb62   : > { %v3225_v16 = vpop.f32.mrf.mxu0  ;;  %5528 = vmatprep.subr.bf16.mxu0 %v7174_v9 }
 0xb63   : > { %v7172_v16 = vld [vmem:[%s7519_s29] ss:$8 sps:$4 sm:$0xff]   ;;  %s796_s29 = sand.u32 1, %s7300_s2  }
 0xb64   : > { %s6009_s1 = scalar_lea.sflag [#allocation3], %s796_s29 }
 0xb68   : > { %5529 = vmatpush1.bf16.xpose.msra.mxu0 %v7172_v16 }
 0xb69   : > { %v3228_v20 = vpop.f32.mrf.mxu0 }
 0xb6a   : > { %v3284_v54 = vmul.f32 %v3268_v23, %v3228_v20  ;;  %v3547_v20 = vpop.permute.xlu0 %3546 }
 0xb6b   : > { %v3230_v31 = vpop.f32.mrf.mxu0  ;;  %v3549_v23 = vmul.f32 %v3547_v20, %v10742_v63  ;;  %v7192_v63 = vld [vmem:[%s13457_s10 + $0x10] sm:$0xff] }
 0xb6d   : > { %v3231_v27 = vpop.f32.mrf.mxu0 }
 0xb6e   : > { %v3285_v6 = vmul.f32 %v3269_v37, %v3231_v27  ;;  %v3560_v27 = vpop.permute.xlu1 %3559 }
 0xb6f   : > { %v3233_v48 = vpop.f32.mrf.mxu0 }
 0xb75   : > { %v3236_v0 = vpop.f32.mrf.mxu0 }
 0xb76   : > { %v3286_v46 = vmul.f32 %v3270_v51, %v3236_v0 }
 0xb77   : > { %v3238_v3 = vpop.f32.mrf.mxu0 }
 0xb79   : > { %v3239_v29 = vpop.f32.mrf.mxu0 }
 0xb7a   : > { %v3287_v24 = vmul.f32 %v3271_v55, %v3239_v29 }
 0xb7b   : > { %v3241_v25 = vpop.f32.mrf.mxu0 }
 0xb83   : > { %v3244_v38 = vpop.f32.mrf.mxu0 }
 0xb84   : > { %v3288_v34 = vmul.f32 %v3272_v49, %v3244_v38 }
 0xb85   : > { %v3246_v15 = vpop.f32.mrf.mxu0 }
 0xb87   : > { %v3247_v7 = vpop.f32.mrf.mxu0 }
 0xb88   : > { %v3289_v10 = vmul.f32 %v3273_v19, %v3247_v7 }
 0xb89   : > { %v3249_v50 = vpop.f32.mrf.mxu0 }
 0xb8b   : > { %v3252_v8 = vpop.f32.mrf.mxu0 }
 0xb8c   : > { %v3290_v61 = vmul.f32 %v3274_v2, %v3252_v8 }
 0xb8d   : > { %v3254_v53 = vpop.f32.mrf.mxu0 }
 0xb8f   : > { %v3255_v17 = vpop.f32.mrf.mxu0 }
 0xb90   : > { %v3291_v56 = vmul.f32 %v3275_v60, %v3255_v17 }
 0xb91   : > { %v3257_v43 = vpop.f32.mrf.mxu0 }
 0xb92   : > { %6355 = vmatpush3.msra.mxu1 %v3291_v56  ;;  %v3550_v56 = vmul.f32 %v3547_v20, %v10745_v52 }
 0xb93   : > { %6356 = vmatprep.subr.mxu1 %v14698_v13 }
 0xb94   : > { %6357 = vmatpush3.msra.mxu1 %v3290_v61 }
 0xb95   : > { %6358 = vmatprep.subr.mxu1 %v14698_v13 }
 0xb96   : > { %6359 = vmatpush3.msra.mxu1 %v3289_v10 }
 0xb97   : > { %6360 = vmatprep.subr.mxu1 %v14698_v13 }
 0xb98   : > { %6361 = vmatpush3.msra.mxu1 %v3288_v34 }
 0xb99   : > { %6362 = vmatprep.subr.mxu1 %v14698_v13 }
 0xb9a   : > { %6363 = vmatpush3.msra.mxu1 %v3287_v24 }
 0xb9b   : > { %6364 = vmatprep.subr.mxu1 %v14698_v13 }
 0xb9c   : > { %6365 = vmatpush3.msra.mxu1 %v3286_v46 }
 0xb9d   : > { %6366 = vmatprep.subr.mxu1 %v14698_v13 }
 0xb9e   : > { %6367 = vmatpush3.msra.mxu1 %v3285_v6 }
 0xb9f   : > { %6368 = vmatprep.subr.mxu1 %v14698_v13 }
 0xba0   : > { %6369 = vmatpush3.msra.mxu1 %v3284_v54 }
 0xba1   : > { %6370 = vmatprep.subr.mxu1 %v14698_v13 }
 0xba2   : > { %6371 = vmatpush3.msra.mxu1 %v3283_v28 }
 0xba3   : > { %6372 = vmatprep.subr.mxu1 %v14698_v13 }
 0xba4   : > { %6373 = vmatpush3.msra.mxu1 %v3282_v39  ;;  %v7191_v39 = vld [vmem:[%s13457_s10 + $0x18] sm:$0xff] }
 0xba5   : > { %6374 = vmatprep.subr.mxu1 %v14698_v13 }
 0xba6   : > { %6375 = vmatpush3.msra.mxu1 %v3281_v62  ;;  %v7194_v62 = vld [vmem:[%s13457_s10] sm:$0xff] }
 0xba7   : > { %6376 = vmatprep.subr.mxu1 %v14698_v13 }
 0xba8   : > { %6377 = vmatpush3.msra.mxu1 %v3280_v47 }
 0xba9   : > { %6378 = vmatprep.subr.mxu1 %v14698_v13 }
 0xbaa   : > { %6379 = vmatpush3.msra.mxu1 %v3279_v5  ;;  %v14717_v5 = vld [vmem:[#allocation15_spill] sm:$0xff] }
 0xbab   : > { %6380 = vmatprep.subr.mxu1 %v14698_v13 }
 0xbac   : > { %6381 = vmatpush3.msra.mxu1 %v3278_v35 }
 0xbad   : > { %6382 = vmatprep.subr.mxu1 %v14698_v13 }
 0xbae   : > { %6383 = vmatpush3.msra.mxu1 %v3277_v36  ;;  %v7195_v36 = vld [vmem:[%s13467_s20 + $0x8] sm:$0xff] }
 0xbaf   : > { %6384 = vmatprep.subr.mxu1 %v14698_v13 }
 0xbb0   : > { %6385 = vmatpush3.msra.mxu1 %v3276_v40 }
 0xbb1   : > { %6387 = vmatmul.mubr.f32.vlgmr.msra.gmra.mxu1 %v3259_v26  ;;  %6389 = vmatprep.subr.mxu1 %v14698_v13  ;;  %v7196_v26 = vld [vmem:[%s13467_s20] sm:$0xff] }
 0xbb2   : > { %6390 = vmatpush3.msra.mxu1 %v3365_v12  ;;  %6397 = vmatprep.mubr.msk.f32.mxu1 %vm14708_vm13, %v14698_v13 }
 0xbb3   : > { %6391 = vmatprep.subr.mxu1 %v14698_v13 }
 0xbb4   : > { %6392 = vmatpush3.msra.mxu1 %v3364_v58  ;;  %v7197_v58 = vld [vmem:[%s13458_s11] ss:$0 sm:$0xff] }
 0xbb5   : > { %6393 = vmatprep.subr.mxu1 %v14698_v13  ;;  %v6907_v48 = vpop.permute.xlu1 %6906 }
 0xbb6   : > { %6394 = vmatpush3.msra.mxu1 %v3363_v32  ;;  %v6909_v3 = vunpack.i.h.bf16 %v6907_v48  ;;  %v6908_v29 = vunpack.i.l.bf16 %v6907_v48  ;;  %v7198_v48 = vld [vmem:[%s13468_s21] sm:$0xff] }
 0xbb7   : > { %6395 = vmatprep.subr.mxu1 %v14698_v13 }
 0xbb8   : > { %6396 = vmatpush3.msra.mxu1 %v3362_v44  ;;  %v3555_v15 = vsel %vm14709_vm0, %v6908_v29, %v6909_v3  ;;  %v3556_v55 = vsel %vm14712_vm1, %v6909_v3, %v6908_v29 }
 0xbb9   : > { %3630 = vmatprep.subr.bf16.mxu1 %v7171_v41  ;;  %v6912_v25 = vpop.permute.xlu1 %6911  ;;  %v3563_v60 = vmul.f32 %v3560_v27, %v3555_v15  ;;  %v3562_v37 = vmul.f32 %v3560_v27, %v3556_v55 }
 0xbba   : > { %v6914_v7 = vunpack.i.h.bf16 %v6912_v25  ;;  %v6913_v50 = vunpack.i.l.bf16 %v6912_v25 }
 0xbbb   : > { %v3565_v43 = vadd.f32 %v3563_v60, %v3550_v56  ;;  %v3564_v14 = vadd.f32 %v3562_v37, %v3549_v23 }
 0xbbc   : > { %v3570_v2 = vsel %vm14710_vm5, %v6913_v50, %v6914_v7  ;;  %v3571_v52 = vsel %vm14714_vm7, %v6914_v7, %v6913_v50 }
 0xbc1   : > { %v3575_v31 = vpop.permute.xlu0 %3574 }
 0xbc2   : > { %v3578_v19 = vmul.f32 %v3575_v31, %v3570_v2  ;;  %v3577_v6 = vmul.f32 %v3575_v31, %v3571_v52  ;;  %v14720_v31 = vld [vmem:[#allocation11_spill] sm:$0xff] }
 0xbc4   : > { %v3580_v49 = vadd.f32 %v3578_v19, %v3565_v43  ;;  %v3579_v33 = vadd.f32 %v3577_v6, %v3564_v14 }
 0xbc5   : > { %v3590_v0 = vpop.permute.xlu0 %3589 }
 0xbc9   : > { %v6917_v38 = vpop.permute.xlu0 %6916 }
 0xbca   : > { %v6919_v8 = vunpack.i.h.bf16 %v6917_v38  ;;  %v6918_v53 = vunpack.i.l.bf16 %v6917_v38 }
 0xbcc   : > { %v3585_v17 = vsel %vm14711_vm8, %v6918_v53, %v6919_v8  ;;  %v3586_v46 = vsel %vm14715_vm3, %v6919_v8, %v6918_v53  ;;  %vm14726_vm3 = vmmov %vm14718_vm10 }
 0xbcd   : > { %v3593_v61 = vmul.f32 %v3590_v0, %v3585_v17  ;;  %v3592_v54 = vmul.f32 %v3590_v0, %v3586_v46 }
 0xbcf   : > { %v3595_v10 = vadd.f32 %v3593_v61, %v3580_v49  ;;  %v3594_v28 = vadd.f32 %v3592_v54, %v3579_v33  ;;  %v7199_v54 = vld [vmem:[%s13468_s21 + $0x8] sm:$0xff]  ;;  %v7200_v33 = vld [vmem:[%s13468_s21 + $0x10] sm:$0xff] }
 0xbd1   : > { %v3597_v51 = vpack.c.bf16 %v3595_v10, %v3595_v10  ;;  %v3596_v30 = vpack.c.bf16 %v3594_v28, %v3594_v28  ;;  %v7201_v28 = vld [vmem:[%s13468_s21 + $0x18] sm:$0xff] }
 0xc71   : > { %v3358_v34 = vpop.f32.mrf.mxu1 }
 0xc72   : > { %6398 = vmatmul.mubr.msk.f32.vlgmr.msra.gmra.mxu1 %vm14713_vm2, %v3358_v34 }
 0xc73   : > { %3631 = vmatpush1.bf16.xpose.msra.mxu1 %v7169_v4  ;;  %v6388_v24 = vpop.f32.mrf.mxu1  ;;  %3650 = vmatprep.mubr.bf16.mxu1 %v3597_v51 }
 0xc74   : > { %3632 = vmatprep.subr.bf16.mxu1 %v7174_v9 }
 0xc7b   : > { %3633 = vmatpush1.bf16.xpose.msra.mxu1 %v7172_v16 }
 0xc7c   : > { %6400 = vmatprep.subr.mxu1 %v14698_v13 }
 0xc82   : > { %3651 = vmatmul.mubr.bf16.vlgmr.msra.gmra.mxu1 %v3596_v30  ;;  %v7202_v30 = vld [vmem:[%s13468_s21 + $0x20] sm:$0xff] }
 0xc83   : > { %6401 = vmatpush3.msra.mxu1 %v7191_v39  ;;  %6408 = vmatprep.mubr.msk.f32.mxu1 %vm14708_vm13, %v14698_v13  ;;  %v7203_v39 = vld [vmem:[%s13468_s21 + $0x28] sm:$0xff] }
 0xc84   : > { %6402 = vmatprep.subr.mxu1 %v14698_v13 }
 0xc85   : > { %6403 = vmatpush3.msra.mxu1 %v7192_v63  ;;  %v7204_v63 = vld [vmem:[%s13468_s21 + $0x30] sm:$0xff] }
 0xc86   : > { %6404 = vmatprep.subr.mxu1 %v14698_v13 }
 0xc87   : > { %6405 = vmatpush3.msra.mxu1 %v7193_v59  ;;  %v7205_v59 = vld [vmem:[%s13468_s21 + $0x38] sm:$0xff] }
 0xc88   : > { %6406 = vmatprep.subr.mxu1 %v14698_v13 }
 0xc89   : > { %6407 = vmatpush3.msra.mxu1 %v7194_v62  ;;  %v7206_v62 = vld [vmem:[%s13468_s21 + $0x40] sm:$0xff] }
 0xc8a   : > { %6411 = vmatprep.subr.mxu1 %v14698_v13 }
 0xd32   : > { %v10890_v18 = vpop.f32.mrf.mxu1 }
 0xd33   : > { %14716 = vst [vmem:[#allocation55_spill] sm:$0xff] %v10890_v18 }
 0xd34   : > { %v6399_v47 = vpop.f32.mrf.mxu1 }
 0xd35   : > { %v7207_v47 = vld [vmem:[%s13468_s21 + $0x48] sm:$0xff] }
 0xd42   : > { %v3652_v22 = vpop.f32.mrf.mxu1 }
 0xd43   : > { %v3653_v42 = vadd.f32 %v3652_v22, %v14717_v5  ;;  %v7208_v22 = vld [vmem:[%s13468_s21 + $0x50] sm:$0xff]  ;;  %v7209_v5 = vld [vmem:[%s13468_s21 + $0x58] sm:$0xff] }
 0xd44   : > { %v3654_v35 = vpop.f32.mrf.mxu1 }
 0xd45   : > { %6409 = vmatmul.mubr.msk.f32.vlgmr.msra.gmra.mxu1 %vm14718_vm10, %v3653_v42  ;;  %vm14727_vm10 = vmmov %vm14722_vm15  ;;  %v7210_v42 = vld [vmem:[%s13468_s21 + $0x60] sm:$0xff]  ;;  %v7211_v35 = vld [vmem:[%s13468_s21 + $0x68] sm:$0xff] }
 0xd46   : > { %v3655_v21 = vpop.f32.mrf.mxu1  ;;  %6412 = vmatpush3.msra.mxu1 %v7195_v36  ;;  %6415 = vmatprep.mubr.msk.f32.mxu1 %vm14708_vm13, %v14698_v13  ;;  %v7213_v36 = vld [vmem:[%s13468_s21 + $0x78] sm:$0xff] }
 0xd47   : > { %6413 = vmatprep.subr.mxu1 %v14698_v13  ;;  %v7212_v21 = vld [vmem:[%s13468_s21 + $0x70] sm:$0xff] }
 0xd48   : > { %v3656_v40 = vpop.f32.mrf.mxu1  ;;  %6414 = vmatpush3.msra.mxu1 %v7196_v26  ;;  %v14742_v26 = vld [vmem:[#allocation16_spill] sm:$0xff] }
 0xe05   : > { %v3727_v12 = vpop.f32.mrf.mxu1 }
 0xe06   : > { %v3728_v32 = vadd.f32 %v7197_v58, %v3727_v12 }
 0xe07   : > { %v6410_v44 = vpop.f32.mrf.mxu1 }
 0xe08   : > { %v3731_v41 = vsel %vm14719_vm11, %v3728_v32, -inf  ;;  %v3818_v0 = vmul.f32 0.0625, %v3728_v32  ;;  %vm14728_vm11 = vmmov %vm14727_vm10 }
 0xe09   : > { %3732 = vmax.xlane.f32.xlu1 %v3731_v41 }
 0xe92   : > { %v3733_v4 = vpop.xlane.xlu1 %3732 }
 0xe93   : > { %v3734_v9 = vsub.f32 %v3728_v32, %v3733_v4  ;;  %v14743_v32 = vld [vmem:[#allocation19_spill] sm:$0xff]  ;;  %v14744_v4 = vld [vmem:[#allocation30_spill] sm:$0xff] }
 0xe95   : > { %v3735_v16 = vmul.f32 1.442695, %v3734_v9 }
 0xe97   : > { %7181 = vpow2.f32 %v3735_v16  ;;  %v14745_v16 = vld [vmem:[#allocation35_spill] sm:$0xff] }
 0xea4   : > { %v7182_v20 = vpop.eup %7181 }
 0xea5   : > { %3738 = vrot.lane.b32.xlu0 %v7182_v20, %s13937_s27 }
 0xea9   : > { %3826 = vperm.xlu0 %6920, %v14720_v31  }
 0xead   : > { %6921 = vset.pattern.permute.xlu0 %v14703_v57 }
 0xeae   : > { %3821 = vperm.xlu0 %6921, %v14720_v31  }
 0xeb2   : > { %7162 = vset.pattern.permute.xlu0 %v14707_v45 }
 0xf17   : > { %v3739_v27 = vpop.permute.xlu0 %3738 }
 0xf18   : > { %6416 = vmatmul.mubr.msk.f32.vlgmr.msra.gmra.mxu1 %vm14721_vm4, %v3739_v27  ;;  %vm14729_vm4 = vmmov %vm14727_vm10  ;;  %v14746_v27 = vld [vmem:[#allocation37_spill] sm:$0xff] }
 0xf19   : > { %6420 = vmatprep.mubr.msk.f32.mxu1 %vm14722_vm15, %v7198_v48  ;;  %vm14730_vm15 = vmmov %vm14729_vm4 }
 0xf24   : > { %v3827_v3 = vpop.permute.xlu0 %3826 }
 0xf25   : > { %v3829_v29 = vadd.f32 %v3827_v3, %v3818_v0 }
 0xf27   : > { %v3833_v25 = vmul.f32 0.06666667, %v3829_v29  ;;  %v7215_v29 = vld [vmem:[%s13469_s22] sm:$0xff] }
 0xf29   : > { %v3834_v38 = vmul.f32 2.0, %v3833_v25  ;;  %v3822_v15 = vpop.permute.xlu0 %3821 }
 0xf2a   : > { %v3824_v7 = vadd.f32 %v3822_v15, %v3818_v0  ;;  %v7214_v0 = vld [vmem:[%s13469_s22 + $0x8] sm:$0xff] }
 0xf2b   : > { %v6168_v50 = vadd.f32 -1.0, %v3834_v38 }
 0xf2c   : > { %v3830_v8 = vmul.f32 0.06666667, %v3824_v7  ;;  %v7216_v7 = vld [vmem:[%s13469_s22 + $0x10] sm:$0xff] }
 0xf2d   : > { %vm3839_vm14 = vcmp.ge.f32.partialorder %v6168_v50, 0.0  ;;  %v3855_v45 = vadd.f32 1.0, %v6168_v50  ;;  %vm3845_vm9 = vcmp.le.f32.partialorder %v6168_v50, 16.0 }
 0xf2e   : > { %v3831_v53 = vmul.f32 2.0, %v3830_v8  ;;  %v3840_v60 = vsel %vm3839_vm14, 1, %v14703_v57  ;;  %v3846_v19 = vsel %vm3845_vm9, 1, %v14703_v57  ;;  %vm14731_vm14 = vmmov %vm14729_vm4 }
 0xf2f   : > { %3841 = vrot.lane.b32.xlu0 %v3840_v60, %s14723_s5  ;;  %v3856_v17 = vmul.f32 0.5, %v3855_v45  ;;  %vm14732_vm9 = vmmov %vm14729_vm4 }
 0xf30   : > { %v6167_v2 = vadd.f32 -1.0, %v3831_v53  ;;  %v14750_v53 = vld [vmem:[#allocation17_spill] sm:$0xff] }
 0xf31   : > { %v3857_v49 = vmul.f32 15.0, %v3856_v17 }
 0xf32   : > { %v3852_v56 = vadd.f32 1.0, %v6167_v2  ;;  %vm3836_vm6 = vcmp.ge.f32.partialorder %v6167_v2, 0.0  ;;  %vm3837_vm0 = vcmp.le.f32.partialorder %v6167_v2, 16.0  ;;  %v14751_v2 = vld [vmem:[#allocation18_spill] sm:$0xff] }
 0xf33   : > { %3847 = vrot.lane.b32.xlu0 %v3846_v19, %s14723_s5  ;;  %vm3838_vm8 = vmand %vm3836_vm6, %vm3837_vm0  ;;  %v14752_v19 = vld [vmem:[#allocation32_spill] sm:$0xff] }
 0xf34   : > { %v3853_v43 = vmul.f32 0.5, %v3852_v56  ;;  %vm14734_vm6 = vmmov %vm14729_vm4 }
 0xf35   : > { %vm14735_vm0 = vmmov %vm14729_vm4 }
 0xf36   : > { %v3854_v61 = vmul.f32 15.0, %v3853_v43 }
 0xf38   : > { %v3863_v10 = vsel %vm14724_vm12, %v3854_v61, %v3857_v49  ;;  %vm14733_vm12 = vmmov %vm14729_vm4  ;;  %v14753_v61 = vld [vmem:[#allocation39_spill] sm:$0xff] }
 0xfa1   : > { %v3842_v55 = vpop.permute.xlu0 %3841 }
 0xfa2   : > { %vm3843_vm5 = vcmp.ne.s32.totalorder %v3842_v55, 0 }
 0xfa3   : > { %vm3844_vm1 = vmand %vm3838_vm8, %vm3843_vm5 }
 0xfa4   : > { %vm14736_vm5 = vmmov %vm14735_vm0 }
 0xfa5   : > { %v3848_v34 = vpop.permute.xlu0 %3847  ;;  %vm14737_vm8 = vmmov %vm14735_vm0 }
 0xfa6   : > { %vm3849_vm2 = vcmp.ne.s32.totalorder %v3848_v34, 0 }
 0xfa7   : > { %vm3850_vm7 = vmand %vm3844_vm1, %vm3849_vm2 }
 0xfa8   : > { %v3851_v51 = vsel %vm3850_vm7, 1.0, %v14698_v13  ;;  %vm14738_vm1 = vmmov %vm14735_vm0 }
 0xfa9   : > { %3859 = vrot.lane.b32.xlu0 %v3851_v51, %s14725_s9  ;;  %vm14739_vm2 = vmmov %vm14735_vm0  ;;  %v7218_v51 = vld [vmem:[%s13469_s22 + $0x20] sm:$0xff] }
 0xfaa   : > { %vm14740_vm7 = vmmov %vm14735_vm0 }
 0xfd8   : > { %v3808_v57 = vpop.f32.mrf.mxu1 }
 0xfd9   : > { %3813 = vrot.lane.b32.xlu0 %v3808_v57, %s14725_s9 }
 0xfda   : > { %v6417_v24 = vpop.f32.mrf.mxu1 }
0x101b   : > { %v3860_v37 = vpop.permute.xlu0 %3859 }
0x104b   : > { %v3814_v52 = vpop.permute.xlu0 %3813 }
0x104c   : > { %7183 = vrcp.f32 %v3814_v52  ;;  %v14756_v52 = vld [vmem:[#allocation21_spill] sm:$0xff] }
0x1059   : > { %v7184_v46 = vpop.eup %7183 }
0x105a   : > { %v3817_v23 = vmul.f32 %v7184_v46, %v7182_v20 }
0x105c   : > { %v3862_v6 = vmul.f32 %v3860_v37, %v3817_v23  ;;  %v14757_v23 = vld [vmem:[#allocation20_spill] sm:$0xff] }
0x105e   : > { %v3864_v14 = vsel %vm14726_vm3, %v3863_v10, %v3862_v6  ;;  %vm14741_vm3 = vmmov %vm14735_vm0  ;;  %v7217_v10 = vld [vmem:[%s13469_s22 + $0x18] sm:$0xff] }
0x105f   : > { %6418 = vmatprep.subr.mxu1 %v3864_v14 }
0x1060   : > { %6419 = vmatpush3.msra.mxu1 %v3864_v14 }
0x1061   : > { %6421 = vmatmul.mubr.msk.f32.vlgmr.msra.gmra.mxu1 %vm14727_vm10, %v7199_v54  ;;  %6444 = vmatprep.subr.mxu1 %v14698_v13  ;;  %vm14747_vm10 = vcmask 130048   ;;  %v14758_v54 = vld [vmem:[#allocation34_spill] sm:$0xff] }
0x1062   : > { %6423 = vmatprep.mubr.msk.f32.mxu1 %vm14728_vm11, %v7200_v33  ;;  %vm14748_vm11 = vmmov %vm14747_vm10 }
0x1065   : > { %6424 = vmatmul.mubr.msk.f32.gmra.mxu1 %vm14729_vm4, %v7201_v28  ;;  %vm14749_vm4 = vmmov %vm14747_vm10  ;;  %v14759_v28 = vld [vmem:[#allocation40_spill] sm:$0xff] }
0x1066   : > { %6426 = vmatprep.mubr.msk.f32.mxu1 %vm14730_vm15, %v7202_v30  ;;  %vm14754_vm15 = vmmov %vm14749_vm4 }
0x1069   : > { %6427 = vmatmul.mubr.msk.f32.gmra.mxu1 %vm14731_vm14, %v7203_v39  ;;  %vm14755_vm14 = vmmov %vm14749_vm4  ;;  %v7219_v39 = vld [vmem:[%s13469_s22 + $0x28] sm:$0xff] }
0x106a   : > { %6429 = vmatprep.mubr.msk.f32.mxu1 %vm14732_vm9, %v7204_v63  ;;  %vm14760_vm9 = vmmov %vm14749_vm4 }
0x106d   : > { %6430 = vmatmul.mubr.msk.f32.gmra.mxu1 %vm14733_vm12, %v7205_v59  ;;  %vm14761_vm12 = vmmov %vm14749_vm4 }
0x106e   : > { %6432 = vmatprep.mubr.msk.f32.mxu1 %vm14734_vm6, %v7206_v62  ;;  %v7220_v62 = vld [vmem:[%s13469_s22 + $0x30] sm:$0xff]  ;;  %vm14766_vm6 = vmmov %vm14749_vm4 }
0x1071   : > { %6433 = vmatmul.mubr.msk.f32.gmra.mxu1 %vm14735_vm0, %v7207_v47  ;;  %vm14767_vm0 = vmmov %vm14749_vm4 }
0x1072   : > { %6435 = vmatprep.mubr.msk.f32.mxu1 %vm14736_vm5, %v7208_v22  ;;  %vm14772_vm5 = vmmov %vm14767_vm0 }
0x1075   : > { %6436 = vmatmul.mubr.msk.f32.gmra.mxu1 %vm14737_vm8, %v7209_v5  ;;  %vm14773_vm8 = vmmov %vm14767_vm0 }
0x1076   : > { %6438 = vmatprep.mubr.msk.f32.mxu1 %vm14738_vm1, %v7210_v42  ;;  %v14762_v42 = vld [vmem:[#allocation23_spill] sm:$0xff]  ;;  %vm14778_vm1 = vmmov %vm14767_vm0 }
0x1079   : > { %6439 = vmatmul.mubr.msk.f32.gmra.mxu1 %vm14739_vm2, %v7211_v35  ;;  %vm14779_vm2 = vmmov %vm14767_vm0 }
0x107a   : > { %6441 = vmatprep.mubr.msk.f32.mxu1 %vm14740_vm7, %v7212_v21  ;;  %v14763_v21 = vld [vmem:[#allocation22_spill] sm:$0xff]  ;;  %vm14784_vm7 = vmmov %vm14767_vm0 }
0x107d   : > { %6442 = vmatmul.mubr.msk.f32.gmra.mxu1 %vm14741_vm3, %v7213_v36  ;;  %vm14785_vm3 = vmmov %vm14767_vm0 }
0x107e   : > { %6476 = vmatprep.mubr.msk.f32.mxu1 %vm14708_vm13, %v14698_v13 }
0x1121   : > { %v6422_v40 = vpop.f32.mrf.mxu1 }
0x1122   : > { %v4075_v12 = vmul.f32 %v6422_v40, %v14742_v26  ;;  %v4203_v9 = vmul.f32 %v6422_v40, %v14744_v4  ;;  %v4011_v3 = vmul.f32 %v7214_v0, %v6422_v40  ;;  %v14764_v26 = vld [vmem:[#allocation36_spill] sm:$0xff] }
0x1123   : > { %v3931_v58 = vpop.f32.mrf.mxu1  ;;  %v14769_v0 = vld [vmem:[#allocation24_spill] sm:$0xff] }
0x1124   : > { %v4074_v44 = vmul.f32 %v3931_v58, %v14743_v32  ;;  %4108 = vrot.lane.b32.xlu0 %v4075_v12, %s14723_s5  ;;  %v4202_v20 = vmul.f32 %v3931_v58, %v14745_v16  ;;  %v4010_v25 = vmul.f32 %v7215_v29, %v3931_v58  ;;  %v4029_v38 = vsel %vm14747_vm10, %v4011_v3, 0.0  ;;  %v14765_v58 = vld [vmem:[#allocation42_spill] sm:$0xff]  ;;  %vm14786_vm10 = vmmov %vm14767_vm0 }
0x1125   : > { %v6425_v41 = vpop.f32.mrf.mxu1 }
0x1126   : > { %4106 = vrot.lane.b32.xlu1 %v4074_v44, %s14723_s5  ;;  %v4026_v15 = vsel %vm14748_vm11, %v4010_v25, 0.0  ;;  %v4077_v60 = vmul.f32 %v6425_v41, %v14750_v53  ;;  %v4205_v43 = vmul.f32 %v6425_v41, %v14752_v19  ;;  %v4013_v55 = vmul.f32 %v7217_v10, %v6425_v41  ;;  %v7221_v44 = vld [vmem:[%s13469_s22 + $0x38] sm:$0xff]  ;;  %v14770_v25 = vld [vmem:[#allocation38_spill] sm:$0xff]  ;;  %v7224_v53 = vld [vmem:[%s13469_s22 + $0x50] sm:$0xff] }
0x1127   : > { %v3941_v31 = vpop.f32.mrf.mxu1  ;;  %v14776_v10 = vld [vmem:[#allocation41_spill] sm:$0xff]  ;;  %vm14787_vm11 = vmmov %vm14767_vm0 }
0x1128   : > { %4236 = vrot.lane.b32.xlu0 %v4203_v9, %s13937_s27  ;;  %v4204_v48 = vmul.f32 %v3941_v31, %v14746_v27  ;;  %v4012_v50 = vmul.f32 %v7216_v7, %v3941_v31  ;;  %v4035_v34 = vsel %vm14754_vm15, %v4013_v55, 0.0  ;;  %v4076_v46 = vmul.f32 %v3941_v31, %v14756_v52  ;;  %v7222_v9 = vld [vmem:[%s13469_s22 + $0x40] sm:$0xff]  ;;  %vm14790_vm15 = vmmov %vm14767_vm0 }
0x1129   : > { %v6428_v45 = vpop.f32.mrf.mxu1  ;;  %v14768_v27 = vld [vmem:[#allocation25_spill] sm:$0xff] }
0x112a   : > { %4234 = vrot.lane.b32.xlu1 %v4202_v20, %s13937_s27  ;;  %v4032_v8 = vsel %vm14749_vm4, %v4012_v50, 0.0  ;;  %v4079_v17 = vmul.f32 %v6428_v45, %v14751_v2  ;;  %v4207_v33 = vmul.f32 %v6428_v45, %v14758_v54  ;;  %v4015_v63 = vmul.f32 %v7219_v39, %v6428_v45  ;;  %v7223_v50 = vld [vmem:[%s13469_s22 + $0x48] sm:$0xff]  ;;  %v7226_v52 = vld [vmem:[%s13469_s22 + $0x60] sm:$0xff]  ;;  %vm14788_vm4 = vmmov %vm14767_vm0 }
0x112b   : > { %v3951_v56 = vpop.f32.mrf.mxu1 }
0x112c   : > { %v4206_v49 = vmul.f32 %v3951_v56, %v14753_v61  ;;  %v4014_v57 = vmul.f32 %v7218_v51, %v3951_v56  ;;  %v4041_v59 = vsel %vm14760_vm9, %v4015_v63, 0.0  ;;  %v4078_v35 = vmul.f32 %v3951_v56, %v14762_v42  ;;  %v14774_v56 = vld [vmem:[#allocation27_spill] sm:$0xff]  ;;  %vm14793_vm9 = vmmov %vm14767_vm0 }
0x112d   : > { %v6431_v37 = vpop.f32.mrf.mxu1 }
0x112e   : > { %4238 = vrot.lane.b32.xlu1 %v4204_v48, %s13937_s27  ;;  %v4038_v24 = vsel %vm14755_vm14, %v4014_v57, 0.0  ;;  %v4081_v6 = vmul.f32 %v6431_v37, %v14757_v23  ;;  %v4209_v12 = vmul.f32 %v6431_v37, %v14764_v26  ;;  %v4017_v41 = vmul.f32 %v7221_v44, %v6431_v37  ;;  %v7225_v57 = vld [vmem:[%s13469_s22 + $0x58] sm:$0xff]  ;;  %v7227_v26 = vld [vmem:[%s13469_s22 + $0x68] sm:$0xff]  ;;  %vm14792_vm14 = vmmov %vm14767_vm0 }
0x112f   : > { %v3961_v14 = vpop.f32.mrf.mxu1 }
0x1130   : > { %v4208_v30 = vmul.f32 %v3961_v14, %v14759_v28  ;;  %v4016_v47 = vmul.f32 %v7220_v62, %v3961_v14  ;;  %v4047_v4 = vsel %vm14766_vm6, %v4017_v41, 0.0  ;;  %v4080_v48 = vmul.f32 %v3961_v14, %v14768_v27  ;;  %v14782_v62 = vld [vmem:[#allocation43_spill] sm:$0xff]  ;;  %vm14795_vm6 = vmmov %vm14767_vm0 }
0x1131   : > { %v6434_v5 = vpop.f32.mrf.mxu1  ;;  %v7228_v41 = vld [vmem:[%s13469_s22 + $0x70] sm:$0xff] }
0x1132   : > { %v4044_v22 = vsel %vm14761_vm12, %v4016_v47, 0.0  ;;  %v4083_v36 = vmul.f32 %v6434_v5, %v14763_v21  ;;  %vm14794_vm12 = vmmov %vm14767_vm0 }
0x1133   : > { %v3971_v40 = vpop.f32.mrf.mxu1 }
0x1134   : > { %v4210_v32 = vmul.f32 %v3971_v40, %v14765_v58  ;;  %v4018_v16 = vmul.f32 %v7222_v9, %v3971_v40  ;;  %v4082_v19 = vmul.f32 %v3971_v40, %v14774_v56 }
0x1135   : > { %v6437_v31 = vpop.f32.mrf.mxu1 }
0x1136   : > { %v4050_v20 = vsel %vm14767_vm0, %v4018_v16, 0.0  ;;  %v4085_v3 = vmul.f32 %v6437_v31, %v14769_v0  ;;  %v4213_v55 = vmul.f32 %v6437_v31, %v14776_v10 }
0x1137   : > { %v3981_v29 = vpop.f32.mrf.mxu1 }
0x1147   : > { %4030 = vadd.xlane.f32.xlu0 %v4029_v38  ;;  %v4211_v38 = vmul.f32 %v6434_v5, %v14770_v25 }
0x114b   : > { %4027 = vadd.xlane.f32.xlu0 %v4026_v15  ;;  %v14771_v15 = vld [vmem:[#allocation44_spill] sm:$0xff] }
0x114c   : > { %v4212_v7 = vmul.f32 %v3981_v29, %v14771_v15  ;;  %v14789_v15 = vld [vmem:[#allocation31_spill] sm:$0xff] }
0x1152   : > { %4033 = vadd.xlane.f32.xlu1 %v4032_v8  ;;  %v4019_v8 = vmul.f32 %v7223_v50, %v6434_v5 }
0x1154   : > { %v4053_v45 = vsel %vm14772_vm5, %v4019_v8, 0.0  ;;  %vm14796_vm5 = vmmov %vm14767_vm0 }
0x1161   : > { %4112 = vrot.lane.b32.xlu0 %v4077_v60, %s14723_s5  ;;  %v4020_v60 = vmul.f32 %v7224_v53, %v3981_v29 }
0x1163   : > { %4116 = vrot.lane.b32.xlu1 %v4079_v17, %s14723_s5  ;;  %v4056_v2 = vsel %vm14773_vm8, %v4020_v60, 0.0  ;;  %v6440_v17 = vpop.f32.mrf.mxu1  ;;  %vm14797_vm8 = vmmov %vm14767_vm0 }
0x1164   : > { %v4215_v47 = vmul.f32 %v6440_v17, %v14782_v62 }
0x1165   : > { %4240 = vrot.lane.b32.xlu0 %v4205_v43, %s13937_s27  ;;  %v14775_v43 = vld [vmem:[#allocation26_spill] sm:$0xff] }
0x1166   : > { %v4087_v61 = vmul.f32 %v6440_v17, %v14775_v43 }
0x1167   : > { %4242 = vrot.lane.b32.xlu1 %v4206_v49, %s13937_s27  ;;  %v3991_v49 = vpop.f32.mrf.mxu1 }
0x1169   : > { %v11093_v54 = vpop.f32.mrf.mxu1 }
0x1184   : > { %4036 = vadd.xlane.f32.xlu0 %v4035_v34  ;;  %v14777_v34 = vld [vmem:[#allocation45_spill] sm:$0xff] }
0x1185   : > { %v4214_v51 = vmul.f32 %v3991_v49, %v14777_v34 }
0x118b   : > { %4039 = vadd.xlane.f32.xlu1 %v4038_v24  ;;  %v4021_v24 = vmul.f32 %v7225_v57, %v6437_v31 }
0x118d   : > { %v4059_v37 = vsel %vm14778_vm1, %v4021_v24, 0.0  ;;  %v7229_v24 = vld [vmem:[%s13469_s22 + $0x78] sm:$0xff]  ;;  %vm14798_vm1 = vmmov %vm14767_vm0 }
0x1198   : > { %v11120_v58 = vpop.permute.xlu1 %4106 }
0x119a   : > { %4110 = vrot.lane.b32.xlu0 %v4076_v46, %s14723_s5  ;;  %v4022_v46 = vmul.f32 %v7226_v52, %v3991_v49 }
0x119c   : > { %4120 = vrot.lane.b32.xlu1 %v4081_v6, %s14723_s5  ;;  %v4062_v23 = vsel %vm14779_vm2, %v4022_v46, 0.0  ;;  %v4109_v6 = vpop.permute.xlu0 %4108  ;;  %vm14800_vm2 = vmmov %vm14767_vm0 }
0x119d   : > { %v4157_v27 = vsel %vm14786_vm10, %v4109_v6, 0.0  ;;  %vm14803_vm10 = vmmov %vm14767_vm0 }
0x119e   : > { %4244 = vrot.lane.b32.xlu0 %v4207_v33, %s13937_s27  ;;  %v14780_v33 = vld [vmem:[#allocation29_spill] sm:$0xff] }
0x119f   : > { %v4084_v28 = vmul.f32 %v3981_v29, %v14780_v33  ;;  %v14799_v33 = vld [vmem:[#allocation33_spill] sm:$0xff] }
0x11a0   : > { %4246 = vrot.lane.b32.xlu1 %v4208_v30, %s13937_s27  ;;  %v11091_v14 = vpop.permute.xlu0 %4236  ;;  %v14781_v30 = vld [vmem:[#allocation28_spill] sm:$0xff] }
0x11a1   : > { %v4089_v39 = vmul.f32 %v11093_v54, %v14781_v30 }
0x11bd   : > { %4042 = vadd.xlane.f32.xlu0 %v4041_v59  ;;  %v11101_v59 = vpop.f32.mrf.mxu1 }
0x11c4   : > { %4045 = vadd.xlane.f32.xlu1 %v4044_v22  ;;  %v14783_v22 = vld [vmem:[#allocation46_spill] sm:$0xff] }
0x11c5   : > { %v4216_v5 = vmul.f32 %v11101_v59, %v14783_v22 }
0x11d0   : > { %v11098_v63 = vpop.xlane.xlu0 %4030 }
0x11d3   : > { %4114 = vrot.lane.b32.xlu0 %v4078_v35, %s14723_s5 }
0x11d4   : > { %v11108_v42 = vpop.xlane.xlu0 %4027 }
0x11d5   : > { %4124 = vrot.lane.b32.xlu1 %v4083_v36, %s14723_s5 }
0x11d7   : > { %4248 = vrot.lane.b32.xlu0 %v4209_v12, %s13937_s27  ;;  %v4023_v12 = vmul.f32 %v7227_v26, %v6440_v17 }
0x11d8   : > { %v11111_v35 = vpop.permute.xlu0 %4112 }
0x11d9   : > { %4250 = vrot.lane.b32.xlu1 %v4210_v32, %s13937_s27  ;;  %v4065_v44 = vsel %vm14784_vm7, %v4023_v12, 0.0  ;;  %vm14801_vm7 = vmmov %vm14767_vm0 }
0x11dc   : > { %v11113_v21 = vpop.permute.xlu0 %4240 }
0x11f6   : > { %4048 = vadd.xlane.f32.xlu0 %v4047_v4  ;;  %v4024_v4 = vmul.f32 %v7228_v41, %v11101_v59 }
0x11f8   : > { %v4068_v16 = vsel %vm14785_vm3, %v4024_v4, 0.0  ;;  %vm14802_vm3 = vmmov %vm14767_vm0  ;;  %v4154_v4 = vsel %vm14803_vm10, %v11120_v58, 0.0 }
0x11f9   : > { %vm14816_vm10 = vmmov %vm14767_vm0 }
0x11fd   : > { %4051 = vadd.xlane.f32.xlu1 %v4050_v20  ;;  %v4235_v20 = vpop.permute.xlu1 %4234 }
0x11fe   : > { %v4282_v0 = vsel %vm14787_vm11, %v4235_v20, 0.0  ;;  %vm14804_vm11 = vmmov %vm14767_vm0 }
0x120c   : > { %4118 = vrot.lane.b32.xlu0 %v4080_v48, %s14723_s5  ;;  %v4239_v48 = vpop.permute.xlu1 %4238 }
0x120d   : > { %v11115_v36 = vpop.xlane.xlu0 %4036  ;;  %v4288_v8 = vsel %vm14790_vm15, %v4239_v48, 0.0  ;;  %vm14806_vm15 = vmmov %vm14767_vm0 }
0x120e   : > { %4128 = vrot.lane.b32.xlu1 %v4085_v3, %s14723_s5 }
0x1210   : > { %4252 = vrot.lane.b32.xlu0 %v4211_v38, %s13937_s27  ;;  %v11134_v3 = vpop.xlane.xlu1 %4033 }
0x1211   : > { %v4111_v40 = vpop.permute.xlu0 %4110 }
0x1212   : > { %4254 = vrot.lane.b32.xlu1 %v4212_v7, %s13937_s27  ;;  %v4160_v25 = vsel %vm14788_vm4, %v4111_v40, 0.0  ;;  %v4086_v7 = vmul.f32 %v3991_v49, %v14789_v15  ;;  %vm14805_vm4 = vmmov %vm14767_vm0 }
0x1214   : > { %v4117_v50 = vpop.permute.xlu1 %4116 }
0x1215   : > { %v11122_v32 = vpop.permute.xlu0 %4244  ;;  %v4169_v48 = vsel %vm14806_vm15, %v4117_v50, 0.0 }
0x1218   : > { %v4243_v17 = vpop.permute.xlu1 %4242 }
0x1219   : > { %v4294_v56 = vsel %vm14793_vm9, %v4243_v17, 0.0  ;;  %vm14808_vm9 = vmmov %vm14767_vm0 }
0x121c   : > { %v11159_v46 = vpop.xlane.xlu1 %4039 }
0x122f   : > { %4054 = vadd.xlane.f32.xlu0 %v4053_v45  ;;  %v14791_v45 = vld [vmem:[#allocation47_spill] sm:$0xff] }
0x1230   : > { %v4217_v53 = vmul.f32 %v11093_v54, %v14791_v45 }
0x1236   : > { %4057 = vadd.xlane.f32.xlu1 %v4056_v2 }
0x1245   : > { %4122 = vrot.lane.b32.xlu0 %v4082_v19, %s14723_s5 }
0x1246   : > { %v11129_v9 = vpop.xlane.xlu0 %4042 }
0x1247   : > { %4132 = vrot.lane.b32.xlu1 %v4087_v61, %s14723_s5 }
0x1249   : > { %4256 = vrot.lane.b32.xlu0 %v4213_v55, %s13937_s27 }
0x124a   : > { %v4115_v31 = vpop.permute.xlu0 %4114 }
0x124b   : > { %4258 = vrot.lane.b32.xlu1 %v4214_v51, %s13937_s27  ;;  %v4166_v2 = vsel %vm14792_vm14, %v4115_v31, 0.0  ;;  %v4291_v31 = vsel %vm14805_vm4, %v11113_v21, 0.0  ;;  %vm14807_vm14 = vmmov %vm14767_vm0 }
0x124e   : > { %v4249_v29 = vpop.permute.xlu0 %4248 }
0x124f   : > { %v4303_v43 = vsel %vm14794_vm12, %v4249_v29, 0.0  ;;  %vm14809_vm12 = vmmov %vm14767_vm0 }
0x1268   : > { %4060 = vadd.xlane.f32.xlu0 %v4059_v37  ;;  %v4025_v37 = vmul.f32 %v7229_v24, %v11093_v54 }
0x126a   : > { %v4071_v52 = vsel %vm14798_vm1, %v4025_v37, 0.0  ;;  %vm14814_vm1 = vmmov %vm14767_vm0 }
0x126f   : > { %4063 = vadd.xlane.f32.xlu1 %v4062_v23  ;;  %v4121_v23 = vpop.permute.xlu1 %4120 }
0x1270   : > { %v4175_v58 = vsel %vm14808_vm9, %v4121_v23, 0.0 }
0x1273   : > { %v4247_v6 = vpop.permute.xlu1 %4246 }
0x1274   : > { %v4300_v21 = vsel %vm14809_vm12, %v4247_v6, 0.0 }
0x1277   : > { %v11164_v30 = vpop.xlane.xlu1 %4045 }
0x127b   : > { %v4125_v54 = vpop.permute.xlu1 %4124 }
0x127e   : > { %4126 = vrot.lane.b32.xlu0 %v4084_v28, %s14723_s5  ;;  %v4088_v28 = vmul.f32 %v11101_v59, %v14799_v33 }
0x127f   : > { %v11137_v38 = vpop.xlane.xlu0 %4048  ;;  %v4251_v40 = vpop.permute.xlu1 %4250 }
0x1280   : > { %4136 = vrot.lane.b32.xlu1 %v4089_v39, %s14723_s5 }
0x1282   : > { %4260 = vrot.lane.b32.xlu0 %v4215_v47, %s13937_s27 }
0x1283   : > { %v4119_v60 = vpop.permute.xlu0 %4118 }
0x1284   : > { %4262 = vrot.lane.b32.xlu1 %v4216_v5, %s13937_s27  ;;  %v4172_v49 = vsel %vm14795_vm6, %v4119_v60, 0.0  ;;  %vm14810_vm6 = vmmov %vm14767_vm0 }
0x1286   : > { %v11170_v26 = vpop.xlane.xlu1 %4051 }
0x1287   : > { %v4253_v19 = vpop.permute.xlu0 %4252 }
0x1288   : > { %v4309_v55 = vsel %vm14767_vm0, %v4253_v19, 0.0 }
0x128a   : > { %v4129_v12 = vpop.permute.xlu1 %4128 }
0x128b   : > { %v4187_v17 = vsel %vm14814_vm1, %v4129_v12, 0.0 }
0x128e   : > { %v4255_v59 = vpop.permute.xlu1 %4254 }
0x12a1   : > { %4066 = vadd.xlane.f32.xlu0 %v4065_v44  ;;  %v4285_v44 = vsel %vm14802_vm3, %v11091_v14, 0.0 }
0x12a8   : > { %4069 = vadd.xlane.f32.xlu1 %v4068_v16  ;;  %v4163_v16 = vsel %vm14804_vm11, %v11111_v35, 0.0 }
0x12ac   : > { %4158 = vadd.xlane.f32.xlu1 %v4157_v27 }
0x12b0   : > { %4283 = vadd.xlane.f32.xlu1 %v4282_v0  ;;  %v4297_v0 = vsel %vm14807_vm14, %v11122_v32, 0.0 }
0x12b4   : > { %4161 = vadd.xlane.f32.xlu1 %v4160_v25 }
0x12b7   : > { %4130 = vrot.lane.b32.xlu0 %v4086_v7, %s14723_s5  ;;  %v4181_v7 = vsel %vm14810_vm6, %v4125_v54, 0.0  ;;  %vm14821_vm6 = vmmov %vm14767_vm0 }
0x12b8   : > { %4289 = vadd.xlane.f32.xlu1 %v4288_v8  ;;  %v11148_v61 = vpop.xlane.xlu0 %4054 }
0x12bb   : > { %4264 = vrot.lane.b32.xlu0 %v4217_v53, %s13937_s27  ;;  %s6197_s27 = sshll.u32 %s7475_s7, 7  ;;  %s7323_s7 = smov [#allocation2]  }
0x12bc   : > { %4167 = vadd.xlane.f32.xlu1 %v4166_v2  ;;  %v4123_v10 = vpop.permute.xlu0 %4122 }
0x12bd   : > { %v4178_v34 = vsel %vm14796_vm5, %v4123_v10, 0.0  ;;  %vm14812_vm5 = vmmov %vm14767_vm0 }
0x12be   : > { %v4306_v45 = vsel %vm14812_vm5, %v4251_v40, 0.0 }
0x12bf   : > { %v11174_v41 = vpop.xlane.xlu1 %4057 }
0x12c0   : > { %4295 = vadd.xlane.f32.xlu1 %v4294_v56  ;;  %v4257_v51 = vpop.permute.xlu0 %4256  ;;  %v11205_v56 = vfloor.f32 %v11134_v3 }
0x12c1   : > { %v4315_v57 = vsel %vm14797_vm8, %v4257_v51, 0.0  ;;  %vm14813_vm8 = vmmov %vm14767_vm0 }
0x12c2   : > { %v4364_v10 = vadd.f32 1.0, %v11205_v56  ;;  %vm4476_vm3 = vcmp.le.f32.partialorder %v11205_v56, 15.0 }
0x12c3   : > { %v4133_v20 = vpop.permute.xlu1 %4132 }
0x12c4   : > { %4304 = vadd.xlane.f32.xlu1 %v4303_v43  ;;  %v4193_v51 = vsel %vm14816_vm10, %v4133_v20, 0.0  ;;  %vm4508_vm11 = vcmp.ge.f32.partialorder %v4364_v10, 0.0  ;;  %vm4524_vm4 = vcmp.le.f32.partialorder %v4364_v10, 15.0 }
0x12c5   : > { %vm11231_vm9 = vmand %vm4508_vm11, %vm4524_vm4 }
0x12c7   : > { %v4259_v27 = vpop.permute.xlu1 %4258 }
0x12c8   : > { %4173 = vadd.xlane.f32.xlu1 %v4172_v49 }
0x12cc   : > { %4310 = vadd.xlane.f32.xlu1 %v4309_v55  ;;  %v4396_v55 = vsub.f32 %v11134_v3, %v11205_v56  ;;  %v11229_v3 = vfloor.f32 %v11159_v46 }
0x12ce   : > { %v4412_v23 = vsub.f32 1.0, %v4396_v55  ;;  %v4366_v40 = vadd.f32 1.0, %v11229_v3  ;;  %v4398_v20 = vsub.f32 %v11159_v46, %v11229_v3  ;;  %vm4462_vm11 = vcmp.ge.f32.partialorder %v11229_v3, 0.0 }
0x12d0   : > { %4179 = vadd.xlane.f32.xlu1 %v4178_v34 }
0x12d4   : > { %4316 = vadd.xlane.f32.xlu1 %v4315_v57 }
0x12da   : > { %4072 = vadd.xlane.f32.xlu0 %v4071_v52 }
0x12f0   : > { %4134 = vrot.lane.b32.xlu0 %v4088_v28, %s14723_s5  ;;  %v4318_v28 = vsel %vm14821_vm6, %v4259_v27, 0.0  ;;  %s15288_s5 = sld [smem:[#allocation186_spill]] }
0x12f1   : > { %v11166_v39 = vpop.xlane.xlu0 %4060 }
0x12f5   : > { %v4127_v62 = vpop.permute.xlu0 %4126 }
0x12f6   : > { %v4184_v47 = vsel %vm14800_vm2, %v4127_v62, 0.0  ;;  %vm14815_vm2 = vmmov %vm14767_vm0  ;;  %s6020_s3 = scalar_lea.hbm %s15288_s5, %s6197_s27 }
0x12f7   : > { %4185 = vadd.xlane.f32.xlu1 %v4184_v47  ;;  %v4312_v49 = vsel %vm14815_vm2, %v4255_v59, 0.0 }
0x12f8   : > { %v11183_v14 = vpop.xlane.xlu1 %4063 }
0x12f9   : > { %v4261_v22 = vpop.permute.xlu0 %4260 }
0x12fa   : > { %v4321_v5 = vsel %vm14801_vm7, %v4261_v22, 0.0  ;;  %vm4460_vm7 = vcmp.ge.f32.partialorder %v11205_v56, 0.0 }
0x12fb   : > { %4322 = vadd.xlane.f32.xlu1 %v4321_v5  ;;  %vm11223_vm15 = vmand %vm4460_vm7, %vm4476_vm3 }
0x12fc   : > { %v11188_v29 = vpop.permute.xlu1 %4136  ;;  %vm14826_vm3 = vmmov %vm14821_vm6 }
0x1300   : > { %v11193_v25 = vpop.permute.xlu1 %4262 }
0x130f   : > { %4286 = vadd.xlane.f32.xlu0 %v4285_v44 }
0x1313   : > { %4155 = vadd.xlane.f32.xlu0 %v4154_v4 }
0x1317   : > { %4164 = vadd.xlane.f32.xlu0 %v4163_v16 }
0x131b   : > { %4292 = vadd.xlane.f32.xlu0 %v4291_v31  ;;  %v4199_v31 = vsel %vm14826_vm3, %v11188_v29, 0.0 }
0x131f   : > { %4170 = vadd.xlane.f32.xlu0 %v4169_v48 }
0x1323   : > { %4298 = vadd.xlane.f32.xlu0 %v4297_v0 }
0x1327   : > { %4176 = vadd.xlane.f32.xlu0 %v4175_v58 }
0x132a   : > { %v11190_v35 = vpop.xlane.xlu0 %4066 }
0x132b   : > { %4301 = vadd.xlane.f32.xlu0 %v4300_v21 }
0x132e   : > { %v4131_v15 = vpop.permute.xlu0 %4130 }
0x132f   : > { %v4190_v50 = vsel %vm14767_vm0, %v4131_v15, 0.0  ;;  %4182 = vadd.xlane.f32.xlu0 %v4181_v7 }
0x1330   : > { %4191 = vadd.xlane.f32.xlu1 %v4190_v50  ;;  %v4414_v50 = vsub.f32 1.0, %v4398_v20 }
0x1331   : > { %v11197_v32 = vpop.xlane.xlu1 %4069 }
0x1332   : > { %14811 = vst [vmem:[#allocation60_spill] sm:$0xff] %v11197_v32  ;;  %v4265_v8 = vpop.permute.xlu0 %4264 }
0x1333   : > { %v4327_v53 = vsel %vm14813_vm8, %v4265_v8, 0.0  ;;  %4307 = vadd.xlane.f32.xlu0 %v4306_v45  ;;  %v11357_v45 = vfloor.f32 %v11129_v9 }
0x1334   : > { %4328 = vadd.xlane.f32.xlu1 %v4327_v53 }
0x1335   : > { %v4159_v60 = vpop.xlane.xlu1 %4158 }
0x1336   : > { %v11201_v2 = vfloor.f32 %v4159_v60 }
0x1337   : > { %4188 = vadd.xlane.f32.xlu0 %v4187_v17 }
0x1338   : > { %v11208_v19 = vsub.f32 %v4159_v60, %v11201_v2  ;;  %v4875_v53 = vmul.f32 16.0, %v11201_v2 }
0x1339   : > { %v11210_v43 = vpop.xlane.xlu1 %4283 }
0x133b   : > { %4313 = vadd.xlane.f32.xlu0 %v4312_v49 }
0x133d   : > { %v4162_v34 = vpop.xlane.xlu1 %4161 }
0x133e   : > { %v11219_v57 = vfloor.f32 %v4162_v34 }
0x133f   : > { %4194 = vadd.xlane.f32.xlu0 %v4193_v51 }
0x1340   : > { %v4428_v24 = vsub.f32 %v4162_v34, %v11219_v57  ;;  %v4380_v37 = vadd.f32 1.0, %v11219_v57  ;;  %vm4556_vm14 = vcmp.ge.f32.partialorder %v11219_v57, 0.0  ;;  %vm4572_vm12 = vcmp.le.f32.partialorder %v11219_v57, 15.0 }
0x1341   : > { %v4290_v33 = vpop.xlane.xlu1 %4289  ;;  %vm11237_vm0 = vmand %vm4556_vm14, %vm4572_vm12  ;;  %vm4478_vm14 = vcmp.le.f32.partialorder %v11229_v3, 15.0  ;;  %vm4526_vm12 = vcmp.le.f32.partialorder %v4366_v40, 15.0 }
0x1342   : > { %v4444_v62 = vsub.f32 1.0, %v4428_v24  ;;  %vm4604_vm5 = vcmp.ge.f32.partialorder %v4380_v37, 0.0  ;;  %vm4620_vm8 = vcmp.le.f32.partialorder %v4380_v37, 15.0  ;;  %v4652_v22 = vmul.f32 %v4412_v23, %v4290_v33  ;;  %vm4684_vm2 = vmand %vm11223_vm15, %vm11237_vm0 }
0x1343   : > { %vm11241_vm1 = vmand %vm4604_vm5, %vm4620_vm8  ;;  %v4668_v5 = vmul.f32 %v4396_v55, %v4290_v33  ;;  %4319 = vadd.xlane.f32.xlu0 %v4318_v28  ;;  %v11315_v33 = vfloor.f32 %v11166_v39 }
0x1344   : > { %vm4732_vm7 = vmand %vm11231_vm9, %vm11237_vm0  ;;  %v4700_v12 = vmul.f32 %v4652_v22, %v4444_v62  ;;  %v4796_v44 = vmul.f32 %v4652_v22, %v4428_v24 }
0x1345   : > { %v4748_v59 = vmul.f32 %v4668_v5, %v4444_v62  ;;  %v4844_v4 = vmul.f32 %v4668_v5, %v4428_v24  ;;  %v4168_v16 = vpop.xlane.xlu1 %4167  ;;  %vm4780_vm10 = vmand %vm11223_vm15, %vm11241_vm1  ;;  %vm4510_vm15 = vcmp.ge.f32.partialorder %v4366_v40, 0.0  ;;  %v4405_v47 = vsub.f32 %v11166_v39, %v11315_v33 }
0x1346   : > { %v11262_v27 = vfloor.f32 %v4168_v16  ;;  %vm4828_vm4 = vmand %vm11231_vm9, %vm11241_vm1  ;;  %v11269_v48 = vsel %vm4684_vm2, %v4700_v12, 0.0  ;;  %v11273_v0 = vsel %vm4780_vm10, %v4796_v44, 0.0  ;;  %v11337_v39 = vfloor.f32 %v11190_v35 }
0x1347   : > { %14827 = vst [vmem:[#allocation79_spill] sm:$0xff] %v11269_v48  ;;  %v11271_v46 = vsel %vm4732_vm7, %v4748_v59, 0.0  ;;  %14829 = vst [vmem:[#allocation65_spill] sm:$0xff] %v11273_v0  ;;  %4200 = vadd.xlane.f32.xlu0 %v4199_v31  ;;  %v11276_v58 = vsel %vm4828_vm4, %v4844_v4, 0.0  ;;  %v4421_v40 = vsub.f32 1.0, %v4405_v47  ;;  %v11340_v31 = vfloor.f32 %v11098_v63 }
0x1348   : > { %14828 = vst [vmem:[#allocation69_spill] sm:$0xff] %v11271_v46  ;;  %14830 = vst [vmem:[#allocation74_spill] sm:$0xff] %v11276_v58  ;;  %v4430_v29 = vsub.f32 %v4168_v16, %v11262_v27  ;;  %v4382_v21 = vadd.f32 1.0, %v11262_v27  ;;  %vm4558_vm0 = vcmp.ge.f32.partialorder %v11262_v27, 0.0  ;;  %vm4574_vm8 = vcmp.le.f32.partialorder %v11262_v27, 15.0 }
0x1349   : > { %v4296_v15 = vpop.xlane.xlu1 %4295  ;;  %vm14831_vm9 = vmmov %vm14826_vm3  ;;  %14843 = vst [vmem:[#allocation78_spill] sm:$0xff] %v11337_v39 }
0x134a   : > { %v4324_v7 = vsel %vm14831_vm9, %v11193_v25, 0.0  ;;  %v4446_v8 = vsub.f32 1.0, %v4430_v29  ;;  %vm11284_vm6 = vmand %vm4462_vm11, %vm4478_vm14  ;;  %vm4606_vm1 = vcmp.ge.f32.partialorder %v4382_v21, 0.0  ;;  %vm4622_vm2 = vcmp.le.f32.partialorder %v4382_v21, 15.0 }
0x134b   : > { %vm11289_vm5 = vmand %vm4510_vm15, %vm4526_vm12  ;;  %4325 = vadd.xlane.f32.xlu0 %v4324_v7  ;;  %v4654_v25 = vmul.f32 %v4414_v50, %v4296_v15  ;;  %v4670_v60 = vmul.f32 %v4398_v20, %v4296_v15  ;;  %v11346_v21 = vsub.f32 %v11098_v63, %v11340_v31  ;;  %v11349_v15 = vfloor.f32 %v11108_v42 }
0x134c   : > { %vm4590_vm7 = vmand %vm4558_vm0, %vm4574_vm8  ;;  %v11352_v7 = vfloor.f32 %v11115_v36  ;;  %v11364_v63 = vfloor.f32 %v11164_v30  ;;  %vm4459_vm12 = vcmp.ge.f32.partialorder %v11340_v31, 0.0  ;;  %vm4571_vm8 = vcmp.le.f32.partialorder %v11201_v2, 15.0 }
0x134d   : > { %vm4638_vm3 = vmand %vm4606_vm1, %vm4622_vm2  ;;  %v11294_v17 = vpop.xlane.xlu1 %4304  ;;  %v4702_v49 = vmul.f32 %v4654_v25, %v4446_v8  ;;  %v4750_v10 = vmul.f32 %v4670_v60, %v4446_v8  ;;  %v4798_v55 = vmul.f32 %v4654_v25, %v4430_v29  ;;  %v4846_v34 = vmul.f32 %v4670_v60, %v4430_v29 }
0x134e   : > { %vm4686_vm10 = vmand %vm11284_vm6, %vm4590_vm7  ;;  %v4407_v29 = vsub.f32 %v11190_v35, %v11337_v39  ;;  %v11361_v35 = vadd.f32 1.0, %v11340_v31  ;;  %v4876_v25 = vmul.f32 16.0, %v11219_v57  ;;  %v11382_v57 = vfloor.f32 %v11170_v26 }
0x134f   : > { %vm4734_vm11 = vmand %vm11289_vm5, %vm4590_vm7  ;;  %v11302_v51 = vsel %vm4686_vm10, %v4702_v49, 0.0  ;;  %v11413_v18 = vadd.f32 1.0, %v11352_v7 }
0x1350   : > { %vm4782_vm4 = vmand %vm11284_vm6, %vm4638_vm3  ;;  %14836 = vst [vmem:[#allocation92_spill] sm:$0xff] %v11302_v51  ;;  %v11304_v24 = vsel %vm4734_vm11, %v4750_v10, 0.0  ;;  %v4423_v49 = vsub.f32 1.0, %v4407_v29  ;;  %v4394_v10 = vsub.f32 %v11108_v42, %v11349_v15  ;;  %v11390_v42 = vsub.f32 %v11129_v9, %v11357_v45 }
0x1351   : > { %14837 = vst [vmem:[#allocation80_spill] sm:$0xff] %v11304_v24  ;;  %vm4830_vm14 = vmand %vm11289_vm5, %vm4638_vm3  ;;  %v11308_v37 = vsel %vm4782_vm4, %v4798_v55, 0.0  ;;  %v4174_v52 = vpop.xlane.xlu1 %4173  ;;  %v11374_v55 = vsub.f32 %v11115_v36, %v11352_v7  ;;  %v11393_v36 = vfloor.f32 %v11148_v61  ;;  %v11409_v9 = vfloor.f32 %v11183_v14 }
0x1352   : > { %14838 = vst [vmem:[#allocation81_spill] sm:$0xff] %v11308_v37  ;;  %v11310_v23 = vsel %vm4830_vm14, %v4846_v34, 0.0  ;;  %v11312_v6 = vfloor.f32 %v4174_v52  ;;  %vm14842_vm15 = vmmov %vm14831_vm9  ;;  %v4878_v34 = vmul.f32 16.0, %v11262_v27  ;;  %v11396_v27 = vfloor.f32 %v11174_v41 }
0x1353   : > { %14839 = vst [vmem:[#allocation87_spill] sm:$0xff] %v11310_v23  ;;  %v11429_v23 = vsub.f32 %v11148_v61, %v11393_v36  ;;  %vm4475_vm9 = vcmp.le.f32.partialorder %v11340_v31, 15.0  ;;  %v11445_v24 = vsub.f32 %v11183_v14, %v11409_v9  ;;  %v11455_v37 = vadd.f32 1.0, %v11382_v57 }
0x1354   : > { %v11318_v28 = vsub.f32 %v4174_v52, %v11312_v6  ;;  %v11459_v14 = vadd.f32 1.0, %v11393_v36  ;;  %v11463_v0 = vadd.f32 1.0, %v11396_v27  ;;  %v11467_v32 = vadd.f32 1.0, %v11409_v9  ;;  %vm11503_vm0 = vmand %vm4459_vm12, %vm4475_vm9 }
0x1355   : > { %v11320_v62 = vpop.xlane.xlu1 %4310  ;;  %14848 = vst [vmem:[#allocation95_spill] sm:$0xff] %v11445_v24  ;;  %vm4555_vm5 = vcmp.ge.f32.partialorder %v11201_v2, 0.0  ;;  %vm4477_vm6 = vcmp.le.f32.partialorder %v11352_v7, 15.0  ;;  %vm14862_vm9 = vcmp.le.f32.partialorder %v11361_v35, 15.0 }
0x1356   : > { %14850 = vst [vmem:[#allocation117_spill] sm:$0xff] %v11459_v14  ;;  %vm11539_vm12 = vmand %vm4555_vm5, %vm4571_vm8  ;;  %vm14863_vm5 = vcmp.ge.f32.partialorder %v11361_v35, 0.0  ;;  %v11578_v35 = vadd.f32 1.0, %v11312_v6 }
0x1357   : > { %vm11561_vm8 = vmand %vm14863_vm5, %vm14862_vm9 }
0x1359   : > { %v4180_v54 = vpop.xlane.xlu1 %4179 }
0x135a   : > { %v11324_v22 = vfloor.f32 %v4180_v54 }
0x135c   : > { %v11327_v5 = vsub.f32 %v4180_v54, %v11324_v22  ;;  %v11379_v54 = vfloor.f32 %v11137_v38  ;;  %v4882_v58 = vmul.f32 16.0, %v11324_v22 }
0x135d   : > { %v4317_v12 = vpop.xlane.xlu1 %4316 }
0x135e   : > { %v11329_v59 = vmul.f32 %v4421_v40, %v4317_v12  ;;  %v11331_v44 = vmul.f32 %v4405_v47, %v4317_v12  ;;  %v4894_v47 = vadd.f32 %v4878_v34, %v11229_v3  ;;  %v11433_v3 = vsub.f32 %v11174_v41, %v11396_v27 }
0x135f   : > { %v4898_v14 = vadd.f32 %v4882_v58, %v11382_v57  ;;  %v4443_v58 = vsub.f32 1.0, %v11208_v19  ;;  %vm14932_vm13 = vcmp.le.f32.partialorder %v11379_v54, 15.0 }
0x1360   : > { %14840 = vst [vmem:[#allocation105_spill] sm:$0xff] %v11329_v59  ;;  %14841 = vst [vmem:[#allocation101_spill] sm:$0xff] %v11331_v44  ;;  %v6564_v41 = vtrunc.f32 %v4894_v47  ;;  %v4419_v47 = vsub.f32 1.0, %v11429_v23  ;;  %v11582_v44 = vmul.f32 %v11429_v23, %v11320_v62  ;;  %v14868_v59 = vsub.f32 1.0, %v11346_v21 }
0x1361   : > { %14847 = vst [vmem:[#allocation98_spill] sm:$0xff] %v11433_v3 }
0x1363   : > { %v11333_v4 = vpop.xlane.xlu0 %4072 }
0x1367   : > { %v4135_v16 = vpop.permute.xlu0 %4134 }
0x1368   : > { %v4196_v20 = vsel %vm14842_vm15, %v4135_v16, 0.0  ;;  %v4891_v16 = vadd.f32 %v4875_v53, %v11340_v31  ;;  %v11439_v53 = vadd.f32 1.0, %v11364_v63  ;;  %vm4461_vm15 = vcmp.ge.f32.partialorder %v11352_v7, 0.0 }
0x1369   : > { %4197 = vadd.xlane.f32.xlu1 %v4196_v20  ;;  %v11401_v20 = vsub.f32 %v11164_v30, %v11364_v63  ;;  %v11417_v30 = vsub.f32 %v11137_v38, %v11379_v54 }
0x136a   : > { %v6558_v38 = vtrunc.f32 %v4891_v16  ;;  %v11451_v16 = vadd.f32 1.0, %v11379_v54 }
0x136c   : > { %14849 = vst [vmem:[#allocation115_spill] sm:$0xff] %v11451_v16  ;;  %v11470_v16 = vadd.f32 1.0, %v11315_v33 }
0x136e   : > { %14851 = vst [vmem:[#allocation137_spill] sm:$0xff] %v11470_v16  ;;  %v11555_v16 = vmul.f32 %v11417_v30, %v11294_v17 }
0x1380   : > { %v4186_v50 = vpop.xlane.xlu1 %4185 }
0x1381   : > { %v11354_v8 = vfloor.f32 %v4186_v50 }
0x1383   : > { %v11368_v60 = vsub.f32 %v4186_v50, %v11354_v8  ;;  %v4892_v50 = vadd.f32 %v4876_v25, %v11205_v56  ;;  %v11421_v56 = vsub.f32 %v11170_v26, %v11382_v57  ;;  %v11425_v25 = vadd.f32 1.0, %v11357_v45 }
0x1384   : > { %v4323_v52 = vpop.xlane.xlu1 %4322  ;;  %v6559_v26 = vcvt.f32.s32 %v6558_v38 }
0x1385   : > { %14844 = vst [vmem:[#allocation109_spill] sm:$0xff] %v11368_v60  ;;  %v11384_v40 = vmul.f32 %v4423_v49, %v4323_v52  ;;  %v11386_v12 = vmul.f32 %v4407_v29, %v4323_v52  ;;  %v4880_v29 = vmul.f32 16.0, %v11312_v6  ;;  %v11406_v49 = vadd.f32 1.0, %v11349_v15 }
0x1386   : > { %v4410_v52 = vsub.f32 1.0, %v4394_v10  ;;  %v6560_v34 = vtrunc.f32 %v4892_v50  ;;  %v4417_v50 = vsub.f32 1.0, %v11417_v30  ;;  %vm4924_vm1 = vcmp.eq.s32.totalorder %v14469_v11, %v6559_v26 }
0x1387   : > { %14845 = vst [vmem:[#allocation89_spill] sm:$0xff] %v11384_v40  ;;  %14846 = vst [vmem:[#allocation91_spill] sm:$0xff] %v11386_v12  ;;  %v4896_v61 = vadd.f32 %v4880_v29, %v11364_v63  ;;  %v6565_v29 = vcvt.f32.s32 %v6564_v41  ;;  %v4884_v12 = vmul.f32 16.0, %v11354_v8  ;;  %v4379_v40 = vadd.f32 1.0, %v11201_v2 }
0x1388   : > { %v6561_v51 = vcvt.f32.s32 %v6560_v34  ;;  %v11479_v34 = vadd.f32 1.0, %v11337_v39  ;;  %v11485_v41 = vmul.f32 %v4394_v10, %v11210_v43  ;;  %vm4925_vm2 = vcmp.eq.s32.totalorder %v14706_v1, %v6559_v26 }
0x1389   : > { %v6568_v48 = vtrunc.f32 %v4896_v61  ;;  %v11482_v61 = vmul.f32 %v4410_v52, %v11210_v43  ;;  %vm4930_vm4 = vcmp.eq.s32.totalorder %v14469_v11, %v6565_v29  ;;  %vm4931_vm14 = vcmp.eq.s32.totalorder %v14706_v1, %v6565_v29 }
0x138a   : > { %14852 = vst [vmem:[#allocation136_spill] sm:$0xff] %v11479_v34  ;;  %vm4926_vm7 = vcmp.eq.s32.totalorder %v14469_v11, %v6561_v51  ;;  %vm4927_vm3 = vcmp.eq.s32.totalorder %v14706_v1, %v6561_v51  ;;  %v6572_v43 = vtrunc.f32 %v4898_v14  ;;  %v4900_v10 = vadd.f32 %v4884_v12, %v11396_v27 }
0x138b   : > { %v6569_v38 = vcvt.f32.s32 %v6568_v48  ;;  %vm4603_vm10 = vcmp.ge.f32.partialorder %v4379_v40, 0.0  ;;  %vm4619_vm11 = vcmp.le.f32.partialorder %v4379_v40, 15.0  ;;  %v11510_v48 = vsel %vm4924_vm1, 1.0, %v14698_v13 }
0x138c   : > { %v11515_v12 = vsel %vm4925_vm2, 1.0, %v14698_v13  ;;  %v11522_v31 = vsel %vm4926_vm7, 1.0, %v14698_v13  ;;  %v11527_v14 = vsel %vm4927_vm3, 1.0, %v14698_v13  ;;  %v11530_v46 = vmul.f32 %v4417_v50, %v11294_v17  ;;  %vm11573_vm3 = vmand %vm4603_vm10, %vm4619_vm11 }
0x138d   : > { %14855 = vst [vmem:[#allocation113_spill] sm:$0xff] %v11522_v31  ;;  %14856 = vst [vmem:[#allocation93_spill] sm:$0xff] %v11527_v14  ;;  %v11533_v26 = vfloor.f32 %v11333_v4  ;;  %v11546_v51 = vsel %vm4930_vm4, 1.0, %v14698_v13  ;;  %v11551_v50 = vsel %vm4931_vm14, 1.0, %v14698_v13  ;;  %vm4509_vm1 = vcmp.ge.f32.partialorder %v11413_v18, 0.0 }
0x138e   : > { %14860 = vst [vmem:[#allocation96_spill] sm:$0xff] %v11546_v51  ;;  %14861 = vst [vmem:[#allocation97_spill] sm:$0xff] %v11551_v50  ;;  %vm4525_vm2 = vcmp.le.f32.partialorder %v11413_v18, 15.0  ;;  %vm4934_vm7 = vcmp.eq.s32.totalorder %v14469_v11, %v6569_v38  ;;  %v11569_v29 = vmul.f32 %v4419_v47, %v11320_v62  ;;  %v6573_v30 = vcvt.f32.s32 %v6572_v43 }
0x138f   : > { %14857 = vst [vmem:[#allocation85_spill] sm:$0xff] %v11533_v26  ;;  %v6576_v50 = vtrunc.f32 %v4900_v10  ;;  %vm4683_vm10 = vmand %vm11503_vm0, %vm11539_vm12  ;;  %vm4935_vm11 = vcmp.eq.s32.totalorder %v14706_v1, %v6569_v38  ;;  %v11594_v40 = vsub.f32 %v11333_v4, %v11533_v26  ;;  %v11605_v62 = vadd.f32 1.0, %v11324_v22 }
0x1390   : > { %vm4731_vm4 = vmand %vm11561_vm8, %vm11539_vm12  ;;  %v11618_v10 = vsel %vm4935_vm11, 1.0, %v14698_v13  ;;  %vm4938_vm5 = vcmp.eq.s32.totalorder %v14469_v11, %v6573_v30  ;;  %vm14875_vm12 = vcmp.ge.f32.partialorder %v11349_v15, 0.0  ;;  %v14876_v34 = vmov 0 }
0x1391   : > { %vm4779_vm14 = vmand %vm11503_vm0, %vm11573_vm3  ;;  %vm14874_vm0 = vcmp.le.f32.partialorder %v11349_v15, 15.0 }
0x1392   : > { %vm4827_vm9 = vmand %vm11561_vm8, %vm11573_vm3 }
0x1393   : > { %vm11652_vm8 = vmand %vm14875_vm12, %vm14874_vm0 }
0x1394   : > { %v14877_v34 = vsel %vm11652_vm8, 4294967295, %v14876_v34 }
0x1398   : > { %v4287_v24 = vpop.xlane.xlu0 %4286 }
0x1399   : > { %v4651_v47 = vmul.f32 %v14868_v59, %v4287_v24  ;;  %v4667_v3 = vmul.f32 %v11346_v21, %v4287_v24  ;;  %v11602_v24 = vsel %vm4934_vm7, 1.0, %v14698_v13  ;;  %vm4939_vm7 = vcmp.eq.s32.totalorder %v14706_v1, %v6573_v30 }
0x139b   : > { %v4699_v59 = vmul.f32 %v4651_v47, %v4443_v58  ;;  %v4747_v21 = vmul.f32 %v4667_v3, %v4443_v58  ;;  %v4795_v4 = vmul.f32 %v4651_v47, %v11208_v19  ;;  %v4843_v38 = vmul.f32 %v4667_v3, %v11208_v19 }
0x139c   : > { %v4156_v43 = vpop.xlane.xlu0 %4155  ;;  %v11622_v58 = vcvt.f32.s32 %v6576_v50 }
0x139d   : > { %v4715_v19 = vsel %vm4683_vm10, %v4699_v59, 0.0  ;;  %v11634_v3 = vsel %vm4731_vm4, %v4747_v21, 0.0  ;;  %v11636_v17 = vsel %vm4779_vm14, %v4795_v4, 0.0  ;;  %v11638_v47 = vsel %vm4827_vm9, %v4843_v38, 0.0 }
0x139e   : > { %14869 = vst [vmem:[#allocation127_spill] sm:$0xff] %v11634_v3  ;;  %14870 = vst [vmem:[#allocation106_spill] sm:$0xff] %v11636_v17  ;;  %v11643_v52 = vmul.f32 %v11510_v48, %v4715_v19  ;;  %v11646_v50 = vmul.f32 %v11515_v12, %v4715_v19  ;;  %v11656_v2 = vfloor.f32 %v4156_v43  ;;  %v11660_v59 = vsel %vm4938_vm5, 1.0, %v14698_v13 }
0x139f   : > { %14871 = vst [vmem:[#allocation122_spill] sm:$0xff] %v11638_v47  ;;  %14878 = vst [vmem:[#allocation52_spill] sm:$0xff] %v11660_v59  ;;  %v11663_v21 = vsel %vm4939_vm7, 1.0, %v14698_v13  ;;  %v11667_v38 = vadd.f32 1.0, %v11354_v8  ;;  %vm14880_vm10 = vcmp.le.f32.partialorder %v11406_v49, 15.0  ;;  %vm14881_vm4 = vcmp.ge.f32.partialorder %v11406_v49, 0.0 }
0x13a0   : > { %14872 = vst [vmem:[#allocation108_spill] sm:$0xff] %v11643_v52  ;;  %14873 = vst [vmem:[#allocation126_spill] sm:$0xff] %v11646_v50  ;;  %v14882_v19 = vmov 0  ;;  %v4426_v30 = vsub.f32 %v4156_v43, %v11656_v2  ;;  %vm4554_vm9 = vcmp.ge.f32.partialorder %v11656_v2, 0.0  ;;  %vm4570_vm5 = vcmp.le.f32.partialorder %v11656_v2, 15.0  ;;  %v4165_v4 = vpop.xlane.xlu0 %4164 }
0x13a1   : > { %14879 = vst [vmem:[#allocation110_spill] sm:$0xff] %v11663_v21  ;;  %vm11673_vm14 = vmand %vm14881_vm4, %vm14880_vm10  ;;  %v4874_v23 = vmul.f32 16.0, %v11656_v2  ;;  %v4349_v43 = vfloor.f32 %v4165_v4 }
0x13a2   : > { %v14883_v19 = vsel %vm11673_vm14, 4294967295, %v14882_v19  ;;  %vm11685_vm7 = vmand %vm4461_vm15, %vm4477_vm6  ;;  %vm4942_vm6 = vcmp.eq.s32.totalorder %v14469_v11, %v11622_v58  ;;  %v4442_v50 = vsub.f32 1.0, %v4426_v30  ;;  %v11703_v52 = vmul.f32 %v11482_v61, %v4426_v30 }
0x13a3   : > { %vm11691_vm10 = vmand %vm4554_vm9, %vm4570_vm5  ;;  %v11706_v3 = vmul.f32 %v11485_v41, %v4426_v30  ;;  %v4890_v17 = vadd.f32 %v4874_v23, %v11349_v15  ;;  %v4429_v18 = vsub.f32 %v4165_v4, %v4349_v43  ;;  %v4877_v30 = vmul.f32 16.0, %v4349_v43 }
0x13a4   : > { %14888 = vst [vmem:[#allocation114_spill] sm:$0xff] %v11703_v52  ;;  %vm11712_vm9 = vmand %vm4509_vm1, %vm4525_vm2  ;;  %vm4557_vm1 = vcmp.ge.f32.partialorder %v4349_v43, 0.0  ;;  %v4698_v15 = vmul.f32 %v11482_v61, %v4442_v50  ;;  %v4746_v23 = vmul.f32 %v11485_v41, %v4442_v50  ;;  %vm4573_vm3 = vcmp.le.f32.partialorder %v4349_v43, 15.0  ;;  %v4293_v52 = vpop.xlane.xlu0 %4292 }
0x13a5   : > { %14889 = vst [vmem:[#allocation128_spill] sm:$0xff] %v11706_v3  ;;  %vm4682_vm12 = vmand %vm11652_vm8, %vm11691_vm10  ;;  %v4381_v3 = vadd.f32 1.0, %v4349_v43  ;;  %v6556_v60 = vtrunc.f32 %v4890_v17  ;;  %v4445_v4 = vsub.f32 1.0, %v4429_v18  ;;  %v4893_v61 = vadd.f32 %v4877_v30, %v11352_v7 }
0x13a6   : > { %vm4730_vm4 = vmand %vm11673_vm14, %vm11691_vm10  ;;  %v11745_v41 = vsel %vm4682_vm12, %v4698_v15, 0.0  ;;  %v14896_v50 = vsub.f32 1.0, %v11374_v55  ;;  %v4669_v59 = vmul.f32 %v11374_v55, %v4293_v52  ;;  %vm14933_vm14 = vcmp.ge.f32.partialorder %v11379_v54, 0.0 }
0x13a7   : > { %vm11735_vm2 = vmand %vm4557_vm1, %vm4573_vm3  ;;  %vm4605_vm11 = vcmp.ge.f32.partialorder %v4381_v3, 0.0  ;;  %vm4621_vm15 = vcmp.le.f32.partialorder %v4381_v3, 15.0  ;;  %v6557_v39 = vcvt.f32.s32 %v6556_v60  ;;  %v6562_v7 = vtrunc.f32 %v4893_v61 }
0x13a8   : > { %vm11747_vm0 = vmand %vm4605_vm11, %vm4621_vm15  ;;  %v4653_v43 = vmul.f32 %v14896_v50, %v4293_v52  ;;  %v11764_v3 = vsel %vm4942_vm6, 1.0, %v14698_v13  ;;  %vm14897_vm11 = vcmp.eq.s32.totalorder %v14706_v1, %v11622_v58  ;;  %v11777_v55 = vsel %vm4730_vm4, %v4746_v23, 0.0  ;;  %v4171_v50 = vpop.xlane.xlu0 %4170 }
0x13a9   : > { %vm4685_vm3 = vmand %vm11685_vm7, %vm11735_vm2  ;;  %v11770_v60 = vsel %vm14897_vm11, 1.0, %v14698_v13  ;;  %14898 = vst [vmem:[#allocation135_spill] sm:$0xff] %v11777_v55  ;;  %v4749_v30 = vmul.f32 %v4669_v59, %v4445_v4  ;;  %v4845_v61 = vmul.f32 %v4669_v59, %v4429_v18  ;;  %vm14899_vm6 = vcmp.le.f32.partialorder %v11357_v45, 15.0 }
0x13aa   : > { %vm4733_vm15 = vmand %vm11712_vm9, %vm11735_vm2  ;;  %v4701_v52 = vmul.f32 %v4653_v43, %v4445_v4  ;;  %v4797_v15 = vmul.f32 %v4653_v43, %v4429_v18  ;;  %vm14900_vm11 = vcmp.ge.f32.partialorder %v11357_v45, 0.0  ;;  %v6563_v49 = vcvt.f32.s32 %v6562_v7 }
0x13ab   : > { %vm11787_vm1 = vmand %vm14900_vm11, %vm14899_vm6  ;;  %v4351_v23 = vfloor.f32 %v4171_v50  ;;  %vm4923_vm4 = vcmp.eq.s32.totalorder %v14706_v1, %v6557_v39  ;;  %v11806_v18 = vsel %vm4733_vm15, %v4749_v30, 0.0 }
0x13ac   : > { %vm4781_vm10 = vmand %vm11685_vm7, %vm11747_vm0  ;;  %v4717_v59 = vsel %vm4685_vm3, %v4701_v52, 0.0  ;;  %14903 = vst [vmem:[#allocation123_spill] sm:$0xff] %v11806_v18  ;;  %v11811_v43 = vsel %vm4923_vm4, 1.0, %v14698_v13  ;;  %vm4928_vm12 = vcmp.eq.s32.totalorder %v14469_v11, %v6563_v49  ;;  %vm14906_vm7 = vcmp.le.f32.partialorder %v11425_v25, 15.0 }
0x13ad   : > { %vm4829_vm5 = vmand %vm11712_vm9, %vm11747_vm0  ;;  %v11808_v4 = vsel %vm4781_vm10, %v4797_v15, 0.0  ;;  %vm4929_vm0 = vcmp.eq.s32.totalorder %v14706_v1, %v6563_v49  ;;  %v4431_v47 = vsub.f32 %v4171_v50, %v4351_v23  ;;  %vm14907_vm9 = vcmp.ge.f32.partialorder %v11425_v25, 0.0  ;;  %v4299_v15 = vpop.xlane.xlu0 %4298 }
0x13ae   : > { %14904 = vst [vmem:[#allocation63_spill] sm:$0xff] %v11808_v4  ;;  %v11817_v26 = vsel %vm4829_vm5, %v4845_v61, 0.0  ;;  %vm11823_vm2 = vmand %vm14907_vm9, %vm14906_vm7  ;;  %v4960_v17 = vsel %vm4928_vm12, 1.0, %v14698_v13  ;;  %v11829_v7 = vsel %vm4929_vm0, 1.0, %v14698_v13  ;;  %v4879_v52 = vmul.f32 16.0, %v4351_v23 }
0x13af   : > { %14905 = vst [vmem:[#allocation118_spill] sm:$0xff] %v11817_v26  ;;  %v11833_v30 = vpack.i.bf16 %v11515_v12, %v11811_v43  ;;  %vm14910_vm5 = vcmp.le.f32.partialorder %v11364_v63, 15.0  ;;  %vm14911_vm3 = vcmp.ge.f32.partialorder %v11364_v63, 0.0  ;;  %v11847_v61 = vmul.f32 %v4960_v17, %v4717_v59  ;;  %vm11896_vm8 = vmand %vm14933_vm14, %vm14932_vm13 }
0x13b0   : > { %vm11839_vm15 = vmand %vm14911_vm3, %vm14910_vm5  ;;  %v11850_v12 = vmul.f32 %v11829_v7, %v4717_v59  ;;  %vm14916_vm7 = vcmp.eq.s32.totalorder %v14469_v11, %v6557_v39  ;;  %v4383_v50 = vadd.f32 1.0, %v4351_v23  ;;  %vm14917_vm9 = vcmp.le.f32.partialorder %v11439_v53, 15.0 }
0x13b1   : > { %14914 = vst [vmem:[#allocation124_spill] sm:$0xff] %v11847_v61  ;;  %v11855_v63 = vsel %vm14916_vm7, 1.0, %v14698_v13  ;;  %vm14918_vm5 = vcmp.ge.f32.partialorder %v11439_v53, 0.0  ;;  %vm14921_vm4 = vcmp.le.f32.partialorder %v11312_v6, 15.0  ;;  %vm14922_vm0 = vcmp.ge.f32.partialorder %v11312_v6, 0.0  ;;  %6928 = vrot.lane.b32.xlu0 %v11833_v30, %s13998_s6 }
0x13b2   : > { %14915 = vst [vmem:[#allocation94_spill] sm:$0xff] %v11850_v12  ;;  %vm11861_vm3 = vmand %vm14918_vm5, %vm14917_vm9  ;;  %v6922_v39 = vpack.i.bf16 %v11510_v48, %v11855_v63  ;;  %v4447_v26 = vsub.f32 1.0, %v4431_v47  ;;  %vm4559_vm7 = vcmp.ge.f32.partialorder %v4351_v23, 0.0  ;;  %vm4575_vm9 = vcmp.le.f32.partialorder %v4351_v23, 15.0 }
0x13b3   : > { %vm11869_vm10 = vmand %vm14922_vm0, %vm14921_vm4  ;;  %vm14925_vm5 = vcmp.le.f32.partialorder %v11578_v35, 15.0  ;;  %vm14926_vm12 = vcmp.ge.f32.partialorder %v11578_v35, 0.0  ;;  %vm4607_vm0 = vcmp.ge.f32.partialorder %v4383_v50, 0.0  ;;  %vm4623_vm11 = vcmp.le.f32.partialorder %v4383_v50, 15.0 }
0x13b4   : > { %vm11881_vm6 = vmand %vm14926_vm12, %vm14925_vm5  ;;  %v4895_v4 = vadd.f32 %v4879_v52, %v11357_v45  ;;  %v14931_v48 = vsub.f32 1.0, %v11390_v42  ;;  %v14934_v35 = vmov 0  ;;  %6923 = vrot.lane.b32.xlu1 %v6922_v39, %s13998_s6  ;;  %v4671_v45 = vmul.f32 %v11390_v42, %v4299_v15  ;;  %v4177_v52 = vpop.xlane.xlu0 %4176 }
0x13b5   : > { %vm11885_vm4 = vmand %vm4559_vm7, %vm4575_vm9  ;;  %v14935_v35 = vsel %vm11896_vm8, 4294967295, %v14934_v35  ;;  %v11909_v50 = vadd.f32 1.0, %v11656_v2  ;;  %v11915_v55 = vfloor.f32 %v4177_v52  ;;  %6943 = vrot.lane.b32.xlu0 %v6922_v39, %s14009_s8  ;;  %vm14938_vm14 = vcmp.le.f32.partialorder %v11382_v57, 15.0 }
0x13b6   : > { %v4655_v12 = vmul.f32 %v14931_v48, %v4299_v15  ;;  %vm11903_vm9 = vmand %vm4607_vm0, %vm4623_vm11  ;;  %v6566_v48 = vtrunc.f32 %v4895_v4  ;;  %v4751_v42 = vmul.f32 %v4671_v45, %v4447_v26  ;;  %v4847_v2 = vmul.f32 %v4671_v45, %v4431_v47 }
0x13b7   : > { %vm4687_vm13 = vmand %vm11787_vm1, %vm11885_vm4  ;;  %v11927_v4 = vpack.i.bf16 %v4960_v17, %v11522_v31  ;;  %vm14939_vm11 = vcmp.ge.f32.partialorder %v11382_v57, 0.0  ;;  %v14940_v15 = vmov 0  ;;  %v4433_v17 = vsub.f32 %v4177_v52, %v11915_v55 }
0x13b8   : > { %v4703_v61 = vmul.f32 %v4655_v12, %v4447_v26  ;;  %v4799_v18 = vmul.f32 %v4655_v12, %v4431_v47  ;;  %vm4735_vm12 = vmand %vm11823_vm2, %vm11885_vm4  ;;  %v6567_v26 = vcvt.f32.s32 %v6566_v48  ;;  %vm4561_vm0 = vcmp.ge.f32.partialorder %v11915_v55, 0.0  ;;  %6933 = vrot.lane.b32.xlu1 %v6922_v39, %s14013_s0 }
0x13b9   : > { %vm11933_vm7 = vmand %vm14939_vm11, %vm14938_vm14  ;;  %v11956_v57 = vsel %vm4735_vm12, %v4751_v42, 0.0  ;;  %v4449_v21 = vsub.f32 1.0, %v4433_v17  ;;  %v14945_v6 = vmov 0  ;;  %vm14947_vm12 = vcmp.le.f32.partialorder %v11455_v37, 15.0  ;;  %6953 = vrot.lane.b32.xlu0 %v11927_v4, %s13998_s6 }
0x13ba   : > { %v14941_v15 = vsel %vm11933_vm7, 4294967295, %v14940_v15  ;;  %vm4783_vm5 = vmand %vm11787_vm1, %vm11903_vm9  ;;  %v4719_v47 = vsel %vm4687_vm13, %v4703_v61, 0.0  ;;  %14942 = vst [vmem:[#allocation147_spill] sm:$0xff] %v11956_v57  ;;  %vm4577_vm1 = vcmp.le.f32.partialorder %v11915_v55, 15.0  ;;  %v4302_v61 = vpop.xlane.xlu0 %4301  ;;  %vm4932_vm14 = vcmp.eq.s32.totalorder %v14469_v11, %v6567_v26 }
0x13bb   : > { %vm4831_vm11 = vmand %vm11823_vm2, %vm11903_vm9  ;;  %v11958_v58 = vsel %vm4783_vm5, %v4799_v18, 0.0  ;;  %vm4933_vm7 = vcmp.eq.s32.totalorder %v14706_v1, %v6567_v26  ;;  %vm14948_vm9 = vcmp.ge.f32.partialorder %v11455_v37, 0.0  ;;  %v11983_v39 = vsel %vm4932_vm14, 1.0, %v14698_v13 }
0x13bc   : > { %14943 = vst [vmem:[#allocation64_spill] sm:$0xff] %v11958_v58  ;;  %v11966_v12 = vsel %vm4831_vm11, %v4847_v2, 0.0  ;;  %vm11968_vm2 = vmand %vm4561_vm0, %vm4577_vm1  ;;  %v11986_v23 = vsel %vm4933_vm7, 1.0, %v14698_v13  ;;  %v11989_v45 = vmul.f32 %v11530_v46, %v4433_v17  ;;  %v11992_v52 = vmul.f32 %v11555_v16, %v4433_v17  ;;  %6938 = vrot.lane.b32.xlu1 %v11833_v30, %s14013_s0 }
0x13bd   : > { %14944 = vst [vmem:[#allocation134_spill] sm:$0xff] %v11966_v12  ;;  %v14946_v6 = vsel %vm11968_vm2, 4294967295, %v14945_v6  ;;  %vm11976_vm5 = vmand %vm14948_vm9, %vm14947_vm12  ;;  %v12001_v37 = vmul.f32 %v11983_v39, %v4719_v47  ;;  %v12004_v48 = vmul.f32 %v11986_v23, %v4719_v47  ;;  %v4705_v42 = vmul.f32 %v11530_v46, %v4449_v21  ;;  %6963 = vrot.lane.b32.xlu0 %v11927_v4, %s14013_s0 }
0x13be   : > { %14951 = vst [vmem:[#allocation138_spill] sm:$0xff] %v11992_v52  ;;  %v12008_v2 = vmul.f32 %v11555_v16, %v4449_v21  ;;  %vm14954_vm7 = vcmp.le.f32.partialorder %v11393_v36, 15.0  ;;  %vm14955_vm14 = vcmp.ge.f32.partialorder %v11393_v36, 0.0  ;;  %v14956_v26 = vmov 0  ;;  %vm4689_vm4 = vmand %vm11896_vm8, %vm11968_vm2  ;;  %v4183_v21 = vpop.xlane.xlu0 %4182 }
0x13bf   : > { %14952 = vst [vmem:[#allocation66_spill] sm:$0xff] %v12001_v37  ;;  %14953 = vst [vmem:[#allocation144_spill] sm:$0xff] %v12004_v48  ;;  %vm14959_vm1 = vcmp.le.f32.partialorder %v11324_v22, 15.0  ;;  %vm14960_vm12 = vcmp.ge.f32.partialorder %v11324_v22, 0.0  ;;  %v12031_v46 = vmul.f32 16.0, %v11915_v55  ;;  %v14963_v16 = vsub.f32 1.0, %v11401_v20  ;;  %v4192_v48 = vpop.xlane.xlu1 %4191 }
0x13c0   : > { %vm12014_vm11 = vmand %vm14955_vm14, %vm14954_vm7  ;;  %v4672_v22 = vmul.f32 %v11401_v20, %v4302_v61  ;;  %v12038_v12 = vsel %vm4689_vm4, %v4705_v42, 0.0  ;;  %v12044_v58 = vfloor.f32 %v4183_v21  ;;  %v12048_v37 = vpack.i.bf16 %v11829_v7, %v11527_v14  ;;  %6948 = vrot.lane.b32.xlu1 %v11833_v30, %s14009_s8 }
0x13c1   : > { %v14957_v26 = vsel %vm12014_vm11, 4294967295, %v14956_v26  ;;  %vm12022_vm9 = vmand %vm14960_vm12, %vm14959_vm1  ;;  %v4656_v17 = vmul.f32 %v14963_v16, %v4302_v61  ;;  %v14964_v20 = vsub.f32 1.0, %v11318_v28  ;;  %vm14966_vm12 = vcmp.le.f32.partialorder %v11396_v27, 15.0  ;;  %6973 = vrot.lane.b32.xlu0 %v11927_v4, %s14009_s8 }
0x13c2   : > { %14958 = vst [vmem:[#allocation140_spill] sm:$0xff] %v14957_v26  ;;  %vm4832_vm4 = vmand %vm11861_vm3, %vm11881_vm6  ;;  %v4848_v7 = vmul.f32 %v4672_v22, %v11318_v28  ;;  %vm14967_vm14 = vcmp.ge.f32.partialorder %v11396_v27, 0.0  ;;  %vm4563_vm13 = vcmp.ge.f32.partialorder %v12044_v58, 0.0  ;;  %vm4579_vm7 = vcmp.le.f32.partialorder %v12044_v58, 15.0 }
0x13c3   : > { %v4704_v61 = vmul.f32 %v4656_v17, %v14964_v20  ;;  %v14965_v42 = vmov %v14964_v20  ;;  %v4800_v57 = vmul.f32 %v4656_v17, %v11318_v28  ;;  %vm12068_vm1 = vmand %vm14967_vm14, %vm14966_vm12  ;;  %v4435_v17 = vsub.f32 %v4183_v21, %v12044_v58 }
0x13c4   : > { %v4752_v16 = vmul.f32 %v4672_v22, %v14965_v42  ;;  %vm14970_vm0 = vnez %v14941_v15  ;;  %vm14971_vm2 = vmand %vm11839_vm15, %vm11869_vm10  ;;  %v12098_v21 = vsel %vm4832_vm4, %v4848_v7, 0.0  ;;  %vm14978_vm8 = vcmp.ge.f32.partialorder %v11605_v62, 0.0  ;;  %v4329_v42 = vpop.xlane.xlu1 %4328  ;;  %6958 = vrot.lane.b32.xlu1 %v12048_v37, %s13998_s6 }
0x13c5   : > { %v4720_v28 = vsel %vm14971_vm2, %v4704_v61, 0.0  ;;  %vm14972_vm14 = vmand %vm11861_vm3, %vm11869_vm10  ;;  %14976 = vst [vmem:[#allocation139_spill] sm:$0xff] %v12098_v21  ;;  %v4308_v61 = vpop.xlane.xlu0 %4307  ;;  %vm14977_vm2 = vcmp.le.f32.partialorder %v11605_v62, 15.0  ;;  %vm14981_vm3 = vcmp.le.f32.partialorder %v11463_v0, 15.0  ;;  %v4451_v53 = vsub.f32 1.0, %v4435_v17 }
0x13c6   : > { %v12089_v27 = vsel %vm14972_vm14, %v4752_v16, 0.0  ;;  %vm14974_vm12 = vmand %vm11839_vm15, %vm11881_vm6  ;;  %vm14982_vm6 = vcmp.ge.f32.partialorder %v11463_v0, 0.0  ;;  %v12119_v59 = vmul.f32 %v11602_v24, %v4720_v28  ;;  %v12122_v30 = vmul.f32 %v11618_v10, %v4720_v28 }
0x13c7   : > { %14973 = vst [vmem:[#allocation116_spill] sm:$0xff] %v12089_v27  ;;  %v12096_v22 = vsel %vm14974_vm12, %v4800_v57, 0.0  ;;  %vm12106_vm10 = vmand %vm14978_vm8, %vm14977_vm2  ;;  %v12129_v57 = vmul.f32 %v11569_v29, %v4435_v17  ;;  %v12132_v0 = vmul.f32 %v11582_v44, %v4435_v17  ;;  %v12134_v16 = vfloor.f32 %v4192_v48  ;;  %v15004_v27 = vld [vmem:[#allocation78_spill] sm:$0xff] }
0x13c8   : > { %14975 = vst [vmem:[#allocation142_spill] sm:$0xff] %v12096_v22  ;;  %vm12114_vm15 = vmand %vm14982_vm6, %vm14981_vm3  ;;  %v14991_v7 = vsub.f32 1.0, %v11421_v56  ;;  %v4674_v21 = vmul.f32 %v11421_v56, %v4308_v61  ;;  %v4707_v22 = vmul.f32 %v11569_v29, %v4451_v53  ;;  %v12147_v17 = vmul.f32 %v11582_v44, %v4451_v53  ;;  %6968 = vrot.lane.b32.xlu1 %v12048_v37, %s14013_s0 }
0x13c9   : > { %14985 = vst [vmem:[#allocation156_spill] sm:$0xff] %v12119_v59  ;;  %14986 = vst [vmem:[#allocation169_spill] sm:$0xff] %v12122_v30  ;;  %v14992_v30 = vsub.f32 1.0, %v11594_v40  ;;  %v12154_v4 = vmul.f32 %v11594_v40, %v4329_v42  ;;  %v12171_v44 = vmul.f32 16.0, %v12044_v58  ;;  %v12174_v29 = vsub.f32 %v4192_v48, %v12134_v16 }
0x13ca   : > { %vm12124_vm4 = vmand %vm4563_vm13, %vm4579_vm7  ;;  %14989 = vst [vmem:[#allocation157_spill] sm:$0xff] %v12129_v57  ;;  %v4658_v28 = vmul.f32 %v14991_v7, %v4308_v61  ;;  %vm14993_vm13 = vcmp.le.f32.partialorder %v11354_v8, 15.0  ;;  %vm14994_vm7 = vcmp.ge.f32.partialorder %v11354_v8, 0.0  ;;  %v14997_v8 = vsub.f32 1.0, %v11327_v5 }
0x13cb   : > { %14990 = vst [vmem:[#allocation141_spill] sm:$0xff] %v12132_v0  ;;  %v12151_v59 = vmul.f32 %v14992_v30, %v4329_v42  ;;  %vm12160_vm14 = vmand %vm14994_vm7, %vm14993_vm13  ;;  %vm14999_vm6 = vcmp.le.f32.partialorder %v11315_v33, 15.0  ;;  %vm15000_vm13 = vcmp.ge.f32.partialorder %v11315_v33, 0.0  ;;  %v15001_v53 = vmov 0  ;;  %v4189_v42 = vpop.xlane.xlu0 %4188  ;;  %v15026_v0 = vld [vmem:[#allocation97_spill] sm:$0xff] }
0x13cc   : > { %vm4691_vm3 = vmand %vm12014_vm11, %vm12124_vm4  ;;  %v4706_v40 = vmul.f32 %v4658_v28, %v14997_v8  ;;  %v14998_v61 = vmov %v14997_v8  ;;  %vm4534_vm2 = vcmp.le.f32.partialorder %v11467_v32, 15.0  ;;  %v4802_v7 = vmul.f32 %v4658_v28, %v11327_v5  ;;  %v15010_v28 = vld [vmem:[#allocation52_spill] sm:$0xff]  ;;  %6978 = vrot.lane.b32.xlu1 %v12048_v37, %s14009_s8 }
0x13cd   : > { %v4754_v30 = vmul.f32 %v4674_v21, %v14998_v61  ;;  %vm12186_vm7 = vmand %vm15000_vm13, %vm14999_vm6  ;;  %v12192_v48 = vsel %vm4691_vm3, %v4707_v22, 0.0  ;;  %v4850_v8 = vmul.f32 %v4674_v21, %v11327_v5  ;;  %v6982_v61 = vpack.i.bf16 %v11983_v39, %v11546_v51  ;;  %v15012_v51 = vld [vmem:[#allocation110_spill] sm:$0xff] }
0x13ce   : > { %v15002_v53 = vsel %vm12186_vm7, 4294967295, %v15001_v53  ;;  %vm4786_vm8 = vmand %vm14970_vm0, %vm12106_vm10  ;;  %vm4487_vm13 = vcmp.le.f32.partialorder %v15004_v27, 15.0  ;;  %v12205_v14 = vmul.f32 16.0, %v12134_v16  ;;  %v12223_v39 = vfloor.f32 %v4189_v42 }
0x13cf   : > { %15003 = vst [vmem:[#allocation160_spill] sm:$0xff] %v15002_v53  ;;  %vm15005_vm3 = vmand %vm14970_vm0, %vm12022_vm9  ;;  %v12225_v21 = vsel %vm4786_vm8, %v4802_v7, 0.0  ;;  %6983 = vrot.lane.b32.xlu0 %v6982_v61, %s13998_s6  ;;  %v4314_v47 = vpop.xlane.xlu0 %4313  ;;  %vm15015_vm8 = vcmp.ge.f32.partialorder %v11667_v38, 0.0  ;;  %v15018_v7 = vld [vmem:[#allocation98_spill] sm:$0xff]  ;;  %v4454_v49 = vsub.f32 1.0, %v12174_v29 }
0x13d0   : > { %v4722_v22 = vsel %vm15005_vm3, %v4706_v40, 0.0  ;;  %vm15006_vm12 = vmand %vm11976_vm5, %vm12022_vm9  ;;  %15008 = vst [vmem:[#allocation143_spill] sm:$0xff] %v12225_v21  ;;  %v4437_v18 = vsub.f32 %v4189_v42, %v12223_v39  ;;  %vm4581_vm9 = vcmp.le.f32.partialorder %v12223_v39, 15.0  ;;  %v4676_v42 = vmul.f32 %v15018_v7, %v4314_v47  ;;  %v15022_v21 = vld [vmem:[#allocation105_spill] sm:$0xff] }
0x13d1   : > { %v12217_v5 = vsel %vm15006_vm12, %v4754_v30, 0.0  ;;  %vm4834_vm6 = vmand %vm11976_vm5, %vm12106_vm10  ;;  %v12230_v40 = vmul.f32 %v15010_v28, %v4722_v22  ;;  %v12233_v31 = vmul.f32 %v15012_v51, %v4722_v22  ;;  %vm4565_vm5 = vcmp.ge.f32.partialorder %v12223_v39, 0.0 }
0x13d2   : > { %15007 = vst [vmem:[#allocation146_spill] sm:$0xff] %v12217_v5  ;;  %v12227_v15 = vsel %vm4834_vm6, %v4850_v8, 0.0  ;;  %vm4692_vm0 = vmand %vm12068_vm1, %vm12160_vm14  ;;  %vm15014_vm10 = vcmp.le.f32.partialorder %v11667_v38, 15.0  ;;  %v12254_v30 = vmul.f32 16.0, %v12223_v39  ;;  %v15019_v8 = vsub.f32 1.0, %v15018_v7 }
0x13d3   : > { %15009 = vst [vmem:[#allocation13_spill] sm:$0xff] %v12227_v15  ;;  %15011 = vst [vmem:[#allocation130_spill] sm:$0xff] %v12230_v40  ;;  %v4453_v15 = vsub.f32 1.0, %v4437_v18  ;;  %v15024_v40 = vld [vmem:[#allocation101_spill] sm:$0xff]  ;;  %6993 = vrot.lane.b32.xlu0 %v6982_v61, %s14013_s0 }
0x13d4   : > { %15013 = vst [vmem:[#allocation174_spill] sm:$0xff] %v12233_v31  ;;  %vm12249_vm12 = vmand %vm15015_vm8, %vm15014_vm10  ;;  %v4660_v22 = vmul.f32 %v15019_v8, %v4314_v47  ;;  %v12268_v31 = vmul.f32 %v15022_v21, %v4437_v18  ;;  %v12271_v5 = vmul.f32 %v15024_v40, %v4437_v18  ;;  %v12275_v8 = vpack.i.bf16 %v11986_v23, %v15026_v0  ;;  %v15027_v47 = vld [vmem:[#allocation109_spill] sm:$0xff] }
0x13d5   : > { %vm4740_vm6 = vmand %vm12114_vm15, %vm12160_vm14  ;;  %v15028_v7 = vsub.f32 1.0, %v15027_v47  ;;  %v4709_v23 = vmul.f32 %v15022_v21, %v4453_v15  ;;  %v12290_v0 = vmul.f32 %v15024_v40, %v4453_v15 }
0x13d6   : > { %vm12263_vm3 = vmand %vm4565_vm5, %vm4581_vm9  ;;  %15023 = vst [vmem:[#allocation145_spill] sm:$0xff] %v12268_v31  ;;  %v4804_v18 = vmul.f32 %v4660_v22, %v15027_v47  ;;  %6988 = vrot.lane.b32.xlu1 %v12275_v8, %s13998_s6 }
0x13d7   : > { %15025 = vst [vmem:[#allocation67_spill] sm:$0xff] %v12271_v5  ;;  %v4708_v57 = vmul.f32 %v4660_v22, %v15028_v7  ;;  %v15029_v26 = vmov %v15028_v7  ;;  %vm4788_vm5 = vmand %vm12068_vm1, %vm12249_vm12  ;;  %v4852_v5 = vmul.f32 %v4676_v42, %v15027_v47  ;;  %v4897_v7 = vadd.f32 %v12031_v46, %v11379_v54  ;;  %7003 = vrot.lane.b32.xlu0 %v6982_v61, %s14009_s8  ;;  %v15042_v22 = vld [vmem:[#allocation85_spill] sm:$0xff] }
0x13d8   : > { %v4756_v52 = vmul.f32 %v4676_v42, %v15029_v26  ;;  %vm4836_vm9 = vmand %vm12114_vm15, %vm12249_vm12  ;;  %v4195_v26 = vpop.xlane.xlu0 %4194  ;;  %v12316_v15 = vsel %vm4788_vm5, %v4804_v18, 0.0  ;;  %vm15035_vm1 = vcmp.le.f32.partialorder %v11409_v9, 15.0  ;;  %vm15036_vm15 = vcmp.ge.f32.partialorder %v11409_v9, 0.0 }
0x13d9   : > { %vm4693_vm10 = vmand %vm12186_vm7, %vm12263_vm3  ;;  %v4724_v37 = vsel %vm4692_vm0, %v4708_v57, 0.0  ;;  %15031 = vst [vmem:[#allocation151_spill] sm:$0xff] %v12316_v15  ;;  %v12318_v54 = vsel %vm4836_vm9, %v4852_v5, 0.0  ;;  %v12328_v57 = vfloor.f32 %v4195_v26  ;;  %v6570_v25 = vtrunc.f32 %v4897_v7  ;;  %v15052_v15 = vld [vmem:[#allocation95_spill] sm:$0xff] }
0x13da   : > { %v12314_v21 = vsel %vm4740_vm6, %v4756_v52, 0.0  ;;  %15032 = vst [vmem:[#allocation68_spill] sm:$0xff] %v12318_v54  ;;  %v12320_v46 = vsel %vm4693_vm10, %v4709_v23, 0.0  ;;  %v12323_v40 = vmul.f32 %v11764_v3, %v4724_v37  ;;  %v12326_v20 = vmul.f32 %v11770_v60, %v4724_v37  ;;  %vm12334_vm14 = vmand %vm15036_vm15, %vm15035_vm1  ;;  %v15050_v37 = vld [vmem:[#allocation91_spill] sm:$0xff]  ;;  %6998 = vrot.lane.b32.xlu1 %v12275_v8, %s14013_s0 }
0x13db   : > { %15030 = vst [vmem:[#allocation99_spill] sm:$0xff] %v12314_v21  ;;  %vm15039_vm12 = vcmp.ge.f32.partialorder %v11467_v32, 0.0  ;;  %v4390_v5 = vadd.f32 1.0, %v12134_v16  ;;  %vm15043_vm10 = vcmp.ge.f32.partialorder %v15004_v27, 0.0  ;;  %v15044_v32 = vmov 0 }
0x13dc   : > { %15033 = vst [vmem:[#allocation150_spill] sm:$0xff] %v12323_v40  ;;  %15034 = vst [vmem:[#allocation57_spill] sm:$0xff] %v12326_v20  ;;  %v4439_v61 = vsub.f32 %v4195_v26, %v12328_v57  ;;  %vm4583_vm15 = vcmp.le.f32.partialorder %v12328_v57, 15.0  ;;  %v4320_v42 = vpop.xlane.xlu0 %4319  ;;  %v15046_v47 = vmov 0  ;;  %v6571_v18 = vcvt.f32.s32 %v6570_v25  ;;  %v15048_v26 = vld [vmem:[#allocation89_spill] sm:$0xff] }
0x13dd   : > { %vm12345_vm6 = vmand %vm15039_vm12, %vm4534_vm2  ;;  %vm4567_vm2 = vcmp.ge.f32.partialorder %v12328_v57, 0.0  ;;  %vm4566_vm12 = vcmp.ge.f32.partialorder %v12134_v16, 0.0  ;;  %vm4582_vm9 = vcmp.le.f32.partialorder %v12134_v16, 15.0  ;;  %v15053_v20 = vsub.f32 1.0, %v15052_v15 }
0x13de   : > { %vm12359_vm1 = vmand %vm15043_vm10, %vm4487_vm13  ;;  %vm4614_vm13 = vcmp.ge.f32.partialorder %v4390_v5, 0.0  ;;  %vm4630_vm10 = vcmp.le.f32.partialorder %v4390_v5, 15.0  ;;  %v4455_v23 = vsub.f32 1.0, %v4439_v61  ;;  %v12377_v7 = vmul.f32 %v15048_v26, %v4439_v61  ;;  %7008 = vrot.lane.b32.xlu1 %v12275_v8, %s14009_s8 }
0x13df   : > { %v15045_v32 = vsel %vm12359_vm1, 4294967295, %v15044_v32  ;;  %vm12367_vm5 = vmand %vm4567_vm2, %vm4583_vm15  ;;  %v12380_v54 = vmul.f32 %v15050_v37, %v4439_v61  ;;  %v4662_v40 = vmul.f32 %v15053_v20, %v4320_v42  ;;  %v12385_v25 = vmul.f32 16.0, %v12328_v57 }
0x13e0   : > { %v15047_v47 = vsel %vm12367_vm5, 4294967295, %v15046_v47  ;;  %vm4695_vm0 = vmand %vm12359_vm1, %vm12367_vm5  ;;  %15049 = vst [vmem:[#allocation152_spill] sm:$0xff] %v12377_v7  ;;  %vm4936_vm2 = vcmp.eq.s32.totalorder %v14469_v11, %v6571_v18  ;;  %v4678_v21 = vmul.f32 %v15052_v15, %v4320_v42  ;;  %v4902_v7 = vadd.f32 %v12205_v14, %v11409_v9  ;;  %v4201_v42 = vpop.xlane.xlu0 %4200  ;;  %v15058_v9 = vld [vmem:[#allocation115_spill] sm:$0xff] }
0x13e1   : > { %15051 = vst [vmem:[#allocation163_spill] sm:$0xff] %v12380_v54  ;;  %vm12388_vm15 = vmand %vm4566_vm12, %vm4582_vm9  ;;  %v4711_v61 = vmul.f32 %v15048_v26, %v4455_v23  ;;  %v12397_v54 = vmul.f32 %v15050_v37, %v4455_v23  ;;  %v12402_v20 = vsel %vm4936_vm2, 1.0, %v14698_v13  ;;  %v4710_v15 = vmul.f32 %v4662_v40, %v4454_v49 }
0x13e2   : > { %vm12406_vm9 = vmand %vm4614_vm13, %vm4630_vm10  ;;  %v7012_v14 = vpack.i.bf16 %v12402_v20, %v11602_v24  ;;  %v4758_v23 = vmul.f32 %v4678_v21, %v4454_v49  ;;  %v4806_v5 = vmul.f32 %v4662_v40, %v12174_v29  ;;  %v4854_v26 = vmul.f32 %v4678_v21, %v12174_v29 }
0x13e3   : > { %vm4694_vm2 = vmand %vm12334_vm14, %vm12388_vm15  ;;  %v12425_v37 = vsel %vm4695_vm0, %v4711_v61, 0.0  ;;  %v6580_v24 = vtrunc.f32 %v4902_v7  ;;  %v12438_v29 = vfloor.f32 %v4201_v42  ;;  %vm4937_vm0 = vcmp.eq.s32.totalorder %v14706_v1, %v6571_v18 }
0x13e4   : > { %v4726_v53 = vsel %vm4694_vm2, %v4710_v15, 0.0  ;;  %vm4742_vm13 = vmand %vm12345_vm6, %vm12388_vm15  ;;  %7013 = vrot.lane.b32.xlu0 %v7012_v14, %s13998_s6  ;;  %v4969_v7 = vsel %vm4937_vm0, 1.0, %v14698_v13  ;;  %v4899_v52 = vadd.f32 %v12171_v44, %v11393_v36  ;;  %vm15067_vm12 = vcmp.ge.f32.partialorder %v15042_v22, 0.0 }
0x13e5   : > { %v12432_v49 = vsel %vm4742_vm13, %v4758_v23, 0.0  ;;  %vm4790_vm10 = vmand %vm12334_vm14, %vm12406_vm9  ;;  %v6581_v40 = vcvt.f32.s32 %v6580_v24  ;;  %v4441_v18 = vsub.f32 %v4201_v42, %v12438_v29  ;;  %vm4569_vm14 = vcmp.ge.f32.partialorder %v12438_v29, 0.0  ;;  %v15072_v23 = vld [vmem:[#allocation117_spill] sm:$0xff] }
0x13e6   : > { %15059 = vst [vmem:[#allocation54_spill] sm:$0xff] %v12432_v49  ;;  %v12441_v21 = vsel %vm4790_vm10, %v4806_v5, 0.0  ;;  %vm4838_vm15 = vmand %vm12345_vm6, %vm12406_vm9  ;;  %vm4585_vm2 = vcmp.le.f32.partialorder %v12438_v29, 15.0  ;;  %vm15062_vm13 = vcmp.le.f32.partialorder %v11909_v50, 15.0  ;;  %vm15063_vm6 = vcmp.ge.f32.partialorder %v11909_v50, 0.0 }
0x13e7   : > { %15060 = vst [vmem:[#allocation154_spill] sm:$0xff] %v12441_v21  ;;  %v12452_v16 = vsel %vm4838_vm15, %v4854_v26, 0.0  ;;  %vm12461_vm9 = vmand %vm15063_vm6, %vm15062_vm13  ;;  %vm4946_vm10 = vcmp.eq.s32.totalorder %v14469_v11, %v6581_v40  ;;  %vm4947_vm0 = vcmp.eq.s32.totalorder %v14706_v1, %v6581_v40  ;;  %vm15066_vm15 = vcmp.le.f32.partialorder %v15042_v22, 15.0 }
0x13e8   : > { %15061 = vst [vmem:[#allocation76_spill] sm:$0xff] %v12452_v16  ;;  %vm12471_vm8 = vmand %vm15067_vm12, %vm15066_vm15  ;;  %v15068_v36 = vmov 0  ;;  %v4889_v44 = vmul.f32 16.0, %v12438_v29  ;;  %v7017_v50 = vpack.i.bf16 %v4969_v7, %v11618_v10  ;;  %v12478_v8 = vsel %vm4946_vm10, 1.0, %v14698_v13  ;;  %7023 = vrot.lane.b32.xlu0 %v7012_v14, %s14013_s0  ;;  %v15073_v10 = vld [vmem:[#allocation60_spill] sm:$0xff] }
0x13e9   : > { %v15069_v36 = vsel %vm12471_vm8, 4294967295, %v15068_v36  ;;  %v12481_v56 = vsel %vm4947_vm0, 1.0, %v14698_v13  ;;  %v4457_v61 = vsub.f32 1.0, %v4441_v18  ;;  %vm12484_vm13 = vmand %vm4569_vm14, %vm4585_vm2  ;;  %v15070_v15 = vmov 0 }
0x13ea   : > { %v15071_v15 = vsel %vm12484_vm13, 4294967295, %v15070_v15  ;;  %v12489_v42 = vmul.f32 %v12151_v59, %v4441_v18  ;;  %v12494_v5 = vfloor.f32 %v15073_v10  ;;  %v12497_v26 = vmul.f32 %v12478_v8, %v4726_v53  ;;  %7018 = vrot.lane.b32.xlu1 %v7017_v50, %s13998_s6  ;;  %vm4697_vm15 = vmand %vm12471_vm8, %vm12484_vm13 }
0x13eb   : > { %v12500_v24 = vmul.f32 %v12481_v56, %v4726_v53  ;;  %v12503_v40 = vmul.f32 %v12154_v4, %v4441_v18  ;;  %vm15076_vm14 = vnez %v14877_v34  ;;  %v4713_v16 = vmul.f32 %v12151_v59, %v4457_v61 }
0x13ec   : > { %15074 = vst [vmem:[#allocation159_spill] sm:$0xff] %v12497_v26  ;;  %vm4778_vm2 = vmand %vm15076_vm14, %vm12461_vm9  ;;  %v12512_v21 = vmul.f32 %v12154_v4, %v4457_v61  ;;  %vm15077_vm10 = vnez %v14883_v19  ;;  %v4377_v53 = vadd.f32 1.0, %v15042_v22  ;;  %v6574_v18 = vtrunc.f32 %v4899_v52  ;;  %7033 = vrot.lane.b32.xlu0 %v7012_v14, %s14009_s8 }
0x13ed   : > { %15075 = vst [vmem:[#allocation59_spill] sm:$0xff] %v12500_v24  ;;  %v4901_v24 = vadd.f32 %v12254_v30, %v11315_v33  ;;  %v4903_v59 = vadd.f32 %v12385_v25, %v15004_v27  ;;  %v12527_v4 = vsel %vm4697_vm15, %v4713_v16, 0.0  ;;  %v4905_v61 = vadd.f32 %v4889_v44, %v15042_v22  ;;  %v15082_v25 = vld [vmem:[#allocation114_spill] sm:$0xff] }
0x13ee   : > { %v12533_v26 = vmul.f32 %v11855_v63, %v11745_v41  ;;  %v12537_v49 = vmul.f32 %v11811_v43, %v11745_v41  ;;  %vm15078_vm12 = vcmp.le.f32.partialorder %v15058_v9, 15.0  ;;  %vm15079_vm6 = vcmp.ge.f32.partialorder %v15058_v9, 0.0  ;;  %7028 = vrot.lane.b32.xlu1 %v7017_v50, %s14013_s0  ;;  %v15084_v43 = vld [vmem:[#allocation128_spill] sm:$0xff] }
0x13ef   : > { %vm12543_vm0 = vmand %vm15079_vm6, %vm15078_vm12  ;;  %v15080_v33 = vmov 0  ;;  %v6575_v27 = vcvt.f32.s32 %v6574_v18  ;;  %v6578_v30 = vtrunc.f32 %v4901_v24  ;;  %v6582_v22 = vtrunc.f32 %v4903_v59  ;;  %v15087_v24 = vld [vmem:[#allocation136_spill] sm:$0xff] }
0x13f0   : > { %v15081_v33 = vsel %vm12543_vm0, 4294967295, %v15080_v33  ;;  %v12554_v41 = vsel %vm4778_vm2, %v15082_v25, 0.0  ;;  %vm15083_vm15 = vnez %v14946_v6  ;;  %vm15085_vm6 = vmand %vm15077_vm10, %vm12461_vm9  ;;  %v12573_v9 = vmul.f32 %v12402_v20, %v12038_v12  ;;  %v15086_v20 = vld [vmem:[#allocation137_spill] sm:$0xff] }
0x13f1   : > { %vm4737_vm12 = vmand %vm12543_vm0, %vm15083_vm15  ;;  %v12566_v63 = vsel %vm15085_vm6, %v15084_v43, 0.0  ;;  %vm4940_vm14 = vcmp.eq.s32.totalorder %v14469_v11, %v6575_v27  ;;  %vm4941_vm2 = vcmp.eq.s32.totalorder %v14706_v1, %v6575_v27  ;;  %v6579_v6 = vcvt.f32.s32 %v6578_v30 }
0x13f2   : > { %v12569_v34 = vsel %vm4737_vm12, %v12008_v2, 0.0  ;;  %v6586_v14 = vtrunc.f32 %v4905_v61  ;;  %v4972_v19 = vsel %vm4940_vm14, 1.0, %v14698_v13  ;;  %v4973_v52 = vsel %vm4941_vm2, 1.0, %v14698_v13  ;;  %7038 = vrot.lane.b32.xlu1 %v7017_v50, %s14009_s8 }
0x13f3   : > { %v6583_v16 = vcvt.f32.s32 %v6582_v22  ;;  %v12580_v31 = vmul.f32 %v4969_v7, %v12038_v12  ;;  %v7042_v2 = vpack.i.bf16 %v4972_v19, %v15010_v28  ;;  %v12587_v44 = vadd.f32 1.0, %v12494_v5 }
0x13f4   : > { %v7047_v12 = vpack.i.bf16 %v4973_v52, %v15012_v51  ;;  %vm4944_vm2 = vcmp.eq.s32.totalorder %v14469_v11, %v6579_v6  ;;  %vm4945_vm8 = vcmp.eq.s32.totalorder %v14706_v1, %v6579_v6  ;;  %v6587_v28 = vcvt.f32.s32 %v6586_v14 }
0x13f5   : > { %7043 = vrot.lane.b32.xlu0 %v7042_v2, %s13998_s6  ;;  %vm15088_vm9 = vcmp.le.f32.partialorder %v15072_v23, 15.0  ;;  %vm15089_vm10 = vcmp.ge.f32.partialorder %v15072_v23, 0.0  ;;  %v12605_v50 = vsub.f32 %v15073_v10, %v12494_v5  ;;  %vm4948_vm6 = vcmp.eq.s32.totalorder %v14469_v11, %v6583_v16 }
0x13f6   : > { %vm12599_vm1 = vmand %vm15089_vm10, %vm15088_vm9  ;;  %vm4949_vm15 = vcmp.eq.s32.totalorder %v14706_v1, %v6583_v16  ;;  %vm15092_vm12 = vcmp.le.f32.partialorder %v15086_v20, 15.0  ;;  %vm15093_vm7 = vcmp.ge.f32.partialorder %v15086_v20, 0.0  ;;  %7048 = vrot.lane.b32.xlu1 %v7047_v12, %s13998_s6  ;;  %vm4488_vm9 = vcmp.le.f32.partialorder %v12494_v5, 15.0  ;;  %v15119_v16 = vld [vmem:[#allocation141_spill] sm:$0xff] }
0x13f7   : > { %vm12614_vm11 = vmand %vm15093_vm7, %vm15092_vm12  ;;  %vm15096_vm10 = vcmp.le.f32.partialorder %v15087_v24, 15.0  ;;  %vm15097_vm0 = vcmp.ge.f32.partialorder %v15087_v24, 0.0  ;;  %vm4520_vm14 = vcmp.ge.f32.partialorder %v12587_v44, 0.0  ;;  %v4976_v10 = vsel %vm4944_vm2, 1.0, %v14698_v13 }
0x13f8   : > { %vm12624_vm13 = vmand %vm15097_vm0, %vm15096_vm10  ;;  %v4977_v18 = vsel %vm4945_vm8, 1.0, %v14698_v13  ;;  %vm15100_vm7 = vcmp.le.f32.partialorder %v4377_v53, 15.0  ;;  %vm15101_vm12 = vcmp.ge.f32.partialorder %v4377_v53, 0.0  ;;  %v12639_v61 = vsel %vm4948_vm6, 1.0, %v14698_v13 }
0x13f9   : > { %vm12633_vm5 = vmand %vm15101_vm12, %vm15100_vm7  ;;  %7053 = vrot.lane.b32.xlu0 %v7042_v2, %s14013_s0  ;;  %v12642_v27 = vsel %vm4949_vm15, 1.0, %v14698_v13  ;;  %vm4952_vm0 = vcmp.eq.s32.totalorder %v14469_v11, %v6587_v28  ;;  %vm4953_vm2 = vcmp.eq.s32.totalorder %v14706_v1, %v6587_v28  ;;  %v4385_v22 = vadd.f32 1.0, %v11915_v55  ;;  %v15122_v28 = vld [vmem:[#allocation145_spill] sm:$0xff] }
0x13fa   : > { %vm4739_vm8 = vmand %vm12599_vm1, %vm12124_vm4  ;;  %v12651_v53 = vsel %vm4952_vm0, 1.0, %v14698_v13  ;;  %v12654_v30 = vsel %vm4953_vm2, 1.0, %v14698_v13  ;;  %7058 = vrot.lane.b32.xlu1 %v7047_v12, %s14013_s0  ;;  %v12666_v62 = vmul.f32 %v4972_v19, %v12192_v48  ;;  %v12669_v43 = vmul.f32 %v4973_v52, %v12192_v48  ;;  %v15116_v19 = vld [vmem:[#allocation157_spill] sm:$0xff] }
0x13fb   : > { %v12658_v25 = vsel %vm4739_vm8, %v12147_v17, 0.0  ;;  %vm4741_vm15 = vmand %vm12614_vm11, %vm12263_vm3  ;;  %v4387_v6 = vadd.f32 1.0, %v12044_v58  ;;  %vm15104_vm4 = vnez %v15047_v47  ;;  %vm4609_vm10 = vcmp.ge.f32.partialorder %v4385_v22, 0.0 }
0x13fc   : > { %v12673_v55 = vsel %vm4741_vm15, %v12290_v0, 0.0  ;;  %vm4743_vm6 = vmand %vm12624_vm13, %vm15104_vm4  ;;  %vm4625_vm3 = vcmp.le.f32.partialorder %v4385_v22, 15.0  ;;  %v12680_v17 = vmul.f32 %v4976_v10, %v12320_v46  ;;  %v12683_v38 = vmul.f32 %v4977_v18, %v12320_v46  ;;  %v15123_v22 = vld [vmem:[#allocation67_spill] sm:$0xff] }
0x13fd   : > { %vm15105_vm7 = vnez %v15071_v15  ;;  %7063 = vrot.lane.b32.xlu0 %v7042_v2, %s14009_s8  ;;  %vm12690_vm0 = vmand %vm4609_vm10, %vm4625_vm3  ;;  %vm4611_vm2 = vcmp.ge.f32.partialorder %v4387_v6, 0.0  ;;  %vm4627_vm8 = vcmp.le.f32.partialorder %v4387_v6, 15.0  ;;  %v4389_v0 = vadd.f32 1.0, %v12223_v39 }
0x13fe   : > { %vm4745_vm12 = vmand %vm12633_vm5, %vm15105_vm7  ;;  %v12696_v48 = vsel %vm4743_vm6, %v12397_v54, 0.0  ;;  %vm15108_vm15 = vnez %v14935_v35  ;;  %v12704_v46 = vmul.f32 %v12639_v61, %v12425_v37  ;;  %v12708_v47 = vmul.f32 %v12642_v27, %v12425_v37  ;;  %7068 = vrot.lane.b32.xlu1 %v7047_v12, %s14009_s8  ;;  %v15120_v12 = vld [vmem:[#allocation160_spill] sm:$0xff] }
0x13ff   : > { %vm4785_vm4 = vmand %vm15108_vm15, %vm12690_vm0  ;;  %vm4536_vm10 = vcmp.le.f32.partialorder %v12587_v44, 15.0  ;;  %v12712_v39 = vsel %vm4745_vm12, %v12512_v21, 0.0  ;;  %v7072_v54 = vpack.i.bf16 %v4976_v10, %v11764_v3  ;;  %vm15109_vm6 = vnez %v15081_v33  ;;  %v15110_v21 = vld [vmem:[#allocation138_spill] sm:$0xff]  ;;  %v15114_v33 = vld [vmem:[#allocation140_spill] sm:$0xff]  ;;  %v4198_v44 = vpop.xlane.xlu1 %4197 }
0x1400   : > { %v12717_v35 = vsel %vm4785_vm4, %v11989_v45, 0.0  ;;  %vm4833_vm3 = vmand %vm15109_vm6, %vm12690_vm0  ;;  %v4391_v37 = vadd.f32 1.0, %v12328_v57  ;;  %v12726_v15 = vmul.f32 %v12651_v53, %v12527_v4  ;;  %vm4613_vm12 = vcmp.ge.f32.partialorder %v4389_v0, 0.0 }
0x1401   : > { %v12729_v14 = vsel %vm4833_vm3, %v15110_v21, 0.0  ;;  %vm4643_vm7 = vmand %vm4611_vm2, %vm4627_vm8  ;;  %vm4629_vm15 = vcmp.le.f32.partialorder %v4389_v0, 15.0  ;;  %v12735_v3 = vmul.f32 %v12654_v30, %v12527_v4  ;;  %7073 = vrot.lane.b32.xlu0 %v7072_v54, %s13998_s6  ;;  %v7077_v45 = vpack.i.bf16 %v4977_v18, %v11770_v60  ;;  %v4326_v4 = vpop.xlane.xlu0 %4325  ;;  %v15128_v21 = vld [vmem:[#allocation163_spill] sm:$0xff] }
0x1402   : > { %vm15111_vm0 = vcmp.ge.f32.partialorder %v12494_v5, 0.0  ;;  %vm15115_vm2 = vnez %v15114_v33  ;;  %vm4835_vm6 = vmand %vm12599_vm1, %vm4643_vm7  ;;  %v4393_v20 = vadd.f32 1.0, %v12438_v29  ;;  %v4424_v24 = vsub.f32 1.0, %v12605_v50 }
0x1403   : > { %vm12743_vm4 = vmand %vm15111_vm0, %vm4488_vm9  ;;  %7078 = vrot.lane.b32.xlu1 %v7077_v45, %s13998_s6  ;;  %v12764_v2 = vsel %vm4835_vm6, %v15119_v16, 0.0  ;;  %vm4615_vm0 = vcmp.ge.f32.partialorder %v4391_v37, 0.0  ;;  %vm15121_vm1 = vnez %v15120_v12  ;;  %v4360_v18 = vfloor.f32 %v4198_v44 }
0x1404   : > { %vm4787_vm8 = vmand %vm15115_vm2, %vm4643_vm7  ;;  %vm4631_vm2 = vcmp.le.f32.partialorder %v4391_v37, 15.0  ;;  %v4664_v10 = vmul.f32 %v4424_v24, %v4326_v4  ;;  %v4680_v29 = vmul.f32 %v12605_v50, %v4326_v4  ;;  %v15127_v50 = vld [vmem:[#allocation152_spill] sm:$0xff]  ;;  %v7102_v16 = vpack.i.bf16 %v12639_v61, %v12478_v8 }
0x1405   : > { %v12750_v52 = vsel %vm4787_vm8, %v15116_v19, 0.0  ;;  %vm12758_vm3 = vmand %vm4520_vm14, %vm4536_vm10  ;;  %7083 = vrot.lane.b32.xlu0 %v7072_v54, %s14013_s0  ;;  %vm4617_vm8 = vcmp.ge.f32.partialorder %v4393_v20, 0.0  ;;  %v4440_v58 = vsub.f32 %v4198_v44, %v4360_v18  ;;  %vm4568_vm6 = vcmp.ge.f32.partialorder %v4360_v18, 0.0 }
0x1406   : > { %vm4645_vm9 = vmand %vm4613_vm12, %vm4629_vm15  ;;  %vm15124_vm12 = vnez %v15045_v32  ;;  %v4888_v0 = vmul.f32 16.0, %v4360_v18  ;;  %v4392_v33 = vadd.f32 1.0, %v4360_v18  ;;  %v7107_v8 = vpack.i.bf16 %v12642_v27, %v12481_v56 }
0x1407   : > { %vm4789_vm7 = vmand %vm15121_vm1, %vm4645_vm9  ;;  %7088 = vrot.lane.b32.xlu1 %v7077_v45, %s14013_s0  ;;  %vm4584_vm1 = vcmp.le.f32.partialorder %v4360_v18, 15.0  ;;  %v4456_v19 = vsub.f32 1.0, %v4440_v58  ;;  %v4808_v23 = vmul.f32 %v4664_v10, %v4440_v58 }
0x1408   : > { %v12772_v7 = vsel %vm4789_vm7, %v15122_v28, 0.0  ;;  %vm4837_vm14 = vmand %vm12614_vm11, %vm4645_vm9  ;;  %v4904_v4 = vadd.f32 %v4888_v0, %v12494_v5  ;;  %vm4616_vm7 = vcmp.ge.f32.partialorder %v4392_v33, 0.0 }
0x1409   : > { %v12777_v6 = vsel %vm4837_vm14, %v15123_v22, 0.0  ;;  %vm4647_vm10 = vmand %vm4615_vm0, %vm4631_vm2  ;;  %7093 = vrot.lane.b32.xlu0 %v7072_v54, %s14009_s8  ;;  %vm4633_vm0 = vcmp.le.f32.partialorder %v4393_v20, 15.0  ;;  %v4856_v54 = vmul.f32 %v4680_v29, %v4440_v58  ;;  %vm4632_vm14 = vcmp.le.f32.partialorder %v4392_v33, 15.0 }
0x140a   : > { %vm4791_vm15 = vmand %vm15124_vm12, %vm4647_vm10  ;;  %v4712_v24 = vmul.f32 %v4664_v10, %v4456_v19  ;;  %v4760_v12 = vmul.f32 %v4680_v29, %v4456_v19  ;;  %v6584_v44 = vtrunc.f32 %v4904_v4  ;;  %v15139_v19 = vld [vmem:[#allocation127_spill] sm:$0xff] }
0x140b   : > { %vm4839_vm11 = vmand %vm12624_vm13, %vm4647_vm10  ;;  %v12791_v37 = vsel %vm4791_vm15, %v15127_v50, 0.0  ;;  %7098 = vrot.lane.b32.xlu1 %v7077_v45, %s14009_s8  ;;  %v15140_v4 = vld [vmem:[#allocation135_spill] sm:$0xff] }
0x140c   : > { %vm12786_vm9 = vmand %vm4568_vm6, %vm4584_vm1  ;;  %v12794_v32 = vsel %vm4839_vm11, %v15128_v21, 0.0  ;;  %v6585_v45 = vcvt.f32.s32 %v6584_v44  ;;  %v15141_v44 = vld [vmem:[#allocation108_spill] sm:$0xff] }
0x140d   : > { %vm4696_vm13 = vmand %vm12743_vm4, %vm12786_vm9  ;;  %7103 = vrot.lane.b32.xlu0 %v7102_v16, %s13998_s6 }
0x140e   : > { %vm4744_vm2 = vmand %vm12758_vm3, %vm12786_vm9  ;;  %v4728_v61 = vsel %vm4696_vm13, %v4712_v24, 0.0  ;;  %vm4950_vm1 = vcmp.eq.s32.totalorder %v14469_v11, %v6585_v45  ;;  %vm4951_vm11 = vcmp.eq.s32.totalorder %v14706_v1, %v6585_v45 }
0x140f   : > { %vm12808_vm10 = vmand %vm4616_vm7, %vm4632_vm14  ;;  %v12826_v10 = vsel %vm4744_vm2, %v4760_v12, 0.0  ;;  %7108 = vrot.lane.b32.xlu1 %v7107_v8, %s13998_s6  ;;  %v4982_v57 = vsel %vm4950_vm1, 1.0, %v14698_v13  ;;  %vm15149_vm2 = vcmp.lt.s32.totalorder %v14469_v11, 16 }
0x1410   : > { %vm12817_vm12 = vmand %vm4617_vm8, %vm4633_vm0  ;;  %vm15133_vm8 = vnez %v15069_v36  ;;  %v4983_v36 = vsel %vm4951_vm11, 1.0, %v14698_v13  ;;  %v7132_v18 = vpack.i.bf16 %v12651_v53, %v4982_v57 }
0x1411   : > { %vm4792_vm15 = vmand %vm12743_vm4, %vm12808_vm10  ;;  %7113 = vrot.lane.b32.xlu0 %v7102_v16, %s14013_s0  ;;  %v12860_v20 = vmul.f32 %v4983_v36, %v4728_v61  ;;  %v7137_v59 = vpack.i.bf16 %v12654_v30, %v4983_v36 }
0x1412   : > { %vm4793_vm6 = vmand %vm15133_vm8, %vm12817_vm12  ;;  %v12837_v56 = vsel %vm4792_vm15, %v4808_v23, 0.0 }
0x1413   : > { %v12842_v27 = vsel %vm4793_vm6, %v12489_v42, 0.0  ;;  %vm4840_vm4 = vmand %vm12758_vm3, %vm12808_vm10  ;;  %7118 = vrot.lane.b32.xlu1 %v7107_v8, %s14013_s0  ;;  %v12858_v42 = vmul.f32 %v4982_v57, %v4728_v61 }
0x1414   : > { %vm4841_vm9 = vmand %vm12633_vm5, %vm12817_vm12  ;;  %v12855_v1 = vsel %vm4840_vm4, %v4856_v54, 0.0  ;;  %vm15135_vm5 = vcmp.lt.s32.totalorder %v14469_v11, 1  ;;  %vm15154_vm12 = vcmp.lt.s32.totalorder %v14469_v11, 17 }
0x1415   : > { %15134 = vst [vmem:[#allocation102_spill] sm:$0xff] %v12855_v1  ;;  %v12863_v60 = vsel %vm4841_vm9, %v12503_v40, 0.0  ;;  %7123 = vrot.lane.b32.xlu0 %v7102_v16, %s14009_s8  ;;  %vm15136_vm3 = vmmov %vm15135_vm5 }
0x1416   : > { %vm15137_vm0 = vmmov %vm15136_vm3 }
0x1417   : > { %7128 = vrot.lane.b32.xlu1 %v7107_v8, %s14009_s8  ;;  %vm15138_vm13 = vmmov %vm15137_vm0  ;;  %v15142_v8 = vld [vmem:[#allocation126_spill] sm:$0xff] }
0x1418   : > { %vm15150_vm7 = vmmov %vm15149_vm2 }
0x1419   : > { %7133 = vrot.lane.b32.xlu0 %v7132_v18, %s13998_s6  ;;  %vm15151_vm14 = vmmov %vm15149_vm2 }
0x141a   : > { %vm15152_vm10 = vmmov %vm15149_vm2 }
0x141b   : > { %7138 = vrot.lane.b32.xlu1 %v7137_v59, %s13998_s6  ;;  %vm15155_vm15 = vmmov %vm15154_vm12 }
0x141c   : > { %vm15156_vm8 = vmmov %vm15154_vm12 }
0x141d   : > { %7143 = vrot.lane.b32.xlu0 %v7132_v18, %s14013_s0  ;;  %vm15157_vm6 = vmmov %vm15156_vm8 }
0x141e   : > { %vm15159_vm1 = vmmov %vm15137_vm0 }
0x141f   : > { %7148 = vrot.lane.b32.xlu1 %v7137_v59, %s14013_s0  ;;  %vm15160_vm11 = vmmov %vm15137_vm0 }
0x1420   : > { %vm15161_vm4 = vmmov %vm15137_vm0 }
0x1421   : > { %7153 = vrot.lane.b32.xlu0 %v7132_v18, %s14009_s8  ;;  %vm15162_vm9 = vmmov %vm15137_vm0 }
0x1423   : > { %7158 = vrot.lane.b32.xlu1 %v7137_v59, %s14009_s8  ;;  %v6929_v40 = vpop.permute.xlu0 %6928 }
0x1424   : > { %v6931_v22 = vunpack.i.h.bf16 %v6929_v40  ;;  %v6930_v29 = vunpack.i.l.bf16 %v6929_v40 }
0x1426   : > { %v6924_v53 = vpop.permute.xlu1 %6923 }
0x1427   : > { %v6926_v58 = vunpack.i.h.bf16 %v6924_v53  ;;  %v6925_v0 = vunpack.i.l.bf16 %v6924_v53  ;;  %v6944_v51 = vpop.permute.xlu0 %6943  ;;  %v15144_v53 = vld [vmem:[#allocation113_spill] sm:$0xff] }
0x1429   : > { %v5083_v30 = vsel %vm15135_vm5, %v6926_v58, %v6931_v22  ;;  %v5099_v50 = vsel %vm15136_vm3, %v6931_v22, %v6926_v58  ;;  %v5082_v21 = vsel %vm15137_vm0, %v6925_v0, %v6930_v29  ;;  %v5098_v33 = vsel %vm15138_vm13, %v6930_v29, %v6925_v0  ;;  %v15143_v29 = vld [vmem:[#allocation79_spill] sm:$0xff]  ;;  %v15145_v0 = vld [vmem:[#allocation93_spill] sm:$0xff]  ;;  %vm15167_vm5 = vmmov %vm15149_vm2 }
0x142a   : > { %v5116_v23 = vmul.f32 %v5099_v50, %v15139_v19  ;;  %v5117_v54 = vmul.f32 %v5083_v30, %v15139_v19  ;;  %v5114_v16 = vmul.f32 %v5098_v33, %v15140_v4  ;;  %v5115_v24 = vmul.f32 %v5082_v21, %v15140_v4  ;;  %v6934_v12 = vpop.permute.xlu1 %6933  ;;  %v15146_v50 = vld [vmem:[#allocation92_spill] sm:$0xff]  ;;  %vm15168_vm3 = vmmov %vm15149_vm2 }
0x142b   : > { %v6954_v57 = vpop.permute.xlu0 %6953  ;;  %v6936_v18 = vunpack.i.h.bf16 %v6934_v12  ;;  %v6935_v59 = vunpack.i.l.bf16 %v6934_v12  ;;  %v4990_v58 = vmul.f32 %v15144_v53, %v15143_v29  ;;  %v4991_v30 = vmul.f32 %v15145_v0, %v15143_v29  ;;  %v15147_v21 = vld [vmem:[#allocation96_spill] sm:$0xff]  ;;  %vm15170_vm0 = vmmov %vm15149_vm2 }
0x142c   : > { %v5148_v28 = vadd.f32 %v5116_v23, %v15141_v44  ;;  %v5149_v5 = vadd.f32 %v5117_v54, %v15142_v8  ;;  %v5146_v61 = vadd.f32 %v5114_v16, %v12533_v26  ;;  %v5147_v45 = vadd.f32 %v5115_v24, %v12537_v49  ;;  %v15148_v26 = vld [vmem:[#allocation97_spill] sm:$0xff]  ;;  %v15153_v44 = vld [vmem:[#allocation106_spill] sm:$0xff]  ;;  %vm15171_vm13 = vmmov %vm15170_vm0 }
0x142d   : > { %v12897_v33 = vmul.f32 %v15147_v21, %v15146_v50  ;;  %v12901_v19 = vmul.f32 %v15148_v26, %v15146_v50  ;;  %v6946_v53 = vunpack.i.h.bf16 %v6944_v51  ;;  %v6945_v0 = vunpack.i.l.bf16 %v6944_v51 }
0x142e   : > { %v6939_v36 = vpop.permute.xlu1 %6938 }
0x142f   : > { %v6941_v40 = vunpack.i.h.bf16 %v6939_v36  ;;  %v6940_v22 = vunpack.i.l.bf16 %v6939_v36  ;;  %v12903_v49 = vpop.permute.xlu0 %6963 }
0x1431   : > { %v5242_v23 = vsel %vm15149_vm2, %v6935_v59, %v6940_v22  ;;  %v5243_v54 = vsel %vm15150_vm7, %v6936_v18, %v6941_v40  ;;  %v5258_v4 = vsel %vm15151_vm14, %v6940_v22, %v6935_v59  ;;  %v5259_v16 = vsel %vm15152_vm10, %v6941_v40, %v6936_v18  ;;  %vm15173_vm2 = vmmov %vm15157_vm6 }
0x1432   : > { %v5274_v24 = vmul.f32 %v5258_v4, %v12554_v41  ;;  %v5275_v12 = vmul.f32 %v5242_v23, %v12554_v41  ;;  %v5276_v8 = vmul.f32 %v5259_v16, %v15153_v44  ;;  %v5277_v36 = vmul.f32 %v5243_v54, %v15153_v44  ;;  %v6949_v29 = vpop.permute.xlu1 %6948  ;;  %v15158_v23 = vld [vmem:[#allocation122_spill] sm:$0xff]  ;;  %vm15174_vm7 = vmmov %vm15173_vm2 }
0x1433   : > { %v6951_v50 = vunpack.i.h.bf16 %v6949_v29  ;;  %v6950_v21 = vunpack.i.l.bf16 %v6949_v29  ;;  %v12917_v1 = vpop.permute.xlu0 %6973  ;;  %v6956_v4 = vunpack.i.h.bf16 %v6954_v57  ;;  %v6955_v16 = vunpack.i.l.bf16 %v6954_v57  ;;  %vm15175_vm14 = vmmov %vm15173_vm2 }
0x1434   : > { %v5306_v26 = vadd.f32 %v5274_v24, %v5146_v61  ;;  %v5308_v13 = vadd.f32 %v5276_v8, %v5148_v28  ;;  %v5307_v59 = vadd.f32 %v5275_v12, %v5147_v45  ;;  %v5309_v22 = vadd.f32 %v5277_v36, %v5149_v5  ;;  %vm15176_vm10 = vmmov %vm15173_vm2 }
0x1435   : > { %v5403_v18 = vsel %vm15154_vm12, %v6946_v53, %v6951_v50  ;;  %v5419_v41 = vsel %vm15155_vm15, %v6951_v50, %v6946_v53  ;;  %v5402_v40 = vsel %vm15156_vm8, %v6945_v0, %v6950_v21  ;;  %v5418_v51 = vsel %vm15157_vm6, %v6950_v21, %v6945_v0  ;;  %vm15179_vm12 = vmmov %vm15159_vm1 }
0x1436   : > { %v5436_v54 = vmul.f32 %v5419_v41, %v15158_v23  ;;  %v5437_v28 = vmul.f32 %v5403_v18, %v15158_v23  ;;  %v5434_v61 = vmul.f32 %v5418_v51, %v12566_v63  ;;  %v5435_v5 = vmul.f32 %v5402_v40, %v12566_v63  ;;  %v6959_v45 = vpop.permute.xlu1 %6958  ;;  %v15163_v18 = vld [vmem:[#allocation123_spill] sm:$0xff]  ;;  %vm15180_vm15 = vmmov %vm15159_vm1 }
0x1437   : > { %v6961_v24 = vunpack.i.h.bf16 %v6959_v45  ;;  %v6960_v12 = vunpack.i.l.bf16 %v6959_v45  ;;  %v6966_v40 = vunpack.i.h.bf16 %v12903_v49  ;;  %v6965_v51 = vunpack.i.l.bf16 %v12903_v49  ;;  %v15169_v49 = vld [vmem:[#allocation63_spill] sm:$0xff]  ;;  %vm15181_vm8 = vmmov %vm15159_vm1 }
0x1438   : > { %v5466_v44 = vadd.f32 %v5434_v61, %v5306_v26  ;;  %v5468_v8 = vadd.f32 %v5436_v54, %v5308_v13  ;;  %v5467_v36 = vadd.f32 %v5435_v5, %v5307_v59  ;;  %v5469_v29 = vadd.f32 %v5437_v28, %v5309_v22  ;;  %v15164_v26 = vld [vmem:[#allocation69_spill] sm:$0xff]  ;;  %v15165_v28 = vld [vmem:[#allocation124_spill] sm:$0xff]  ;;  %v15166_v5 = vld [vmem:[#allocation94_spill] sm:$0xff] }
0x1439   : > { %v5085_v53 = vsel %vm15159_vm1, %v6956_v4, %v6961_v24  ;;  %v5101_v0 = vsel %vm15160_vm11, %v6961_v24, %v6956_v4  ;;  %v5084_v50 = vsel %vm15161_vm4, %v6955_v16, %v6960_v12  ;;  %v5100_v63 = vsel %vm15162_vm9, %v6960_v12, %v6955_v16  ;;  %vm15182_vm6 = vmmov %vm15159_vm1 }
0x143a   : > { %v5498_v57 = vpack.c.bf16 %v5468_v8, %v5466_v44  ;;  %v5120_v41 = vmul.f32 %v5101_v0, %v15163_v18  ;;  %v5121_v13 = vmul.f32 %v5085_v53, %v15163_v18  ;;  %v5118_v59 = vmul.f32 %v5100_v63, %v15164_v26  ;;  %v6969_v22 = vpop.permute.xlu1 %6968  ;;  %vm15187_vm1 = vmmov %vm15170_vm0 }
0x143b   : > { %v5119_v23 = vmul.f32 %v5084_v50, %v15164_v26  ;;  %v6971_v54 = vunpack.i.h.bf16 %v6969_v22  ;;  %v6970_v16 = vunpack.i.l.bf16 %v6969_v22  ;;  %v5499_v8 = vpack.c.bf16 %v5469_v29, %v5467_v36  ;;  %vm15188_vm11 = vmmov %vm15170_vm0 }
0x143c   : > { %v5152_v61 = vadd.f32 %v5120_v41, %v15165_v28  ;;  %v5153_v45 = vadd.f32 %v5121_v13, %v15166_v5  ;;  %v5150_v4 = vadd.f32 %v5118_v59, %v4990_v58  ;;  %v6976_v18 = vunpack.i.h.bf16 %v12917_v1  ;;  %v15172_v13 = vld [vmem:[#allocation65_spill] sm:$0xff]  ;;  %vm15190_vm4 = vmmov %vm15170_vm0 }
0x143d   : > { %v5151_v24 = vadd.f32 %v5119_v23, %v4991_v30  ;;  %v5245_v12 = vsel %vm15167_vm5, %v6966_v40, %v6971_v54  ;;  %v5261_v44 = vsel %vm15168_vm3, %v6971_v54, %v6966_v40  ;;  %v5244_v63 = vsel %vm15170_vm0, %v6965_v51, %v6970_v16  ;;  %5546 = vmatprep.mubr.bf16.mxu0 %v5499_v8  ;;  %vm15191_vm9 = vmmov %vm15170_vm0 }
0x143e   : > { %v5280_v0 = vmul.f32 %v5261_v44, %v15169_v49  ;;  %v5281_v50 = vmul.f32 %v5245_v12, %v15169_v49  ;;  %v5260_v58 = vsel %vm15171_vm13, %v6970_v16, %v6965_v51  ;;  %v6979_v30 = vpop.permute.xlu1 %6978  ;;  %v6975_v41 = vunpack.i.l.bf16 %v12917_v1  ;;  %5547 = vmatmul.mubr.bf16.vlgmr.msra.gmra.mxu0 %v5498_v57  ;;  %v15177_v44 = vld [vmem:[#allocation118_spill] sm:$0xff]  ;;  %vm15193_vm5 = vmmov %vm15173_vm2 }
0x143f   : > { %v5278_v26 = vmul.f32 %v5260_v58, %v15172_v13  ;;  %v5279_v36 = vmul.f32 %v5244_v63, %v15172_v13  ;;  %v6981_v29 = vunpack.i.h.bf16 %v6979_v30  ;;  %v6980_v59 = vunpack.i.l.bf16 %v6979_v30  ;;  %vm15194_vm3 = vmmov %vm15173_vm2 }
0x1440   : > { %v5313_v22 = vadd.f32 %v5281_v50, %v5153_v45  ;;  %v5312_v40 = vadd.f32 %v5280_v0, %v5152_v61  ;;  %vm15196_vm0 = vmmov %vm15173_vm2 }
0x1441   : > { %v6984_v21 = vpop.permute.xlu0 %6983  ;;  %v5311_v28 = vadd.f32 %v5279_v36, %v5151_v24  ;;  %v5310_v5 = vadd.f32 %v5278_v26, %v5150_v4  ;;  %v5405_v51 = vsel %vm15173_vm2, %v6976_v18, %v6981_v29  ;;  %v5421_v1 = vsel %vm15174_vm7, %v6981_v29, %v6976_v18  ;;  %vm15197_vm13 = vmmov %vm15196_vm0 }
0x1442   : > { %v6986_v23 = vunpack.i.h.bf16 %v6984_v21  ;;  %v6985_v54 = vunpack.i.l.bf16 %v6984_v21  ;;  %v5404_v16 = vsel %vm15175_vm14, %v6975_v41, %v6980_v59  ;;  %v5420_v57 = vsel %vm15176_vm10, %v6980_v59, %v6975_v41  ;;  %v15178_v21 = vld [vmem:[#allocation74_spill] sm:$0xff]  ;;  %vm15199_vm2 = vmmov %vm15182_vm6 }
0x1443   : > { %v5440_v45 = vmul.f32 %v5421_v1, %v15177_v44  ;;  %v5441_v61 = vmul.f32 %v5405_v51, %v15177_v44  ;;  %v5438_v24 = vmul.f32 %v5420_v57, %v15178_v21  ;;  %v5439_v4 = vmul.f32 %v5404_v16, %v15178_v21  ;;  %vm15200_vm7 = vmmov %vm15199_vm2 }
0x1444   : > { %vm15201_vm14 = vmmov %vm15199_vm2 }
0x1445   : > { %v12951_v53 = vpop.permute.xlu0 %6993  ;;  %v5471_v58 = vadd.f32 %v5439_v4, %v5311_v28  ;;  %v5473_v30 = vadd.f32 %v5441_v61, %v5313_v22  ;;  %v5470_v18 = vadd.f32 %v5438_v24, %v5310_v5  ;;  %v5472_v41 = vadd.f32 %v5440_v45, %v5312_v40  ;;  %v15184_v22 = vld [vmem:[#allocation80_spill] sm:$0xff]  ;;  %vm15202_vm10 = vmmov %vm15199_vm2 }
0x1446   : > { %v6996_v49 = vunpack.i.h.bf16 %v12951_v53  ;;  %v6995_v0 = vunpack.i.l.bf16 %v12951_v53  ;;  %v15183_v53 = vld [vmem:[#allocation147_spill] sm:$0xff]  ;;  %v15186_v45 = vld [vmem:[#allocation144_spill] sm:$0xff] }
0x1447   : > { %v5501_v57 = vpack.c.bf16 %v5473_v30, %v5471_v58  ;;  %v15189_v30 = vld [vmem:[#allocation64_spill] sm:$0xff] }
0x1448   : > { %v6989_v12 = vpop.permute.xlu1 %6988 }
0x1449   : > { %v7004_v8 = vpop.permute.xlu0 %7003  ;;  %v6991_v50 = vunpack.i.h.bf16 %v6989_v12  ;;  %v6990_v63 = vunpack.i.l.bf16 %v6989_v12  ;;  %v5500_v12 = vpack.c.bf16 %v5472_v41, %v5470_v18  ;;  %5554 = vmatprep.mubr.bf16.mxu0 %v5501_v57  ;;  %v15195_v57 = vld [vmem:[#allocation134_spill] sm:$0xff] }
0x144a   : > { %v7006_v4 = vunpack.i.h.bf16 %v7004_v8 }
0x144b   : > { %v5087_v13 = vsel %vm15179_vm12, %v6986_v23, %v6991_v50  ;;  %v5103_v26 = vsel %vm15180_vm15, %v6991_v50, %v6986_v23  ;;  %v5086_v36 = vsel %vm15181_vm8, %v6985_v54, %v6990_v63  ;;  %v5102_v29 = vsel %vm15182_vm6, %v6990_v63, %v6985_v54  ;;  %v15185_v23 = vld [vmem:[#allocation66_spill] sm:$0xff]  ;;  %5555 = vmatmul.mubr.bf16.gmra.mxu0 %v5500_v12  ;;  %vm15206_vm12 = vmmov %vm15187_vm1 }
0x144c   : > { %v6999_v59 = vpop.permute.xlu1 %6998  ;;  %v5124_v51 = vmul.f32 %v5103_v26, %v15183_v53  ;;  %v5125_v28 = vmul.f32 %v5087_v13, %v15183_v53  ;;  %v5122_v5 = vmul.f32 %v5102_v29, %v15184_v22  ;;  %v5123_v40 = vmul.f32 %v5086_v36, %v15184_v22  ;;  %vm15207_vm15 = vmmov %vm15187_vm1 }
0x144d   : > { %v7001_v1 = vunpack.i.h.bf16 %v6999_v59  ;;  %v7000_v16 = vunpack.i.l.bf16 %v6999_v59  ;;  %v7005_v50 = vunpack.i.l.bf16 %v7004_v8  ;;  %v15192_v59 = vld [vmem:[#allocation81_spill] sm:$0xff]  ;;  %vm15208_vm8 = vmmov %vm15187_vm1 }
0x144e   : > { %v5156_v44 = vadd.f32 %v5124_v51, %v15185_v23  ;;  %v5157_v61 = vadd.f32 %v5125_v28, %v15186_v45  ;;  %v5154_v21 = vadd.f32 %v5122_v5, %v12897_v33  ;;  %v5155_v54 = vadd.f32 %v5123_v40, %v12901_v19  ;;  %vm15209_vm6 = vmmov %vm15187_vm1 }
0x144f   : > { %v5247_v63 = vsel %vm15187_vm1, %v6996_v49, %v7001_v1  ;;  %v5263_v13 = vsel %vm15188_vm11, %v7001_v1, %v6996_v49  ;;  %v5246_v33 = vsel %vm15190_vm4, %v6995_v0, %v7000_v16  ;;  %v5262_v19 = vsel %vm15191_vm9, %v7000_v16, %v6995_v0  ;;  %vm15211_vm1 = vmmov %vm15196_vm0 }
0x1450   : > { %v7009_v58 = vpop.permute.xlu1 %7008  ;;  %v5284_v18 = vmul.f32 %v5263_v13, %v15189_v30  ;;  %v5285_v41 = vmul.f32 %v5247_v63, %v15189_v30  ;;  %v5282_v53 = vmul.f32 %v5262_v19, %v15192_v59  ;;  %v5283_v49 = vmul.f32 %v5246_v33, %v15192_v59  ;;  %vm15212_vm11 = vmmov %vm15196_vm0 }
0x1451   : > { %v7011_v36 = vunpack.i.h.bf16 %v7009_v58  ;;  %v7010_v29 = vunpack.i.l.bf16 %v7009_v58  ;;  %vm15213_vm4 = vmmov %vm15196_vm0 }
0x1452   : > { %v5317_v28 = vadd.f32 %v5285_v41, %v5157_v61  ;;  %v5316_v22 = vadd.f32 %v5284_v18, %v5156_v44  ;;  %v15198_v44 = vld [vmem:[#allocation87_spill] sm:$0xff]  ;;  %v5315_v18 = vadd.f32 %v5283_v49, %v5155_v54  ;;  %v5314_v41 = vadd.f32 %v5282_v53, %v5154_v21  ;;  %v15203_v54 = vld [vmem:[#allocation116_spill] sm:$0xff]  ;;  %vm15214_vm9 = vmmov %vm15196_vm0 }
0x1453   : > { %v5407_v1 = vsel %vm15193_vm5, %v7006_v4, %v7011_v36  ;;  %v5423_v0 = vsel %vm15194_vm3, %v7011_v36, %v7006_v4  ;;  %v5406_v45 = vsel %vm15196_vm0, %v7005_v50, %v7010_v29  ;;  %v5422_v61 = vsel %vm15197_vm13, %v7010_v29, %v7005_v50  ;;  %vm15216_vm5 = vmmov %vm15199_vm2 }
0x1454   : > { %v5444_v12 = vmul.f32 %v5423_v0, %v15195_v57  ;;  %v5445_v23 = vmul.f32 %v5407_v1, %v15195_v57  ;;  %v5443_v63 = vmul.f32 %v5406_v45, %v15198_v44  ;;  %v15205_v45 = vld [vmem:[#allocation169_spill] sm:$0xff]  ;;  %vm15217_vm3 = vmmov %vm15199_vm2 }
0x1455   : > { %vm15218_vm0 = vmmov %vm15199_vm2 }
0x1456   : > { %v7014_v24 = vpop.permute.xlu0 %7013  ;;  %v5477_v4 = vadd.f32 %v5445_v23, %v5317_v28  ;;  %v5476_v33 = vadd.f32 %v5444_v12, %v5316_v22  ;;  %v5475_v57 = vadd.f32 %v5443_v63, %v5315_v18  ;;  %v15204_v23 = vld [vmem:[#allocation156_spill] sm:$0xff]  ;;  %v15210_v63 = vld [vmem:[#allocation142_spill] sm:$0xff]  ;;  %vm15219_vm13 = vmmov %vm15218_vm0 }
0x1457   : > { %v7016_v8 = vunpack.i.h.bf16 %v7014_v24  ;;  %v7015_v26 = vunpack.i.l.bf16 %v7014_v24  ;;  %v5442_v24 = vmul.f32 %v5422_v61, %v15198_v44 }
0x1459   : > { %v5474_v12 = vadd.f32 %v5442_v24, %v5314_v41 }
0x145a   : > { %v7024_v51 = vpop.permute.xlu0 %7023 }
0x145b   : > { %v7026_v5 = vunpack.i.h.bf16 %v7024_v51  ;;  %v7025_v40 = vunpack.i.l.bf16 %v7024_v51 }
0x145c   : > { %v7019_v16 = vpop.permute.xlu1 %7018 }
0x145d   : > { %v7021_v13 = vunpack.i.h.bf16 %v7019_v16  ;;  %v7020_v58 = vunpack.i.l.bf16 %v7019_v16 }
0x145e   : > { %v7034_v30 = vpop.permute.xlu0 %7033 }
0x145f   : > { %v7036_v19 = vunpack.i.h.bf16 %v7034_v30  ;;  %v7035_v36 = vunpack.i.l.bf16 %v7034_v30  ;;  %v5089_v59 = vsel %vm15199_vm2, %v7016_v8, %v7021_v13  ;;  %v5105_v51 = vsel %vm15200_vm7, %v7021_v13, %v7016_v8  ;;  %vm15223_vm2 = vmmov %vm15209_vm6 }
0x1460   : > { %v7029_v50 = vpop.permute.xlu1 %7028  ;;  %v5128_v29 = vmul.f32 %v5105_v51, %v12569_v34  ;;  %v5129_v1 = vmul.f32 %v5089_v59, %v12569_v34  ;;  %v5088_v0 = vsel %vm15201_vm14, %v7015_v26, %v7020_v58  ;;  %v5104_v21 = vsel %vm15202_vm10, %v7020_v58, %v7015_v26  ;;  %vm15224_vm7 = vmmov %vm15223_vm2 }
0x1461   : > { %v5126_v53 = vmul.f32 %v5104_v21, %v15203_v54  ;;  %v5127_v49 = vmul.f32 %v5088_v0, %v15203_v54  ;;  %v7031_v28 = vunpack.i.h.bf16 %v7029_v50  ;;  %v7030_v22 = vunpack.i.l.bf16 %v7029_v50  ;;  %vm15225_vm14 = vmmov %vm15223_vm2 }
0x1462   : > { %v5160_v16 = vadd.f32 %v5128_v29, %v12573_v9  ;;  %v5161_v8 = vadd.f32 %v5129_v1, %v12580_v31  ;;  %v5503_v59 = vpack.c.bf16 %v5477_v4, %v5475_v57  ;;  %v5502_v51 = vpack.c.bf16 %v5476_v33, %v5474_v12  ;;  %v15215_v57 = vld [vmem:[#allocation139_spill] sm:$0xff]  ;;  %vm15226_vm10 = vmmov %vm15223_vm2 }
0x1463   : > { %v5158_v34 = vadd.f32 %v5126_v53, %v15204_v23  ;;  %v5159_v61 = vadd.f32 %v5127_v49, %v15205_v45  ;;  %v5249_v44 = vsel %vm15206_vm12, %v7026_v5, %v7031_v28  ;;  %v5265_v26 = vsel %vm15207_vm15, %v7031_v28, %v7026_v5  ;;  %vm15228_vm12 = vmmov %vm15211_vm1 }
0x1464   : > { %v7039_v13 = vpop.permute.xlu1 %7038  ;;  %v5288_v58 = vmul.f32 %v5265_v26, %v12717_v35  ;;  %v5289_v30 = vmul.f32 %v5249_v44, %v12717_v35  ;;  %v5248_v9 = vsel %vm15208_vm8, %v7025_v40, %v7030_v22  ;;  %v5264_v31 = vsel %vm15209_vm6, %v7030_v22, %v7025_v40  ;;  %5562 = vmatprep.mubr.bf16.mxu0 %v5503_v59  ;;  %vm15229_vm15 = vmmov %vm15211_vm1 }
0x1465   : > { %v5286_v18 = vmul.f32 %v5264_v31, %v15210_v63  ;;  %v5287_v41 = vmul.f32 %v5248_v9, %v15210_v63  ;;  %v7041_v29 = vunpack.i.h.bf16 %v7039_v13  ;;  %v7040_v1 = vunpack.i.l.bf16 %v7039_v13  ;;  %5563 = vmatmul.mubr.bf16.gmra.mxu0 %v5502_v51  ;;  %vm15230_vm8 = vmmov %vm15211_vm1 }
0x1466   : > { %v5321_v21 = vadd.f32 %v5289_v30, %v5161_v8  ;;  %v5320_v53 = vadd.f32 %v5288_v58, %v5160_v16  ;;  %vm15231_vm6 = vmmov %vm15211_vm1 }
0x1467   : > { %v7044_v24 = vpop.permute.xlu0 %7043  ;;  %v5319_v35 = vadd.f32 %v5287_v41, %v5159_v61  ;;  %v5318_v54 = vadd.f32 %v5286_v18, %v5158_v34  ;;  %v5409_v40 = vsel %vm15211_vm1, %v7036_v19, %v7041_v29  ;;  %v5425_v49 = vsel %vm15212_vm11, %v7041_v29, %v7036_v19  ;;  %v15220_v18 = vld [vmem:[#allocation146_spill] sm:$0xff]  ;;  %vm15233_vm1 = vmmov %vm15218_vm0 }
0x1468   : > { %v7046_v50 = vunpack.i.h.bf16 %v7044_v24  ;;  %v7045_v5 = vunpack.i.l.bf16 %v7044_v24  ;;  %v7049_v0 = vpop.permute.xlu1 %7048  ;;  %v5408_v4 = vsel %vm15213_vm4, %v7035_v36, %v7040_v1  ;;  %v5424_v33 = vsel %vm15214_vm9, %v7040_v1, %v7035_v36  ;;  %vm15234_vm11 = vmmov %vm15218_vm0 }
0x1469   : > { %v5448_v22 = vmul.f32 %v5425_v49, %v12729_v14  ;;  %v5449_v8 = vmul.f32 %v5409_v40, %v12729_v14  ;;  %v5446_v16 = vmul.f32 %v5424_v33, %v15215_v57  ;;  %v5447_v12 = vmul.f32 %v5408_v4, %v15215_v57  ;;  %vm15235_vm4 = vmmov %vm15218_vm0 }
0x146a   : > { %v7051_v45 = vunpack.i.h.bf16 %v7049_v0  ;;  %v7050_v61 = vunpack.i.l.bf16 %v7049_v0  ;;  %vm15236_vm9 = vmmov %vm15218_vm0 }
0x146b   : > { %v7054_v28 = vpop.permute.xlu0 %7053  ;;  %v5479_v44 = vadd.f32 %v5447_v12, %v5319_v35  ;;  %v5481_v26 = vadd.f32 %v5449_v8, %v5321_v21  ;;  %v5478_v13 = vadd.f32 %v5446_v16, %v5318_v54  ;;  %v5480_v58 = vadd.f32 %v5448_v22, %v5320_v53  ;;  %v15221_v21 = vld [vmem:[#allocation130_spill] sm:$0xff]  ;;  %v15227_v22 = vld [vmem:[#allocation143_spill] sm:$0xff] }
0x146c   : > { %v7056_v23 = vunpack.i.h.bf16 %v7054_v28  ;;  %v7055_v34 = vunpack.i.l.bf16 %v7054_v28  ;;  %v7059_v19 = vpop.permute.xlu1 %7058  ;;  %v5091_v36 = vsel %vm15216_vm5, %v7046_v50, %v7051_v45  ;;  %v5107_v30 = vsel %vm15217_vm3, %v7051_v45, %v7046_v50  ;;  %vm15240_vm5 = vmmov %vm15223_vm2 }
0x146d   : > { %v5090_v14 = vsel %vm15218_vm0, %v7045_v5, %v7050_v61  ;;  %v5106_v9 = vsel %vm15219_vm13, %v7050_v61, %v7045_v5  ;;  %v5132_v24 = vmul.f32 %v5107_v30, %v12658_v25  ;;  %v5133_v63 = vmul.f32 %v5091_v36, %v12658_v25  ;;  %v15222_v5 = vld [vmem:[#allocation174_spill] sm:$0xff]  ;;  %vm15241_vm3 = vmmov %vm15223_vm2 }
0x146e   : > { %v5130_v41 = vmul.f32 %v5106_v9, %v15220_v18  ;;  %v5131_v59 = vmul.f32 %v5090_v14, %v15220_v18  ;;  %v7061_v1 = vunpack.i.h.bf16 %v7059_v19  ;;  %v7060_v0 = vunpack.i.l.bf16 %v7059_v19  ;;  %vm15242_vm0 = vmmov %vm15223_vm2 }
0x146f   : > { %v7064_v31 = vpop.permute.xlu0 %7063  ;;  %v5164_v50 = vadd.f32 %v5132_v24, %v12666_v62  ;;  %v5165_v35 = vadd.f32 %v5133_v63, %v12669_v43  ;;  %v5505_v45 = vpack.c.bf16 %v5481_v26, %v5479_v44  ;;  %v5504_v61 = vpack.c.bf16 %v5480_v58, %v5478_v13  ;;  %vm15243_vm13 = vmmov %vm15242_vm0 }
0x1470   : > { %v7066_v51 = vunpack.i.h.bf16 %v7064_v31  ;;  %v7065_v29 = vunpack.i.l.bf16 %v7064_v31  ;;  %v5162_v54 = vadd.f32 %v5130_v41, %v15221_v21  ;;  %v5163_v53 = vadd.f32 %v5131_v59, %v15222_v5  ;;  %v7069_v40 = vpop.permute.xlu1 %7068 }
0x1471   : > { %v5251_v25 = vsel %vm15223_vm2, %v7056_v23, %v7061_v1  ;;  %v5267_v49 = vsel %vm15224_vm7, %v7061_v1, %v7056_v23  ;;  %v5250_v4 = vsel %vm15225_vm14, %v7055_v34, %v7060_v0  ;;  %v5266_v33 = vsel %vm15226_vm10, %v7060_v0, %v7055_v34  ;;  %5570 = vmatprep.mubr.bf16.mxu0 %v5505_v45  ;;  %v15232_v1 = vld [vmem:[#allocation13_spill] sm:$0xff]  ;;  %vm15245_vm2 = vmmov %vm15231_vm6 }
0x1472   : > { %v5292_v43 = vmul.f32 %v5267_v49, %v12750_v52  ;;  %v5293_v28 = vmul.f32 %v5251_v25, %v12750_v52  ;;  %v5290_v8 = vmul.f32 %v5266_v33, %v15227_v22  ;;  %v5291_v57 = vmul.f32 %v5250_v4, %v15227_v22  ;;  %5571 = vmatmul.mubr.bf16.gmra.mxu0 %v5504_v61  ;;  %v15238_v22 = vld [vmem:[#allocation150_spill] sm:$0xff]  ;;  %vm15246_vm7 = vmmov %vm15245_vm2 }
0x1473   : > { %v7074_v62 = vpop.permute.xlu0 %7073  ;;  %v7071_v23 = vunpack.i.h.bf16 %v7069_v40  ;;  %v7070_v19 = vunpack.i.l.bf16 %v7069_v40  ;;  %v15237_v40 = vld [vmem:[#allocation99_spill] sm:$0xff]  ;;  %vm15247_vm14 = vmmov %vm15245_vm2 }
0x1474   : > { %v7076_v16 = vunpack.i.h.bf16 %v7074_v62  ;;  %v7075_v12 = vunpack.i.l.bf16 %v7074_v62  ;;  %v5323_v30 = vadd.f32 %v5291_v57, %v5163_v53  ;;  %v5325_v14 = vadd.f32 %v5293_v28, %v5165_v35  ;;  %v15239_v57 = vld [vmem:[#allocation57_spill] sm:$0xff]  ;;  %vm15248_vm10 = vmmov %vm15245_vm2 }
0x1475   : > { %v7079_v36 = vpop.permute.xlu1 %7078  ;;  %v5322_v31 = vadd.f32 %v5290_v8, %v5162_v54  ;;  %v5324_v24 = vadd.f32 %v5292_v43, %v5164_v50  ;;  %v5411_v63 = vsel %vm15228_vm12, %v7066_v51, %v7071_v23  ;;  %v5427_v18 = vsel %vm15229_vm15, %v7071_v23, %v7066_v51  ;;  %vm15250_vm12 = vmmov %vm15233_vm1 }
0x1476   : > { %v7081_v34 = vunpack.i.h.bf16 %v7079_v36  ;;  %v7080_v9 = vunpack.i.l.bf16 %v7079_v36  ;;  %v5410_v44 = vsel %vm15230_vm8, %v7065_v29, %v7070_v19  ;;  %v5426_v26 = vsel %vm15231_vm6, %v7070_v19, %v7065_v29  ;;  %vm15251_vm15 = vmmov %vm15233_vm1 }
0x1477   : > { %v7084_v52 = vpop.permute.xlu0 %7083  ;;  %v5452_v41 = vmul.f32 %v5427_v18, %v12764_v2  ;;  %v5453_v59 = vmul.f32 %v5411_v63, %v12764_v2  ;;  %v5450_v0 = vmul.f32 %v5426_v26, %v15232_v1  ;;  %v5451_v50 = vmul.f32 %v5410_v44, %v15232_v1  ;;  %vm15252_vm8 = vmmov %vm15233_vm1 }
0x1478   : > { %v7086_v13 = vunpack.i.h.bf16 %v7084_v52  ;;  %v7085_v58 = vunpack.i.l.bf16 %v7084_v52  ;;  %v5093_v35 = vsel %vm15233_vm1, %v7076_v16, %v7081_v34  ;;  %v5109_v51 = vsel %vm15234_vm11, %v7081_v34, %v7076_v16  ;;  %v15244_v34 = vld [vmem:[#allocation151_spill] sm:$0xff]  ;;  %vm15253_vm6 = vmmov %vm15233_vm1 }
0x1479   : > { %v7089_v21 = vpop.permute.xlu1 %7088  ;;  %v5136_v54 = vmul.f32 %v5109_v51, %v12673_v55  ;;  %v5137_v29 = vmul.f32 %v5093_v35, %v12673_v55  ;;  %v5092_v5 = vsel %vm15235_vm4, %v7075_v12, %v7080_v9  ;;  %v5108_v2 = vsel %vm15236_vm9, %v7080_v9, %v7075_v12  ;;  %vm15257_vm1 = vmmov %vm15242_vm0 }
0x147a   : > { %v5134_v25 = vmul.f32 %v5108_v2, %v15237_v40  ;;  %v5135_v49 = vmul.f32 %v5092_v5, %v15237_v40  ;;  %v7091_v4 = vunpack.i.h.bf16 %v7089_v21  ;;  %v7090_v33 = vunpack.i.l.bf16 %v7089_v21  ;;  %vm15258_vm11 = vmmov %vm15242_vm0 }
0x147b   : > { %v7094_v53 = vpop.permute.xlu0 %7093  ;;  %v13110_v28 = vadd.f32 %v5136_v54, %v12680_v17  ;;  %v5169_v55 = vadd.f32 %v5137_v29, %v12683_v38  ;;  %v5483_v63 = vadd.f32 %v5451_v50, %v5323_v30  ;;  %v5485_v18 = vadd.f32 %v5453_v59, %v5325_v14  ;;  %v15249_v50 = vld [vmem:[#allocation68_spill] sm:$0xff]  ;;  %vm15259_vm4 = vmmov %vm15242_vm0 }
0x147c   : > { %v7096_v62 = vunpack.i.h.bf16 %v7094_v53  ;;  %v7095_v43 = vunpack.i.l.bf16 %v7094_v53  ;;  %v13114_v8 = vadd.f32 %v5134_v25, %v15238_v22  ;;  %v5167_v16 = vadd.f32 %v5135_v49, %v15239_v57  ;;  %vm15260_vm9 = vmmov %vm15242_vm0 }
0x147d   : > { %v5253_v12 = vsel %vm15240_vm5, %v7086_v13, %v7091_v4  ;;  %v5269_v45 = vsel %vm15241_vm3, %v7091_v4, %v7086_v13  ;;  %v7099_v61 = vpop.permute.xlu1 %7098  ;;  %v5252_v38 = vsel %vm15242_vm0, %v7085_v58, %v7090_v33  ;;  %v5268_v19 = vsel %vm15243_vm13, %v7090_v33, %v7085_v58  ;;  %vm15262_vm5 = vmmov %vm15245_vm2 }
0x147e   : > { %v13122_v23 = vmul.f32 %v5269_v45, %v12772_v7  ;;  %v5297_v17 = vmul.f32 %v5253_v12, %v12772_v7  ;;  %v5294_v9 = vmul.f32 %v5268_v19, %v15244_v34  ;;  %v5295_v52 = vmul.f32 %v5252_v38, %v15244_v34  ;;  %v15255_v34 = vld [vmem:[#allocation159_spill] sm:$0xff]  ;;  %vm15263_vm3 = vmmov %vm15245_vm2 }
0x147f   : > { %v7104_v36 = vpop.permute.xlu0 %7103  ;;  %v5482_v13 = vadd.f32 %v5450_v0, %v5322_v31  ;;  %v5484_v1 = vadd.f32 %v5452_v41, %v5324_v24  ;;  %v5507_v35 = vpack.c.bf16 %v5485_v18, %v5483_v63  ;;  %v7101_v51 = vunpack.i.h.bf16 %v7099_v61  ;;  %v15256_v63 = vld [vmem:[#allocation59_spill] sm:$0xff]  ;;  %vm15264_vm0 = vmmov %vm15245_vm2 }
0x1480   : > { %v7106_v44 = vunpack.i.h.bf16 %v7104_v36  ;;  %v7105_v26 = vunpack.i.l.bf16 %v7104_v36  ;;  %v7100_v7 = vunpack.i.l.bf16 %v7099_v61  ;;  %v5327_v54 = vadd.f32 %v5295_v52, %v5167_v16  ;;  %v15254_v16 = vld [vmem:[#allocation54_spill] sm:$0xff]  ;;  %vm15265_vm13 = vmmov %vm15264_vm0 }
0x1481   : > { %v7109_v21 = vpop.permute.xlu1 %7108  ;;  %v5506_v29 = vpack.c.bf16 %v5484_v1, %v5482_v13  ;;  %v5329_v58 = vadd.f32 %v5297_v17, %v5169_v55  ;;  %5578 = vmatprep.mubr.bf16.mxu0 %v5507_v35  ;;  %v5413_v40 = vsel %vm15245_vm2, %v7096_v62, %v7101_v51  ;;  %v5429_v30 = vsel %vm15246_vm7, %v7101_v51, %v7096_v62  ;;  %v15261_v51 = vld [vmem:[#allocation154_spill] sm:$0xff]  ;;  %vm15267_vm2 = vmmov %vm15253_vm6 }
0x1482   : > { %v7111_v5 = vunpack.i.h.bf16 %v7109_v21  ;;  %v7110_v2 = vunpack.i.l.bf16 %v7109_v21  ;;  %v5412_v14 = vsel %vm15247_vm14, %v7095_v43, %v7100_v7  ;;  %v5428_v31 = vsel %vm15248_vm10, %v7100_v7, %v7095_v43  ;;  %vm15268_vm7 = vmmov %vm15267_vm2 }
0x1483   : > { %v7114_v53 = vpop.permute.xlu0 %7113  ;;  %5579 = vmatmul.mubr.bf16.gmra.mxu0 %v5506_v29  ;;  %v5456_v59 = vmul.f32 %v5429_v30, %v12777_v6  ;;  %v5457_v0 = vmul.f32 %v5413_v40, %v12777_v6  ;;  %v5454_v25 = vmul.f32 %v5428_v31, %v15249_v50  ;;  %v5455_v49 = vmul.f32 %v5412_v14, %v15249_v50  ;;  %vm15269_vm14 = vmmov %vm15267_vm2 }
0x1484   : > { %v7116_v24 = vunpack.i.h.bf16 %v7114_v53  ;;  %v7115_v41 = vunpack.i.l.bf16 %v7114_v53  ;;  %v5095_v4 = vsel %vm15250_vm12, %v7106_v44, %v7111_v5  ;;  %v5111_v33 = vsel %vm15251_vm15, %v7111_v5, %v7106_v44  ;;  %vm15270_vm10 = vmmov %vm15267_vm2 }
0x1485   : > { %v7119_v62 = vpop.permute.xlu1 %7118  ;;  %v5140_v43 = vmul.f32 %v5111_v33, %v12696_v48  ;;  %v5141_v55 = vmul.f32 %v5095_v4, %v12696_v48  ;;  %v5094_v22 = vsel %vm15252_vm8, %v7105_v26, %v7110_v2  ;;  %v5110_v6 = vsel %vm15253_vm6, %v7110_v2, %v7105_v26  ;;  %vm15271_vm12 = vmmov %vm15257_vm1 }
0x1486   : > { %v5138_v12 = vmul.f32 %v5110_v6, %v15254_v16  ;;  %v5139_v45 = vmul.f32 %v5094_v22, %v15254_v16  ;;  %v7121_v61 = vunpack.i.h.bf16 %v7119_v62  ;;  %v7120_v17 = vunpack.i.l.bf16 %v7119_v62  ;;  %vm15272_vm15 = vmmov %vm15257_vm1 }
0x1487   : > { %v7124_v57 = vpop.permute.xlu0 %7123  ;;  %v13156_v36 = vadd.f32 %v5140_v43, %v12704_v46  ;;  %v5173_v48 = vadd.f32 %v5141_v55, %v12708_v47  ;;  %v5487_v29 = vadd.f32 %v5455_v49, %v5327_v54  ;;  %v5489_v5 = vadd.f32 %v5457_v0, %v5329_v58  ;;  %vm15273_vm8 = vmmov %vm15257_vm1 }
0x1488   : > { %v7126_v38 = vunpack.i.h.bf16 %v7124_v57  ;;  %v7125_v19 = vunpack.i.l.bf16 %v7124_v57  ;;  %v13160_v52 = vadd.f32 %v5138_v12, %v15255_v34  ;;  %v5171_v18 = vadd.f32 %v5139_v45, %v15256_v63  ;;  %vm15274_vm6 = vmmov %vm15257_vm1 }
0x1489   : > { %v5255_v44 = vsel %vm15257_vm1, %v7116_v24, %v7121_v61  ;;  %v5271_v26 = vsel %vm15258_vm11, %v7121_v61, %v7116_v24  ;;  %v7129_v13 = vpop.permute.xlu1 %7128  ;;  %v5254_v47 = vsel %vm15259_vm4, %v7115_v41, %v7120_v17  ;;  %v5270_v35 = vsel %vm15260_vm9, %v7120_v17, %v7115_v41  ;;  %vm15275_vm1 = vmmov %vm15264_vm0 }
0x148a   : > { %v13168_v1 = vmul.f32 %v5271_v26, %v12791_v37  ;;  %v5301_v46 = vmul.f32 %v5255_v44, %v12791_v37  ;;  %v5298_v7 = vmul.f32 %v5270_v35, %v15261_v51  ;;  %v5299_v21 = vmul.f32 %v5254_v47, %v15261_v51  ;;  %vm15276_vm11 = vmmov %vm15264_vm0 }
0x148b   : > { %v7134_v2 = vpop.permute.xlu0 %7133  ;;  %v5326_v53 = vadd.f32 %v5294_v9, %v13114_v8  ;;  %v5328_v40 = vadd.f32 %v13122_v23, %v13110_v28  ;;  %v7131_v30 = vunpack.i.h.bf16 %v7129_v13  ;;  %v7130_v37 = vunpack.i.l.bf16 %v7129_v13  ;;  %vm15277_vm4 = vmmov %vm15264_vm0 }
0x148c   : > { %v5509_v14 = vpack.c.bf16 %v5489_v5, %v5487_v29  ;;  %v7136_v31 = vunpack.i.h.bf16 %v7134_v2  ;;  %v7135_v24 = vunpack.i.l.bf16 %v7134_v2  ;;  %v5331_v4 = vadd.f32 %v5299_v21, %v5171_v18  ;;  %vm15278_vm9 = vmmov %vm15264_vm0 }
0x148d   : > { %v7139_v50 = vpop.permute.xlu1 %7138  ;;  %v5486_v41 = vadd.f32 %v5454_v25, %v5326_v53  ;;  %v5488_v33 = vadd.f32 %v5456_v59, %v5328_v40  ;;  %v5415_v62 = vsel %vm15262_vm5, %v7126_v38, %v7131_v30  ;;  %v5431_v54 = vsel %vm15263_vm3, %v7131_v30, %v7126_v38  ;;  %v15266_v59 = vld [vmem:[#allocation76_spill] sm:$0xff] }
0x148e   : > { %5586 = vmatprep.mubr.bf16.mxu0 %v5509_v14  ;;  %v5460_v8 = vmul.f32 %v5431_v54, %v12794_v32  ;;  %v5461_v28 = vmul.f32 %v5415_v62, %v12794_v32  ;;  %v5414_v23 = vsel %vm15264_vm0, %v7125_v19, %v7130_v37  ;;  %v5430_v9 = vsel %vm15265_vm13, %v7130_v37, %v7125_v19  ;;  %v15279_v62 = vld [vmem:[#allocation102_spill] sm:$0xff] }
0x148f   : > { %v7144_v58 = vpop.permute.xlu0 %7143  ;;  %v5508_v0 = vpack.c.bf16 %v5488_v33, %v5486_v41  ;;  %v5458_v25 = vmul.f32 %v5430_v9, %v15266_v59  ;;  %v5459_v49 = vmul.f32 %v5414_v23, %v15266_v59  ;;  %v7141_v43 = vunpack.i.h.bf16 %v7139_v50 }
0x1490   : > { %v7140_v55 = vunpack.i.l.bf16 %v7139_v50  ;;  %v7146_v22 = vunpack.i.h.bf16 %v7144_v58  ;;  %v7145_v6 = vunpack.i.l.bf16 %v7144_v58  ;;  %v5333_v16 = vadd.f32 %v5301_v46, %v5173_v48 }
0x1491   : > { %v7149_v57 = vpop.permute.xlu1 %7148  ;;  %5587 = vmatmul.mubr.bf16.gmra.mxu0 %v5508_v0  ;;  %v5097_v32 = vsel %vm15267_vm2, %v7136_v31, %v7141_v43  ;;  %v5113_v12 = vsel %vm15268_vm7, %v7141_v43, %v7136_v31  ;;  %v5491_v53 = vadd.f32 %v5459_v49, %v5331_v4  ;;  %vm15281_vm5 = vmmov 0  }
0x1492   : > { %v7151_v45 = vunpack.i.h.bf16 %v7149_v57  ;;  %v7150_v61 = vunpack.i.l.bf16 %v7149_v57  ;;  %v5144_v17 = vmul.f32 %v5113_v12, %v12712_v39  ;;  %v5145_v38 = vmul.f32 %v5097_v32, %v12712_v39 }
0x1493   : > { %v5096_v19 = vsel %vm15269_vm14, %v7135_v24, %v7140_v55  ;;  %v5112_v34 = vsel %vm15270_vm10, %v7140_v55, %v7135_v24  ;;  %v7154_v26 = vpop.permute.xlu0 %7153  ;;  %v5493_v40 = vadd.f32 %v5461_v28, %v5333_v16  ;;  %vm15282_vm3 = vcmask 261120  }
0x1494   : > { %v5142_v48 = vmul.f32 %v5112_v34, %v12826_v10  ;;  %v5143_v63 = vmul.f32 %v5096_v19, %v12826_v10  ;;  %v5257_v18 = vsel %vm15271_vm12, %v7146_v22, %v7151_v45  ;;  %v5273_v44 = vsel %vm15272_vm15, %v7151_v45, %v7146_v22  ;;  %vm15284_vm0 = vmmov %vm15282_vm3 }
0x1495   : > { %v5176_v13 = vadd.f32 %v5144_v17, %v12726_v15  ;;  %v5177_v39 = vadd.f32 %v5145_v38, %v12735_v3  ;;  %v5304_v46 = vmul.f32 %v5273_v44, %v12842_v27  ;;  %v5305_v47 = vmul.f32 %v5257_v18, %v12842_v27  ;;  %v7159_v29 = vpop.permute.xlu1 %7158  ;;  %vm15285_vm13 = vmmov %vm15284_vm0 }
0x1496   : > { %v5174_v35 = vadd.f32 %v5142_v48, %v12858_v42  ;;  %v5175_v51 = vadd.f32 %v5143_v63, %v12860_v20  ;;  %v5256_v10 = vsel %vm15273_vm8, %v7145_v6, %v7150_v61  ;;  %v5272_v21 = vsel %vm15274_vm6, %v7150_v61, %v7145_v6  ;;  %vm15286_vm2 = vmmov %vm15284_vm0 }
0x1497   : > { %v5302_v5 = vmul.f32 %v5272_v21, %v12837_v56  ;;  %v5303_v15 = vmul.f32 %v5256_v10, %v12837_v56  ;;  %v7156_v3 = vunpack.i.h.bf16 %v7154_v26  ;;  %v7155_v2 = vunpack.i.l.bf16 %v7154_v26  ;;  %vm15289_vm10 = vmmov %vm15284_vm0 }
0x1498   : > { %v5330_v27 = vadd.f32 %v5298_v7, %v13160_v52  ;;  %v5332_v42 = vadd.f32 %v13168_v1, %v13156_v36  ;;  %v7161_v20 = vunpack.i.h.bf16 %v7159_v29  ;;  %v7160_v30 = vunpack.i.l.bf16 %v7159_v29 }
0x1499   : > { %v5335_v37 = vadd.f32 %v5303_v15, %v5175_v51  ;;  %v5337_v14 = vadd.f32 %v5305_v47, %v5177_v39  ;;  %v5511_v31 = vpack.c.bf16 %v5493_v40, %v5491_v53  ;;  %v5334_v41 = vadd.f32 %v5302_v5, %v5174_v35  ;;  %v7230_v5 = vld [vmem:[%s13471_s24 + $0x78] sm:$0xff] }
0x149a   : > { %v5490_v24 = vadd.f32 %v5458_v25, %v5330_v27  ;;  %v5492_v50 = vadd.f32 %v5460_v8, %v5332_v42  ;;  %v5417_v56 = vsel %vm15275_vm1, %v7156_v3, %v7161_v20  ;;  %v5433_v4 = vsel %vm15276_vm11, %v7161_v20, %v7156_v3  ;;  %v7232_v27 = vld [vmem:[%s13471_s24 + $0x68] sm:$0xff]  ;;  %v7233_v20 = vld [vmem:[%s13471_s24 + $0x60] sm:$0xff] }
0x149b   : > { %v5416_v52 = vsel %vm15277_vm4, %v7155_v2, %v7160_v30  ;;  %v5432_v36 = vsel %vm15278_vm9, %v7160_v30, %v7155_v2  ;;  %5594 = vmatprep.mubr.bf16.mxu0 %v5511_v31  ;;  %v5464_v7 = vmul.f32 %v5433_v4, %v12863_v60  ;;  %v5465_v33 = vmul.f32 %v5417_v56, %v12863_v60  ;;  %v7231_v2 = vld [vmem:[%s13471_s24 + $0x70] sm:$0xff]  ;;  %v7237_v56 = vld [vmem:[%s13471_s24 + $0x40] sm:$0xff] }
0x149c   : > { %v5510_v1 = vpack.c.bf16 %v5492_v50, %v5490_v24  ;;  %v5462_v54 = vmul.f32 %v5432_v36, %v15279_v62  ;;  %v5463_v8 = vmul.f32 %v5416_v52, %v15279_v62  ;;  %v5336_v28 = vadd.f32 %v5304_v46, %v5176_v13  ;;  %v7235_v31 = vld [vmem:[%s13471_s24 + $0x50] sm:$0xff]  ;;  %v7236_v50 = vld [vmem:[%s13471_s24 + $0x48] sm:$0xff]  ;;  %v7238_v52 = vld [vmem:[%s13471_s24 + $0x38] sm:$0xff] }
0x149d   : > { %v5497_v23 = vadd.f32 %v5465_v33, %v5337_v14  ;;  %v15280_v40 = vmov 0.0   ;;  %v7240_v33 = vld [vmem:[%s13471_s24 + $0x28] sm:$0xff]  ;;  %vm5932_vm14 = vcmask 523264  }
0x149e   : > { %5595 = vmatmul.mubr.bf16.gmra.mxu0 %v5510_v1  ;;  %v5494_v9 = vadd.f32 %v5462_v54, %v5334_v41  ;;  %v5495_v58 = vadd.f32 %v5463_v8, %v5335_v37  ;;  %v5496_v0 = vadd.f32 %v5464_v7, %v5336_v28  ;;  %v7234_v37 = vld [vmem:[%s13471_s24 + $0x58] sm:$0xff]  ;;  %v7239_v1 = vld [vmem:[%s13471_s24 + $0x30] sm:$0xff]  ;;  %v7241_v54 = vld [vmem:[%s13471_s24 + $0x20] sm:$0xff] }
0x149f   : > { %v7242_v28 = vld [vmem:[%s13471_s24 + $0x18] sm:$0xff] }
0x14a0   : > { %v5513_v59 = vpack.c.bf16 %v5497_v23, %v5495_v58  ;;  %v5512_v25 = vpack.c.bf16 %v5496_v0, %v5494_v9  ;;  %v7243_v9 = vld [vmem:[%s13471_s24 + $0x10] sm:$0xff]  ;;  %v7244_v0 = vld [vmem:[%s13471_s24 + $0x8] sm:$0xff] }
0x14a2   : > { %5602 = vmatprep.mubr.bf16.mxu0 %v5513_v59 }
0x14a6   : > { %5603 = vmatmul.mubr.bf16.gmra.mxu0 %v5512_v25  ;;  %v7245_v25 = vld [vmem:[%s13471_s24] sm:$0xff] }
0x14fe   : > { %v13235_v11 = vpop.f32.mrf.mxu0 }
0x1500   : > { %v5550_v49 = vpop.f32.mrf.mxu0 }
0x1501   : > { %v5611_v49 = vmul.f32 %v7245_v25, %v13235_v11  ;;  %v6186_v11 = vld [vmem:[%s13459_s12 + $0x28] sm:$0xff] }
0x1502   : > { %v13237_v43 = vpop.f32.mrf.mxu0 }
0x1503   : > { %v5612_v59 = vmul.f32 %v7244_v0, %v13237_v43  ;;  %v7246_v43 = vld [vmem:[%s13470_s23] sm:$0xff] }
0x1504   : > { %v5553_v60 = vpop.f32.mrf.mxu0 }
0x1505   : > { %v6188_v60 = vld [vmem:[%s13459_s12 + $0x38] sm:$0xff] }
0x150b   : > { %v13239_v55 = vpop.f32.mrf.mxu0 }
0x150c   : > { %v5613_v58 = vmul.f32 %v7243_v9, %v13239_v55  ;;  %v6187_v55 = vld [vmem:[%s13459_s12 + $0x30] sm:$0xff] }
0x150d   : > { %v5558_v22 = vpop.f32.mrf.mxu0 }
0x150e   : > { %v6185_v22 = vld [vmem:[%s13459_s12 + $0x20] sm:$0xff] }
0x150f   : > { %v13241_v6 = vpop.f32.mrf.mxu0 }
0x1510   : > { %v5614_v23 = vmul.f32 %v7242_v28, %v13241_v6 }
0x1511   : > { %v5561_v57 = vpop.f32.mrf.mxu0 }
0x1525   : > { %v13243_v16 = vpop.f32.mrf.mxu0 }
0x1526   : > { %v5615_v8 = vmul.f32 %v7241_v54, %v13243_v16  ;;  %v6130_v16 = vld [vmem:[%s13460_s13] ss:$0 sm:$0xff] }
0x1527   : > { %v5566_v32 = vpop.f32.mrf.mxu0 }
0x1528   : > { %v15283_v32 = vld [vmem:[#allocation55_spill] sm:$0xff] }
0x1529   : > { %v5567_v12 = vpop.f32.mrf.mxu0 }
0x152a   : > { %v5616_v62 = vmul.f32 %v7240_v33, %v5567_v12  ;;  %v3439_v12 = vadd.f32 %v6130_v16, %v15283_v32  ;;  %v6194_v32 = vld [vmem:[%s15287_s19] ss:$0 sm:$0xff] }
0x152b   : > { %v5569_v45 = vpop.f32.mrf.mxu0 }
0x1532   : > { %v5572_v61 = vpop.f32.mrf.mxu0 }
0x1533   : > { %v5617_v7 = vmul.f32 %v7239_v1, %v5572_v61 }
0x1534   : > { %v5574_v17 = vpop.f32.mrf.mxu0 }
0x1536   : > { %v5575_v38 = vpop.f32.mrf.mxu0 }
0x1537   : > { %v5618_v36 = vmul.f32 %v7238_v52, %v5575_v38  ;;  %v7247_v38 = vld [vmem:[%s7623_s28] sm:$0xff]  ;;  %s6121_s28 = sshll.u32 %s796_s29, 3 }
0x1538   : > { %v5577_v19 = vpop.f32.mrf.mxu0  ;;  %s798_s25 = scalar_lea.vmem [#allocation2], %s6121_s28  ;;  %s7252_s28 = sshll.u32 %s7323_s7, 4  ;;  %s7253_s28 = int_to_ptr.vmem [resolvable:$false] %s7252_s28 }
0x1539   : > { %s6022_s6 = sshll.u32 %s798_s25, 4  ;;  %s7254_s30 = scalar_lea.vmem %s7253_s28, 256  ;;  %s6023_s6 = int_to_ptr.vmem [resolvable:$true] %s6022_s6 }
0x153a   : > { %s7248_s9 = scalar_lea.vmem %s6023_s6, 128  ;;  %p7255_p0 = scmp.lt.s32.totalorder %s6023_s6, %s7253_s28 }
0x153b   : > { %p7249_p11 = scmp.ne.s32.totalorder %s6023_s6, %s7248_s9  ;;  %p7256_p1 = scmp.lt.s32.totalorder %s7254_s30, %s7248_s9 }
0x153d   : > { %p7250_p12 = pnand %p7249_p11, %p7492_p5  ;;  %p7257_p2 = por %p7256_p1, %p7255_p0 }
0x153f   : > { %p7251_p13 = pneg %p7250_p12 }
0x1541   : > { %p7258_p3 = pnand %p7257_p2, %p7251_p13 }
0x1543   : > { %v5580_v34 = vpop.f32.mrf.mxu0 }
0x1544   : > { %v5619_v4 = vmul.f32 %v7237_v56, %v5580_v34 }
0x1545   : > { %v5582_v48 = vpop.f32.mrf.mxu0 }
0x1547   : > { %v5583_v63 = vpop.f32.mrf.mxu0 }
0x1548   : > { %v5620_v41 = vmul.f32 %v7236_v50, %v5583_v63 }
0x1549   : > { %v5585_v18 = vpop.f32.mrf.mxu0 }
0x1551   : > { %v5588_v44 = vpop.f32.mrf.mxu0 }
0x1552   : > { %v5621_v24 = vmul.f32 %v7235_v31, %v5588_v44  ;;  %v5917_v31 = vld [vmem:[%s13465_s18] sm:$0xff] }
0x1553   : > { %v5590_v26 = vpop.f32.mrf.mxu0 }
0x1555   : > { %v5591_v13 = vpop.f32.mrf.mxu0 }
0x1556   : > { %v5622_v14 = vmul.f32 %v7234_v37, %v5591_v13  ;;  %v5809_v13 = vld [vmem:[%s13463_s16 + $0x18] sm:$0xff]  ;;  %v5919_v37 = vld [vmem:[%s13465_s18 + $0x10] sm:$0xff] }
0x1557   : > { %v5593_v39 = vpop.f32.mrf.mxu0 }
0x1558   : > { %v5808_v39 = vld [vmem:[%s13463_s16 + $0x10] sm:$0xff] }
0x155e   : > { %v5596_v46 = vpop.f32.mrf.mxu0 }
0x155f   : > { %v5623_v30 = vmul.f32 %v7233_v20, %v5596_v46  ;;  %v5807_v46 = vld [vmem:[%s13463_s16 + $0x8] sm:$0xff]  ;;  %v5921_v20 = vld [vmem:[%s13465_s18 + $0x20] sm:$0xff] }
0x1560   : > { %v5598_v47 = vpop.f32.mrf.mxu0 }
0x1561   : > { %v5806_v47 = vld [vmem:[%s13463_s16] sm:$0xff] }
0x1562   : > { %v5599_v35 = vpop.f32.mrf.mxu0 }
0x1563   : > { %v5624_v42 = vmul.f32 %v7232_v27, %v5599_v35  ;;  %v5923_v27 = vld [vmem:[%s13465_s18 + $0x30] sm:$0xff] }
0x1564   : > { %v5601_v51 = vpop.f32.mrf.mxu0 }
0x1566   : > { %v5604_v10 = vpop.f32.mrf.mxu0 }
0x1567   : > { %v5625_v53 = vmul.f32 %v7231_v2, %v5604_v10 }
0x1568   : > { %v5606_v21 = vpop.f32.mrf.mxu0 }
0x156a   : > { %v5607_v29 = vpop.f32.mrf.mxu0 }
0x156b   : > { %v5626_v15 = vmul.f32 %v7230_v5, %v5607_v29  ;;  %v6190_v29 = vld [vmem:[%s13461_s14] ss:$0 sm:$0xff] }
0x156c   : > { %v5609_v3 = vpop.f32.mrf.mxu0 }
0x156d   : > { %6445 = vmatpush3.msra.mxu1 %v5626_v15  ;;  %v6191_v15 = vld [vmem:[%s13462_s15] ss:$0 sm:$0xff] }
0x156e   : > { %6446 = vmatprep.subr.mxu1 %v15280_v40 }
0x156f   : > { %6447 = vmatpush3.msra.mxu1 %v5625_v53  ;;  %v5924_v53 = vld [vmem:[%s13465_s18 + $0x38] sm:$0xff] }
0x1570   : > { %6448 = vmatprep.subr.mxu1 %v15280_v40 }
0x1571   : > { %6449 = vmatpush3.msra.mxu1 %v5624_v42  ;;  %v5922_v42 = vld [vmem:[%s13465_s18 + $0x28] sm:$0xff] }
0x1572   : > { %6450 = vmatprep.subr.mxu1 %v15280_v40 }
0x1573   : > { %6451 = vmatpush3.msra.mxu1 %v5623_v30  ;;  %v5920_v30 = vld [vmem:[%s13465_s18 + $0x18] sm:$0xff] }
0x1574   : > { %6452 = vmatprep.subr.mxu1 %v15280_v40 }
0x1575   : > { %6453 = vmatpush3.msra.mxu1 %v5622_v14  ;;  %v5918_v14 = vld [vmem:[%s13465_s18 + $0x8] sm:$0xff] }
0x1576   : > { %6454 = vmatprep.subr.mxu1 %v15280_v40 }
0x1577   : > { %6455 = vmatpush3.msra.mxu1 %v5621_v24  ;;  %v6192_v24 = vld [vmem:[%s13464_s17] ss:$0 sm:$0xff] }
0x1578   : > { %6456 = vmatprep.subr.mxu1 %v15280_v40 }
0x1579   : > { %6457 = vmatpush3.msra.mxu1 %v5620_v41 }
0x157a   : > { %6458 = vmatprep.subr.mxu1 %v15280_v40 }
0x157b   : > { %6459 = vmatpush3.msra.mxu1 %v5619_v4 }
0x157c   : > { %6460 = vmatprep.subr.mxu1 %v15280_v40 }
0x157d   : > { %6461 = vmatpush3.msra.mxu1 %v5618_v36 }
0x157e   : > { %6462 = vmatprep.subr.mxu1 %v15280_v40 }
0x157f   : > { %6463 = vmatpush3.msra.mxu1 %v5617_v7 }
0x1580   : > { %6464 = vmatprep.subr.mxu1 %v15280_v40 }
0x1581   : > { %6465 = vmatpush3.msra.mxu1 %v5616_v62 }
0x1582   : > { %6466 = vmatprep.subr.mxu1 %v15280_v40 }
0x1583   : > { %6467 = vmatpush3.msra.mxu1 %v5615_v8 }
0x1584   : > { %6468 = vmatprep.subr.mxu1 %v15280_v40 }
0x1585   : > { %6469 = vmatpush3.msra.mxu1 %v5614_v23 }
0x1586   : > { %6470 = vmatprep.subr.mxu1 %v15280_v40 }
0x1587   : > { %6471 = vmatpush3.msra.mxu1 %v5613_v58 }
0x1588   : > { %6472 = vmatprep.subr.mxu1 %v15280_v40 }
0x1589   : > { %6473 = vmatpush3.msra.mxu1 %v5612_v59 }
0x158a   : > { %6474 = vmatprep.subr.mxu1 %v15280_v40 }
0x158b   : > { %6475 = vmatpush3.msra.mxu1 %v5611_v49 }
0x158c   : > { %6477 = vmatmul.mubr.f32.vlgmr.msra.gmra.mxu1 %v7246_v43  ;;  %6479 = vmatprep.subr.mxu1 %v15280_v40 }
0x158d   : > { %6480 = vmatpush3.msra.mxu1 %v6188_v60  ;;  %6487 = vmatprep.mubr.msk.f32.mxu1 %vm15281_vm5, %v15280_v40 }
0x158e   : > { %6481 = vmatprep.subr.mxu1 %v15280_v40 }
0x158f   : > { %6482 = vmatpush3.msra.mxu1 %v6187_v55  ;;  %v7322_v55 = vmov -1.0  }
0x1590   : > { %6483 = vmatprep.subr.mxu1 %v15280_v40 }
0x1591   : > { %6484 = vmatpush3.msra.mxu1 %v6186_v11 }
0x1592   : > { %6485 = vmatprep.subr.mxu1 %v15280_v40 }
0x1593   : > { %6486 = vmatpush3.msra.mxu1 %v6185_v22 }
0x1594   : > { %6490 = vmatprep.subr.mxu1 %v15280_v40 }
0x164c   : > { %v5693_v6 = vpop.f32.mrf.mxu1 }
0x164d   : > { %6488 = vmatmul.mubr.msk.f32.vlgmr.msra.gmra.mxu1 %vm15282_vm3, %v5693_v6 }
0x164e   : > { %v6478_v57 = vpop.f32.mrf.mxu1  ;;  %6498 = vmatprep.mubr.msk.f32.mxu1 %vm15281_vm5, %v15280_v40  ;;  %6491 = vmatpush3.msra.mxu1 %v5809_v13 }
0x164f   : > { %6492 = vmatprep.subr.mxu1 %v15280_v40 }
0x1650   : > { %6493 = vmatpush3.msra.mxu1 %v5808_v39 }
0x1651   : > { %6494 = vmatprep.subr.mxu1 %v15280_v40 }
0x1652   : > { %6495 = vmatpush3.msra.mxu1 %v5807_v46 }
0x1653   : > { %6496 = vmatprep.subr.mxu1 %v15280_v40 }
0x1654   : > { %6497 = vmatpush3.msra.mxu1 %v5806_v47 }
0x1655   : > { %6501 = vmatprep.subr.mxu1 %v15280_v40 }
0x170d   : > { %v5771_v45 = vpop.f32.mrf.mxu1 }
0x170e   : > { %v5775_v61 = vadd.f32 %v5771_v45, %v3439_v12 }
0x170f   : > { %v6489_v17 = vpop.f32.mrf.mxu1 }
0x1710   : > { %v13343_v19 = vadd.f32 %v7247_v38, %v5775_v61 }
0x1712   : > { %v5779_v34 = vsel %vm15284_vm0, %v13343_v19, 0.0 }
0x1713   : > { %5780 = vadd.xlane.f32.xlu0 %v5779_v34 }
0x179c   : > { %v5781_v48 = vpop.xlane.xlu0 %5780 }
0x179d   : > { %v5782_v63 = vmul.f32 0.03125, %v5781_v48 }
0x179f   : > { %v5783_v18 = vsub.f32 %v13343_v19, %v5782_v63 }
0x17a1   : > { %v5784_v44 = vmul.f32 %v5783_v18, %v5783_v18 }
0x17a3   : > { %v5785_v26 = vsel %vm15285_vm13, %v5784_v44, 0.0 }
0x17a4   : > { %5786 = vadd.xlane.f32.xlu1 %v5785_v26 }
0x182d   : > { %v5787_v35 = vpop.xlane.xlu1 %5786 }
0x182e   : > { %v5788_v51 = vmul.f32 0.03125, %v5787_v35 }
0x1830   : > { %v5789_v10 = vadd.f32 1e-05, %v5788_v51 }
0x1832   : > { %7185 = vrsqrt.f32 %v5789_v10 }
0x183f   : > { %v7186_v21 = vpop.eup %7185 }
0x1840   : > { %v5791_v5 = vmul.f32 %v7186_v21, %v5783_v18 }
0x1842   : > { %v5798_v3 = vmul.f32 %v6190_v29, %v5791_v5 }
0x1844   : > { %v5805_v2 = vadd.f32 %v6191_v15, %v5798_v3 }
0x1846   : > { %6499 = vmatmul.mubr.msk.f32.vlgmr.msra.gmra.mxu1 %vm15286_vm2, %v5805_v2 }
0x1847   : > { %6517 = vmatprep.mubr.msk.f32.mxu1 %vm15281_vm5, %v15280_v40  ;;  %6502 = vmatpush3.msra.mxu1 %v5924_v53 }
0x1848   : > { %6503 = vmatprep.subr.mxu1 %v15280_v40 }
0x1849   : > { %6504 = vmatpush3.msra.mxu1 %v5923_v27 }
0x184a   : > { %6505 = vmatprep.subr.mxu1 %v15280_v40 }
0x184b   : > { %6506 = vmatpush3.msra.mxu1 %v5922_v42 }
0x184c   : > { %6507 = vmatprep.subr.mxu1 %v15280_v40 }
0x184d   : > { %6508 = vmatpush3.msra.mxu1 %v5921_v20 }
0x184e   : > { %6509 = vmatprep.subr.mxu1 %v15280_v40 }
0x184f   : > { %6510 = vmatpush3.msra.mxu1 %v5920_v30 }
0x1850   : > { %6511 = vmatprep.subr.mxu1 %v15280_v40 }
0x1851   : > { %6512 = vmatpush3.msra.mxu1 %v5919_v37 }
0x1852   : > { %6513 = vmatprep.subr.mxu1 %v15280_v40 }
0x1853   : > { %6514 = vmatpush3.msra.mxu1 %v5918_v14 }
0x1854   : > { %6515 = vmatprep.subr.mxu1 %v15280_v40 }
0x1855   : > { %6516 = vmatpush3.msra.mxu1 %v5917_v31 }
0x1906   : > { %v5886_v50 = vpop.f32.mrf.mxu1 }
0x1907   : > { %v5887_v41 = vadd.f32 %v6192_v24, %v5886_v50 }
0x1908   : > { %v6500_v56 = vpop.f32.mrf.mxu1 }
0x1909   : > { %v5891_v4 = vmul.f32 0.70710677, %v5887_v41  ;;  %v5890_v6 = vmul.f32 0.5, %v5887_v41 }
0x190b   : > { %v5894_v52 = vand.u32 2147483647, %v5891_v4  ;;  %vm5892_vm7 = vcmp.ge.f32.partialorder %v5891_v4, 0.0 }
0x190c   : > { %v5893_v11 = vsel %vm5892_vm7, 1.0, %v7322_v55 }
0x190d   : > { %v5895_v36 = vmul.f32 0.3275911, %v5894_v52  ;;  %v5908_v7 = vsub.f32 0.0, %v5894_v52 }
0x190f   : > { %v5896_v1 = vadd.f32 1.0, %v5895_v36  ;;  %v5909_v33 = vmul.f32 %v5908_v7, %v5894_v52 }
0x1911   : > { %7187 = vrcp.f32 %v5896_v1  ;;  %v5910_v8 = vmul.f32 1.442695, %v5909_v33 }
0x1913   : > { %7189 = vpow2.f32 %v5910_v8 }
0x191e   : > { %v7188_v62 = vpop.eup %7187 }
0x191f   : > { %v5899_v54 = vmul.f32 1.0614054, %v7188_v62 }
0x1920   : > { %v7190_v49 = vpop.eup %7189 }
0x1921   : > { %v5900_v28 = vadd.f32 -1.4531521, %v5899_v54 }
0x1923   : > { %v5901_v40 = vmul.f32 %v7188_v62, %v5900_v28 }
0x1925   : > { %v5902_v23 = vadd.f32 1.4214138, %v5901_v40 }
0x1927   : > { %v5903_v9 = vmul.f32 %v7188_v62, %v5902_v23 }
0x1929   : > { %v5904_v58 = vadd.f32 -0.28449672, %v5903_v9 }
0x192b   : > { %v5905_v0 = vmul.f32 %v7188_v62, %v5904_v58 }
0x192d   : > { %v5906_v59 = vadd.f32 0.2548296, %v5905_v0 }
0x192f   : > { %v5907_v25 = vmul.f32 %v7188_v62, %v5906_v59 }
0x1931   : > { %v5912_v60 = vmul.f32 %v7190_v49, %v5907_v25 }
0x1933   : > { %v5913_v43 = vsub.f32 1.0, %v5912_v60 }
0x1935   : > { %v5914_v22 = vmul.f32 %v5913_v43, %v5893_v11 }
0x1937   : > { %v5915_v57 = vadd.f32 1.0, %v5914_v22 }
0x1939   : > { %v5916_v16 = vmul.f32 %v5915_v57, %v5890_v6 }
0x193b   : > { %6518 = vmatmul.mubr.msk.f32.vlgmr.msra.gmra.mxu1 %vm5932_vm14, %v5916_v16 }
0x19fb   : > { %v6002_v12 = vpop.f32.mrf.mxu1 }
0x19fc   : > { %v6003_v45 = vadd.f32 %v6194_v32, %v6002_v12 }
0x19fd   : > { %v6519_v61 = vpop.f32.mrf.mxu1 }
0x19fe   : > { %v6006_v17 = vadd.f32 %v6003_v45, %v13343_v19 }
0x1a00   : > { %6007 = vst.msk [vmem:[%s798_s25] sm:$0xff] %vm15289_vm10, %v6006_v17 }
0x1a01   : > { %7261 = shalt.err (!%p7258_p3)
}
0x1a02   : > { %s7262_s26 = scalar_lea.hbm %s6020_s3, 128  ;;  %s7266_s27 = scalar_lea.hbm %s15288_s5, 256 }
0x1a03   : > { %p7263_p4 = scmp.ne.s32.totalorder %s6020_s3, %s7262_s26  ;;  %p7267_p9 = scmp.lt.s32.totalorder %s6020_s3, %s15288_s5 }
0x1a04   : > { %p7268_p10 = scmp.lt.s32.totalorder %s7266_s27, %s7262_s26 }
0x1a05   : > { %p7264_p7 = pnand %p7263_p4, %p7492_p5 }
0x1a06   : > { %p7269_p11 = por %p7268_p10, %p7267_p9 }
0x1a07   : > { %p7265_p8 = pneg %p7264_p7 }
0x1a09   : > { %p7270_p12 = pnand %p7269_p11, %p7265_p8 }
0x1a0b   : > { %7273 = shalt.err (!%p7270_p12)
}
0x1a0c   : > { %6588 = dma.vmem_to_hbm [thread:$0]  (%p7492_p5), %s6023_s6, 128, %s6020_s3, %s6009_s1  }
0x1a0d PF: > { %s15290_s0 = sld [smem:[#allocation7_spill]] }
0x1a0e   : > { %s15291_s9 = sld [smem:[#allocation5_spill]] }
0x1a13   : > { %p6594_p13 = scmp.ge.s32.totalorder %s15290_s0, 2 }
0x1a14   : > { %s6034_s28 = sand.u32 1, %s15291_s9  }
0x1a15   : > { %p6591_p0 = pnand %p6594_p13, %p7496_p6  ;;  %s6035_s30 = scalar_lea.sflag [#allocation3], %s6034_s28 }
0x1a17   : > { %p6592_p1 = pneg %p6591_p0 }
0x1a19   : > { %7291 = dma.done.wait (%p6592_p1), %s6035_s30, 128  }
0x1a1a   : > { %7293 = vsyncadd (%p6592_p1), %s6035_s30, 4294967168  ;;  %s15293_s30 = sld [smem:[#allocation8_spill]]  ;;  %s15296_s29 = smov %s7300_s2 }
0x1a1b   : > { %s15294_s26 = sld [smem:[#allocation6_spill]] }
0x1a1c   : > { %s15295_s6 = sld [smem:[#allocation9_spill]] }
0x1a20   : > { %p35_p2 = scmp.ge.s32.totalorder %s15293_s30, 4  }
0x1a21   : > { %s15297_s2 = smov %s15294_s26 }
0x1a22   :  { %37 = sbr.rel (!%p35_p2) target bundleno = 16 (0x10), region = 165 }
0x1a27   :  { %6040 = vsyncpa [#allocation3], 1 }
0x1a28   :  { %6042 = vsyncpa [#allocation3 + $0x1], 1 }

</bundles_post_ra>
